<compile_context>
chip_gen: v7x
topology: tpu7x:2x2x1
jax: 0.10.0
libtpu: 0.0.40
codegen_flags: <defaults>
</compile_context>

<pallas_src>
import jax
import jax.numpy as jnp
from jax.experimental import pallas as pl
from jax.experimental.pallas import tpu as pltpu

Z_DIM = 10
IM_CHAN = 1
HIDDEN = 64
BN_EPS = 1e-5

TILE_M = 512            # pass-A tile along M = N*Ho*Wo (sublane axis)
TILE_M_FINAL = 2048     # final-layer tile along M (lane axis of the transposed matmul)
VMEM_LIMIT_BYTES = 48 * 1024 * 1024   # < v7x's 64 MiB/TC; plenty on v5e/v6e (128 MiB)

# bf16 halves the patch/intermediate HBM traffic (the binding resource) and
# doubles MXU rate on every generation; accumulation and epilogues stay f32.
# Set to jnp.float32 for a bit-closer match to the PyTorch f32 reference.
COMPUTE_DTYPE = jnp.bfloat16


def _round_up(x, m):
    return (x + m - 1) // m * m


# ---------------------------------------------------------------------------
# Kernels
# ---------------------------------------------------------------------------
def _matmul_stats_kernel(p_ref, w_ref, y_ref, stats_ref):
    """One M tile of a gen block: x = P @ W (bias-free; the ConvT bias cancels
    exactly under train-mode BatchNorm).  Emits the tile result plus per-tile
    per-channel (sum, sum-of-squares) partials.  Zero-padded tail rows of P
    contribute exactly zero, so no masking is needed, and the M grid axis is
    fully parallel (partials are reduced in XLA)."""
    x = jnp.dot(p_ref[...], w_ref[...], preferred_element_type=jnp.float32)
    y_ref[...] = x.astype(y_ref.dtype)
    stats_ref[...] = jnp.zeros_like(stats_ref)
    stats_ref[0:1, :] = jnp.sum(x, axis=0, keepdims=True)        # per-channel sum
    stats_ref[1:2, :] = jnp.sum(x * x, axis=0, keepdims=True)    # per-channel sumsq


def _matvec_tanh_kernel(pt_ref, w_ref, b_ref, o_ref):
    """Final layer, transposed: out^T = tanh(W^T @ P^T + b).  Cout = 1, so the
    output block is (1, tm) with M on the lane axis -- lane-dense stores with
    zero padding writeback.  W^T is padded to 8 rows (rows 1..7 are zero)."""
    y = jnp.dot(w_ref[...], pt_ref[...], preferred_element_type=jnp.float32)  # (8, tm)
    o_ref[...] = jnp.tanh(y[0:1, :] + b_ref[0])


# ---------------------------------------------------------------------------
# Layout glue (plain JAX)
# ---------------------------------------------------------------------------
def _dilate_pad(x_nhwc, k, stride):
    """ConvTranspose2d(k, stride, padding=0) == dilate by `stride`, pad by
    (k-1) on each side, then a stride-1 correlation with the flipped kernel."""
    n, h, w, cin = x_nhwc.shape
    hd, wd = (h - 1) * stride + 1, (w - 1) * stride + 1
    xd = jnp.zeros((n, hd, wd, cin), x_nhwc.dtype)
    xd = xd.at[:, ::stride, ::stride, :].set(x_nhwc)
    xp = jnp.pad(xd, ((0, 0), (k - 1, k - 1), (k - 1, k - 1), (0, 0)))
    return xp, hd + k - 1, wd + k - 1        # Ho = (H-1)*stride + k (matches PyTorch)


# TODO(synk): the patch gather below is still XLA glue (k^2-inflated HBM copy
# feeding the kernels); a stride-phase / in-kernel gather formulation of the
# transposed conv would remove that traffic and is the main remaining win.
def _im2col(x_nhwc, k, stride):
    """(M, k*k*Cin) patch matrix, M = N*Ho*Wo, columns ordered (kh, kw, cin)."""
    n, _, _, cin = x_nhwc.shape
    xp, ho, wo = _dilate_pad(x_nhwc, k, stride)
    patches = jnp.concatenate(
        [xp[:, i:i + ho, j:j + wo, :] for i in range(k) for j in range(k)], axis=-1)
    return patches.reshape(n * ho * wo, k * k * cin), ho, wo


def _im2col_t(x_nhwc, k, stride):
    """K-major patches (k*k*Cin, M) for the transposed final-layer matmul."""
    n, _, _, cin = x_nhwc.shape
    xp, ho, wo = _dilate_pad(x_nhwc, k, stride)
    m = n * ho * wo
    cols = [xp[:, i:i + ho, j:j + wo, :].transpose(3, 0, 1, 2).reshape(cin, m)
            for i in range(k) for j in range(k)]
    return jnp.concatenate(cols, axis=0), ho, wo


# ---------------------------------------------------------------------------
# Layer wrappers
# ---------------------------------------------------------------------------
def gen_block(x_nhwc, blk):
    """ConvTranspose2d + BatchNorm2d (train-mode batch statistics) + ReLU.
    Pallas pass: tiled matmul + per-tile stats partials ("parallel" M grid).
    The tiny stats reduction and per-channel scale/shift + ReLU are applied in
    XLA where they fuse with the next layer's patch construction."""
    n = x_nhwc.shape[0]
    cout = blk["cout"]
    kp, cout_pad = blk["wm"].shape

    p, ho, wo = _im2col(x_nhwc, blk["k"], blk["stride"])
    m = p.shape[0]
    tm = min(TILE_M, _round_up(m, 8))
    mp = _round_up(m, tm)
    p = jnp.pad(p, ((0, mp - m), (0, kp - p.shape[1]))).astype(COMPUTE_DTYPE)
    grid = mp // tm

    y, stats = pl.pallas_call(
        _matmul_stats_kernel,
        out_shape=(jax.ShapeDtypeStruct((mp, cout_pad), COMPUTE_DTYPE),
                   jax.ShapeDtypeStruct((grid * 8, cout_pad), jnp.float32)),
        grid_spec=pltpu.PrefetchScalarGridSpec(
            num_scalar_prefetch=0, grid=(grid,),
            in_specs=[pl.BlockSpec((tm, kp), lambda i: (i, 0)),
                      pl.BlockSpec((kp, cout_pad), lambda i: (0, 0))],
            out_specs=(pl.BlockSpec((tm, cout_pad), lambda i: (i, 0)),
                       pl.BlockSpec((8, cout_pad), lambda i: (i, 0)))),
        compiler_params=pltpu.CompilerParams(
            dimension_semantics=("parallel",),
            vmem_limit_bytes=VMEM_LIMIT_BYTES),
    )(p, blk["wm"])

    # Exact batch statistics from the per-tile partials (tiny: grid x 2 x Cout).
    st = stats.reshape(grid, 8, cout_pad)[:, :2, :cout]
    mean = st[:, 0, :].sum(axis=0) / m
    var = jnp.maximum(st[:, 1, :].sum(axis=0) / m - mean * mean, 0.0)  # biased var
    # ConvT bias cancels exactly under train-mode BN: (x+b) - mean(x+b) == x - mean(x).
    scale = blk["gamma"] * jax.lax.rsqrt(var + BN_EPS)
    shift = blk["beta"] - mean * scale
    act = jnp.maximum(y[:m, :cout].astype(jnp.float32) * scale + shift, 0.0)
    return act.reshape(n, ho, wo, cout).astype(COMPUTE_DTYPE)


def final_block(x_nhwc, blk):
    """ConvTranspose2d + Tanh, computed transposed so the Cout=1 output is
    lane-dense along M with zero padding writeback."""
    n = x_nhwc.shape[0]
    kp = blk["w_t"].shape[1]

    pt, ho, wo = _im2col_t(x_nhwc, blk["k"], blk["stride"])
    m = pt.shape[1]
    tm = min(TILE_M_FINAL, _round_up(m, 128))
    mp = _round_up(m, tm)
    pt = jnp.pad(pt, ((0, kp - pt.shape[0]), (0, mp - m))).astype(COMPUTE_DTYPE)

    y = pl.pallas_call(
        _matvec_tanh_kernel,
        out_shape=jax.ShapeDtypeStruct((1, mp), jnp.float32),
        grid_spec=pltpu.PrefetchScalarGridSpec(
            num_scalar_prefetch=0, grid=(mp // tm,),
            in_specs=[pl.BlockSpec((kp, tm), lambda i: (0, i)),
                      pl.BlockSpec((8, kp), lambda i: (0, 0)),
                      pl.BlockSpec(memory_space=pltpu.MemorySpace.SMEM)],
            out_specs=pl.BlockSpec((1, tm), lambda i: (0, i))),
        compiler_params=pltpu.CompilerParams(
            dimension_semantics=("parallel",),
            vmem_limit_bytes=VMEM_LIMIT_BYTES),
    )(pt, blk["w_t"], blk["b"])

    return y[0, :m].reshape(n, ho, wo, 1)


# ---------------------------------------------------------------------------
# Parameters & forward
# ---------------------------------------------------------------------------
def _prep_weight(wt, cout_pad):
    """PyTorch ConvTranspose2d weight (Cin, Cout, k, k) -> matmul-ready
    (round_up(k*k*Cin, 128), cout_pad): spatial flip, reorder rows to
    (kh, kw, cin) matching the patch layout, zero-pad for lane alignment."""
    cin, cout, k, _ = wt.shape
    wm = jnp.flip(wt, axis=(2, 3)).transpose(2, 3, 0, 1).reshape(k * k * cin, cout)
    kp = _round_up(k * k * cin, 128)
    wm = jnp.pad(wm, ((0, kp - k * k * cin), (0, cout_pad - cout)))
    return wm.astype(COMPUTE_DTYPE)


def init_params(key):
    """Deterministic synthetic parameters; shapes follow nn.ConvTranspose2d /
    nn.BatchNorm2d from the reference __init__.  Weights are converted to the
    matmul-ready padded layout once here (not per forward call)."""
    layer_defs = [
        (Z_DIM, HIDDEN * 4, 3, 2, False),       # make_gen_block(z_dim, 256)
        (HIDDEN * 4, HIDDEN * 2, 4, 1, False),  # make_gen_block(256, 128, k=4, s=1)
        (HIDDEN * 2, HIDDEN, 3, 2, False),      # make_gen_block(128, 64)
        (HIDDEN, IM_CHAN, 4, 2, True),          # make_gen_block(64, 1, k=4, final)
    ]
    params = []
    for cin, cout, k, stride, final in layer_defs:
        key, k1, k2, k3, k4 = jax.random.split(key, 5)
        wt = 0.05 * jax.random.normal(k1, (cin, cout, k, k), jnp.float32)
        b = 0.05 * jax.random.normal(k2, (cout,), jnp.float32)
        if final:
            wm = _prep_weight(wt, cout)                       # (kp, 1)
            w_t = jnp.pad(wm.T, ((0, 8 - cout), (0, 0)))      # (8, kp), rows 1..7 zero
            blk = dict(w_t=w_t, b=b.reshape(1), k=k, stride=stride,
                       cout=cout, final=True)
        else:
            # Lane-dense pass-A outputs: pad Cout (layer 3's 64 -> 128) in the
            # weight only; gamma/beta stay unpadded (scale/shift applied in XLA).
            # The ConvT bias `b` is mathematically cancelled by train-mode BN.
            blk = dict(wm=_prep_weight(wt, _round_up(cout, 128)),
                       gamma=1.0 + 0.1 * jax.random.normal(k3, (cout,), jnp.float32),
                       beta=0.1 * jax.random.normal(k4, (cout,), jnp.float32),
                       k=k, stride=stride, cout=cout, final=False)
        params.append(blk)
    return params


def generator_forward(noise, params):
    n = noise.shape[0]
    # noise.view(N, z_dim, 1, 1) in NCHW  <=>  (N, 1, 1, z_dim) in NHWC
    x = noise.reshape(n, 1, 1, Z_DIM).astype(COMPUTE_DTYPE)
    for blk in params:
        x = final_block(x, blk) if blk["final"] else gen_block(x, blk)
    # back to NCHW to match the PyTorch output convention
    return jnp.transpose(x, (0, 3, 1, 2)).astype(jnp.float32)


if __name__ == "__main__":
    key = jax.random.PRNGKey(0)
    kparam, knoise = jax.random.split(key)
    params = init_params(kparam)

    noise = jax.random.normal(knoise, (2, Z_DIM), jnp.float32)
    fwd = jax.jit(lambda z: generator_forward(z, params))
    out = jax.block_until_ready(fwd(noise))

    assert out.shape == (2, IM_CHAN, 28, 28), out.shape
    assert out.dtype == jnp.float32
    assert bool(jnp.all(jnp.isfinite(out)))
    assert bool(jnp.all(jnp.abs(out) <= 1.0))  # tanh output range
    print("KERNEL_OK")
</pallas_src>

<mosaic_0001>
module attributes {stable_mosaic.version = 11 : i64} {
  func.func @_matmul_stats_kernel(%arg0: i32, %arg1: memref<24x128xbf16, #tpu.memory_space<vmem>>, %arg2: memref<128x256xbf16, #tpu.memory_space<vmem>>, %arg3: memref<24x256xbf16, #tpu.memory_space<vmem>>, %arg4: memref<8x256xf32, #tpu.memory_space<vmem>>) attributes {dimension_semantics = [#tpu.dimension_semantics<parallel>], iteration_bounds = array<i64: 1>, scalar_prefetch = 0 : i64, scratch_operands = 0 : i64, tpu.core_type = #tpu.core_type<tc>, window_params = [{transform_indices = @transform_0, window_bounds = array<i64: 24, 128>}, {pipeline_mode = #tpu.pipeline_mode<synchronous>, transform_indices = @transform_1, window_bounds = array<i64: 128, 256>}, {transform_indices = @transform_2, window_bounds = array<i64: 24, 256>}, {transform_indices = @transform_3, window_bounds = array<i64: 8, 256>}]} {
    %c0 = arith.constant 0 : index
    %c0_0 = arith.constant 0 : index
    %0 = vector.load %arg1[%c0, %c0_0] : memref<24x128xbf16, #tpu.memory_space<vmem>>, vector<24x128xbf16>
    %c0_1 = arith.constant 0 : index
    %c0_2 = arith.constant 0 : index
    %1 = vector.load %arg2[%c0_1, %c0_2] : memref<128x256xbf16, #tpu.memory_space<vmem>>, vector<128x256xbf16>
    %cst = arith.constant dense<0.000000e+00> : vector<24x256xf32>
    %2 = tpu.matmul %0, %1, %cst {dimension_numbers = #tpu.dot_dimension_numbers<[1], [0], [0], [1], [0, 0, 1, 1], [], []>} : vector<24x128xbf16>, vector<128x256xbf16>, vector<24x256xf32> -> vector<24x256xf32>
    %3 = arith.truncf %2 : vector<24x256xf32> to vector<24x256xbf16>
    %c0_3 = arith.constant 0 : index
    %c0_4 = arith.constant 0 : index
    %4 = vector.load %arg3[%c0_3, %c0_4] : memref<24x256xbf16, #tpu.memory_space<vmem>>, vector<24x256xbf16>
    tpu.vector_store %arg3[%c0_3, %c0_4], %3 {strides = array<i32>} : memref<24x256xbf16, #tpu.memory_space<vmem>>, vector<24x256xbf16>,
    %cst_5 = arith.constant 0.000000e+00 : f32
    %5 = vector.broadcast %cst_5 : f32 to vector<8x256xf32>
    %c0_6 = arith.constant 0 : index
    %c0_7 = arith.constant 0 : index
    %6 = vector.load %arg4[%c0_6, %c0_7] : memref<8x256xf32, #tpu.memory_space<vmem>>, vector<8x256xf32>
    tpu.vector_store %arg4[%c0_6, %c0_7], %5 {strides = array<i32>} : memref<8x256xf32, #tpu.memory_space<vmem>>, vector<8x256xf32>,
    %cst_8 = arith.constant dense<0.000000e+00> : vector<256xf32>
    %7 = vector.multi_reduction <add>, %2, %cst_8 [0] : vector<24x256xf32> to vector<256xf32>
    %8 = vector.shape_cast %7 : vector<256xf32> to vector<1x256xf32>
    %c0_9 = arith.constant 0 : index
    %c0_10 = arith.constant 0 : index
    %9 = vector.load %arg4[%c0_9, %c0_10] : memref<8x256xf32, #tpu.memory_space<vmem>>, vector<1x256xf32>
    tpu.vector_store %arg4[%c0_9, %c0_10], %8 {strides = array<i32>} : memref<8x256xf32, #tpu.memory_space<vmem>>, vector<1x256xf32>,
    %10 = arith.mulf %2, %2 : vector<24x256xf32>
    %cst_11 = arith.constant dense<0.000000e+00> : vector<256xf32>
    %11 = vector.multi_reduction <add>, %10, %cst_11 [0] : vector<24x256xf32> to vector<256xf32>
    %12 = vector.shape_cast %11 : vector<256xf32> to vector<1x256xf32>
    %c1 = arith.constant 1 : index
    %c0_12 = arith.constant 0 : index
    %13 = vector.load %arg4[%c1, %c0_12] : memref<8x256xf32, #tpu.memory_space<vmem>>, vector<1x256xf32>
    tpu.vector_store %arg4[%c1, %c0_12], %12 {strides = array<i32>} : memref<8x256xf32, #tpu.memory_space<vmem>>, vector<1x256xf32>,
    return
  }
  func.func @transform_0(%arg0: i32) -> (i32, i32) {
    %c0_i32 = arith.constant 0 : i32
    %c0_i32_0 = arith.constant 0 : i32
    return %arg0, %c0_i32 : i32, i32
  }
  func.func @transform_1(%arg0: i32) -> (i32, i32) {
    %c0_i32 = arith.constant 0 : i32
    %c0_i32_0 = arith.constant 0 : i32
    %c0_i32_1 = arith.constant 0 : i32
    return %c0_i32, %c0_i32_0 : i32, i32
  }
  func.func @transform_2(%arg0: i32) -> (i32, i32) {
    %c0_i32 = arith.constant 0 : i32
    %c0_i32_0 = arith.constant 0 : i32
    return %arg0, %c0_i32 : i32, i32
  }
  func.func @transform_3(%arg0: i32) -> (i32, i32) {
    %c0_i32 = arith.constant 0 : i32
    %c0_i32_0 = arith.constant 0 : i32
    return %arg0, %c0_i32 : i32, i32
  }
}

module attributes {stable_mosaic.version = 11 : i64} {
  func.func @_matmul_stats_kernel(%arg0: i32, %arg1: memref<72x4096xbf16, #tpu.memory_space<vmem>>, %arg2: memref<4096x128xbf16, #tpu.memory_space<vmem>>, %arg3: memref<72x128xbf16, #tpu.memory_space<vmem>>, %arg4: memref<8x128xf32, #tpu.memory_space<vmem>>) attributes {dimension_semantics = [#tpu.dimension_semantics<parallel>], iteration_bounds = array<i64: 1>, scalar_prefetch = 0 : i64, scratch_operands = 0 : i64, tpu.core_type = #tpu.core_type<tc>, window_params = [{transform_indices = @transform_0, window_bounds = array<i64: 72, 4096>}, {pipeline_mode = #tpu.pipeline_mode<synchronous>, transform_indices = @transform_1, window_bounds = array<i64: 4096, 128>}, {transform_indices = @transform_2, window_bounds = array<i64: 72, 128>}, {transform_indices = @transform_3, window_bounds = array<i64: 8, 128>}]} {
    %c0 = arith.constant 0 : index
    %c0_0 = arith.constant 0 : index
    %0 = vector.load %arg1[%c0, %c0_0] : memref<72x4096xbf16, #tpu.memory_space<vmem>>, vector<72x4096xbf16>
    %c0_1 = arith.constant 0 : index
    %c0_2 = arith.constant 0 : index
    %1 = vector.load %arg2[%c0_1, %c0_2] : memref<4096x128xbf16, #tpu.memory_space<vmem>>, vector<4096x128xbf16>
    %cst = arith.constant dense<0.000000e+00> : vector<72x128xf32>
    %2 = tpu.matmul %0, %1, %cst {dimension_numbers = #tpu.dot_dimension_numbers<[1], [0], [0], [1], [0, 0, 1, 1], [], []>} : vector<72x4096xbf16>, vector<4096x128xbf16>, vector<72x128xf32> -> vector<72x128xf32>
    %3 = arith.truncf %2 : vector<72x128xf32> to vector<72x128xbf16>
    %c0_3 = arith.constant 0 : index
    %c0_4 = arith.constant 0 : index
    %4 = vector.load %arg3[%c0_3, %c0_4] : memref<72x128xbf16, #tpu.memory_space<vmem>>, vector<72x128xbf16>
    tpu.vector_store %arg3[%c0_3, %c0_4], %3 {strides = array<i32>} : memref<72x128xbf16, #tpu.memory_space<vmem>>, vector<72x128xbf16>,
    %cst_5 = arith.constant 0.000000e+00 : f32
    %5 = vector.broadcast %cst_5 : f32 to vector<8x128xf32>
    %c0_6 = arith.constant 0 : index
    %c0_7 = arith.constant 0 : index
    %6 = vector.load %arg4[%c0_6, %c0_7] : memref<8x128xf32, #tpu.memory_space<vmem>>, vector<8x128xf32>
    tpu.vector_store %arg4[%c0_6, %c0_7], %5 {strides = array<i32>} : memref<8x128xf32, #tpu.memory_space<vmem>>, vector<8x128xf32>,
    %cst_8 = arith.constant dense<0.000000e+00> : vector<128xf32>
    %7 = vector.multi_reduction <add>, %2, %cst_8 [0] : vector<72x128xf32> to vector<128xf32>
    %8 = vector.shape_cast %7 : vector<128xf32> to vector<1x128xf32>
    %c0_9 = arith.constant 0 : index
    %c0_10 = arith.constant 0 : index
    %9 = vector.load %arg4[%c0_9, %c0_10] : memref<8x128xf32, #tpu.memory_space<vmem>>, vector<1x128xf32>
    tpu.vector_store %arg4[%c0_9, %c0_10], %8 {strides = array<i32>} : memref<8x128xf32, #tpu.memory_space<vmem>>, vector<1x128xf32>,
    %10 = arith.mulf %2, %2 : vector<72x128xf32>
    %cst_11 = arith.constant dense<0.000000e+00> : vector<128xf32>
    %11 = vector.multi_reduction <add>, %10, %cst_11 [0] : vector<72x128xf32> to vector<128xf32>
    %12 = vector.shape_cast %11 : vector<128xf32> to vector<1x128xf32>
    %c1 = arith.constant 1 : index
    %c0_12 = arith.constant 0 : index
    %13 = vector.load %arg4[%c1, %c0_12] : memref<8x128xf32, #tpu.memory_space<vmem>>, vector<1x128xf32>
    tpu.vector_store %arg4[%c1, %c0_12], %12 {strides = array<i32>} : memref<8x128xf32, #tpu.memory_space<vmem>>, vector<1x128xf32>,
    return
  }
  func.func @transform_0(%arg0: i32) -> (i32, i32) {
    %c0_i32 = arith.constant 0 : i32
    %c0_i32_0 = arith.constant 0 : i32
    return %arg0, %c0_i32 : i32, i32
  }
  func.func @transform_1(%arg0: i32) -> (i32, i32) {
    %c0_i32 = arith.constant 0 : i32
    %c0_i32_0 = arith.constant 0 : i32
    %c0_i32_1 = arith.constant 0 : i32
    return %c0_i32, %c0_i32_0 : i32, i32
  }
  func.func @transform_2(%arg0: i32) -> (i32, i32) {
    %c0_i32 = arith.constant 0 : i32
    %c0_i32_0 = arith.constant 0 : i32
    return %arg0, %c0_i32 : i32, i32
  }
  func.func @transform_3(%arg0: i32) -> (i32, i32) {
    %c0_i32 = arith.constant 0 : i32
    %c0_i32_0 = arith.constant 0 : i32
    return %arg0, %c0_i32 : i32, i32
  }
}

module attributes {stable_mosaic.version = 11 : i64} {
  func.func @_matmul_stats_kernel(%arg0: i32, %arg1: memref<344x1152xbf16, #tpu.memory_space<vmem>>, %arg2: memref<1152x128xbf16, #tpu.memory_space<vmem>>, %arg3: memref<344x128xbf16, #tpu.memory_space<vmem>>, %arg4: memref<8x128xf32, #tpu.memory_space<vmem>>) attributes {dimension_semantics = [#tpu.dimension_semantics<parallel>], iteration_bounds = array<i64: 1>, scalar_prefetch = 0 : i64, scratch_operands = 0 : i64, tpu.core_type = #tpu.core_type<tc>, window_params = [{transform_indices = @transform_0, window_bounds = array<i64: 344, 1152>}, {pipeline_mode = #tpu.pipeline_mode<synchronous>, transform_indices = @transform_1, window_bounds = array<i64: 1152, 128>}, {transform_indices = @transform_2, window_bounds = array<i64: 344, 128>}, {transform_indices = @transform_3, window_bounds = array<i64: 8, 128>}]} {
    %c0 = arith.constant 0 : index
    %c0_0 = arith.constant 0 : index
    %0 = vector.load %arg1[%c0, %c0_0] : memref<344x1152xbf16, #tpu.memory_space<vmem>>, vector<344x1152xbf16>
    %c0_1 = arith.constant 0 : index
    %c0_2 = arith.constant 0 : index
    %1 = vector.load %arg2[%c0_1, %c0_2] : memref<1152x128xbf16, #tpu.memory_space<vmem>>, vector<1152x128xbf16>
    %cst = arith.constant dense<0.000000e+00> : vector<344x128xf32>
    %2 = tpu.matmul %0, %1, %cst {dimension_numbers = #tpu.dot_dimension_numbers<[1], [0], [0], [1], [0, 0, 1, 1], [], []>} : vector<344x1152xbf16>, vector<1152x128xbf16>, vector<344x128xf32> -> vector<344x128xf32>
    %3 = arith.truncf %2 : vector<344x128xf32> to vector<344x128xbf16>
    %c0_3 = arith.constant 0 : index
    %c0_4 = arith.constant 0 : index
    %4 = vector.load %arg3[%c0_3, %c0_4] : memref<344x128xbf16, #tpu.memory_space<vmem>>, vector<344x128xbf16>
    tpu.vector_store %arg3[%c0_3, %c0_4], %3 {strides = array<i32>} : memref<344x128xbf16, #tpu.memory_space<vmem>>, vector<344x128xbf16>,
    %cst_5 = arith.constant 0.000000e+00 : f32
    %5 = vector.broadcast %cst_5 : f32 to vector<8x128xf32>
    %c0_6 = arith.constant 0 : index
    %c0_7 = arith.constant 0 : index
    %6 = vector.load %arg4[%c0_6, %c0_7] : memref<8x128xf32, #tpu.memory_space<vmem>>, vector<8x128xf32>
    tpu.vector_store %arg4[%c0_6, %c0_7], %5 {strides = array<i32>} : memref<8x128xf32, #tpu.memory_space<vmem>>, vector<8x128xf32>,
    %cst_8 = arith.constant dense<0.000000e+00> : vector<128xf32>
    %7 = vector.multi_reduction <add>, %2, %cst_8 [0] : vector<344x128xf32> to vector<128xf32>
    %8 = vector.shape_cast %7 : vector<128xf32> to vector<1x128xf32>
    %c0_9 = arith.constant 0 : index
    %c0_10 = arith.constant 0 : index
    %9 = vector.load %arg4[%c0_9, %c0_10] : memref<8x128xf32, #tpu.memory_space<vmem>>, vector<1x128xf32>
    tpu.vector_store %arg4[%c0_9, %c0_10], %8 {strides = array<i32>} : memref<8x128xf32, #tpu.memory_space<vmem>>, vector<1x128xf32>,
    %10 = arith.mulf %2, %2 : vector<344x128xf32>
    %cst_11 = arith.constant dense<0.000000e+00> : vector<128xf32>
    %11 = vector.multi_reduction <add>, %10, %cst_11 [0] : vector<344x128xf32> to vector<128xf32>
    %12 = vector.shape_cast %11 : vector<128xf32> to vector<1x128xf32>
    %c1 = arith.constant 1 : index
    %c0_12 = arith.constant 0 : index
    %13 = vector.load %arg4[%c1, %c0_12] : memref<8x128xf32, #tpu.memory_space<vmem>>, vector<1x128xf32>
    tpu.vector_store %arg4[%c1, %c0_12], %12 {strides = array<i32>} : memref<8x128xf32, #tpu.memory_space<vmem>>, vector<1x128xf32>,
    return
  }
  func.func @transform_0(%arg0: i32) -> (i32, i32) {
    %c0_i32 = arith.constant 0 : i32
    %c0_i32_0 = arith.constant 0 : i32
    return %arg0, %c0_i32 : i32, i32
  }
  func.func @transform_1(%arg0: i32) -> (i32, i32) {
    %c0_i32 = arith.constant 0 : i32
    %c0_i32_0 = arith.constant 0 : i32
    %c0_i32_1 = arith.constant 0 : i32
    return %c0_i32, %c0_i32_0 : i32, i32
  }
  func.func @transform_2(%arg0: i32) -> (i32, i32) {
    %c0_i32 = arith.constant 0 : i32
    %c0_i32_0 = arith.constant 0 : i32
    return %arg0, %c0_i32 : i32, i32
  }
  func.func @transform_3(%arg0: i32) -> (i32, i32) {
    %c0_i32 = arith.constant 0 : i32
    %c0_i32_0 = arith.constant 0 : i32
    return %arg0, %c0_i32 : i32, i32
  }
}

module attributes {stable_mosaic.version = 11 : i64} {
  func.func @_matvec_tanh_kernel(%arg0: i32, %arg1: memref<1024x1664xbf16, #tpu.memory_space<vmem>>, %arg2: memref<8x1024xbf16, #tpu.memory_space<vmem>>, %arg3: memref<1xf32, #tpu.memory_space<smem>>, %arg4: memref<1x1664xf32, #tpu.memory_space<vmem>>) attributes {dimension_semantics = [#tpu.dimension_semantics<parallel>], iteration_bounds = array<i64: 1>, scalar_prefetch = 0 : i64, scratch_operands = 0 : i64, tpu.core_type = #tpu.core_type<tc>, window_params = [{transform_indices = @transform_0, window_bounds = array<i64: 1024, 1664>}, {pipeline_mode = #tpu.pipeline_mode<synchronous>, transform_indices = @transform_1, window_bounds = array<i64: 8, 1024>}, {transform_indices = @transform_2, window_bounds = array<i64: 1>}, {transform_indices = @transform_3, window_bounds = array<i64: 1, 1664>}]} {
    %c0 = arith.constant 0 : index
    %c0_0 = arith.constant 0 : index
    %0 = vector.load %arg2[%c0, %c0_0] : memref<8x1024xbf16, #tpu.memory_space<vmem>>, vector<8x1024xbf16>
    %c0_1 = arith.constant 0 : index
    %c0_2 = arith.constant 0 : index
    %1 = vector.load %arg1[%c0_1, %c0_2] : memref<1024x1664xbf16, #tpu.memory_space<vmem>>, vector<1024x1664xbf16>
    %cst = arith.constant dense<0.000000e+00> : vector<8x1664xf32>
    %2 = tpu.matmul %0, %1, %cst {dimension_numbers = #tpu.dot_dimension_numbers<[1], [0], [0], [1], [0, 0, 1, 1], [], []>} : vector<8x1024xbf16>, vector<1024x1664xbf16>, vector<8x1664xf32> -> vector<8x1664xf32>
    %3 = vector.extract_strided_slice %2 {offsets = [0, 0], sizes = [1, 1664], strides = [1, 1]} : vector<8x1664xf32> to vector<1x1664xf32>
    %c0_3 = arith.constant 0 : index
    %4 = memref.load %arg3[%c0_3] : memref<1xf32, #tpu.memory_space<smem>>
    %5 = vector.broadcast %4 : f32 to vector<1x1664xf32>
    %6 = arith.addf %3, %5 : vector<1x1664xf32>
    %7 = math.tanh %6 : vector<1x1664xf32>
    %c0_4 = arith.constant 0 : index
    %c0_5 = arith.constant 0 : index
    %8 = vector.load %arg4[%c0_4, %c0_5] : memref<1x1664xf32, #tpu.memory_space<vmem>>, vector<1x1664xf32>
    tpu.vector_store %arg4[%c0_4, %c0_5], %7 {strides = array<i32>} : memref<1x1664xf32, #tpu.memory_space<vmem>>, vector<1x1664xf32>,
    return
  }
  func.func @transform_0(%arg0: i32) -> (i32, i32) {
    %c0_i32 = arith.constant 0 : i32
    %c0_i32_0 = arith.constant 0 : i32
    return %c0_i32, %arg0 : i32, i32
  }
  func.func @transform_1(%arg0: i32) -> (i32, i32) {
    %c0_i32 = arith.constant 0 : i32
    %c0_i32_0 = arith.constant 0 : i32
    %c0_i32_1 = arith.constant 0 : i32
    return %c0_i32, %c0_i32_0 : i32, i32
  }
  func.func @transform_2(%arg0: i32) -> i32 {
    %c0_i32 = arith.constant 0 : i32
    %c0_i32_0 = arith.constant 0 : i32
    return %c0_i32 : i32
  }
  func.func @transform_3(%arg0: i32) -> (i32, i32) {
    %c0_i32 = arith.constant 0 : i32
    %c0_i32_0 = arith.constant 0 : i32
    return %c0_i32, %arg0 : i32, i32
  }
}

</mosaic_0001>

<bundles_post_ra>
// kernel: _lambda_.4
= control target key start
LH: loop header
LB: loop body
LE: loop exit
PB: predicated region body
PF: predicated region fallthrough
CT: control target
= control target key end

     0   :  { %v360_v1 = vmov 0   ;;  %v361_v19 = vmov 0.0   ;;  %v362_v50 = vmov 1966171168   ;;  %v221_v52 = vlaneseq  ;;  %s458_s1 = inlined_call_operand.vmem [shape: bf16[128,256], index: 1, kind: input, shape index: {}]   ;;  %s459_s0 = inlined_call_operand.vmem [shape: bf16[24,128], index: 0, kind: input, shape index: {}]   ;;  %s460_s3 = inlined_call_operand.vmem [shape: f32[8,256], index: 3, kind: output, shape index: {1}]   ;;  %s461_s2 = inlined_call_operand.vmem [shape: bf16[24,256], index: 2, kind: output, shape index: {0}]  }
   0x1   :  { %v334_v0 = vld [vmem:[%s458_s1 + $0x4] ss:$8 sps:$4 sm:$0xff]   ;;  %155 = vmatprep.mubr.bf16.mxu0 %v360_v1  ;;  %165 = vmatprep.mubr.bf16.mxu1 %v360_v1  ;;  %v336_v2 = vld [vmem:[%s458_s1] ss:$8 sps:$4 sm:$0xff]   ;;  %v337_v3 = vld [vmem:[%s458_s1 + $0x14] ss:$8 sps:$4 sm:$0xff]   ;;  %197 = vst [vmem:[%s460_s3] sm:$0xff] %v361_v19  ;;  %v219_v51 = vunpack.c.l.s4 %v362_v50 }
   0x2   :  { %123 = vmatprep.subr.bf16.mxu0 %v334_v0  ;;  %315 = vmatprep.subr.bf16.mxu1 %v334_v0  ;;  %v339_v4 = vld [vmem:[%s458_s1 + $0x10] ss:$8 sps:$4 sm:$0xff]   ;;  %v340_v5 = vld [vmem:[%s458_s1 + $0x24] ss:$8 sps:$4 sm:$0xff]   ;;  %v342_v6 = vld [vmem:[%s458_s1 + $0x20] ss:$8 sps:$4 sm:$0xff]  }
   0x3   :  { %124 = vmatpush1.bf16.msra.mxu0 %v336_v2  ;;  %323 = vmatpush1.bf16.msra.mxu1 %v336_v2  ;;  %v343_v7 = vld [vmem:[%s458_s1 + $0x34] ss:$8 sps:$4 sm:$0xff]   ;;  %v345_v8 = vld [vmem:[%s458_s1 + $0x30] ss:$8 sps:$4 sm:$0xff]   ;;  %v346_v9 = vld [vmem:[%s458_s1 + $0x44] ss:$8 sps:$4 sm:$0xff]   ;;  %v220_v61 = vunpack.c.0.s8 %v219_v51 }
   0x4   :  { %125 = vmatprep.subr.bf16.mxu0 %v337_v3  ;;  %316 = vmatprep.subr.bf16.mxu1 %v337_v3  ;;  %v348_v10 = vld [vmem:[%s458_s1 + $0x40] ss:$8 sps:$4 sm:$0xff]   ;;  %v349_v11 = vld [vmem:[%s458_s1 + $0x54] ss:$8 sps:$4 sm:$0xff]   ;;  %v351_v12 = vld [vmem:[%s458_s1 + $0x50] ss:$8 sps:$4 sm:$0xff]  }
   0x5   :  { %v352_v13 = vld [vmem:[%s458_s1 + $0x64] ss:$8 sps:$4 sm:$0xff]   ;;  %v354_v14 = vld [vmem:[%s458_s1 + $0x60] ss:$8 sps:$4 sm:$0xff]   ;;  %v355_v15 = vld [vmem:[%s458_s1 + $0x74] ss:$8 sps:$4 sm:$0xff]  }
   0x6   :  { %v357_v16 = vld [vmem:[%s458_s1 + $0x70] ss:$8 sps:$4 sm:$0xff]   ;;  %v358_v17 = vld [vmem:[%s459_s0] sm:$0xff]   ;;  %v359_v18 = vld [vmem:[%s459_s0 + $0x8] ss:$0 sps:$4 sm:$0xff]   ;;  %198 = vst [vmem:[%s460_s3 + $0x8] sm:$0xff] %v361_v19 }
   0x7   :  { %126 = vmatpush1.bf16.msra.mxu0 %v339_v4  ;;  %324 = vmatpush1.bf16.msra.mxu1 %v339_v4  ;;  %v222_v62 = vshrl.u32 %v221_v52, 7  ;;  %vm235_vm0 = vcmp.lt.s32.totalorder %v221_v52, 256 }
   0x8   :  { %127 = vmatprep.subr.bf16.mxu0 %v340_v5  ;;  %317 = vmatprep.subr.bf16.mxu1 %v340_v5 }
   0xb   :  { %128 = vmatpush1.bf16.msra.mxu0 %v342_v6  ;;  %325 = vmatpush1.bf16.msra.mxu1 %v342_v6 }
   0xc   :  { %129 = vmatprep.subr.bf16.mxu0 %v343_v7  ;;  %318 = vmatprep.subr.bf16.mxu1 %v343_v7  ;;  %v223_v7 = vsub.s32 %v220_v61, %v222_v62 }
   0xf   :  { %130 = vmatpush1.bf16.msra.mxu0 %v345_v8  ;;  %326 = vmatpush1.bf16.msra.mxu1 %v345_v8 }
  0x10   :  { %131 = vmatprep.subr.bf16.mxu0 %v346_v9  ;;  %319 = vmatprep.subr.bf16.mxu1 %v346_v9 }
  0x13   :  { %132 = vmatpush1.bf16.msra.mxu0 %v348_v10  ;;  %327 = vmatpush1.bf16.msra.mxu1 %v348_v10 }
  0x14   :  { %133 = vmatprep.subr.bf16.mxu0 %v349_v11  ;;  %320 = vmatprep.subr.bf16.mxu1 %v349_v11 }
  0x17   :  { %134 = vmatpush1.bf16.msra.mxu0 %v351_v12  ;;  %328 = vmatpush1.bf16.msra.mxu1 %v351_v12 }
  0x18   :  { %135 = vmatprep.subr.bf16.mxu0 %v352_v13  ;;  %321 = vmatprep.subr.bf16.mxu1 %v352_v13 }
  0x1b   :  { %136 = vmatpush1.bf16.msra.mxu0 %v354_v14  ;;  %329 = vmatpush1.bf16.msra.mxu1 %v354_v14 }
  0x1c   :  { %137 = vmatprep.subr.bf16.mxu0 %v355_v15  ;;  %322 = vmatprep.subr.bf16.mxu1 %v355_v15 }
  0x1f   :  { %138 = vmatpush1.bf16.msra.mxu0 %v357_v16  ;;  %330 = vmatpush1.bf16.msra.mxu1 %v357_v16 }
  0x22   :  { %156 = vmatmul.mubr.bf16.vlgmr.msra.gmra.mrb[0].mxu0 %v358_v17  ;;  %166 = vmatmul.mubr.bf16.vlgmr.msra.gmra.mrb[0].mxu1 %v359_v18 }
  0xf5   :  { %v157_v20 = vpop.f32.mrb[0].mxu0  ;;  %v167_v21 = vpop.f32.mrb[0].mxu1 }
  0xf6   :  { %v159_v22 = vpop.f32.mrb[1].mxu0  ;;  %v169_v23 = vpop.f32.mrb[1].mxu1  ;;  %v239_v24 = vmul.f32 %v157_v20, %v157_v20  ;;  %v243_v30 = vmul.f32 %v167_v21, %v167_v21 }
  0xf7   :  { %v312_v25 = vpack.c.bf16 %v159_v22, %v157_v20  ;;  %v161_v26 = vpop.f32.mrb[2].mxu0  ;;  %v314_v27 = vpack.c.bf16 %v169_v23, %v167_v21  ;;  %v171_v28 = vpop.f32.mrb[2].mxu1  ;;  %v240_v29 = vmul.f32 %v159_v22, %v159_v22  ;;  %v244_v35 = vmul.f32 %v169_v23, %v169_v23 }
  0xf8   :  { %v199_v31 = vadd.f32 %v161_v26, %v157_v20  ;;  %v241_v32 = vmul.f32 %v161_v26, %v161_v26  ;;  %v163_v33 = vpop.f32.mrb[3].mxu0  ;;  %v172_v34 = vpop.f32.mrb[3].mxu1 }
  0xf9   :  { %194 = vst [vmem:[%s461_s2] sm:$0xff] %v312_v25  ;;  %196 = vst [vmem:[%s461_s2 + $0x10] sm:$0xff] %v314_v27  ;;  %v313_v36 = vpack.c.bf16 %v163_v33, %v161_v26  ;;  %v207_v37 = vadd.f32 %v163_v33, %v159_v22  ;;  %v242_v38 = vmul.f32 %v163_v33, %v163_v33 }
  0xfa   :  { %v200_v39 = vadd.f32 %v199_v31, %v167_v21  ;;  %v245_v40 = vadd.f32 %v241_v32, %v239_v24 }
  0xfb   :  { %195 = vst [vmem:[%s461_s2 + $0x8] sm:$0xff] %v313_v36  ;;  %v208_v41 = vadd.f32 %v207_v37, %v169_v23  ;;  %v253_v42 = vadd.f32 %v242_v38, %v240_v29 }
  0xfc   :  { %v201_v43 = vrot.slane %v200_v39, 4  ;;  %v246_v44 = vadd.f32 %v245_v40, %v243_v30 }
  0xfd   :  { %v209_v45 = vrot.slane %v208_v41, 4  ;;  %v254_v46 = vadd.f32 %v253_v42, %v244_v35 }
  0xfe   :  { %v202_v47 = vadd.f32 %v201_v43, %v200_v39  ;;  %v247_v48 = vrot.slane %v246_v44, 4 }
  0xff   :  { %v210_v49 = vadd.f32 %v209_v45, %v208_v41  ;;  %v255_v53 = vrot.slane %v254_v46, 4 }
 0x100   :  { %v203_v54 = vrot.slane %v202_v47, 2  ;;  %v248_v55 = vadd.f32 %v247_v48, %v246_v44 }
 0x101   :  { %v211_v56 = vrot.slane %v210_v49, 2  ;;  %v256_v57 = vadd.f32 %v255_v53, %v254_v46 }
 0x102   :  { %v204_v58 = vadd.f32 %v203_v54, %v202_v47  ;;  %v249_v59 = vrot.slane %v248_v55, 2 }
 0x103   :  { %v212_v60 = vadd.f32 %v211_v56, %v210_v49  ;;  %v257_v63 = vrot.slane %v256_v57, 2 }
 0x104   :  { %v205_v0 = vrot.slane %v204_v58, 1  ;;  %v250_v1 = vadd.f32 %v249_v59, %v248_v55 }
 0x105   :  { %v213_v2 = vrot.slane %v212_v60, 1  ;;  %v258_v3 = vadd.f32 %v257_v63, %v256_v57 }
 0x106   :  { %v206_v4 = vadd.f32 %v205_v0, %v204_v58  ;;  %v251_v5 = vrot.slane %v250_v1, 1 }
 0x107   :  { %v214_v6 = vadd.f32 %v213_v2, %v212_v60  ;;  %v259_v8 = vrot.slane %v258_v3, 1 }
 0x108   :  { %v252_v9 = vadd.f32 %v251_v5, %v250_v1 }
 0x109   :  { %v217_v10 = vcombine.low %v206_v4, %v214_v6  ;;  %v260_v11 = vadd.f32 %v259_v8, %v258_v3 }
 0x10b   :  { %v224_v12 = vrot.slane %v217_v10, %v223_v7  ;;  %v263_v13 = vcombine.low %v252_v9, %v260_v11 }
 0x10d   :  { %v231_v14 = vrot.slane %v224_v12, %v223_v7  ;;  %v270_v15 = vrot.slane %v263_v13, %v223_v7 }
 0x10f   :  { %237 = vst.msk [vmem:[%s460_s3] ss:$8 sm:$0x3] %vm235_vm0, %v231_v14  ;;  %v277_v16 = vrot.slane %v270_v15, %v223_v7 }
 0x111   :  { %311 = vst.msk [vmem:[%s460_s3 + $0x1] ss:$8 sm:$0x3] %vm235_vm0, %v277_v16 }

// kernel: _lambda_.5
= control target key start
LH: loop header
LB: loop body
LE: loop exit
PB: predicated region body
PF: predicated region fallthrough
CT: control target
= control target key end

     0   :  { %s7220_s1 = inlined_call_operand.vmem [shape: bf16[4096,128], index: 1, kind: input, shape index: {}]   ;;  %s7221_s0 = inlined_call_operand.vmem [shape: bf16[72,4096], index: 0, kind: input, shape index: {}]   ;;  %s7222_s3 = inlined_call_operand.vmem [shape: f32[8,128], index: 3, kind: output, shape index: {1}]   ;;  %s7223_s2 = inlined_call_operand.vmem [shape: bf16[72,128], index: 2, kind: output, shape index: {0}]  }
   0x1   :  { %v5398_v0 = vld [vmem:[%s7220_s1 + $0x40] sm:$0xff]   ;;  %v5402_v4 = vld [vmem:[%s7220_s1 + $0x48] sm:$0xff]   ;;  %v5406_v8 = vld [vmem:[%s7220_s1 + $0x50] sm:$0xff]  }
   0x2   :  { %v5399_v1 = vld [vmem:[%s7220_s1 + $0xc0] sm:$0xff]   ;;  %4661 = vmatprep.subr.bf16.mxu0 %v5398_v0  ;;  %v5403_v5 = vld [vmem:[%s7220_s1 + $0xc8] sm:$0xff]   ;;  %v5407_v9 = vld [vmem:[%s7220_s1 + $0xd0] sm:$0xff]  }
   0x3   :  { %v5400_v2 = vld [vmem:[%s7220_s1] sm:$0xff]   ;;  %4707 = vmatprep.subr.bf16.mxu1 %v5399_v1  ;;  %v5404_v6 = vld [vmem:[%s7220_s1 + $0x8] sm:$0xff]   ;;  %v5408_v10 = vld [vmem:[%s7220_s1 + $0x10] sm:$0xff]  }
   0x4   :  { %v5401_v3 = vld [vmem:[%s7220_s1 + $0x80] sm:$0xff]   ;;  %4662 = vmatpush3.bf16.msra.mxu0 %v5400_v2  ;;  %v5405_v7 = vld [vmem:[%s7220_s1 + $0x88] sm:$0xff]   ;;  %v5409_v11 = vld [vmem:[%s7220_s1 + $0x90] sm:$0xff]  }
   0x5   :  { %4708 = vmatpush3.bf16.msra.mxu1 %v5401_v3  ;;  %4663 = vmatprep.subr.bf16.mxu0 %v5402_v4  ;;  %v5410_v12 = vld [vmem:[%s7220_s1 + $0x58] sm:$0xff]   ;;  %v5414_v16 = vld [vmem:[%s7220_s1 + $0x60] sm:$0xff]   ;;  %v5418_v20 = vld [vmem:[%s7220_s1 + $0x68] sm:$0xff]  }
   0x6   :  { %4709 = vmatprep.subr.bf16.mxu1 %v5403_v5  ;;  %v5411_v13 = vld [vmem:[%s7220_s1 + $0xd8] sm:$0xff]   ;;  %v5415_v17 = vld [vmem:[%s7220_s1 + $0xe0] sm:$0xff]   ;;  %v5419_v21 = vld [vmem:[%s7220_s1 + $0xe8] sm:$0xff]  }
   0x7   :  { %v5412_v14 = vld [vmem:[%s7220_s1 + $0x18] sm:$0xff]   ;;  %v5416_v18 = vld [vmem:[%s7220_s1 + $0x20] sm:$0xff]   ;;  %v5420_v22 = vld [vmem:[%s7220_s1 + $0x28] sm:$0xff]  }
   0x8   :  { %4664 = vmatpush3.bf16.msra.mxu0 %v5404_v6  ;;  %v5413_v15 = vld [vmem:[%s7220_s1 + $0x98] sm:$0xff]   ;;  %v5417_v19 = vld [vmem:[%s7220_s1 + $0xa0] sm:$0xff]   ;;  %v5421_v23 = vld [vmem:[%s7220_s1 + $0xa8] sm:$0xff]  }
   0x9   :  { %4710 = vmatpush3.bf16.msra.mxu1 %v5405_v7  ;;  %4665 = vmatprep.subr.bf16.mxu0 %v5406_v8  ;;  %v5422_v24 = vld [vmem:[%s7220_s1 + $0x70] sm:$0xff]   ;;  %v5426_v28 = vld [vmem:[%s7220_s1 + $0x78] sm:$0xff]   ;;  %v14_v32 = vld [vmem:[%s7221_s0] sm:$0xff] }
   0xa   :  { %4711 = vmatprep.subr.bf16.mxu1 %v5407_v9  ;;  %v5423_v25 = vld [vmem:[%s7220_s1 + $0xf0] sm:$0xff]   ;;  %v5427_v29 = vld [vmem:[%s7220_s1 + $0xf8] sm:$0xff]   ;;  %v30_v33 = vld [vmem:[%s7221_s0 + $0x80] sm:$0xff] }
   0xb   :  { %v5424_v26 = vld [vmem:[%s7220_s1 + $0x30] sm:$0xff]   ;;  %v5428_v30 = vld [vmem:[%s7220_s1 + $0x38] sm:$0xff]   ;;  %v15_v34 = vld [vmem:[%s7221_s0 + $0x8] sm:$0xff]  ;;  %v4204_v35 = vcombine.low %v14_v32, %v30_v33  ;;  %v4205_v36 = vcombine.high %v14_v32, %v30_v33 }
   0xc   :  { %4666 = vmatpush3.bf16.msra.mxu0 %v5408_v10  ;;  %v5425_v27 = vld [vmem:[%s7220_s1 + $0xb0] sm:$0xff]   ;;  %v5429_v31 = vld [vmem:[%s7220_s1 + $0xb8] sm:$0xff]   ;;  %v31_v37 = vld [vmem:[%s7221_s0 + $0x88] sm:$0xff] }
   0xd   :  { %4712 = vmatpush3.bf16.msra.mxu1 %v5409_v11  ;;  %4667 = vmatprep.subr.bf16.mxu0 %v5410_v12  ;;  %v4206_v38 = vcombine.low %v15_v34, %v31_v37  ;;  %v4207_v39 = vcombine.high %v15_v34, %v31_v37  ;;  %v5430_v40 = vld [vmem:[%s7220_s1 + $0x140] sm:$0xff]   ;;  %v5434_v44 = vld [vmem:[%s7220_s1 + $0x148] sm:$0xff]   ;;  %v5438_v56 = vld [vmem:[%s7220_s1 + $0x150] sm:$0xff]  }
   0xe   :  { %4713 = vmatprep.subr.bf16.mxu1 %v5411_v13  ;;  %2990 = vmatprep.mubr.bf16.mxu0 %v4205_v36  ;;  %v5431_v41 = vld [vmem:[%s7220_s1 + $0x100] sm:$0xff]   ;;  %v5435_v45 = vld [vmem:[%s7220_s1 + $0x108] sm:$0xff]   ;;  %v5439_v57 = vld [vmem:[%s7220_s1 + $0x110] sm:$0xff]  }
   0xf   :  { %3062 = vmatprep.mubr.bf16.mxu1 %v4207_v39  ;;  %v5432_v42 = vld [vmem:[%s7220_s1 + $0x1c0] sm:$0xff]   ;;  %v47_v49 = vld [vmem:[%s7221_s0 + $0x108] sm:$0xff]  ;;  %v5440_v58 = vld [vmem:[%s7220_s1 + $0x1d0] sm:$0xff]  }
  0x10   :  { %4668 = vmatpush3.bf16.msra.mxu0 %v5412_v14  ;;  %v5433_v43 = vld [vmem:[%s7220_s1 + $0x180] sm:$0xff]   ;;  %v63_v50 = vld [vmem:[%s7221_s0 + $0x188] sm:$0xff]  ;;  %v5441_v59 = vld [vmem:[%s7220_s1 + $0x190] sm:$0xff]  }
  0x11   :  { %4714 = vmatpush3.bf16.msra.mxu1 %v5413_v15  ;;  %4669 = vmatprep.subr.bf16.mxu0 %v5414_v16  ;;  %v46_v46 = vld [vmem:[%s7221_s0 + $0x100] sm:$0xff]  ;;  %v4239_v52 = vcombine.high %v47_v49, %v63_v50  ;;  %v5436_v53 = vld [vmem:[%s7220_s1 + $0x1c8] sm:$0xff]   ;;  %v4238_v54 = vcombine.low %v47_v49, %v63_v50  ;;  %v5442_v2 = vld [vmem:[%s7220_s1 + $0x158] sm:$0xff]  }
  0x12   :  { %4715 = vmatprep.subr.bf16.mxu1 %v5415_v17  ;;  %v62_v47 = vld [vmem:[%s7221_s0 + $0x180] sm:$0xff]  ;;  %v5437_v55 = vld [vmem:[%s7220_s1 + $0x188] sm:$0xff]   ;;  %v5443_v5 = vld [vmem:[%s7220_s1 + $0x118] sm:$0xff]  }
  0x13   :  { %v4237_v48 = vcombine.high %v46_v46, %v62_v47  ;;  %v4236_v51 = vcombine.low %v46_v46, %v62_v47  ;;  %v78_v60 = vld [vmem:[%s7221_s0 + $0x200] sm:$0xff]  ;;  %v79_v62 = vld [vmem:[%s7221_s0 + $0x208] sm:$0xff]  ;;  %v5444_v6 = vld [vmem:[%s7220_s1 + $0x1d8] sm:$0xff]  }
  0x14   :  { %4670 = vmatpush3.bf16.msra.mxu0 %v5416_v18  ;;  %v94_v61 = vld [vmem:[%s7221_s0 + $0x280] sm:$0xff]  ;;  %v95_v63 = vld [vmem:[%s7221_s0 + $0x288] sm:$0xff]  ;;  %v5445_v7 = vld [vmem:[%s7220_s1 + $0x198] sm:$0xff]  }
  0x15   :  { %4716 = vmatpush3.bf16.msra.mxu1 %v5417_v19  ;;  %4671 = vmatprep.subr.bf16.mxu0 %v5418_v20  ;;  %v4269_v0 = vcombine.high %v78_v60, %v94_v61  ;;  %v4271_v1 = vcombine.high %v79_v62, %v95_v63  ;;  %v4268_v3 = vcombine.low %v78_v60, %v94_v61  ;;  %v5446_v8 = vld [vmem:[%s7220_s1 + $0x160] sm:$0xff]   ;;  %v111_v13 = vld [vmem:[%s7221_s0 + $0x308] sm:$0xff]  ;;  %v5461_v33 = vld [vmem:[%s7220_s1 + $0x1b0] sm:$0xff]  }
  0x16   :  { %4717 = vmatprep.subr.bf16.mxu1 %v5419_v21  ;;  %v4270_v4 = vcombine.low %v79_v62, %v95_v63  ;;  %v5447_v9 = vld [vmem:[%s7220_s1 + $0x120] sm:$0xff]   ;;  %v127_v15 = vld [vmem:[%s7221_s0 + $0x388] sm:$0xff]  ;;  %v5462_v34 = vld [vmem:[%s7220_s1 + $0x178] sm:$0xff]  }
  0x17   :  { %v5448_v10 = vld [vmem:[%s7220_s1 + $0x1e0] sm:$0xff]   ;;  %v4303_v17 = vcombine.high %v111_v13, %v127_v15  ;;  %v4302_v19 = vcombine.low %v111_v13, %v127_v15  ;;  %v5450_v20 = vld [vmem:[%s7220_s1 + $0x168] sm:$0xff]   ;;  %v5464_v36 = vld [vmem:[%s7220_s1 + $0x1f8] sm:$0xff]  }
  0x18   :  { %4672 = vmatpush3.bf16.msra.mxu0 %v5420_v22  ;;  %v110_v11 = vld [vmem:[%s7221_s0 + $0x300] sm:$0xff]  ;;  %v5451_v21 = vld [vmem:[%s7220_s1 + $0x128] sm:$0xff]   ;;  %v5465_v37 = vld [vmem:[%s7220_s1 + $0x1b8] sm:$0xff]  }
  0x19   :  { %4718 = vmatpush3.bf16.msra.mxu1 %v5421_v23  ;;  %4673 = vmatprep.subr.bf16.mxu0 %v5422_v24  ;;  %v126_v12 = vld [vmem:[%s7221_s0 + $0x380] sm:$0xff]  ;;  %v5452_v22 = vld [vmem:[%s7220_s1 + $0x1e8] sm:$0xff]   ;;  %v5454_v24 = vld [vmem:[%s7220_s1 + $0x170] sm:$0xff]  }
  0x1a   :  { %4719 = vmatprep.subr.bf16.mxu1 %v5423_v25  ;;  %v4301_v14 = vcombine.high %v110_v11, %v126_v12  ;;  %v4300_v16 = vcombine.low %v110_v11, %v126_v12  ;;  %v5449_v18 = vld [vmem:[%s7220_s1 + $0x1a0] sm:$0xff]   ;;  %v5453_v23 = vld [vmem:[%s7220_s1 + $0x1a8] sm:$0xff]   ;;  %v32_v39 = vld [vmem:[%s7221_s0 + $0x90] sm:$0xff] }
  0x1b   :  { %v142_v25 = vld [vmem:[%s7221_s0 + $0x400] sm:$0xff]  ;;  %v5470_v50 = vld [vmem:[%s7220_s1 + $0x248] sm:$0xff]   ;;  %v5474_v62 = vld [vmem:[%s7220_s1 + $0x250] sm:$0xff]  }
  0x1c   :  { %4674 = vmatpush3.bf16.msra.mxu0 %v5424_v26  ;;  %v143_v26 = vld [vmem:[%s7221_s0 + $0x408] sm:$0xff]  ;;  %v5467_v47 = vld [vmem:[%s7220_s1 + $0x200] sm:$0xff]   ;;  %v5475_v63 = vld [vmem:[%s7220_s1 + $0x210] sm:$0xff]  }
  0x1d   :  { %4720 = vmatpush3.bf16.msra.mxu1 %v5425_v27  ;;  %4675 = vmatprep.subr.bf16.mxu0 %v5426_v28  ;;  %v4333_v27 = vcombine.high %v142_v25, %v142_v25  ;;  %v4335_v28 = vcombine.high %v143_v26, %v143_v26  ;;  %v4334_v32 = vcombine.low %v143_v26, %v143_v26  ;;  %v5469_v49 = vld [vmem:[%s7220_s1 + $0x280] sm:$0xff]   ;;  %v5473_v60 = vld [vmem:[%s7220_s1 + $0x288] sm:$0xff]   ;;  %v5480_v11 = vld [vmem:[%s7220_s1 + $0x2d8] sm:$0xff]  }
  0x1e   :  { %4721 = vmatprep.subr.bf16.mxu1 %v5427_v29  ;;  %v5457_v29 = vld [vmem:[%s7220_s1 + $0x130] sm:$0xff]   ;;  %v5481_v13 = vld [vmem:[%s7220_s1 + $0x298] sm:$0xff]   ;;  %v5483_v15 = vld [vmem:[%s7220_s1 + $0x220] sm:$0xff]  }
  0x20   :  { %4676 = vmatpush3.bf16.msra.mxu0 %v5428_v30  ;;  %v4332_v30 = vcombine.low %v142_v25, %v142_v25  ;;  %v5486_v25 = vld [vmem:[%s7220_s1 + $0x268] sm:$0xff]  }
  0x21   :  { %4722 = vmatpush3.bf16.msra.mxu1 %v5429_v31  ;;  %4753 = vmatprep.subr.bf16.mxu0 %v5430_v40  ;;  %v5460_v31 = vld [vmem:[%s7220_s1 + $0x1f0] sm:$0xff]   ;;  %v17_v40 = vld [vmem:[%s7221_s0 + $0x18] sm:$0xff] }
  0x22   :  { %4799 = vmatprep.subr.bf16.mxu1 %v5432_v42  ;;  %v33_v42 = vld [vmem:[%s7221_s0 + $0x98] sm:$0xff] }
  0x23   :  { %2991 = vmatmul.mubr.bf16.vlgmr.msra.gmra.mrb[0].mxu0 %v4204_v35  ;;  %v5463_v35 = vld [vmem:[%s7220_s1 + $0x138] sm:$0xff]   ;;  %v4210_v46 = vcombine.low %v17_v40, %v33_v42 }
  0x24   :  { %3063 = vmatmul.mubr.bf16.vlgmr.msra.gmra.mrb[0].mxu1 %v4206_v38  ;;  %4754 = vmatpush3.bf16.msra.mxu0 %v5431_v41  ;;  %v16_v38 = vld [vmem:[%s7221_s0 + $0x10] sm:$0xff] }
  0x25   :  { %4800 = vmatpush3.bf16.msra.mxu1 %v5433_v43  ;;  %4755 = vmatprep.subr.bf16.mxu0 %v5434_v44  ;;  %v4209_v41 = vcombine.high %v16_v38, %v32_v39  ;;  %v4208_v43 = vcombine.low %v16_v38, %v32_v39  ;;  %v4211_v44 = vcombine.high %v17_v40, %v33_v42  ;;  %v5498_v39 = vld [vmem:[%s7220_s1 + $0x278] sm:$0xff]  }
  0x26   :  { %2998 = vmatprep.mubr.bf16.mxu0 %v4237_v48  ;;  %3070 = vmatprep.mubr.bf16.mxu1 %v4239_v52  ;;  %v5468_v48 = vld [vmem:[%s7220_s1 + $0x2c0] sm:$0xff]   ;;  %v48_v52 = vld [vmem:[%s7221_s0 + $0x110] sm:$0xff]  ;;  %v5500_v42 = vld [vmem:[%s7220_s1 + $0x2f8] sm:$0xff]  }
  0x27   :  { %4801 = vmatprep.subr.bf16.mxu1 %v5436_v53  ;;  %v64_v53 = vld [vmem:[%s7221_s0 + $0x190] sm:$0xff] }
  0x28   :  { %4756 = vmatpush3.bf16.msra.mxu0 %v5435_v45  ;;  %v5466_v45 = vld [vmem:[%s7220_s1 + $0x240] sm:$0xff]  }
  0x29   :  { %4802 = vmatpush3.bf16.msra.mxu1 %v5437_v55  ;;  %4757 = vmatprep.subr.bf16.mxu0 %v5438_v56  ;;  %v49_v55 = vld [vmem:[%s7221_s0 + $0x118] sm:$0xff] }
  0x2a   :  { %4803 = vmatprep.subr.bf16.mxu1 %v5440_v58  ;;  %v65_v56 = vld [vmem:[%s7221_s0 + $0x198] sm:$0xff]  ;;  %v5472_v58 = vld [vmem:[%s7220_s1 + $0x2c8] sm:$0xff]  }
  0x2b   :  { %2999 = vmatmul.mubr.bf16.gmra.mrb[4].mxu0 %v4236_v51  ;;  %v5471_v51 = vld [vmem:[%s7220_s1 + $0x208] sm:$0xff]   ;;  %v4242_v61 = vcombine.low %v49_v55, %v65_v56 }
  0x2c   :  { %3071 = vmatmul.mubr.bf16.gmra.mrb[4].mxu1 %v4238_v54  ;;  %4758 = vmatpush3.bf16.msra.mxu0 %v5439_v57  ;;  %v4241_v54 = vcombine.high %v48_v52, %v64_v53  ;;  %v4243_v57 = vcombine.high %v49_v55, %v65_v56  ;;  %v5505_v55 = vld [vmem:[%s7220_s1 + $0x380] sm:$0xff]   ;;  %v5506_v56 = vld [vmem:[%s7220_s1 + $0x348] sm:$0xff]  }
  0x2d   :  { %4804 = vmatpush3.bf16.msra.mxu1 %v5441_v59  ;;  %3006 = vmatprep.mubr.bf16.mxu0 %v4269_v0  ;;  %v4240_v59 = vcombine.low %v48_v52, %v64_v53  ;;  %v5476_v0 = vld [vmem:[%s7220_s1 + $0x2d0] sm:$0xff]   ;;  %v5504_v53 = vld [vmem:[%s7220_s1 + $0x3c0] sm:$0xff]  }
  0x2e   :  { %3078 = vmatprep.mubr.bf16.mxu1 %v4271_v1  ;;  %4759 = vmatprep.subr.bf16.mxu0 %v5442_v2  ;;  %v5477_v1 = vld [vmem:[%s7220_s1 + $0x290] sm:$0xff]  }
  0x2f   :  { %4805 = vmatprep.subr.bf16.mxu1 %v5444_v6  ;;  %v80_v2 = vld [vmem:[%s7221_s0 + $0x210] sm:$0xff] }
  0x30   :  { %4760 = vmatpush3.bf16.msra.mxu0 %v5443_v5  ;;  %v97_v5 = vld [vmem:[%s7221_s0 + $0x298] sm:$0xff] }
  0x31   :  { %4806 = vmatpush3.bf16.msra.mxu1 %v5445_v7  ;;  %4761 = vmatprep.subr.bf16.mxu0 %v5446_v8  ;;  %v5478_v8 = vld [vmem:[%s7220_s1 + $0x258] sm:$0xff]  }
  0x32   :  { %4807 = vmatprep.subr.bf16.mxu1 %v5448_v10 }
  0x33   :  { %3007 = vmatmul.mubr.bf16.gmra.mrb[8].mxu0 %v4268_v3  ;;  %v96_v3 = vld [vmem:[%s7221_s0 + $0x290] sm:$0xff] }
  0x34   :  { %3079 = vmatmul.mubr.bf16.gmra.mrb[8].mxu1 %v4270_v4  ;;  %4762 = vmatpush3.bf16.msra.mxu0 %v5447_v9  ;;  %v81_v4 = vld [vmem:[%s7221_s0 + $0x218] sm:$0xff]  ;;  %v4273_v6 = vcombine.high %v80_v2, %v96_v3  ;;  %v4272_v10 = vcombine.low %v80_v2, %v96_v3  ;;  %v5510_v2 = vld [vmem:[%s7220_s1 + $0x350] sm:$0xff]  }
  0x35   :  { %3014 = vmatprep.mubr.bf16.mxu0 %v4301_v14  ;;  %3086 = vmatprep.mubr.bf16.mxu1 %v4303_v17  ;;  %v4275_v7 = vcombine.high %v81_v4, %v97_v5  ;;  %v5479_v9 = vld [vmem:[%s7220_s1 + $0x218] sm:$0xff]   ;;  %v4274_v12 = vcombine.low %v81_v4, %v97_v5  ;;  %v5482_v14 = vld [vmem:[%s7220_s1 + $0x260] sm:$0xff]   ;;  %v112_v17 = vld [vmem:[%s7221_s0 + $0x310] sm:$0xff] }
  0x36   :  { %4808 = vmatpush3.bf16.msra.mxu1 %v5449_v18  ;;  %4763 = vmatprep.subr.bf16.mxu0 %v5450_v20  ;;  %v128_v18 = vld [vmem:[%s7221_s0 + $0x390] sm:$0xff] }
  0x37   :  { %4809 = vmatprep.subr.bf16.mxu1 %v5452_v22  ;;  %v4305_v20 = vcombine.high %v112_v17, %v128_v18  ;;  %v5511_v4 = vld [vmem:[%s7220_s1 + $0x310] sm:$0xff]  }
  0x38   :  { %4764 = vmatpush3.bf16.msra.mxu0 %v5451_v21  ;;  %v129_v21 = vld [vmem:[%s7221_s0 + $0x398] sm:$0xff] }
  0x39   :  { %4765 = vmatprep.subr.bf16.mxu0 %v5454_v24  ;;  %v4304_v24 = vcombine.low %v112_v17, %v128_v18  ;;  %v5517_v17 = vld [vmem:[%s7220_s1 + $0x398] sm:$0xff]  }
  0x3a   :  { %4810 = vmatpush3.bf16.msra.mxu1 %v5453_v23  ;;  %v5485_v23 = vld [vmem:[%s7220_s1 + $0x2a0] sm:$0xff]  }
  0x3b   :  { %3015 = vmatmul.mubr.bf16.gmra.mrb[12].mxu0 %v4300_v16  ;;  %4811 = vmatprep.subr.bf16.mxu1 %v5460_v31  ;;  %v5484_v16 = vld [vmem:[%s7220_s1 + $0x2e0] sm:$0xff]   ;;  %v144_v31 = vld [vmem:[%s7221_s0 + $0x410] sm:$0xff] }
  0x3c   :  { %3087 = vmatmul.mubr.bf16.gmra.mrb[12].mxu1 %v4302_v19  ;;  %3022 = vmatprep.mubr.bf16.mxu0 %v4333_v27  ;;  %v113_v19 = vld [vmem:[%s7221_s0 + $0x318] sm:$0xff]  ;;  %v5487_v27 = vld [vmem:[%s7220_s1 + $0x228] sm:$0xff]   ;;  %v4336_v38 = vcombine.low %v144_v31, %v144_v31 }
  0x3d   :  { %3094 = vmatprep.mubr.bf16.mxu1 %v4335_v28  ;;  %4766 = vmatpush3.bf16.msra.mxu0 %v5457_v29  ;;  %v4307_v22 = vcombine.high %v113_v19, %v129_v21  ;;  %v4306_v26 = vcombine.low %v113_v19, %v129_v21  ;;  %v5488_v28 = vld [vmem:[%s7220_s1 + $0x2e8] sm:$0xff]   ;;  %v5518_v19 = vld [vmem:[%s7220_s1 + $0x360] sm:$0xff]  }
  0x3e   :  { %4812 = vmatpush3.bf16.msra.mxu1 %v5461_v33  ;;  %4767 = vmatprep.subr.bf16.mxu0 %v5462_v34  ;;  %v5489_v29 = vld [vmem:[%s7220_s1 + $0x2a8] sm:$0xff]   ;;  %v4337_v33 = vcombine.high %v144_v31, %v144_v31  ;;  %v5519_v21 = vld [vmem:[%s7220_s1 + $0x320] sm:$0xff]  }
  0x3f   :  { %4813 = vmatprep.subr.bf16.mxu1 %v5464_v36  ;;  %v5496_v36 = vld [vmem:[%s7220_s1 + $0x2f0] sm:$0xff]   ;;  %v5523_v31 = vld [vmem:[%s7220_s1 + $0x328] sm:$0xff]  }
  0x41   :  { %4768 = vmatpush3.bf16.msra.mxu0 %v5463_v35  ;;  %v5493_v35 = vld [vmem:[%s7220_s1 + $0x230] sm:$0xff]  }
  0x42   :  { %4814 = vmatpush3.bf16.msra.mxu1 %v5465_v37  ;;  %4845 = vmatprep.subr.bf16.mxu0 %v5466_v45  ;;  %v5497_v37 = vld [vmem:[%s7220_s1 + $0x2b0] sm:$0xff]   ;;  %v34_v45 = vld [vmem:[%s7221_s0 + $0xa0] sm:$0xff] }
  0x43   :  { %3023 = vmatmul.mubr.bf16.gmra.mrb[16].mxu0 %v4332_v30  ;;  %4891 = vmatprep.subr.bf16.mxu1 %v5468_v48  ;;  %v5490_v30 = vld [vmem:[%s7220_s1 + $0x270] sm:$0xff]   ;;  %v35_v48 = vld [vmem:[%s7221_s0 + $0xa8] sm:$0xff] }
  0x44   :  { %3095 = vmatmul.mubr.bf16.gmra.mrb[16].mxu1 %v4334_v32  ;;  %3134 = vmatprep.mubr.bf16.mxu0 %v4209_v41  ;;  %v145_v32 = vld [vmem:[%s7221_s0 + $0x418] sm:$0xff] }
  0x45   :  { %3206 = vmatprep.mubr.bf16.mxu1 %v4211_v44  ;;  %v4339_v34 = vcombine.high %v145_v32, %v145_v32  ;;  %v4338_v40 = vcombine.low %v145_v32, %v145_v32  ;;  %v5499_v41 = vld [vmem:[%s7220_s1 + $0x238] sm:$0xff]   ;;  %v18_v44 = vld [vmem:[%s7221_s0 + $0x20] sm:$0xff] }
  0x46   :  { %v4212_v52 = vcombine.low %v18_v44, %v34_v45 }
  0x4b   :  { %3135 = vmatmul.mubr.bf16.vlgmr.msra.gmra.mrb[20].mxu0 %v4208_v43  ;;  %v5501_v43 = vld [vmem:[%s7220_s1 + $0x2b8] sm:$0xff]  }
  0x4c   :  { %3207 = vmatmul.mubr.bf16.vlgmr.msra.gmra.mrb[20].mxu1 %v4210_v46  ;;  %4846 = vmatpush3.bf16.msra.mxu0 %v5467_v47  ;;  %v19_v46 = vld [vmem:[%s7221_s0 + $0x28] sm:$0xff]  ;;  %v4213_v47 = vcombine.high %v18_v44, %v34_v45  ;;  %v5534_v44 = vld [vmem:[%s7220_s1 + $0x378] sm:$0xff]  }
  0x4d   :  { %4892 = vmatpush3.bf16.msra.mxu1 %v5469_v49  ;;  %4847 = vmatprep.subr.bf16.mxu0 %v5470_v50  ;;  %v4215_v49 = vcombine.high %v19_v46, %v35_v48  ;;  %v5502_v50 = vld [vmem:[%s7220_s1 + $0x340] sm:$0xff]   ;;  %v5535_v45 = vld [vmem:[%s7220_s1 + $0x338] sm:$0xff]  }
  0x4e   :  { %3142 = vmatprep.mubr.bf16.mxu0 %v4241_v54  ;;  %3214 = vmatprep.mubr.bf16.mxu1 %v4243_v57  ;;  %v4214_v54 = vcombine.low %v19_v46, %v35_v48  ;;  %v5507_v57 = vld [vmem:[%s7220_s1 + $0x308] sm:$0xff]  }
  0x4f   :  { %4893 = vmatprep.subr.bf16.mxu1 %v5472_v58  ;;  %v50_v58 = vld [vmem:[%s7221_s0 + $0x120] sm:$0xff] }
  0x50   :  { %4848 = vmatpush3.bf16.msra.mxu0 %v5471_v51  ;;  %v5503_v51 = vld [vmem:[%s7220_s1 + $0x300] sm:$0xff]  }
  0x51   :  { %4894 = vmatpush3.bf16.msra.mxu1 %v5473_v60  ;;  %4849 = vmatprep.subr.bf16.mxu0 %v5474_v62  ;;  %v67_v62 = vld [vmem:[%s7221_s0 + $0x1a8] sm:$0xff] }
  0x52   :  { %4895 = vmatprep.subr.bf16.mxu1 %v5476_v0  ;;  %v5508_v0 = vld [vmem:[%s7220_s1 + $0x3c8] sm:$0xff]  }
  0x53   :  { %3143 = vmatmul.mubr.bf16.gmra.mrb[24].mxu0 %v4240_v59  ;;  %v66_v59 = vld [vmem:[%s7221_s0 + $0x1a0] sm:$0xff] }
  0x54   :  { %3215 = vmatmul.mubr.bf16.gmra.mrb[24].mxu1 %v4242_v61  ;;  %4850 = vmatpush3.bf16.msra.mxu0 %v5475_v63  ;;  %v4245_v60 = vcombine.high %v50_v58, %v66_v59  ;;  %v51_v61 = vld [vmem:[%s7221_s0 + $0x128] sm:$0xff]  ;;  %v4244_v3 = vcombine.low %v50_v58, %v66_v59  ;;  %v5539_v58 = vld [vmem:[%s7220_s1 + $0x400] sm:$0xff]  }
  0x55   :  { %4896 = vmatpush3.bf16.msra.mxu1 %v5477_v1  ;;  %3150 = vmatprep.mubr.bf16.mxu0 %v4273_v6  ;;  %v4247_v63 = vcombine.high %v51_v61, %v67_v62  ;;  %v5509_v1 = vld [vmem:[%s7220_s1 + $0x388] sm:$0xff]   ;;  %v4246_v5 = vcombine.low %v51_v61, %v67_v62  ;;  %v5512_v6 = vld [vmem:[%s7220_s1 + $0x3d0] sm:$0xff]  }
  0x56   :  { %3222 = vmatprep.mubr.bf16.mxu1 %v4275_v7  ;;  %4851 = vmatprep.subr.bf16.mxu0 %v5478_v8  ;;  %v5513_v7 = vld [vmem:[%s7220_s1 + $0x390] sm:$0xff]   ;;  %v82_v8 = vld [vmem:[%s7221_s0 + $0x220] sm:$0xff]  ;;  %v5542_v62 = vld [vmem:[%s7220_s1 + $0x448] sm:$0xff]  }
  0x57   :  { %4897 = vmatprep.subr.bf16.mxu1 %v5480_v11  ;;  %v99_v11 = vld [vmem:[%s7221_s0 + $0x2a8] sm:$0xff] }
  0x58   :  { %4852 = vmatpush3.bf16.msra.mxu0 %v5479_v9  ;;  %v98_v9 = vld [vmem:[%s7221_s0 + $0x2a0] sm:$0xff] }
  0x59   :  { %4898 = vmatpush3.bf16.msra.mxu1 %v5481_v13  ;;  %4853 = vmatprep.subr.bf16.mxu0 %v5482_v14  ;;  %v5514_v14 = vld [vmem:[%s7220_s1 + $0x358] sm:$0xff]   ;;  %v4276_v18 = vcombine.low %v82_v8, %v98_v9 }
  0x5a   :  { %4899 = vmatprep.subr.bf16.mxu1 %v5484_v16  ;;  %v5516_v16 = vld [vmem:[%s7220_s1 + $0x3d8] sm:$0xff]  }
  0x5b   :  { %3151 = vmatmul.mubr.bf16.gmra.mrb[28].mxu0 %v4272_v10  ;;  %v83_v10 = vld [vmem:[%s7221_s0 + $0x228] sm:$0xff] }
  0x5c   :  { %3223 = vmatmul.mubr.bf16.gmra.mrb[28].mxu1 %v4274_v12  ;;  %4854 = vmatpush3.bf16.msra.mxu0 %v5483_v15  ;;  %v4277_v12 = vcombine.high %v82_v8, %v98_v9  ;;  %v4279_v13 = vcombine.high %v83_v10, %v99_v11  ;;  %v5515_v15 = vld [vmem:[%s7220_s1 + $0x318] sm:$0xff]   ;;  %v5546_v8 = vld [vmem:[%s7220_s1 + $0x450] sm:$0xff]  }
  0x5d   :  { %3158 = vmatprep.mubr.bf16.mxu0 %v4305_v20  ;;  %3230 = vmatprep.mubr.bf16.mxu1 %v4307_v22  ;;  %v4278_v20 = vcombine.low %v83_v10, %v99_v11  ;;  %v5520_v22 = vld [vmem:[%s7220_s1 + $0x3e0] sm:$0xff]   ;;  %v5547_v9 = vld [vmem:[%s7220_s1 + $0x410] sm:$0xff]  }
  0x5e   :  { %4900 = vmatpush3.bf16.msra.mxu1 %v5485_v23  ;;  %4855 = vmatprep.subr.bf16.mxu0 %v5486_v25  ;;  %v114_v23 = vld [vmem:[%s7221_s0 + $0x320] sm:$0xff]  ;;  %v115_v25 = vld [vmem:[%s7221_s0 + $0x328] sm:$0xff]  ;;  %v5548_v10 = vld [vmem:[%s7220_s1 + $0x4d0] sm:$0xff]  }
  0x5f   :  { %4901 = vmatprep.subr.bf16.mxu1 %v5488_v28 }
  0x60   :  { %4856 = vmatpush3.bf16.msra.mxu0 %v5487_v27  ;;  %v131_v27 = vld [vmem:[%s7221_s0 + $0x3a8] sm:$0xff] }
  0x61   :  { %4857 = vmatprep.subr.bf16.mxu0 %v5490_v30  ;;  %v4311_v28 = vcombine.high %v115_v25, %v131_v27  ;;  %v5522_v30 = vld [vmem:[%s7220_s1 + $0x368] sm:$0xff]  }
  0x62   :  { %4902 = vmatpush3.bf16.msra.mxu1 %v5489_v29  ;;  %v5521_v29 = vld [vmem:[%s7220_s1 + $0x3a0] sm:$0xff]  }
  0x63   :  { %3159 = vmatmul.mubr.bf16.gmra.mrb[32].mxu0 %v4304_v24  ;;  %4903 = vmatprep.subr.bf16.mxu1 %v5496_v36  ;;  %v130_v24 = vld [vmem:[%s7221_s0 + $0x3a0] sm:$0xff]  ;;  %v5526_v36 = vld [vmem:[%s7220_s1 + $0x370] sm:$0xff]  }
  0x64   :  { %3231 = vmatmul.mubr.bf16.gmra.mrb[32].mxu1 %v4306_v26  ;;  %3166 = vmatprep.mubr.bf16.mxu0 %v4337_v33  ;;  %v4309_v26 = vcombine.high %v114_v23, %v130_v24  ;;  %v4308_v32 = vcombine.low %v114_v23, %v130_v24  ;;  %v5524_v33 = vld [vmem:[%s7220_s1 + $0x3e8] sm:$0xff]   ;;  %v5553_v23 = vld [vmem:[%s7220_s1 + $0x498] sm:$0xff]   ;;  %v5554_v24 = vld [vmem:[%s7220_s1 + $0x460] sm:$0xff]  }
  0x65   :  { %3238 = vmatprep.mubr.bf16.mxu1 %v4339_v34  ;;  %4858 = vmatpush3.bf16.msra.mxu0 %v5493_v35  ;;  %v4310_v34 = vcombine.low %v115_v25, %v131_v27  ;;  %v5525_v35 = vld [vmem:[%s7220_s1 + $0x3a8] sm:$0xff]   ;;  %v5555_v25 = vld [vmem:[%s7220_s1 + $0x420] sm:$0xff]  }
  0x66   :  { %4904 = vmatpush3.bf16.msra.mxu1 %v5497_v37  ;;  %4859 = vmatprep.subr.bf16.mxu0 %v5498_v39  ;;  %v146_v37 = vld [vmem:[%s7221_s0 + $0x420] sm:$0xff] }
  0x67   :  { %4905 = vmatprep.subr.bf16.mxu1 %v5500_v42  ;;  %v4341_v39 = vcombine.high %v146_v37, %v146_v37  ;;  %v5532_v42 = vld [vmem:[%s7220_s1 + $0x3f0] sm:$0xff]   ;;  %v4340_v46 = vcombine.low %v146_v37, %v146_v37  ;;  %v5556_v27 = vld [vmem:[%s7220_s1 + $0x4e0] sm:$0xff]   ;;  %v5559_v37 = vld [vmem:[%s7220_s1 + $0x428] sm:$0xff]  }
  0x69   :  { %4860 = vmatpush3.bf16.msra.mxu0 %v5499_v41  ;;  %v5529_v41 = vld [vmem:[%s7220_s1 + $0x330] sm:$0xff]  }
  0x6a   :  { %4906 = vmatpush3.bf16.msra.mxu1 %v5501_v43  ;;  %4937 = vmatprep.subr.bf16.mxu0 %v5502_v50  ;;  %v5533_v43 = vld [vmem:[%s7220_s1 + $0x3b0] sm:$0xff]  }
  0x6b   :  { %3167 = vmatmul.mubr.bf16.gmra.mrb[36].mxu0 %v4336_v38  ;;  %4983 = vmatprep.subr.bf16.mxu1 %v5504_v53  ;;  %v147_v38 = vld [vmem:[%s7221_s0 + $0x428] sm:$0xff]  ;;  %v20_v50 = vld [vmem:[%s7221_s0 + $0x30] sm:$0xff] }
  0x6c   :  { %3239 = vmatmul.mubr.bf16.gmra.mrb[36].mxu1 %v4338_v40  ;;  %3278 = vmatprep.mubr.bf16.mxu0 %v4213_v47  ;;  %v4343_v40 = vcombine.high %v147_v38, %v147_v38  ;;  %v5536_v47 = vld [vmem:[%s7220_s1 + $0x3f8] sm:$0xff]   ;;  %v4342_v48 = vcombine.low %v147_v38, %v147_v38  ;;  %v5560_v38 = vld [vmem:[%s7220_s1 + $0x4e8] sm:$0xff]  }
  0x6d   :  { %3350 = vmatprep.mubr.bf16.mxu1 %v4215_v49  ;;  %v5537_v49 = vld [vmem:[%s7220_s1 + $0x3b8] sm:$0xff]  }
  0x73   :  { %3279 = vmatmul.mubr.bf16.vlgmr.msra.gmra.mrb[40].mxu0 %v4212_v52  ;;  %v21_v52 = vld [vmem:[%s7221_s0 + $0x38] sm:$0xff] }
  0x74   :  { %3351 = vmatmul.mubr.bf16.vlgmr.msra.gmra.mrb[40].mxu1 %v4214_v54  ;;  %4938 = vmatpush3.bf16.msra.mxu0 %v5503_v51  ;;  %v36_v51 = vld [vmem:[%s7221_s0 + $0xb0] sm:$0xff]  ;;  %v37_v54 = vld [vmem:[%s7221_s0 + $0xb8] sm:$0xff] }
  0x75   :  { %4984 = vmatpush3.bf16.msra.mxu1 %v5505_v55  ;;  %4939 = vmatprep.subr.bf16.mxu0 %v5506_v56  ;;  %v4217_v53 = vcombine.high %v20_v50, %v36_v51  ;;  %v4219_v55 = vcombine.high %v21_v52, %v37_v54  ;;  %v5538_v56 = vld [vmem:[%s7220_s1 + $0x440] sm:$0xff]   ;;  %v4216_v59 = vcombine.low %v20_v50, %v36_v51  ;;  %v5570_v50 = vld [vmem:[%s7220_s1 + $0x478] sm:$0xff]  }
  0x76   :  { %3286 = vmatprep.mubr.bf16.mxu0 %v4245_v60  ;;  %3358 = vmatprep.mubr.bf16.mxu1 %v4247_v63  ;;  %v5541_v60 = vld [vmem:[%s7220_s1 + $0x480] sm:$0xff]   ;;  %v4218_v61 = vcombine.low %v21_v52, %v37_v54  ;;  %v52_v63 = vld [vmem:[%s7221_s0 + $0x130] sm:$0xff]  ;;  %v5571_v51 = vld [vmem:[%s7220_s1 + $0x438] sm:$0xff]  }
  0x77   :  { %4985 = vmatprep.subr.bf16.mxu1 %v5508_v0  ;;  %v68_v0 = vld [vmem:[%s7221_s0 + $0x1b0] sm:$0xff]  ;;  %v5572_v52 = vld [vmem:[%s7220_s1 + $0x4f8] sm:$0xff]  }
  0x78   :  { %4940 = vmatpush3.bf16.msra.mxu0 %v5507_v57  ;;  %v5540_v57 = vld [vmem:[%s7220_s1 + $0x4c0] sm:$0xff]   ;;  %v4248_v11 = vcombine.low %v52_v63, %v68_v0 }
  0x79   :  { %4986 = vmatpush3.bf16.msra.mxu1 %v5509_v1  ;;  %4941 = vmatprep.subr.bf16.mxu0 %v5510_v2  ;;  %v53_v1 = vld [vmem:[%s7221_s0 + $0x138] sm:$0xff] }
  0x7a   :  { %4987 = vmatprep.subr.bf16.mxu1 %v5512_v6  ;;  %v69_v2 = vld [vmem:[%s7221_s0 + $0x1b8] sm:$0xff]  ;;  %v5544_v6 = vld [vmem:[%s7220_s1 + $0x4c8] sm:$0xff]  }
  0x7b   :  { %3287 = vmatmul.mubr.bf16.gmra.mrb[44].mxu0 %v4244_v3  ;;  %v5543_v3 = vld [vmem:[%s7220_s1 + $0x408] sm:$0xff]  }
  0x7c   :  { %3359 = vmatmul.mubr.bf16.gmra.mrb[44].mxu1 %v4246_v5  ;;  %4942 = vmatpush3.bf16.msra.mxu0 %v5511_v4  ;;  %v4249_v4 = vcombine.high %v52_v63, %v68_v0  ;;  %v4251_v5 = vcombine.high %v53_v1, %v69_v2  ;;  %v5576_v63 = vld [vmem:[%s7220_s1 + $0x5c0] sm:$0xff]  }
  0x7d   :  { %4988 = vmatpush3.bf16.msra.mxu1 %v5513_v7  ;;  %3294 = vmatprep.mubr.bf16.mxu0 %v4277_v12  ;;  %v5545_v7 = vld [vmem:[%s7220_s1 + $0x488] sm:$0xff]   ;;  %v5549_v12 = vld [vmem:[%s7220_s1 + $0x490] sm:$0xff]   ;;  %v5575_v0 = vld [vmem:[%s7220_s1 + $0x500] sm:$0xff]  }
  0x7e   :  { %3366 = vmatprep.mubr.bf16.mxu1 %v4279_v13  ;;  %4943 = vmatprep.subr.bf16.mxu0 %v5514_v14  ;;  %v84_v13 = vld [vmem:[%s7221_s0 + $0x230] sm:$0xff]  ;;  %v4250_v14 = vcombine.low %v53_v1, %v69_v2  ;;  %v54_v1 = vld [vmem:[%s7221_s0 + $0x140] sm:$0xff] }
  0x7f   :  { %4989 = vmatprep.subr.bf16.mxu1 %v5516_v16  ;;  %v85_v16 = vld [vmem:[%s7221_s0 + $0x238] sm:$0xff]  ;;  %v70_v2 = vld [vmem:[%s7221_s0 + $0x1c0] sm:$0xff] }
  0x80   :  { %4944 = vmatpush3.bf16.msra.mxu0 %v5515_v15  ;;  %v100_v15 = vld [vmem:[%s7221_s0 + $0x2b0] sm:$0xff] }
  0x81   :  { %4990 = vmatpush3.bf16.msra.mxu1 %v5517_v17  ;;  %4945 = vmatprep.subr.bf16.mxu0 %v5518_v19  ;;  %v101_v17 = vld [vmem:[%s7221_s0 + $0x2b8] sm:$0xff] }
  0x82   :  { %4991 = vmatprep.subr.bf16.mxu1 %v5520_v22  ;;  %v5550_v19 = vld [vmem:[%s7220_s1 + $0x458] sm:$0xff]  }
  0x83   :  { %3295 = vmatmul.mubr.bf16.gmra.mrb[48].mxu0 %v4276_v18  ;;  %v4281_v18 = vcombine.high %v84_v13, %v100_v15  ;;  %v5552_v22 = vld [vmem:[%s7220_s1 + $0x4d8] sm:$0xff]  }
  0x84   :  { %3367 = vmatmul.mubr.bf16.gmra.mrb[48].mxu1 %v4278_v20  ;;  %4946 = vmatpush3.bf16.msra.mxu0 %v5519_v21  ;;  %v4283_v20 = vcombine.high %v85_v16, %v101_v17  ;;  %v5551_v21 = vld [vmem:[%s7220_s1 + $0x418] sm:$0xff]  }
  0x85   :  { %3302 = vmatprep.mubr.bf16.mxu0 %v4309_v26  ;;  %3374 = vmatprep.mubr.bf16.mxu1 %v4311_v28  ;;  %v4280_v26 = vcombine.low %v84_v13, %v100_v15  ;;  %v4282_v28 = vcombine.low %v85_v16, %v101_v17  ;;  %v5581_v13 = vld [vmem:[%s7220_s1 + $0x588] sm:$0xff]   ;;  %v5584_v15 = vld [vmem:[%s7220_s1 + $0x5d0] sm:$0xff]   ;;  %v86_v17 = vld [vmem:[%s7221_s0 + $0x240] sm:$0xff] }
  0x86   :  { %4992 = vmatpush3.bf16.msra.mxu1 %v5521_v29  ;;  %4947 = vmatprep.subr.bf16.mxu0 %v5522_v30  ;;  %v116_v29 = vld [vmem:[%s7221_s0 + $0x330] sm:$0xff] }
  0x87   :  { %4993 = vmatprep.subr.bf16.mxu1 %v5524_v33  ;;  %v132_v30 = vld [vmem:[%s7221_s0 + $0x3b0] sm:$0xff]  ;;  %v133_v33 = vld [vmem:[%s7221_s0 + $0x3b8] sm:$0xff] }
  0x88   :  { %4948 = vmatpush3.bf16.msra.mxu0 %v5523_v31  ;;  %v117_v31 = vld [vmem:[%s7221_s0 + $0x338] sm:$0xff]  ;;  %v5583_v16 = vld [vmem:[%s7220_s1 + $0x510] sm:$0xff]  }
  0x89   :  { %4949 = vmatprep.subr.bf16.mxu0 %v5526_v36  ;;  %v5558_v36 = vld [vmem:[%s7220_s1 + $0x468] sm:$0xff]  }
  0x8a   :  { %4994 = vmatpush3.bf16.msra.mxu1 %v5525_v35  ;;  %v5557_v35 = vld [vmem:[%s7220_s1 + $0x4a0] sm:$0xff]  }
  0x8b   :  { %3303 = vmatmul.mubr.bf16.gmra.mrb[52].mxu0 %v4308_v32  ;;  %4995 = vmatprep.subr.bf16.mxu1 %v5532_v42  ;;  %v4313_v32 = vcombine.high %v116_v29, %v132_v30  ;;  %v148_v42 = vld [vmem:[%s7221_s0 + $0x430] sm:$0xff] }
  0x8c   :  { %3375 = vmatmul.mubr.bf16.gmra.mrb[52].mxu1 %v4310_v34  ;;  %3310 = vmatprep.mubr.bf16.mxu0 %v4341_v39  ;;  %v4315_v34 = vcombine.high %v117_v31, %v133_v33  ;;  %v5561_v39 = vld [vmem:[%s7220_s1 + $0x4a8] sm:$0xff]   ;;  %v4344_v54 = vcombine.low %v148_v42, %v148_v42 }
  0x8d   :  { %3382 = vmatprep.mubr.bf16.mxu1 %v4343_v40  ;;  %4950 = vmatpush3.bf16.msra.mxu0 %v5529_v41  ;;  %v4312_v40 = vcombine.low %v116_v29, %v132_v30  ;;  %v5562_v41 = vld [vmem:[%s7220_s1 + $0x470] sm:$0xff]   ;;  %v5589_v29 = vld [vmem:[%s7220_s1 + $0x598] sm:$0xff]   ;;  %v5590_v30 = vld [vmem:[%s7220_s1 + $0x560] sm:$0xff]  }
  0x8e   :  { %4996 = vmatpush3.bf16.msra.mxu1 %v5533_v43  ;;  %4951 = vmatprep.subr.bf16.mxu0 %v5534_v44  ;;  %v149_v43 = vld [vmem:[%s7221_s0 + $0x438] sm:$0xff]  ;;  %v4314_v44 = vcombine.low %v117_v31, %v133_v33  ;;  %v5592_v31 = vld [vmem:[%s7220_s1 + $0x5e0] sm:$0xff]  }
  0x8f   :  { %4997 = vmatprep.subr.bf16.mxu1 %v5536_v47  ;;  %v4347_v47 = vcombine.high %v149_v43, %v149_v43  ;;  %v134_v33 = vld [vmem:[%s7221_s0 + $0x3c0] sm:$0xff] }
  0x91   :  { %4952 = vmatpush3.bf16.msra.mxu0 %v5535_v45  ;;  %v4345_v45 = vcombine.high %v148_v42, %v148_v42  ;;  %v5594_v42 = vld [vmem:[%s7220_s1 + $0x568] sm:$0xff]  }
  0x92   :  { %4998 = vmatpush3.bf16.msra.mxu1 %v5537_v49  ;;  %5029 = vmatprep.subr.bf16.mxu0 %v5538_v56  ;;  %v5569_v49 = vld [vmem:[%s7220_s1 + $0x4b0] sm:$0xff]   ;;  %v38_v56 = vld [vmem:[%s7221_s0 + $0xc0] sm:$0xff] }
  0x93   :  { %3311 = vmatmul.mubr.bf16.gmra.mrb[56].mxu0 %v4340_v46  ;;  %5075 = vmatprep.subr.bf16.mxu1 %v5540_v57  ;;  %v5565_v46 = vld [vmem:[%s7220_s1 + $0x430] sm:$0xff]   ;;  %v23_v57 = vld [vmem:[%s7221_s0 + $0x48] sm:$0xff] }
  0x94   :  { %3383 = vmatmul.mubr.bf16.gmra.mrb[56].mxu1 %v4342_v48  ;;  %3422 = vmatprep.mubr.bf16.mxu0 %v4217_v53  ;;  %v5568_v48 = vld [vmem:[%s7220_s1 + $0x4f0] sm:$0xff]   ;;  %v5573_v53 = vld [vmem:[%s7220_s1 + $0x4b8] sm:$0xff]  }
  0x95   :  { %3494 = vmatprep.mubr.bf16.mxu1 %v4219_v55  ;;  %v22_v55 = vld [vmem:[%s7221_s0 + $0x40] sm:$0xff] }
  0x9b   :  { %3423 = vmatmul.mubr.bf16.vlgmr.msra.gmra.mrb[60].mxu0 %v4216_v59  ;;  %v4221_v59 = vcombine.high %v22_v55, %v38_v56 }
  0x9c   :  { %3495 = vmatmul.mubr.bf16.vlgmr.msra.gmra.mrb[60].mxu1 %v4218_v61  ;;  %5030 = vmatpush3.bf16.msra.mxu0 %v5539_v58  ;;  %v4346_v58 = vcombine.low %v149_v43, %v149_v43  ;;  %v5596_v43 = vld [vmem:[%s7220_s1 + $0x5e8] sm:$0xff]  }
  0x9d   :  { %5076 = vmatpush3.bf16.msra.mxu1 %v5541_v60  ;;  %5031 = vmatprep.subr.bf16.mxu0 %v5542_v62  ;;  %v39_v60 = vld [vmem:[%s7221_s0 + $0xc8] sm:$0xff]  ;;  %v5574_v62 = vld [vmem:[%s7220_s1 + $0x540] sm:$0xff]  }
  0x9e   :  { %3430 = vmatprep.mubr.bf16.mxu0 %v4249_v4  ;;  %3502 = vmatprep.mubr.bf16.mxu1 %v4251_v5  ;;  %v4223_v61 = vcombine.high %v23_v57, %v39_v60  ;;  %v55_v4 = vld [vmem:[%s7221_s0 + $0x148] sm:$0xff] }
  0x9f   :  { %5077 = vmatprep.subr.bf16.mxu1 %v5544_v6  ;;  %v71_v5 = vld [vmem:[%s7221_s0 + $0x1c8] sm:$0xff]  ;;  %v4222_v6 = vcombine.low %v23_v57, %v39_v60  ;;  %v5607_v57 = vld [vmem:[%s7220_s1 + $0x538] sm:$0xff]   ;;  %v24_v60 = vld [vmem:[%s7221_s0 + $0x50] sm:$0xff] }
  0xa0   :  { %5032 = vmatpush3.bf16.msra.mxu0 %v5543_v3  ;;  %v4220_v3 = vcombine.low %v22_v55, %v38_v56  ;;  %v5605_v55 = vld [vmem:[%s7220_s1 + $0x5b0] sm:$0xff]   ;;  %v5606_v56 = vld [vmem:[%s7220_s1 + $0x578] sm:$0xff]  }
  0xa1   :  { %5078 = vmatpush3.bf16.msra.mxu1 %v5545_v7  ;;  %5033 = vmatprep.subr.bf16.mxu0 %v5546_v8  ;;  %v5577_v7 = vld [vmem:[%s7220_s1 + $0x580] sm:$0xff]   ;;  %v5578_v8 = vld [vmem:[%s7220_s1 + $0x548] sm:$0xff]  }
  0xa2   :  { %5079 = vmatprep.subr.bf16.mxu1 %v5548_v10  ;;  %v4253_v10 = vcombine.high %v54_v1, %v70_v2 }
  0xa3   :  { %3431 = vmatmul.mubr.bf16.gmra.mrb[64].mxu0 %v4248_v11  ;;  %v4255_v11 = vcombine.high %v55_v4, %v71_v5 }
  0xa4   :  { %3503 = vmatmul.mubr.bf16.gmra.mrb[64].mxu1 %v4250_v14  ;;  %5034 = vmatpush3.bf16.msra.mxu0 %v5547_v9  ;;  %v5579_v9 = vld [vmem:[%s7220_s1 + $0x508] sm:$0xff]   ;;  %v5582_v14 = vld [vmem:[%s7220_s1 + $0x550] sm:$0xff]  }
  0xa5   :  { %5080 = vmatpush3.bf16.msra.mxu1 %v5549_v12  ;;  %3438 = vmatprep.mubr.bf16.mxu0 %v4281_v18  ;;  %v5580_v12 = vld [vmem:[%s7220_s1 + $0x5c8] sm:$0xff]   ;;  %v102_v18 = vld [vmem:[%s7221_s0 + $0x2c0] sm:$0xff] }
  0xa6   :  { %3510 = vmatprep.mubr.bf16.mxu1 %v4283_v20  ;;  %5035 = vmatprep.subr.bf16.mxu0 %v5550_v19  ;;  %v87_v19 = vld [vmem:[%s7221_s0 + $0x248] sm:$0xff]  ;;  %v4252_v20 = vcombine.low %v54_v1, %v70_v2  ;;  %v5610_v1 = vld [vmem:[%s7220_s1 + $0x640] sm:$0xff]  }
  0xa7   :  { %5081 = vmatprep.subr.bf16.mxu1 %v5552_v22  ;;  %v4254_v22 = vcombine.low %v55_v4, %v71_v5  ;;  %v5612_v5 = vld [vmem:[%s7220_s1 + $0x6c0] sm:$0xff]  }
  0xa8   :  { %5036 = vmatpush3.bf16.msra.mxu0 %v5551_v21  ;;  %v103_v21 = vld [vmem:[%s7221_s0 + $0x2c8] sm:$0xff] }
  0xa9   :  { %5082 = vmatpush3.bf16.msra.mxu1 %v5553_v23  ;;  %5037 = vmatprep.subr.bf16.mxu0 %v5554_v24  ;;  %v5585_v23 = vld [vmem:[%s7220_s1 + $0x590] sm:$0xff]   ;;  %v4285_v24 = vcombine.high %v86_v17, %v102_v18 }
  0xaa   :  { %5083 = vmatprep.subr.bf16.mxu1 %v5556_v27  ;;  %v5587_v27 = vld [vmem:[%s7220_s1 + $0x518] sm:$0xff]  }
  0xab   :  { %3439 = vmatmul.mubr.bf16.gmra.mrb[68].mxu0 %v4280_v26  ;;  %v4287_v26 = vcombine.high %v87_v19, %v103_v21 }
  0xac   :  { %3511 = vmatmul.mubr.bf16.gmra.mrb[68].mxu1 %v4282_v28  ;;  %5038 = vmatpush3.bf16.msra.mxu0 %v5555_v25  ;;  %v5586_v25 = vld [vmem:[%s7220_s1 + $0x558] sm:$0xff]  }
  0xad   :  { %3446 = vmatprep.mubr.bf16.mxu0 %v4313_v32  ;;  %3518 = vmatprep.mubr.bf16.mxu1 %v4315_v34  ;;  %v5588_v28 = vld [vmem:[%s7220_s1 + $0x5d8] sm:$0xff]   ;;  %v118_v32 = vld [vmem:[%s7221_s0 + $0x340] sm:$0xff]  ;;  %v119_v34 = vld [vmem:[%s7221_s0 + $0x348] sm:$0xff] }
  0xae   :  { %5084 = vmatpush3.bf16.msra.mxu1 %v5557_v35  ;;  %5039 = vmatprep.subr.bf16.mxu0 %v5558_v36  ;;  %v4284_v35 = vcombine.low %v86_v17, %v102_v18  ;;  %v135_v36 = vld [vmem:[%s7221_s0 + $0x3c8] sm:$0xff] }
  0xaf   :  { %5085 = vmatprep.subr.bf16.mxu1 %v5560_v38  ;;  %v5591_v38 = vld [vmem:[%s7220_s1 + $0x520] sm:$0xff]   ;;  %v5616_v18 = vld [vmem:[%s7220_s1 + $0x6c8] sm:$0xff]  }
  0xb0   :  { %5040 = vmatpush3.bf16.msra.mxu0 %v5559_v37  ;;  %v4286_v37 = vcombine.low %v87_v19, %v103_v21  ;;  %v5617_v19 = vld [vmem:[%s7220_s1 + $0x688] sm:$0xff]   ;;  %v5620_v21 = vld [vmem:[%s7220_s1 + $0x6d0] sm:$0xff]  }
  0xb1   :  { %5041 = vmatprep.subr.bf16.mxu0 %v5562_v41  ;;  %v5593_v41 = vld [vmem:[%s7220_s1 + $0x5a0] sm:$0xff]  }
  0xb2   :  { %5086 = vmatpush3.bf16.msra.mxu1 %v5561_v39  ;;  %v4317_v39 = vcombine.high %v118_v32, %v134_v33 }
  0xb3   :  { %3447 = vmatmul.mubr.bf16.gmra.mrb[72].mxu0 %v4312_v40  ;;  %5087 = vmatprep.subr.bf16.mxu1 %v5568_v48  ;;  %v4319_v40 = vcombine.high %v119_v34, %v135_v36  ;;  %v151_v48 = vld [vmem:[%s7221_s0 + $0x448] sm:$0xff] }
  0xb4   :  { %3519 = vmatmul.mubr.bf16.gmra.mrb[72].mxu1 %v4314_v44  ;;  %3454 = vmatprep.mubr.bf16.mxu0 %v4345_v45  ;;  %v5595_v44 = vld [vmem:[%s7220_s1 + $0x528] sm:$0xff]   ;;  %v4350_v2 = vcombine.low %v151_v48, %v151_v48 }
  0xb5   :  { %3526 = vmatprep.mubr.bf16.mxu1 %v4347_v47  ;;  %5042 = vmatpush3.bf16.msra.mxu0 %v5565_v46  ;;  %v5597_v45 = vld [vmem:[%s7220_s1 + $0x5a8] sm:$0xff]   ;;  %v5598_v46 = vld [vmem:[%s7220_s1 + $0x570] sm:$0xff]   ;;  %v150_v47 = vld [vmem:[%s7221_s0 + $0x440] sm:$0xff] }
  0xb6   :  { %5088 = vmatpush3.bf16.msra.mxu1 %v5569_v49  ;;  %5043 = vmatprep.subr.bf16.mxu0 %v5570_v50  ;;  %v4316_v49 = vcombine.low %v118_v32, %v134_v33  ;;  %v5604_v50 = vld [vmem:[%s7220_s1 + $0x5f0] sm:$0xff]   ;;  %v5623_v33 = vld [vmem:[%s7220_s1 + $0x618] sm:$0xff]  }
  0xb7   :  { %5089 = vmatprep.subr.bf16.mxu1 %v5572_v52  ;;  %v4349_v52 = vcombine.high %v150_v47, %v150_v47 }
  0xb9   :  { %5044 = vmatpush3.bf16.msra.mxu0 %v5571_v51  ;;  %v4318_v51 = vcombine.low %v119_v34, %v135_v36  ;;  %v5624_v34 = vld [vmem:[%s7220_s1 + $0x6d8] sm:$0xff]   ;;  %v5626_v36 = vld [vmem:[%s7220_s1 + $0x660] sm:$0xff]  }
  0xba   :  { %5090 = vmatpush3.bf16.msra.mxu1 %v5573_v53  ;;  %5121 = vmatprep.subr.bf16.mxu0 %v5574_v62  ;;  %v5601_v53 = vld [vmem:[%s7220_s1 + $0x530] sm:$0xff]   ;;  %v25_v62 = vld [vmem:[%s7221_s0 + $0x58] sm:$0xff] }
  0xbb   :  { %3455 = vmatmul.mubr.bf16.gmra.mrb[76].mxu0 %v4344_v54  ;;  %5167 = vmatprep.subr.bf16.mxu1 %v5576_v63  ;;  %v4351_v54 = vcombine.high %v151_v48, %v151_v48  ;;  %v41_v63 = vld [vmem:[%s7221_s0 + $0xd8] sm:$0xff] }
  0xbc   :  { %3527 = vmatmul.mubr.bf16.gmra.mrb[76].mxu1 %v4346_v58  ;;  %3566 = vmatprep.mubr.bf16.mxu0 %v4221_v59  ;;  %v5608_v58 = vld [vmem:[%s7220_s1 + $0x5f8] sm:$0xff]   ;;  %v4227_v4 = vcombine.high %v25_v62, %v41_v63 }
  0xbd   :  { %3638 = vmatprep.mubr.bf16.mxu1 %v4223_v61  ;;  %v5609_v59 = vld [vmem:[%s7220_s1 + $0x5b8] sm:$0xff]   ;;  %v40_v61 = vld [vmem:[%s7221_s0 + $0xd0] sm:$0xff] }
  0xc3   :  { %3567 = vmatmul.mubr.bf16.vlgmr.msra.gmra.mrb[80].mxu0 %v4220_v3  ;;  %v4225_v3 = vcombine.high %v24_v60, %v40_v61 }
  0xc4   :  { %3639 = vmatmul.mubr.bf16.vlgmr.msra.gmra.mrb[80].mxu1 %v4222_v6  ;;  %5122 = vmatpush3.bf16.msra.mxu0 %v5575_v0  ;;  %v4348_v0 = vcombine.low %v150_v47, %v150_v47  ;;  %v56_v6 = vld [vmem:[%s7221_s0 + $0x150] sm:$0xff] }
  0xc5   :  { %5168 = vmatpush3.bf16.msra.mxu1 %v5577_v7  ;;  %5123 = vmatprep.subr.bf16.mxu0 %v5578_v8  ;;  %v72_v7 = vld [vmem:[%s7221_s0 + $0x1d0] sm:$0xff]  ;;  %v5611_v8 = vld [vmem:[%s7220_s1 + $0x600] sm:$0xff]  }
  0xc6   :  { %3574 = vmatprep.mubr.bf16.mxu0 %v4253_v10  ;;  %3646 = vmatprep.mubr.bf16.mxu1 %v4255_v11  ;;  %v4224_v10 = vcombine.low %v24_v60, %v40_v61  ;;  %v73_v11 = vld [vmem:[%s7221_s0 + $0x1d8] sm:$0xff]  ;;  %v5631_v60 = vld [vmem:[%s7220_s1 + $0x628] sm:$0xff]  }
  0xc7   :  { %5169 = vmatprep.subr.bf16.mxu1 %v5580_v12  ;;  %v4226_v12 = vcombine.low %v25_v62, %v41_v63  ;;  %v5632_v63 = vld [vmem:[%s7220_s1 + $0x6e8] sm:$0xff]  }
  0xc8   :  { %5124 = vmatpush3.bf16.msra.mxu0 %v5579_v9  ;;  %v57_v9 = vld [vmem:[%s7221_s0 + $0x158] sm:$0xff] }
  0xc9   :  { %5170 = vmatpush3.bf16.msra.mxu1 %v5581_v13  ;;  %5125 = vmatprep.subr.bf16.mxu0 %v5582_v14  ;;  %v5613_v13 = vld [vmem:[%s7220_s1 + $0x680] sm:$0xff]   ;;  %v5614_v14 = vld [vmem:[%s7220_s1 + $0x648] sm:$0xff]   ;;  %v4259_v17 = vcombine.high %v57_v9, %v73_v11 }
  0xca   :  { %5171 = vmatprep.subr.bf16.mxu1 %v5584_v15  ;;  %v5615_v15 = vld [vmem:[%s7220_s1 + $0x608] sm:$0xff]  }
  0xcb   :  { %3575 = vmatmul.mubr.bf16.gmra.mrb[84].mxu0 %v4252_v20  ;;  %v5618_v20 = vld [vmem:[%s7220_s1 + $0x650] sm:$0xff]  }
  0xcc   :  { %3647 = vmatmul.mubr.bf16.gmra.mrb[84].mxu1 %v4254_v22  ;;  %5126 = vmatpush3.bf16.msra.mxu0 %v5583_v16  ;;  %v4257_v16 = vcombine.high %v56_v6, %v72_v7  ;;  %v88_v22 = vld [vmem:[%s7221_s0 + $0x250] sm:$0xff] }
  0xcd   :  { %5172 = vmatpush3.bf16.msra.mxu1 %v5585_v23  ;;  %3582 = vmatprep.mubr.bf16.mxu0 %v4285_v24  ;;  %v104_v23 = vld [vmem:[%s7221_s0 + $0x2d0] sm:$0xff] }
  0xce   :  { %3654 = vmatprep.mubr.bf16.mxu1 %v4287_v26  ;;  %5127 = vmatprep.subr.bf16.mxu0 %v5586_v25  ;;  %v5619_v24 = vld [vmem:[%s7220_s1 + $0x610] sm:$0xff]   ;;  %v89_v25 = vld [vmem:[%s7221_s0 + $0x258] sm:$0xff]  ;;  %v4256_v26 = vcombine.low %v56_v6, %v72_v7 }
  0xcf   :  { %5173 = vmatprep.subr.bf16.mxu1 %v5588_v28  ;;  %v4258_v28 = vcombine.low %v57_v9, %v73_v11  ;;  %v5640_v9 = vld [vmem:[%s7220_s1 + $0x6f0] sm:$0xff]  }
  0xd0   :  { %5128 = vmatpush3.bf16.msra.mxu0 %v5587_v27  ;;  %v105_v27 = vld [vmem:[%s7221_s0 + $0x2d8] sm:$0xff] }
  0xd1   :  { %5174 = vmatpush3.bf16.msra.mxu1 %v5589_v29  ;;  %5129 = vmatprep.subr.bf16.mxu0 %v5590_v30  ;;  %v5621_v29 = vld [vmem:[%s7220_s1 + $0x690] sm:$0xff]   ;;  %v4289_v30 = vcombine.high %v88_v22, %v104_v23  ;;  %v4291_v32 = vcombine.high %v89_v25, %v105_v27 }
  0xd2   :  { %5175 = vmatprep.subr.bf16.mxu1 %v5592_v31  ;;  %v5622_v31 = vld [vmem:[%s7220_s1 + $0x658] sm:$0xff]  }
  0xd3   :  { %3583 = vmatmul.mubr.bf16.gmra.mrb[88].mxu0 %v4284_v35  ;;  %v5625_v35 = vld [vmem:[%s7220_s1 + $0x698] sm:$0xff]  }
  0xd4   :  { %3655 = vmatmul.mubr.bf16.gmra.mrb[88].mxu1 %v4286_v37  ;;  %5130 = vmatpush3.bf16.msra.mxu0 %v5591_v38  ;;  %v5628_v37 = vld [vmem:[%s7220_s1 + $0x6e0] sm:$0xff]   ;;  %v6646_v38 = vld [vmem:[%s7221_s0 + $0x350] sm:$0xff] }
  0xd5   :  { %3590 = vmatprep.mubr.bf16.mxu0 %v4317_v39  ;;  %3662 = vmatprep.mubr.bf16.mxu1 %v4319_v40  ;;  %v6651_v39 = vld [vmem:[%s7221_s0 + $0x3d0] sm:$0xff]  ;;  %v6656_v40 = vld [vmem:[%s7221_s0 + $0x358] sm:$0xff] }
  0xd6   :  { %5176 = vmatpush3.bf16.msra.mxu1 %v5593_v41  ;;  %5131 = vmatprep.subr.bf16.mxu0 %v5594_v42  ;;  %v6661_v42 = vld [vmem:[%s7221_s0 + $0x3d8] sm:$0xff] }
  0xd7   :  { %5177 = vmatprep.subr.bf16.mxu1 %v5596_v43 }
  0xd8   :  { %5132 = vmatpush3.bf16.msra.mxu0 %v5595_v44 }
  0xd9   :  { %5133 = vmatprep.subr.bf16.mxu0 %v5598_v46  ;;  %v5627_v46 = vld [vmem:[%s7220_s1 + $0x620] sm:$0xff]  }
  0xda   :  { %5178 = vmatpush3.bf16.msra.mxu1 %v5597_v45  ;;  %v4288_v45 = vcombine.low %v88_v22, %v104_v23  ;;  %v5642_v23 = vld [vmem:[%s7220_s1 + $0x678] sm:$0xff]  }
  0xdb   :  { %3591 = vmatmul.mubr.bf16.gmra.mrb[92].mxu0 %v4316_v49  ;;  %5179 = vmatprep.subr.bf16.mxu1 %v5604_v50  ;;  %v4290_v50 = vcombine.low %v89_v25, %v105_v27  ;;  %v5644_v27 = vld [vmem:[%s7220_s1 + $0x6f8] sm:$0xff]  }
  0xdc   :  { %3663 = vmatmul.mubr.bf16.gmra.mrb[92].mxu1 %v4318_v51  ;;  %3598 = vmatprep.mubr.bf16.mxu0 %v4349_v52 }
  0xdd   :  { %3670 = vmatprep.mubr.bf16.mxu1 %v4351_v54  ;;  %5134 = vmatpush3.bf16.msra.mxu0 %v5601_v53  ;;  %v4321_v54 = vcombine.high %v6646_v38, %v6651_v39 }
  0xde   :  { %5180 = vmatpush3.bf16.msra.mxu1 %v5605_v55  ;;  %5135 = vmatprep.subr.bf16.mxu0 %v5606_v56  ;;  %v4323_v55 = vcombine.high %v6656_v40, %v6661_v42  ;;  %v5629_v56 = vld [vmem:[%s7220_s1 + $0x6a0] sm:$0xff]  }
  0xdf   :  { %5181 = vmatprep.subr.bf16.mxu1 %v5608_v58 }
  0xe1   :  { %5136 = vmatpush3.bf16.msra.mxu0 %v5607_v57  ;;  %v5630_v57 = vld [vmem:[%s7220_s1 + $0x668] sm:$0xff]  }
  0xe2   :  { %5182 = vmatpush3.bf16.msra.mxu1 %v5609_v59  ;;  %5213 = vmatprep.subr.bf16.mxu0 %v5610_v1  ;;  %v5634_v1 = vld [vmem:[%s7220_s1 + $0x670] sm:$0xff]  }
  0xe3   :  { %3599 = vmatmul.mubr.bf16.gmra.mrb[96].mxu0 %v4348_v0  ;;  %5259 = vmatprep.subr.bf16.mxu1 %v5612_v5  ;;  %v5633_v0 = vld [vmem:[%s7220_s1 + $0x6a8] sm:$0xff]   ;;  %v6700_v5 = vld [vmem:[%s7221_s0 + $0x458] sm:$0xff] }
  0xe4   :  { %3671 = vmatmul.mubr.bf16.gmra.mrb[96].mxu1 %v4350_v2  ;;  %3710 = vmatprep.mubr.bf16.mxu0 %v4225_v3  ;;  %v6695_v3 = vld [vmem:[%s7221_s0 + $0x450] sm:$0xff] }
  0xe5   :  { %3782 = vmatprep.mubr.bf16.mxu1 %v4227_v4 }
  0xeb   :  { %3711 = vmatmul.mubr.bf16.vlgmr.msra.gmra.mrb[100].mxu0 %v4224_v10 }
  0xec   :  { %3783 = vmatmul.mubr.bf16.vlgmr.msra.gmra.mrb[100].mxu1 %v4226_v12  ;;  %5214 = vmatpush3.bf16.msra.mxu0 %v5611_v8  ;;  %v4320_v8 = vcombine.low %v6646_v38, %v6651_v39  ;;  %v4352_v38 = vcombine.low %v6695_v3, %v6695_v3 }
  0xed   :  { %5260 = vmatpush3.bf16.msra.mxu1 %v5613_v13  ;;  %5215 = vmatprep.subr.bf16.mxu0 %v5614_v14  ;;  %v4322_v13 = vcombine.low %v6656_v40, %v6661_v42  ;;  %v4353_v14 = vcombine.high %v6695_v3, %v6695_v3  ;;  %v4354_v42 = vcombine.low %v6700_v5, %v6700_v5 }
  0xee   :  { %3718 = vmatprep.mubr.bf16.mxu0 %v4257_v16  ;;  %3790 = vmatprep.mubr.bf16.mxu1 %v4259_v17 }
  0xef   :  { %5261 = vmatprep.subr.bf16.mxu1 %v5616_v18  ;;  %v4355_v18 = vcombine.high %v6700_v5, %v6700_v5  ;;  %v5649_v5 = vld [vmem:[%s7220_s1 + $0x780] sm:$0xff]  }
  0xf0   :  { %5216 = vmatpush3.bf16.msra.mxu0 %v5615_v15 }
  0xf1   :  { %5262 = vmatpush3.bf16.msra.mxu1 %v5617_v19  ;;  %5217 = vmatprep.subr.bf16.mxu0 %v5618_v20  ;;  %v5637_v19 = vld [vmem:[%s7220_s1 + $0x630] sm:$0xff]  }
  0xf2   :  { %5263 = vmatprep.subr.bf16.mxu1 %v5620_v21  ;;  %v5641_v20 = vld [vmem:[%s7220_s1 + $0x6b0] sm:$0xff]  }
  0xf3   :  { %3719 = vmatmul.mubr.bf16.gmra.mrb[104].mxu0 %v4256_v26  ;;  %v5643_v26 = vld [vmem:[%s7220_s1 + $0x638] sm:$0xff]  }
  0xf4   :  { %3791 = vmatmul.mubr.bf16.gmra.mrb[104].mxu1 %v4258_v28  ;;  %5218 = vmatpush3.bf16.msra.mxu0 %v5619_v24  ;;  %v5645_v28 = vld [vmem:[%s7220_s1 + $0x6b8] sm:$0xff]  }
  0xf5   :  { %5264 = vmatpush3.bf16.msra.mxu1 %v5621_v29  ;;  %3726 = vmatprep.mubr.bf16.mxu0 %v4289_v30  ;;  %v6736_v29 = vld [vmem:[%s7221_s0 + $0x60] sm:$0xff] }
  0xf6   :  { %v4677_v41 = vpop.f32.mrb[0].mxu0  ;;  %3798 = vmatprep.mubr.bf16.mxu1 %v4291_v32  ;;  %5219 = vmatprep.subr.bf16.mxu0 %v5622_v31  ;;  %v6741_v30 = vld [vmem:[%s7221_s0 + $0xe0] sm:$0xff]  ;;  %v6746_v31 = vld [vmem:[%s7221_s0 + $0x68] sm:$0xff] }
  0xf7   :  { %v4723_v43 = vpop.f32.mrb[0].mxu1  ;;  %v4678_v44 = vpop.f32.mrb[1].mxu0  ;;  %5265 = vmatprep.subr.bf16.mxu1 %v5624_v34 }
  0xf8   :  { %v4679_v47 = vadd.f32 %v4678_v44, %v4677_v41  ;;  %v4724_v48 = vpop.f32.mrb[1].mxu1  ;;  %v4680_v49 = vpop.f32.mrb[2].mxu0  ;;  %5220 = vmatpush3.bf16.msra.mxu0 %v5623_v33  ;;  %v43_v33 = vld [vmem:[%s7221_s0 + $0xe8] sm:$0xff]  ;;  %v5648_v44 = vld [vmem:[%s7220_s1 + $0x7c0] sm:$0xff]  }
  0xf9   :  { %v4725_v51 = vadd.f32 %v4724_v48, %v4723_v43  ;;  %v4726_v52 = vpop.f32.mrb[2].mxu1  ;;  %v4681_v53 = vpop.f32.mrb[3].mxu0  ;;  %5266 = vmatpush3.bf16.msra.mxu1 %v5625_v35  ;;  %5221 = vmatprep.subr.bf16.mxu0 %v5626_v36  ;;  %v5646_v35 = vld [vmem:[%s7220_s1 + $0x740] sm:$0xff]   ;;  %v4229_v43 = vcombine.high %v6736_v29, %v6741_v30  ;;  %v4231_v48 = vcombine.high %v6746_v31, %v43_v33 }
  0xfa   :  { %v4682_v58 = vadd.f32 %v4681_v53, %v4680_v49  ;;  %v4727_v59 = vpop.f32.mrb[3].mxu1  ;;  %5267 = vmatprep.subr.bf16.mxu1 %v5628_v37 }
  0xfb   :  { %v6679_v61 = vadd.f32 %v4725_v51, %v4679_v47  ;;  %v4728_v62 = vadd.f32 %v4727_v59, %v4726_v52  ;;  %3727 = vmatmul.mubr.bf16.gmra.mrb[108].mxu0 %v4288_v45  ;;  %v6791_v59 = vld [vmem:[%s7221_s0 + $0x1e8] sm:$0xff] }
  0xfc   :  { %3799 = vmatmul.mubr.bf16.gmra.mrb[108].mxu1 %v4290_v50  ;;  %5222 = vmatpush3.bf16.msra.mxu0 %v5627_v46 }
  0xfd   :  { %v6690_v2 = vadd.f32 %v4728_v62, %v4682_v58  ;;  %3734 = vmatprep.mubr.bf16.mxu0 %v4321_v54  ;;  %3806 = vmatprep.mubr.bf16.mxu1 %v4323_v55  ;;  %v6773_v54 = vld [vmem:[%s7221_s0 + $0x160] sm:$0xff] }
  0xfe   :  { %v4683_v4 = vpop.f32.mrb[4].mxu0  ;;  %5268 = vmatpush3.bf16.msra.mxu1 %v5629_v56  ;;  %5223 = vmatprep.subr.bf16.mxu0 %v5630_v57  ;;  %v6778_v55 = vld [vmem:[%s7221_s0 + $0x1e0] sm:$0xff]  ;;  %v6783_v56 = vld [vmem:[%s7221_s0 + $0x168] sm:$0xff] }
  0xff   :  { %v4729_v6 = vpop.f32.mrb[4].mxu1  ;;  %v4684_v7 = vpop.f32.mrb[5].mxu0  ;;  %5269 = vmatprep.subr.bf16.mxu1 %v5632_v63  ;;  %v5647_v58 = vld [vmem:[%s7220_s1 + $0x700] sm:$0xff]   ;;  %v4228_v63 = vcombine.low %v6736_v29, %v6741_v30 }
 0x100   :  { %v4685_v10 = vadd.f32 %v4684_v7, %v4683_v4  ;;  %v4730_v11 = vpop.f32.mrb[5].mxu1  ;;  %v4686_v12 = vpop.f32.mrb[6].mxu0  ;;  %5224 = vmatpush3.bf16.msra.mxu0 %v5631_v60  ;;  %v4230_v4 = vcombine.low %v6746_v31, %v43_v33  ;;  %v4260_v31 = vcombine.low %v6773_v54, %v6778_v55 }
 0x101   :  { %v4731_v15 = vadd.f32 %v4730_v11, %v4729_v6  ;;  %v4732_v16 = vpop.f32.mrb[6].mxu1  ;;  %v4687_v17 = vpop.f32.mrb[7].mxu0  ;;  %5225 = vmatprep.subr.bf16.mxu0 %v5634_v1  ;;  %v5650_v6 = vld [vmem:[%s7220_s1 + $0x748] sm:$0xff]  }
 0x102   :  { %v4688_v21 = vadd.f32 %v4687_v17, %v4686_v12  ;;  %v4733_v22 = vpop.f32.mrb[7].mxu1  ;;  %5270 = vmatpush3.bf16.msra.mxu1 %v5633_v0  ;;  %v5651_v12 = vld [vmem:[%s7220_s1 + $0x708] sm:$0xff]  }
 0x103   :  { %v6722_v24 = vadd.f32 %v4731_v15, %v4685_v10  ;;  %v4734_v25 = vadd.f32 %v4733_v22, %v4732_v16  ;;  %3735 = vmatmul.mubr.bf16.gmra.mrb[112].mxu0 %v4320_v8  ;;  %5271 = vmatprep.subr.bf16.mxu1 %v5640_v9  ;;  %v5652_v15 = vld [vmem:[%s7220_s1 + $0x7c8] sm:$0xff]   ;;  %v6831_v22 = vld [vmem:[%s7221_s0 + $0x2e0] sm:$0xff] }
 0x104   :  { %3807 = vmatmul.mubr.bf16.gmra.mrb[112].mxu1 %v4322_v13  ;;  %3742 = vmatprep.mubr.bf16.mxu0 %v4353_v14  ;;  %v4261_v13 = vcombine.high %v6773_v54, %v6778_v55  ;;  %v4263_v14 = vcombine.high %v6783_v56, %v6791_v59  ;;  %v6887_v54 = vld [vmem:[%s7221_s0 + $0x3e0] sm:$0xff]  ;;  %v6892_v55 = vld [vmem:[%s7221_s0 + $0x368] sm:$0xff] }
 0x105   :  { %v6748_v32 = vadd.f32 %v4734_v25, %v4688_v21  ;;  %3814 = vmatprep.mubr.bf16.mxu1 %v4355_v18  ;;  %5226 = vmatpush3.bf16.msra.mxu0 %v5637_v19  ;;  %v5653_v18 = vld [vmem:[%s7220_s1 + $0x788] sm:$0xff]   ;;  %v5654_v19 = vld [vmem:[%s7220_s1 + $0x750] sm:$0xff]   ;;  %v6826_v21 = vld [vmem:[%s7221_s0 + $0x260] sm:$0xff] }
 0x106   :  { %v4689_v34 = vpop.f32.mrb[8].mxu0  ;;  %5272 = vmatpush3.bf16.msra.mxu1 %v5641_v20  ;;  %5227 = vmatprep.subr.bf16.mxu0 %v5642_v23  ;;  %v5656_v20 = vld [vmem:[%s7220_s1 + $0x7d0] sm:$0xff]   ;;  %v6838_v25 = vld [vmem:[%s7221_s0 + $0x268] sm:$0xff] }
 0x107   :  { %v4735_v36 = vpop.f32.mrb[8].mxu1  ;;  %v4690_v37 = vpop.f32.mrb[9].mxu0  ;;  %5273 = vmatprep.subr.bf16.mxu1 %v5644_v27  ;;  %v5655_v27 = vld [vmem:[%s7220_s1 + $0x710] sm:$0xff]  }
 0x108   :  { %v4691_v39 = vadd.f32 %v4690_v37, %v4689_v34  ;;  %v4736_v40 = vpop.f32.mrb[9].mxu1  ;;  %v4692_v41 = vpop.f32.mrb[10].mxu0  ;;  %v5657_v37 = vld [vmem:[%s7220_s1 + $0x790] sm:$0xff]  }
 0x109   :  { %v4737_v45 = vadd.f32 %v4736_v40, %v4735_v36  ;;  %v4738_v46 = vpop.f32.mrb[10].mxu1  ;;  %v4693_v47 = vpop.f32.mrb[11].mxu0  ;;  %5228 = vmatpush3.bf16.msra.mxu0 %v5643_v26  ;;  %v4262_v36 = vcombine.low %v6783_v56, %v6791_v59 }
 0x10a   :  { %v4694_v49 = vadd.f32 %v4693_v47, %v4692_v41  ;;  %v4739_v50 = vpop.f32.mrb[11].mxu1  ;;  %5274 = vmatpush3.bf16.msra.mxu1 %v5645_v28  ;;  %5305 = vmatprep.subr.bf16.mxu0 %v5646_v35  ;;  %v6846_v28 = vld [vmem:[%s7221_s0 + $0x2e8] sm:$0xff] }
 0x10b   :  { %v6766_v51 = vadd.f32 %v4737_v45, %v4691_v39  ;;  %v4740_v52 = vadd.f32 %v4739_v50, %v4738_v46  ;;  %3743 = vmatmul.mubr.bf16.gmra.mrb[116].mxu0 %v4352_v38  ;;  %5351 = vmatprep.subr.bf16.mxu1 %v5648_v44  ;;  %v5658_v38 = vld [vmem:[%s7220_s1 + $0x758] sm:$0xff]   ;;  %v4295_v44 = vcombine.high %v6838_v25, %v6846_v28  ;;  %v5664_v50 = vld [vmem:[%s7220_s1 + $0x7e0] sm:$0xff]  }
 0x10c   :  { %3815 = vmatmul.mubr.bf16.gmra.mrb[116].mxu1 %v4354_v42  ;;  %3854 = vmatprep.mubr.bf16.mxu0 %v4229_v43  ;;  %v4293_v42 = vcombine.high %v6826_v21, %v6831_v22  ;;  %v5659_v45 = vld [vmem:[%s7220_s1 + $0x718] sm:$0xff]  }
 0x10d   :  { %v6768_v53 = vadd.f32 %v4740_v52, %v4694_v49  ;;  %3926 = vmatprep.mubr.bf16.mxu1 %v4231_v48  ;;  %v5660_v46 = vld [vmem:[%s7220_s1 + $0x7d8] sm:$0xff]   ;;  %v5662_v49 = vld [vmem:[%s7220_s1 + $0x760] sm:$0xff]  }
 0x10e   :  { %v4695_v57 = vpop.f32.mrb[12].mxu0  ;;  %v5661_v48 = vld [vmem:[%s7220_s1 + $0x798] sm:$0xff]   ;;  %v6882_v52 = vld [vmem:[%s7221_s0 + $0x360] sm:$0xff] }
 0x10f   :  { %v4741_v60 = vpop.f32.mrb[12].mxu1  ;;  %v4696_v62 = vpop.f32.mrb[13].mxu0 }
 0x110   :  { %v4697_v0 = vadd.f32 %v4696_v62, %v4695_v57  ;;  %v4742_v1 = vpop.f32.mrb[13].mxu1  ;;  %v4698_v3 = vpop.f32.mrb[14].mxu0  ;;  %v5663_v57 = vld [vmem:[%s7220_s1 + $0x720] sm:$0xff]   ;;  %v4292_v62 = vcombine.low %v6826_v21, %v6831_v22 }
 0x111   :  { %v4743_v7 = vadd.f32 %v4742_v1, %v4741_v60  ;;  %v4744_v8 = vpop.f32.mrb[14].mxu1  ;;  %v4699_v9 = vpop.f32.mrb[15].mxu0  ;;  %v6935_v21 = vld [vmem:[%s7221_s0 + $0x460] sm:$0xff] }
 0x112   :  { %v4700_v10 = vadd.f32 %v4699_v9, %v4698_v3  ;;  %v4745_v11 = vpop.f32.mrb[15].mxu1  ;;  %v4294_v3 = vcombine.low %v6838_v25, %v6846_v28  ;;  %v4325_v9 = vcombine.high %v6882_v52, %v6887_v54  ;;  %v6942_v25 = vld [vmem:[%s7221_s0 + $0x468] sm:$0xff]  ;;  %v4324_v28 = vcombine.low %v6882_v52, %v6887_v54  ;;  %v28_v52 = vld [vmem:[%s7221_s0 + $0x70] sm:$0xff] }
 0x113   :  { %v6812_v16 = vadd.f32 %v4743_v7, %v4697_v0  ;;  %v4746_v17 = vadd.f32 %v4745_v11, %v4744_v8  ;;  %3855 = vmatmul.mubr.bf16.vlgmr.msra.gmra.mrb[120].mxu0 %v4228_v63  ;;  %v44_v54 = vld [vmem:[%s7221_s0 + $0xf0] sm:$0xff] }
 0x114   :  { %3927 = vmatmul.mubr.bf16.vlgmr.msra.gmra.mrb[120].mxu1 %v4230_v4  ;;  %5306 = vmatpush3.bf16.msra.mxu0 %v5647_v58  ;;  %v6900_v58 = vld [vmem:[%s7221_s0 + $0x3e8] sm:$0xff]  ;;  %v5665_v4 = vld [vmem:[%s7220_s1 + $0x7a0] sm:$0xff]  }
 0x115   :  { %v6833_v23 = vadd.f32 %v4746_v17, %v4700_v10  ;;  %5352 = vmatpush3.bf16.msra.mxu1 %v5649_v5  ;;  %5307 = vmatprep.subr.bf16.mxu0 %v5650_v6  ;;  %v5666_v5 = vld [vmem:[%s7220_s1 + $0x768] sm:$0xff]   ;;  %v4327_v10 = vcombine.high %v6892_v55, %v6900_v58 }
 0x116   :  { %v4701_v26 = vpop.f32.mrb[16].mxu0  ;;  %3862 = vmatprep.mubr.bf16.mxu0 %v4261_v13  ;;  %3934 = vmatprep.mubr.bf16.mxu1 %v4263_v14  ;;  %v5667_v14 = vld [vmem:[%s7220_s1 + $0x728] sm:$0xff]  }
 0x117   :  { %v4747_v29 = vpop.f32.mrb[16].mxu1  ;;  %v4702_v30 = vpop.f32.mrb[17].mxu0  ;;  %5353 = vmatprep.subr.bf16.mxu1 %v5652_v15  ;;  %v5668_v17 = vld [vmem:[%s7220_s1 + $0x7e8] sm:$0xff]  }
 0x118   :  { %v4703_v33 = vadd.f32 %v4702_v30, %v4701_v26  ;;  %v4748_v34 = vpop.f32.mrb[17].mxu1  ;;  %v4704_v35 = vpop.f32.mrb[18].mxu0  ;;  %5308 = vmatpush3.bf16.msra.mxu0 %v5651_v12  ;;  %v5676_v30 = vld [vmem:[%s7220_s1 + $0x7f0] sm:$0xff]  }
 0x119   :  { %v4749_v39 = vadd.f32 %v4748_v34, %v4747_v29  ;;  %v4750_v40 = vpop.f32.mrb[18].mxu1  ;;  %v4705_v41 = vpop.f32.mrb[19].mxu0  ;;  %5354 = vmatpush3.bf16.msra.mxu1 %v5653_v18  ;;  %5309 = vmatprep.subr.bf16.mxu0 %v5654_v19  ;;  %v5673_v29 = vld [vmem:[%s7220_s1 + $0x730] sm:$0xff]   ;;  %v4326_v35 = vcombine.low %v6892_v55, %v6900_v58  ;;  %v45_v58 = vld [vmem:[%s7221_s0 + $0xf8] sm:$0xff] }
 0x11a   :  { %v4751_v43 = vpop.f32.mrb[19].mxu1  ;;  %5355 = vmatprep.subr.bf16.mxu1 %v5656_v20  ;;  %v5670_v20 = vld [vmem:[%s7220_s1 + $0x770] sm:$0xff]   ;;  %v4359_v40 = vcombine.high %v6942_v25, %v6942_v25 }
 0x11b   :  { %v6868_v47 = vadd.f32 %v4749_v39, %v4703_v33  ;;  %3863 = vmatmul.mubr.bf16.gmra.mrb[124].mxu0 %v4260_v31  ;;  %v5677_v41 = vld [vmem:[%s7220_s1 + $0x7b0] sm:$0xff]  }
 0x11c   :  { %3935 = vmatmul.mubr.bf16.gmra.mrb[124].mxu1 %v4262_v36  ;;  %5310 = vmatpush3.bf16.msra.mxu0 %v5655_v27  ;;  %v4357_v36 = vcombine.high %v6935_v21, %v6935_v21 }
 0x11d   :  { %5356 = vmatpush3.bf16.msra.mxu1 %v5657_v37  ;;  %3870 = vmatprep.mubr.bf16.mxu0 %v4293_v42  ;;  %v5678_v42 = vld [vmem:[%s7220_s1 + $0x778] sm:$0xff]  }
 0x11e   :  { %v4769_v56 = vpop.f32.mrb[20].mxu0  ;;  %3942 = vmatprep.mubr.bf16.mxu1 %v4295_v44  ;;  %5311 = vmatprep.subr.bf16.mxu0 %v5658_v38 }
 0x11f   :  { %v4815_v59 = vpop.f32.mrb[20].mxu1  ;;  %v4770_v60 = vpop.f32.mrb[21].mxu0  ;;  %5357 = vmatprep.subr.bf16.mxu1 %v5660_v46  ;;  %v5680_v46 = vld [vmem:[%s7220_s1 + $0x7f8] sm:$0xff]  }
 0x120   :  { %v4771_v63 = vadd.f32 %v4770_v60, %v4769_v56  ;;  %v4816_v0 = vpop.f32.mrb[21].mxu1  ;;  %v4772_v1 = vpop.f32.mrb[22].mxu0  ;;  %5312 = vmatpush3.bf16.msra.mxu0 %v5659_v45 }
 0x121   :  { %v4817_v6 = vadd.f32 %v4816_v0, %v4815_v59  ;;  %v4818_v7 = vpop.f32.mrb[22].mxu1  ;;  %v4773_v8 = vpop.f32.mrb[23].mxu0  ;;  %5358 = vmatpush3.bf16.msra.mxu1 %v5661_v48  ;;  %5313 = vmatprep.subr.bf16.mxu0 %v5662_v49 }
 0x122   :  { %v3137_v11 = vadd.f32 %v4771_v63, %v6679_v61  ;;  %v4774_v12 = vadd.f32 %v4773_v8, %v4772_v1  ;;  %v4819_v13 = vpop.f32.mrb[23].mxu1  ;;  %5359 = vmatprep.subr.bf16.mxu1 %v5664_v50  ;;  %v5669_v61 = vld [vmem:[%s7220_s1 + $0x7a8] sm:$0xff]  }
 0x123   :  { %v4820_v15 = vadd.f32 %v4819_v13, %v4818_v7  ;;  %3871 = vmatmul.mubr.bf16.gmra.mrb[128].mxu0 %v4292_v62  ;;  %v4356_v62 = vcombine.low %v6935_v21, %v6935_v21 }
 0x124   :  { %v6923_v18 = vadd.f32 %v4817_v6, %v3137_v11  ;;  %v3140_v19 = vadd.f32 %v4774_v12, %v6690_v2  ;;  %3943 = vmatmul.mubr.bf16.gmra.mrb[128].mxu1 %v4294_v3  ;;  %5314 = vmatpush3.bf16.msra.mxu0 %v5663_v57  ;;  %v29_v57 = vld [vmem:[%s7221_s0 + $0x78] sm:$0xff]  ;;  %v4358_v3 = vcombine.low %v6942_v25, %v6942_v25 }
 0x125   :  { %3878 = vmatprep.mubr.bf16.mxu0 %v4325_v9  ;;  %3950 = vmatprep.mubr.bf16.mxu1 %v4327_v10  ;;  %v4235_v8 = vcombine.high %v29_v57, %v45_v58 }
 0x126   :  { %v6937_v22 = vadd.f32 %v4820_v15, %v3140_v19  ;;  %v4775_v2 = vpop.f32.mrb[24].mxu0  ;;  %5360 = vmatpush3.bf16.msra.mxu1 %v5665_v4  ;;  %5315 = vmatprep.subr.bf16.mxu0 %v5666_v5  ;;  %v4233_v4 = vcombine.high %v28_v52, %v44_v54  ;;  %v60_v15 = vld [vmem:[%s7221_s0 + $0x170] sm:$0xff] }
 0x127   :  { %v4821_v26 = vpop.f32.mrb[24].mxu1  ;;  %v4776_v27 = vpop.f32.mrb[25].mxu0  ;;  %5361 = vmatprep.subr.bf16.mxu1 %v5668_v17 }
 0x128   :  { %v4777_v31 = vadd.f32 %v4776_v27, %v4775_v2  ;;  %v4822_v33 = vpop.f32.mrb[25].mxu1  ;;  %v4778_v34 = vpop.f32.mrb[26].mxu0  ;;  %5316 = vmatpush3.bf16.msra.mxu0 %v5667_v14  ;;  %v4232_v2 = vcombine.low %v28_v52, %v44_v54 }
 0x129   :  { %v4823_v37 = vadd.f32 %v4822_v33, %v4821_v26  ;;  %v4824_v38 = vpop.f32.mrb[26].mxu1  ;;  %v4779_v39 = vpop.f32.mrb[27].mxu0  ;;  %5317 = vmatprep.subr.bf16.mxu0 %v5670_v20 }
 0x12a   :  { %v3145_v43 = vadd.f32 %v4777_v31, %v6722_v24  ;;  %v4780_v44 = vadd.f32 %v4779_v39, %v4778_v34  ;;  %v4825_v45 = vpop.f32.mrb[27].mxu1  ;;  %5362 = vmatpush3.bf16.msra.mxu1 %v5669_v61  ;;  %v5679_v24 = vld [vmem:[%s7220_s1 + $0x738] sm:$0xff]  }
 0x12b   :  { %v4826_v48 = vadd.f32 %v4825_v45, %v4824_v38  ;;  %3879 = vmatmul.mubr.bf16.gmra.mrb[132].mxu0 %v4324_v28  ;;  %5363 = vmatprep.subr.bf16.mxu1 %v5676_v30  ;;  %v61_v61 = vld [vmem:[%s7221_s0 + $0x178] sm:$0xff]  ;;  %v4234_v28 = vcombine.low %v29_v57, %v45_v58 }
 0x12c   :  { %v6968_v49 = vadd.f32 %v4823_v37, %v3145_v43  ;;  %v3148_v50 = vadd.f32 %v4780_v44, %v6748_v32  ;;  %3951 = vmatmul.mubr.bf16.gmra.mrb[132].mxu1 %v4326_v35  ;;  %3886 = vmatprep.mubr.bf16.mxu0 %v4357_v36  ;;  %v5681_v32 = vld [vmem:[%s7220_s1 + $0x7b8] sm:$0xff]  }
 0x12d   :  { %3958 = vmatprep.mubr.bf16.mxu1 %v4359_v40  ;;  %5318 = vmatpush3.bf16.msra.mxu0 %v5673_v29  ;;  %v93_v44 = vld [vmem:[%s7221_s0 + $0x278] sm:$0xff] }
 0x12e   :  { %v6980_v55 = vadd.f32 %v4826_v48, %v3148_v50  ;;  %v4781_v56 = vpop.f32.mrb[28].mxu0  ;;  %5364 = vmatpush3.bf16.msra.mxu1 %v5677_v41  ;;  %5319 = vmatprep.subr.bf16.mxu0 %v5678_v42  ;;  %v92_v41 = vld [vmem:[%s7221_s0 + $0x270] sm:$0xff] }
 0x12f   :  { %v4827_v59 = vpop.f32.mrb[28].mxu1  ;;  %v4782_v60 = vpop.f32.mrb[29].mxu0  ;;  %5365 = vmatprep.subr.bf16.mxu1 %v5680_v46  ;;  %v108_v42 = vld [vmem:[%s7221_s0 + $0x2f0] sm:$0xff] }
 0x130   :  { %v4783_v63 = vadd.f32 %v4782_v60, %v4781_v56  ;;  %v4828_v0 = vpop.f32.mrb[29].mxu1  ;;  %v4784_v1 = vpop.f32.mrb[30].mxu0  ;;  %v4297_v56 = vcombine.high %v92_v41, %v108_v42 }
 0x131   :  { %v4829_v5 = vadd.f32 %v4828_v0, %v4827_v59  ;;  %v4830_v6 = vpop.f32.mrb[30].mxu1  ;;  %v4785_v7 = vpop.f32.mrb[31].mxu0  ;;  %5320 = vmatpush3.bf16.msra.mxu0 %v5679_v24  ;;  %v124_v0 = vld [vmem:[%s7221_s0 + $0x370] sm:$0xff] }
 0x132   :  { %v3153_v9 = vadd.f32 %v4783_v63, %v6766_v51  ;;  %v4786_v10 = vadd.f32 %v4785_v7, %v4784_v1  ;;  %v4831_v11 = vpop.f32.mrb[31].mxu1  ;;  %5366 = vmatpush3.bf16.msra.mxu1 %v5681_v32  ;;  %v76_v51 = vld [vmem:[%s7221_s0 + $0x1f0] sm:$0xff]  ;;  %v4296_v7 = vcombine.low %v92_v41, %v108_v42 }
 0x133   :  { %v4832_v12 = vadd.f32 %v4831_v11, %v4830_v6  ;;  %3887 = vmatmul.mubr.bf16.gmra.mrb[136].mxu0 %v4356_v62  ;;  %v4265_v29 = vcombine.high %v60_v15, %v76_v51  ;;  %v4264_v48 = vcombine.low %v60_v15, %v76_v51  ;;  %v140_v1 = vld [vmem:[%s7221_s0 + $0x3f0] sm:$0xff] }
 0x134   :  { %v6996_v13 = vadd.f32 %v4829_v5, %v3153_v9  ;;  %v3156_v14 = vadd.f32 %v4786_v10, %v6768_v53  ;;  %3959 = vmatmul.mubr.bf16.gmra.mrb[136].mxu1 %v4358_v3  ;;  %3998 = vmatprep.mubr.bf16.mxu0 %v4233_v4  ;;  %v77_v53 = vld [vmem:[%s7221_s0 + $0x1f8] sm:$0xff] }
 0x135   :  { %4070 = vmatprep.mubr.bf16.mxu1 %v4235_v8  ;;  %v4267_v34 = vcombine.high %v61_v61, %v77_v53  ;;  %v4266_v54 = vcombine.low %v61_v61, %v77_v53  ;;  %v141_v4 = vld [vmem:[%s7221_s0 + $0x3f8] sm:$0xff] }
 0x136   :  { %v7005_v17 = vadd.f32 %v4832_v12, %v3156_v14  ;;  %v4787_v19 = vpop.f32.mrb[32].mxu0  ;;  %v4329_v12 = vcombine.high %v124_v0, %v140_v1 }
 0x137   :  { %v4833_v20 = vpop.f32.mrb[32].mxu1  ;;  %v4788_v21 = vpop.f32.mrb[33].mxu0 }
 0x138   :  { %v4789_v25 = vadd.f32 %v4788_v21, %v4787_v19  ;;  %v4834_v26 = vpop.f32.mrb[33].mxu1  ;;  %v4790_v27 = vpop.f32.mrb[34].mxu0 }
 0x139   :  { %v4835_v30 = vadd.f32 %v4834_v26, %v4833_v20  ;;  %v4836_v31 = vpop.f32.mrb[34].mxu1  ;;  %v4791_v33 = vpop.f32.mrb[35].mxu0  ;;  %v156_v26 = vld [vmem:[%s7221_s0 + $0x470] sm:$0xff] }
 0x13a   :  { %v3161_v35 = vadd.f32 %v4789_v25, %v6812_v16  ;;  %v4792_v36 = vadd.f32 %v4791_v33, %v4790_v27  ;;  %v4837_v37 = vpop.f32.mrb[35].mxu1 }
 0x13b   :  { %v4838_v38 = vadd.f32 %v4837_v37, %v4836_v31  ;;  %3999 = vmatmul.mubr.bf16.vlgmr.msra.gmra.mrb[140].mxu0 %v4232_v2  ;;  %v4328_v31 = vcombine.low %v124_v0, %v140_v1 }
 0x13c   :  { %v7014_v39 = vadd.f32 %v4835_v30, %v3161_v35  ;;  %v3164_v40 = vadd.f32 %v4792_v36, %v6833_v23  ;;  %4071 = vmatmul.mubr.bf16.vlgmr.msra.gmra.mrb[140].mxu1 %v4234_v28  ;;  %4006 = vmatprep.mubr.bf16.mxu0 %v4265_v29  ;;  %v109_v23 = vld [vmem:[%s7221_s0 + $0x2f8] sm:$0xff]  ;;  %v4361_v36 = vcombine.high %v156_v26, %v156_v26 }
 0x13d   :  { %4078 = vmatprep.mubr.bf16.mxu1 %v4267_v34  ;;  %v4299_v59 = vcombine.high %v93_v44, %v109_v23  ;;  %v4298_v11 = vcombine.low %v93_v44, %v109_v23 }
 0x13e   :  { %v7023_v16 = vadd.f32 %v4838_v38, %v3164_v40  ;;  %v4793_v43 = vpop.f32.mrb[36].mxu0 }
 0x13f   :  { %v4839_v45 = vpop.f32.mrb[36].mxu1  ;;  %v4794_v46 = vpop.f32.mrb[37].mxu0 }
 0x140   :  { %v4795_v50 = vadd.f32 %v4794_v46, %v4793_v43  ;;  %v4840_v24 = vpop.f32.mrb[37].mxu1  ;;  %v4796_v52 = vpop.f32.mrb[38].mxu0 }
 0x141   :  { %v4841_v32 = vadd.f32 %v4840_v24, %v4839_v45  ;;  %v4842_v57 = vpop.f32.mrb[38].mxu1  ;;  %v4797_v58 = vpop.f32.mrb[39].mxu0 }
 0x142   :  { %v3169_v60 = vadd.f32 %v4795_v50, %v6868_v47  ;;  %v4843_v62 = vpop.f32.mrb[39].mxu1  ;;  %v125_v47 = vld [vmem:[%s7221_s0 + $0x378] sm:$0xff] }
 0x143   :  { %4007 = vmatmul.mubr.bf16.gmra.mrb[144].mxu0 %v4264_v48  ;;  %v4331_v19 = vcombine.high %v125_v47, %v141_v4  ;;  %v4330_v35 = vcombine.low %v125_v47, %v141_v4 }
 0x144   :  { %v7032_v63 = vadd.f32 %v4841_v32, %v3169_v60  ;;  %4079 = vmatmul.mubr.bf16.gmra.mrb[144].mxu1 %v4266_v54  ;;  %4014 = vmatprep.mubr.bf16.mxu0 %v4297_v56  ;;  %v4360_v54 = vcombine.low %v156_v26, %v156_v26 }
 0x145   :  { %4086 = vmatprep.mubr.bf16.mxu1 %v4299_v59 }
 0x146   :  { %v4861_v3 = vpop.f32.mrb[40].mxu0 }
 0x147   :  { %v4907_v5 = vpop.f32.mrb[40].mxu1  ;;  %v4862_v6 = vpop.f32.mrb[41].mxu0 }
 0x148   :  { %v4863_v8 = vadd.f32 %v4862_v6, %v4861_v3  ;;  %v4908_v9 = vpop.f32.mrb[41].mxu1  ;;  %v4864_v10 = vpop.f32.mrb[42].mxu0 }
 0x149   :  { %v4909_v14 = vadd.f32 %v4908_v9, %v4907_v5  ;;  %v4910_v15 = vpop.f32.mrb[42].mxu1  ;;  %v4865_v51 = vpop.f32.mrb[43].mxu0 }
 0x14a   :  { %v3281_v61 = vadd.f32 %v4863_v8, %v6923_v18  ;;  %v4866_v53 = vadd.f32 %v4865_v51, %v4864_v10  ;;  %v4911_v20 = vpop.f32.mrb[43].mxu1  ;;  %v157_v18 = vld [vmem:[%s7221_s0 + $0x478] sm:$0xff] }
 0x14b   :  { %v4912_v21 = vadd.f32 %v4911_v20, %v4910_v15  ;;  %4015 = vmatmul.mubr.bf16.gmra.mrb[148].mxu0 %v4296_v7  ;;  %v4363_v41 = vcombine.high %v157_v18, %v157_v18  ;;  %v4362_v57 = vcombine.low %v157_v18, %v157_v18 }
 0x14c   :  { %v7047_v2 = vadd.f32 %v4909_v14, %v3281_v61  ;;  %v3284_v25 = vadd.f32 %v4866_v53, %v6937_v22  ;;  %4087 = vmatmul.mubr.bf16.gmra.mrb[148].mxu1 %v4298_v11  ;;  %4022 = vmatprep.mubr.bf16.mxu0 %v4329_v12 }
 0x14d   :  { %4094 = vmatprep.mubr.bf16.mxu1 %v4331_v19 }
 0x14e   :  { %v7053_v27 = vadd.f32 %v4912_v21, %v3284_v25  ;;  %v4867_v28 = vpop.f32.mrb[44].mxu0 }
 0x14f   :  { %v4913_v29 = vpop.f32.mrb[44].mxu1  ;;  %v4868_v30 = vpop.f32.mrb[45].mxu0 }
 0x150   :  { %v4869_v33 = vadd.f32 %v4868_v30, %v4867_v28  ;;  %v4914_v34 = vpop.f32.mrb[45].mxu1  ;;  %v4870_v22 = vpop.f32.mrb[46].mxu0 }
 0x151   :  { %v4915_v37 = vadd.f32 %v4914_v34, %v4913_v29  ;;  %v4916_v38 = vpop.f32.mrb[46].mxu1  ;;  %v4871_v40 = vpop.f32.mrb[47].mxu0 }
 0x152   :  { %v3289_v42 = vadd.f32 %v4869_v33, %v6968_v49  ;;  %v4872_v43 = vadd.f32 %v4871_v40, %v4870_v22  ;;  %v4917_v44 = vpop.f32.mrb[47].mxu1 }
 0x153   :  { %v4918_v23 = vadd.f32 %v4917_v44, %v4916_v38  ;;  %4023 = vmatmul.mubr.bf16.gmra.mrb[152].mxu0 %v4328_v31 }
 0x154   :  { %v7059_v45 = vadd.f32 %v4915_v37, %v3289_v42  ;;  %v3292_v46 = vadd.f32 %v4872_v43, %v6980_v55  ;;  %4095 = vmatmul.mubr.bf16.gmra.mrb[152].mxu1 %v4330_v35  ;;  %4030 = vmatprep.mubr.bf16.mxu0 %v4361_v36 }
 0x155   :  { %4102 = vmatprep.mubr.bf16.mxu1 %v4363_v41 }
 0x156   :  { %v7062_v48 = vadd.f32 %v4918_v23, %v3292_v46  ;;  %v4873_v50 = vpop.f32.mrb[48].mxu0 }
 0x157   :  { %v4919_v24 = vpop.f32.mrb[48].mxu1  ;;  %v4874_v52 = vpop.f32.mrb[49].mxu0 }
 0x158   :  { %v4875_v56 = vadd.f32 %v4874_v52, %v4873_v50  ;;  %v4920_v32 = vpop.f32.mrb[49].mxu1  ;;  %v4876_v49 = vpop.f32.mrb[50].mxu0 }
 0x159   :  { %v4921_v58 = vadd.f32 %v4920_v32, %v4919_v24  ;;  %v4922_v59 = vpop.f32.mrb[50].mxu1  ;;  %v4877_v60 = vpop.f32.mrb[51].mxu0 }
 0x15a   :  { %v3297_v62 = vadd.f32 %v4875_v56, %v6996_v13  ;;  %v4878_v0 = vadd.f32 %v4877_v60, %v4876_v49  ;;  %v4923_v55 = vpop.f32.mrb[51].mxu1 }
 0x15b   :  { %v4924_v1 = vadd.f32 %v4923_v55, %v4922_v59  ;;  %4031 = vmatmul.mubr.bf16.gmra.mrb[156].mxu0 %v4360_v54 }
 0x15c   :  { %v7065_v3 = vadd.f32 %v4921_v58, %v3297_v62  ;;  %v3300_v47 = vadd.f32 %v4878_v0, %v7005_v17  ;;  %4103 = vmatmul.mubr.bf16.gmra.mrb[156].mxu1 %v4362_v57 }
 0x15e   :  { %v7068_v4 = vadd.f32 %v4924_v1, %v3300_v47  ;;  %v4879_v5 = vpop.f32.mrb[52].mxu0 }
 0x15f   :  { %v4925_v6 = vpop.f32.mrb[52].mxu1  ;;  %v4880_v7 = vpop.f32.mrb[53].mxu0 }
 0x160   :  { %v4881_v8 = vadd.f32 %v4880_v7, %v4879_v5  ;;  %v4926_v9 = vpop.f32.mrb[53].mxu1  ;;  %v4882_v10 = vpop.f32.mrb[54].mxu0 }
 0x161   :  { %v4927_v11 = vadd.f32 %v4926_v9, %v4925_v6  ;;  %v4928_v12 = vpop.f32.mrb[54].mxu1  ;;  %v4883_v13 = vpop.f32.mrb[55].mxu0 }
 0x162   :  { %v3305_v14 = vadd.f32 %v4881_v8, %v7014_v39  ;;  %v4884_v15 = vadd.f32 %v4883_v13, %v4882_v10  ;;  %v4929_v51 = vpop.f32.mrb[55].mxu1 }
 0x163   :  { %v4930_v19 = vadd.f32 %v4929_v51, %v4928_v12 }
 0x164   :  { %v7071_v61 = vadd.f32 %v4927_v11, %v3305_v14  ;;  %v3308_v17 = vadd.f32 %v4884_v15, %v7023_v16 }
 0x166   :  { %v7074_v53 = vadd.f32 %v4930_v19, %v3308_v17  ;;  %v4885_v20 = vpop.f32.mrb[56].mxu0 }
 0x167   :  { %v4931_v21 = vpop.f32.mrb[56].mxu1  ;;  %v4886_v25 = vpop.f32.mrb[57].mxu0 }
 0x168   :  { %v4887_v26 = vadd.f32 %v4886_v25, %v4885_v20  ;;  %v4932_v28 = vpop.f32.mrb[57].mxu1  ;;  %v4888_v18 = vpop.f32.mrb[58].mxu0 }
 0x169   :  { %v4933_v29 = vadd.f32 %v4932_v28, %v4931_v21  ;;  %v4934_v30 = vpop.f32.mrb[58].mxu1  ;;  %v4889_v31 = vpop.f32.mrb[59].mxu0 }
 0x16a   :  { %v3313_v39 = vadd.f32 %v4887_v26, %v7032_v63  ;;  %v4935_v33 = vpop.f32.mrb[59].mxu1 }
 0x16c   :  { %v7077_v34 = vadd.f32 %v4933_v29, %v3313_v39 }
 0x16e   :  { %v4953_v22 = vpop.f32.mrb[60].mxu0 }
 0x16f   :  { %v4999_v35 = vpop.f32.mrb[60].mxu1  ;;  %v4954_v36 = vpop.f32.mrb[61].mxu0 }
 0x170   :  { %v4955_v16 = vadd.f32 %v4954_v36, %v4953_v22  ;;  %v5000_v37 = vpop.f32.mrb[61].mxu1  ;;  %v4956_v38 = vpop.f32.mrb[62].mxu0 }
 0x171   :  { %v5001_v40 = vadd.f32 %v5000_v37, %v4999_v35  ;;  %v5002_v41 = vpop.f32.mrb[62].mxu1  ;;  %v4957_v42 = vpop.f32.mrb[63].mxu0 }
 0x172   :  { %v3425_v43 = vadd.f32 %v4955_v16, %v7047_v2  ;;  %v4958_v44 = vadd.f32 %v4957_v42, %v4956_v38  ;;  %v5003_v23 = vpop.f32.mrb[63].mxu1 }
 0x173   :  { %v5004_v46 = vadd.f32 %v5003_v23, %v5002_v41 }
 0x174   :  { %v7080_v50 = vadd.f32 %v5001_v40, %v3425_v43  ;;  %v3428_v63 = vadd.f32 %v4958_v44, %v7053_v27 }
 0x176   :  { %v7083_v24 = vadd.f32 %v5004_v46, %v3428_v63  ;;  %v4959_v52 = vpop.f32.mrb[64].mxu0 }
 0x177   :  { %v5005_v54 = vpop.f32.mrb[64].mxu1  ;;  %v4960_v56 = vpop.f32.mrb[65].mxu0 }
 0x178   :  { %v4961_v32 = vadd.f32 %v4960_v56, %v4959_v52  ;;  %v5006_v49 = vpop.f32.mrb[65].mxu1  ;;  %v4962_v57 = vpop.f32.mrb[66].mxu0 }
 0x179   :  { %v5007_v58 = vadd.f32 %v5006_v49, %v5005_v54  ;;  %v5008_v59 = vpop.f32.mrb[66].mxu1  ;;  %v4963_v60 = vpop.f32.mrb[67].mxu0 }
 0x17a   :  { %v3433_v2 = vadd.f32 %v4961_v32, %v7059_v45  ;;  %v4964_v62 = vadd.f32 %v4963_v60, %v4962_v57  ;;  %v5009_v0 = vpop.f32.mrb[67].mxu1 }
 0x17b   :  { %v5010_v55 = vadd.f32 %v5009_v0, %v5008_v59 }
 0x17c   :  { %v7086_v1 = vadd.f32 %v5007_v58, %v3433_v2  ;;  %v3436_v27 = vadd.f32 %v4964_v62, %v7062_v48 }
 0x17e   :  { %v7089_v47 = vadd.f32 %v5010_v55, %v3436_v27  ;;  %v4965_v5 = vpop.f32.mrb[68].mxu0 }
 0x17f   :  { %v5011_v6 = vpop.f32.mrb[68].mxu1  ;;  %v4966_v7 = vpop.f32.mrb[69].mxu0 }
 0x180   :  { %v4967_v8 = vadd.f32 %v4966_v7, %v4965_v5  ;;  %v5012_v9 = vpop.f32.mrb[69].mxu1  ;;  %v4968_v10 = vpop.f32.mrb[70].mxu0 }
 0x181   :  { %v5013_v11 = vadd.f32 %v5012_v9, %v5011_v6  ;;  %v5014_v12 = vpop.f32.mrb[70].mxu1  ;;  %v4969_v13 = vpop.f32.mrb[71].mxu0 }
 0x182   :  { %v3441_v45 = vadd.f32 %v4967_v8, %v7065_v3  ;;  %v4970_v14 = vadd.f32 %v4969_v13, %v4968_v10  ;;  %v5015_v15 = vpop.f32.mrb[71].mxu1 }
 0x183   :  { %v5016_v51 = vadd.f32 %v5015_v15, %v5014_v12 }
 0x184   :  { %v7092_v19 = vadd.f32 %v5013_v11, %v3441_v45  ;;  %v3444_v48 = vadd.f32 %v4970_v14, %v7068_v4 }
 0x186   :  { %v7095_v17 = vadd.f32 %v5016_v51, %v3444_v48  ;;  %v4971_v20 = vpop.f32.mrb[72].mxu0 }
 0x187   :  { %v5017_v21 = vpop.f32.mrb[72].mxu1  ;;  %v4972_v25 = vpop.f32.mrb[73].mxu0 }
 0x188   :  { %v4973_v26 = vadd.f32 %v4972_v25, %v4971_v20  ;;  %v5018_v28 = vpop.f32.mrb[73].mxu1  ;;  %v4974_v18 = vpop.f32.mrb[74].mxu0 }
 0x189   :  { %v5019_v29 = vadd.f32 %v5018_v28, %v5017_v21  ;;  %v5020_v30 = vpop.f32.mrb[74].mxu1  ;;  %v4975_v31 = vpop.f32.mrb[75].mxu0 }
 0x18a   :  { %v3449_v3 = vadd.f32 %v4973_v26, %v7071_v61  ;;  %v4976_v39 = vadd.f32 %v4975_v31, %v4974_v18  ;;  %v5021_v33 = vpop.f32.mrb[75].mxu1 }
 0x18b   :  { %v5022_v22 = vadd.f32 %v5021_v33, %v5020_v30 }
 0x18c   :  { %v7098_v35 = vadd.f32 %v5019_v29, %v3449_v3  ;;  %v3452_v4 = vadd.f32 %v4976_v39, %v7074_v53 }
 0x18e   :  { %v7101_v36 = vadd.f32 %v5022_v22, %v3452_v4  ;;  %v4977_v16 = vpop.f32.mrb[76].mxu0 }
 0x18f   :  { %v5023_v37 = vpop.f32.mrb[76].mxu1  ;;  %v4978_v38 = vpop.f32.mrb[77].mxu0 }
 0x190   :  { %v4979_v40 = vadd.f32 %v4978_v38, %v4977_v16  ;;  %v5024_v41 = vpop.f32.mrb[77].mxu1  ;;  %v4980_v42 = vpop.f32.mrb[78].mxu0 }
 0x191   :  { %v5025_v43 = vadd.f32 %v5024_v41, %v5023_v37  ;;  %v5026_v44 = vpop.f32.mrb[78].mxu1  ;;  %v4981_v23 = vpop.f32.mrb[79].mxu0 }
 0x192   :  { %v3457_v61 = vadd.f32 %v4979_v40, %v7077_v34  ;;  %v5027_v46 = vpop.f32.mrb[79].mxu1 }
 0x194   :  { %v7104_v63 = vadd.f32 %v5025_v43, %v3457_v61 }
 0x196   :  { %v5045_v52 = vpop.f32.mrb[80].mxu0 }
 0x197   :  { %v5091_v54 = vpop.f32.mrb[80].mxu1  ;;  %v5046_v56 = vpop.f32.mrb[81].mxu0 }
 0x198   :  { %v5047_v53 = vadd.f32 %v5046_v56, %v5045_v52  ;;  %v5092_v32 = vpop.f32.mrb[81].mxu1  ;;  %v5048_v49 = vpop.f32.mrb[82].mxu0 }
 0x199   :  { %v5093_v57 = vadd.f32 %v5092_v32, %v5091_v54  ;;  %v5094_v58 = vpop.f32.mrb[82].mxu1  ;;  %v5049_v59 = vpop.f32.mrb[83].mxu0 }
 0x19a   :  { %v3569_v60 = vadd.f32 %v5047_v53, %v7080_v50  ;;  %v5050_v2 = vadd.f32 %v5049_v59, %v5048_v49  ;;  %v5095_v62 = vpop.f32.mrb[83].mxu1 }
 0x19b   :  { %v5096_v0 = vadd.f32 %v5095_v62, %v5094_v58 }
 0x19c   :  { %v7107_v55 = vadd.f32 %v5093_v57, %v3569_v60  ;;  %v3572_v34 = vadd.f32 %v5050_v2, %v7083_v24 }
 0x19e   :  { %v7110_v27 = vadd.f32 %v5096_v0, %v3572_v34  ;;  %v5051_v5 = vpop.f32.mrb[84].mxu0  ;;  %v5686_v34 = vmov 0.0  }
 0x19f   :  { %v5097_v6 = vpop.f32.mrb[84].mxu1  ;;  %v5052_v7 = vpop.f32.mrb[85].mxu0  ;;  %4156 = vst [vmem:[%s7222_s3] sm:$0xff] %v5686_v34 }
 0x1a0   :  { %v5053_v8 = vadd.f32 %v5052_v7, %v5051_v5  ;;  %v5098_v9 = vpop.f32.mrb[85].mxu1  ;;  %v5054_v10 = vpop.f32.mrb[86].mxu0 }
 0x1a1   :  { %v5099_v11 = vadd.f32 %v5098_v9, %v5097_v6  ;;  %v5100_v12 = vpop.f32.mrb[86].mxu1  ;;  %v5055_v13 = vpop.f32.mrb[87].mxu0 }
 0x1a2   :  { %v3577_v50 = vadd.f32 %v5053_v8, %v7086_v1  ;;  %v5056_v45 = vadd.f32 %v5055_v13, %v5054_v10  ;;  %v5101_v14 = vpop.f32.mrb[87].mxu1 }
 0x1a3   :  { %v5102_v15 = vadd.f32 %v5101_v14, %v5100_v12 }
 0x1a4   :  { %v7113_v51 = vadd.f32 %v5099_v11, %v3577_v50  ;;  %v3580_v24 = vadd.f32 %v5056_v45, %v7089_v47 }
 0x1a6   :  { %v7116_v48 = vadd.f32 %v5102_v15, %v3580_v24  ;;  %v5057_v20 = vpop.f32.mrb[88].mxu0 }
 0x1a7   :  { %v5103_v21 = vpop.f32.mrb[88].mxu1  ;;  %v5058_v25 = vpop.f32.mrb[89].mxu0 }
 0x1a8   :  { %v5059_v26 = vadd.f32 %v5058_v25, %v5057_v20  ;;  %v5104_v28 = vpop.f32.mrb[89].mxu1  ;;  %v5060_v18 = vpop.f32.mrb[90].mxu0 }
 0x1a9   :  { %v5105_v29 = vadd.f32 %v5104_v28, %v5103_v21  ;;  %v5106_v30 = vpop.f32.mrb[90].mxu1  ;;  %v5061_v31 = vpop.f32.mrb[91].mxu0 }
 0x1aa   :  { %v3585_v1 = vadd.f32 %v5059_v26, %v7092_v19  ;;  %v5062_v3 = vadd.f32 %v5061_v31, %v5060_v18  ;;  %v5107_v39 = vpop.f32.mrb[91].mxu1 }
 0x1ab   :  { %v5108_v33 = vadd.f32 %v5107_v39, %v5106_v30 }
 0x1ac   :  { %v7119_v22 = vadd.f32 %v5105_v29, %v3585_v1  ;;  %v3588_v47 = vadd.f32 %v5062_v3, %v7095_v17 }
 0x1ae   :  { %v7122_v4 = vadd.f32 %v5108_v33, %v3588_v47  ;;  %v5063_v16 = vpop.f32.mrb[92].mxu0 }
 0x1af   :  { %v5109_v37 = vpop.f32.mrb[92].mxu1  ;;  %v5064_v38 = vpop.f32.mrb[93].mxu0 }
 0x1b0   :  { %v5065_v40 = vadd.f32 %v5064_v38, %v5063_v16  ;;  %v5110_v41 = vpop.f32.mrb[93].mxu1  ;;  %v5066_v42 = vpop.f32.mrb[94].mxu0 }
 0x1b1   :  { %v5111_v43 = vadd.f32 %v5110_v41, %v5109_v37  ;;  %v5112_v44 = vpop.f32.mrb[94].mxu1  ;;  %v5067_v23 = vpop.f32.mrb[95].mxu0 }
 0x1b2   :  { %v3593_v19 = vadd.f32 %v5065_v40, %v7098_v35  ;;  %v5068_v61 = vadd.f32 %v5067_v23, %v5066_v42  ;;  %v5113_v46 = vpop.f32.mrb[95].mxu1 }
 0x1b3   :  { %v5114_v52 = vadd.f32 %v5113_v46, %v5112_v44 }
 0x1b4   :  { %v7125_v54 = vadd.f32 %v5111_v43, %v3593_v19  ;;  %v3596_v17 = vadd.f32 %v5068_v61, %v7101_v36 }
 0x1b6   :  { %v7128_v56 = vadd.f32 %v5114_v52, %v3596_v17  ;;  %v5069_v53 = vpop.f32.mrb[96].mxu0 }
 0x1b7   :  { %v5115_v32 = vpop.f32.mrb[96].mxu1  ;;  %v5070_v49 = vpop.f32.mrb[97].mxu0 }
 0x1b8   :  { %v5071_v57 = vadd.f32 %v5070_v49, %v5069_v53  ;;  %v5116_v58 = vpop.f32.mrb[97].mxu1  ;;  %v5072_v59 = vpop.f32.mrb[98].mxu0 }
 0x1b9   :  { %v5117_v60 = vadd.f32 %v5116_v58, %v5115_v32  ;;  %v5118_v2 = vpop.f32.mrb[98].mxu1  ;;  %v5073_v62 = vpop.f32.mrb[99].mxu0 }
 0x1ba   :  { %v3601_v35 = vadd.f32 %v5071_v57, %v7104_v63  ;;  %v5119_v0 = vpop.f32.mrb[99].mxu1 }
 0x1bc   :  { %v7134_v36 = vadd.f32 %v5117_v60, %v3601_v35 }
 0x1be   :  { %v5137_v5 = vpop.f32.mrb[100].mxu0 }
 0x1bf   :  { %v5183_v6 = vpop.f32.mrb[100].mxu1  ;;  %v5138_v7 = vpop.f32.mrb[101].mxu0 }
 0x1c0   :  { %v5139_v8 = vadd.f32 %v5138_v7, %v5137_v5  ;;  %v5184_v9 = vpop.f32.mrb[101].mxu1  ;;  %v5140_v10 = vpop.f32.mrb[102].mxu0 }
 0x1c1   :  { %v5185_v11 = vadd.f32 %v5184_v9, %v5183_v6  ;;  %v5186_v12 = vpop.f32.mrb[102].mxu1  ;;  %v5141_v13 = vpop.f32.mrb[103].mxu0 }
 0x1c2   :  { %v3713_v50 = vadd.f32 %v5139_v8, %v7107_v55  ;;  %v5142_v63 = vadd.f32 %v5141_v13, %v5140_v10  ;;  %v5187_v45 = vpop.f32.mrb[103].mxu1 }
 0x1c3   :  { %v5188_v14 = vadd.f32 %v5187_v45, %v5186_v12 }
 0x1c4   :  { %v7137_v15 = vadd.f32 %v5185_v11, %v3713_v50  ;;  %v3716_v24 = vadd.f32 %v5142_v63, %v7110_v27 }
 0x1c6   :  { %v7140_v20 = vadd.f32 %v5188_v14, %v3716_v24  ;;  %v5143_v21 = vpop.f32.mrb[104].mxu0 }
 0x1c7   :  { %v5189_v25 = vpop.f32.mrb[104].mxu1  ;;  %v5144_v26 = vpop.f32.mrb[105].mxu0 }
 0x1c8   :  { %v5145_v28 = vadd.f32 %v5144_v26, %v5143_v21  ;;  %v5190_v18 = vpop.f32.mrb[105].mxu1  ;;  %v5146_v29 = vpop.f32.mrb[106].mxu0 }
 0x1c9   :  { %v5191_v30 = vadd.f32 %v5190_v18, %v5189_v25  ;;  %v5192_v31 = vpop.f32.mrb[106].mxu1  ;;  %v5147_v1 = vpop.f32.mrb[107].mxu0 }
 0x1ca   :  { %v3721_v55 = vadd.f32 %v5145_v28, %v7113_v51  ;;  %v5148_v3 = vadd.f32 %v5147_v1, %v5146_v29  ;;  %v5193_v39 = vpop.f32.mrb[107].mxu1 }
 0x1cb   :  { %v5194_v33 = vadd.f32 %v5193_v39, %v5192_v31 }
 0x1cc   :  { %v7143_v47 = vadd.f32 %v5191_v30, %v3721_v55  ;;  %v3724_v27 = vadd.f32 %v5148_v3, %v7116_v48 }
 0x1ce   :  { %v7146_v16 = vadd.f32 %v5194_v33, %v3724_v27  ;;  %v5149_v37 = vpop.f32.mrb[108].mxu0 }
 0x1cf   :  { %v5195_v38 = vpop.f32.mrb[108].mxu1  ;;  %v5150_v40 = vpop.f32.mrb[109].mxu0 }
 0x1d0   :  { %v5151_v41 = vadd.f32 %v5150_v40, %v5149_v37  ;;  %v5196_v42 = vpop.f32.mrb[109].mxu1  ;;  %v5152_v43 = vpop.f32.mrb[110].mxu0 }
 0x1d1   :  { %v5197_v44 = vadd.f32 %v5196_v42, %v5195_v38  ;;  %v5198_v23 = vpop.f32.mrb[110].mxu1  ;;  %v5153_v19 = vpop.f32.mrb[111].mxu0 }
 0x1d2   :  { %v3729_v51 = vadd.f32 %v5151_v41, %v7119_v22  ;;  %v5154_v61 = vadd.f32 %v5153_v19, %v5152_v43  ;;  %v5199_v46 = vpop.f32.mrb[111].mxu1 }
 0x1d3   :  { %v5200_v52 = vadd.f32 %v5199_v46, %v5198_v23 }
 0x1d4   :  { %v7149_v17 = vadd.f32 %v5197_v44, %v3729_v51  ;;  %v3732_v48 = vadd.f32 %v5154_v61, %v7122_v4 }
 0x1d6   :  { %v7152_v53 = vadd.f32 %v5200_v52, %v3732_v48  ;;  %v5155_v32 = vpop.f32.mrb[112].mxu0 }
 0x1d7   :  { %v5201_v49 = vpop.f32.mrb[112].mxu1  ;;  %v5156_v57 = vpop.f32.mrb[113].mxu0 }
 0x1d8   :  { %v5157_v58 = vadd.f32 %v5156_v57, %v5155_v32  ;;  %v5202_v59 = vpop.f32.mrb[113].mxu1  ;;  %v5158_v60 = vpop.f32.mrb[114].mxu0 }
 0x1d9   :  { %v5203_v2 = vadd.f32 %v5202_v59, %v5201_v49  ;;  %v5204_v62 = vpop.f32.mrb[114].mxu1  ;;  %v5159_v35 = vpop.f32.mrb[115].mxu0 }
 0x1da   :  { %v3737_v22 = vadd.f32 %v5157_v58, %v7125_v54  ;;  %v5160_v0 = vadd.f32 %v5159_v35, %v5158_v60  ;;  %v5205_v34 = vpop.f32.mrb[115].mxu1 }
 0x1db   :  { %v5206_v5 = vadd.f32 %v5205_v34, %v5204_v62 }
 0x1dc   :  { %v7155_v6 = vadd.f32 %v5203_v2, %v3737_v22  ;;  %v3740_v4 = vadd.f32 %v5160_v0, %v7128_v56 }
 0x1de   :  { %v7158_v7 = vadd.f32 %v5206_v5, %v3740_v4  ;;  %v5161_v8 = vpop.f32.mrb[116].mxu0 }
 0x1df   :  { %v5207_v9 = vpop.f32.mrb[116].mxu1  ;;  %v5162_v10 = vpop.f32.mrb[117].mxu0 }
 0x1e0   :  { %v5163_v11 = vadd.f32 %v5162_v10, %v5161_v8  ;;  %v5208_v12 = vpop.f32.mrb[117].mxu1  ;;  %v5164_v13 = vpop.f32.mrb[118].mxu0 }
 0x1e1   :  { %v5209_v50 = vadd.f32 %v5208_v12, %v5207_v9  ;;  %v5210_v63 = vpop.f32.mrb[118].mxu1  ;;  %v5165_v45 = vpop.f32.mrb[119].mxu0 }
 0x1e2   :  { %v3745_v54 = vadd.f32 %v5163_v11, %v7134_v36  ;;  %v5211_v14 = vpop.f32.mrb[119].mxu1 }
 0x1e4   :  { %v7161_v24 = vadd.f32 %v5209_v50, %v3745_v54 }
 0x1e6   :  { %v5229_v21 = vpop.f32.mrb[120].mxu0 }
 0x1e7   :  { %v5275_v25 = vpop.f32.mrb[120].mxu1  ;;  %v5230_v26 = vpop.f32.mrb[121].mxu0 }
 0x1e8   :  { %v5231_v56 = vadd.f32 %v5230_v26, %v5229_v21  ;;  %v5276_v28 = vpop.f32.mrb[121].mxu1  ;;  %v5232_v18 = vpop.f32.mrb[122].mxu0 }
 0x1e9   :  { %v5277_v29 = vadd.f32 %v5276_v28, %v5275_v25  ;;  %v5278_v30 = vpop.f32.mrb[122].mxu1  ;;  %v5233_v31 = vpop.f32.mrb[123].mxu0 }
 0x1ea   :  { %v3857_v1 = vadd.f32 %v5231_v56, %v7137_v15  ;;  %v5234_v55 = vadd.f32 %v5233_v31, %v5232_v18  ;;  %v5279_v3 = vpop.f32.mrb[123].mxu1 }
 0x1eb   :  { %v5280_v39 = vadd.f32 %v5279_v3, %v5278_v30 }
 0x1ec   :  { %v7164_v33 = vadd.f32 %v5277_v29, %v3857_v1  ;;  %v3860_v36 = vadd.f32 %v5234_v55, %v7140_v20 }
 0x1ee   :  { %v7167_v27 = vadd.f32 %v5280_v39, %v3860_v36  ;;  %v5235_v37 = vpop.f32.mrb[124].mxu0 }
 0x1ef   :  { %v5281_v38 = vpop.f32.mrb[124].mxu1  ;;  %v5236_v40 = vpop.f32.mrb[125].mxu0 }
 0x1f0   :  { %v5237_v41 = vadd.f32 %v5236_v40, %v5235_v37  ;;  %v5282_v42 = vpop.f32.mrb[125].mxu1  ;;  %v5238_v43 = vpop.f32.mrb[126].mxu0 }
 0x1f1   :  { %v5283_v44 = vadd.f32 %v5282_v42, %v5281_v38  ;;  %v5284_v23 = vpop.f32.mrb[126].mxu1  ;;  %v5239_v19 = vpop.f32.mrb[127].mxu0 }
 0x1f2   :  { %v3865_v15 = vadd.f32 %v5237_v41, %v7143_v47  ;;  %v5240_v51 = vadd.f32 %v5239_v19, %v5238_v43  ;;  %v5285_v61 = vpop.f32.mrb[127].mxu1 }
 0x1f3   :  { %v5286_v46 = vadd.f32 %v5285_v61, %v5284_v23 }
 0x1f4   :  { %v7170_v52 = vadd.f32 %v5283_v44, %v3865_v15  ;;  %v3868_v20 = vadd.f32 %v5240_v51, %v7146_v16 }
 0x1f6   :  { %v7173_v48 = vadd.f32 %v5286_v46, %v3868_v20  ;;  %v5241_v32 = vpop.f32.mrb[128].mxu0 }
 0x1f7   :  { %v5287_v49 = vpop.f32.mrb[128].mxu1  ;;  %v5242_v57 = vpop.f32.mrb[129].mxu0 }
 0x1f8   :  { %v5243_v58 = vadd.f32 %v5242_v57, %v5241_v32  ;;  %v5288_v59 = vpop.f32.mrb[129].mxu1  ;;  %v5244_v60 = vpop.f32.mrb[130].mxu0 }
 0x1f9   :  { %v5289_v2 = vadd.f32 %v5288_v59, %v5287_v49  ;;  %v5290_v62 = vpop.f32.mrb[130].mxu1  ;;  %v5245_v35 = vpop.f32.mrb[131].mxu0 }
 0x1fa   :  { %v3873_v47 = vadd.f32 %v5243_v58, %v7149_v17  ;;  %v5246_v22 = vadd.f32 %v5245_v35, %v5244_v60  ;;  %v5291_v0 = vpop.f32.mrb[131].mxu1 }
 0x1fb   :  { %v5292_v34 = vadd.f32 %v5291_v0, %v5290_v62 }
 0x1fc   :  { %v7176_v5 = vadd.f32 %v5289_v2, %v3873_v47  ;;  %v3876_v16 = vadd.f32 %v5246_v22, %v7152_v53 }
 0x1fe   :  { %v7179_v4 = vadd.f32 %v5292_v34, %v3876_v16  ;;  %v5247_v8 = vpop.f32.mrb[132].mxu0 }
 0x1ff   :  { %v5293_v9 = vpop.f32.mrb[132].mxu1  ;;  %v5248_v10 = vpop.f32.mrb[133].mxu0 }
 0x200   :  { %v5249_v11 = vadd.f32 %v5248_v10, %v5247_v8  ;;  %v5294_v12 = vpop.f32.mrb[133].mxu1  ;;  %v5250_v13 = vpop.f32.mrb[134].mxu0 }
 0x201   :  { %v5295_v50 = vadd.f32 %v5294_v12, %v5293_v9  ;;  %v5296_v63 = vpop.f32.mrb[134].mxu1  ;;  %v5251_v45 = vpop.f32.mrb[135].mxu0 }
 0x202   :  { %v3881_v17 = vadd.f32 %v5249_v11, %v7155_v6  ;;  %v5252_v54 = vadd.f32 %v5251_v45, %v5250_v13  ;;  %v5297_v14 = vpop.f32.mrb[135].mxu1 }
 0x203   :  { %v5298_v21 = vadd.f32 %v5297_v14, %v5296_v63 }
 0x204   :  { %v7182_v25 = vadd.f32 %v5295_v50, %v3881_v17  ;;  %v3884_v53 = vadd.f32 %v5252_v54, %v7158_v7 }
 0x206   :  { %v7185_v26 = vadd.f32 %v5298_v21, %v3884_v53  ;;  %v5253_v56 = vpop.f32.mrb[136].mxu0 }
 0x207   :  { %v5299_v28 = vpop.f32.mrb[136].mxu1  ;;  %v5254_v18 = vpop.f32.mrb[137].mxu0 }
 0x208   :  { %v5255_v29 = vadd.f32 %v5254_v18, %v5253_v56  ;;  %v5300_v30 = vpop.f32.mrb[137].mxu1  ;;  %v5256_v31 = vpop.f32.mrb[138].mxu0 }
 0x209   :  { %v5301_v1 = vadd.f32 %v5300_v30, %v5299_v28  ;;  %v5302_v55 = vpop.f32.mrb[138].mxu1  ;;  %v5257_v3 = vpop.f32.mrb[139].mxu0 }
 0x20a   :  { %v3889_v6 = vadd.f32 %v5255_v29, %v7161_v24  ;;  %v5303_v39 = vpop.f32.mrb[139].mxu1 }
 0x20c   :  { %v7188_v36 = vadd.f32 %v5301_v1, %v3889_v6 }
 0x20e   :  { %v5321_v37 = vpop.f32.mrb[140].mxu0 }
 0x20f   :  { %v5367_v38 = vpop.f32.mrb[140].mxu1  ;;  %v5322_v40 = vpop.f32.mrb[141].mxu0 }
 0x210   :  { %v5323_v7 = vadd.f32 %v5322_v40, %v5321_v37  ;;  %v5368_v41 = vpop.f32.mrb[141].mxu1  ;;  %v5324_v42 = vpop.f32.mrb[142].mxu0 }
 0x211   :  { %v5369_v43 = vadd.f32 %v5368_v41, %v5367_v38  ;;  %v5370_v44 = vpop.f32.mrb[142].mxu1  ;;  %v5325_v23 = vpop.f32.mrb[143].mxu0 }
 0x212   :  { %v4001_v19 = vadd.f32 %v5323_v7, %v7164_v33  ;;  %v5326_v15 = vadd.f32 %v5325_v23, %v5324_v42  ;;  %v5371_v51 = vpop.f32.mrb[143].mxu1 }
 0x213   :  { %v5372_v61 = vadd.f32 %v5371_v51, %v5370_v44 }
 0x214   :  { %v4073_v46 = vadd.f32 %v5369_v43, %v4001_v19  ;;  %v4004_v24 = vadd.f32 %v5326_v15, %v7167_v27 }
 0x216   :  { %v4076_v20 = vadd.f32 %v5372_v61, %v4004_v24  ;;  %v5327_v32 = vpop.f32.mrb[144].mxu0  ;;  %v4172_v49 = vmul.f32 %v4073_v46, %v4073_v46 }
 0x217   :  { %v5373_v57 = vpop.f32.mrb[144].mxu1  ;;  %v5328_v58 = vpop.f32.mrb[145].mxu0 }
 0x218   :  { %v4641_v59 = vpack.c.bf16 %v4076_v20, %v4073_v46  ;;  %v4157_v60 = vadd.f32 %v4076_v20, %v4073_v46  ;;  %v4173_v2 = vmul.f32 %v4076_v20, %v4076_v20  ;;  %v5329_v62 = vadd.f32 %v5328_v58, %v5327_v32  ;;  %v5374_v35 = vpop.f32.mrb[145].mxu1  ;;  %v5330_v47 = vpop.f32.mrb[146].mxu0 }
 0x219   :  { %v5375_v22 = vadd.f32 %v5374_v35, %v5373_v57  ;;  %v5376_v0 = vpop.f32.mrb[146].mxu1  ;;  %v5331_v33 = vpop.f32.mrb[147].mxu0 }
 0x21a   :  { %4642 = vst [vmem:[%s7223_s2] sm:$0xff] %v4641_v59   ;;  %v4181_v34 = vadd.f32 %v4173_v2, %v4172_v49  ;;  %v4009_v27 = vadd.f32 %v5329_v62, %v7170_v52  ;;  %v5332_v16 = vadd.f32 %v5331_v33, %v5330_v47  ;;  %v5377_v8 = vpop.f32.mrb[147].mxu1 }
 0x21b   :  { %v5378_v9 = vadd.f32 %v5377_v8, %v5376_v0 }
 0x21c   :  { %v4081_v10 = vadd.f32 %v5375_v22, %v4009_v27  ;;  %v4012_v11 = vadd.f32 %v5332_v16, %v7173_v48 }
 0x21e   :  { %v4158_v12 = vadd.f32 %v4157_v60, %v4081_v10  ;;  %v4174_v13 = vmul.f32 %v4081_v10, %v4081_v10  ;;  %v4084_v50 = vadd.f32 %v5378_v9, %v4012_v11  ;;  %v5333_v63 = vpop.f32.mrb[148].mxu0 }
 0x21f   :  { %v5379_v45 = vpop.f32.mrb[148].mxu1  ;;  %v5334_v17 = vpop.f32.mrb[149].mxu0 }
 0x220   :  { %v4182_v54 = vadd.f32 %v4181_v34, %v4174_v13  ;;  %v4646_v14 = vpack.c.bf16 %v4084_v50, %v4081_v10  ;;  %v4159_v21 = vadd.f32 %v4158_v12, %v4084_v50  ;;  %v4175_v53 = vmul.f32 %v4084_v50, %v4084_v50  ;;  %v5380_v56 = vpop.f32.mrb[149].mxu1  ;;  %v5336_v28 = vpop.f32.mrb[150].mxu0 }
 0x221   :  { %v5335_v18 = vadd.f32 %v5334_v17, %v5333_v63  ;;  %v5381_v52 = vadd.f32 %v5380_v56, %v5379_v45  ;;  %v5382_v29 = vpop.f32.mrb[150].mxu1  ;;  %v5337_v30 = vpop.f32.mrb[151].mxu0 }
 0x222   :  { %4658 = vst [vmem:[%s7223_s2 + $0x8] sm:$0xff] %v4646_v14   ;;  %v4183_v48 = vadd.f32 %v4182_v54, %v4175_v53  ;;  %v5338_v31 = vadd.f32 %v5337_v30, %v5336_v28  ;;  %v5383_v1 = vpop.f32.mrb[151].mxu1 }
 0x223   :  { %v4017_v55 = vadd.f32 %v5335_v18, %v7176_v5  ;;  %v5384_v3 = vadd.f32 %v5383_v1, %v5382_v29 }
 0x224   :  { %v4020_v6 = vadd.f32 %v5338_v31, %v7179_v4 }
 0x225   :  { %v4089_v39 = vadd.f32 %v5381_v52, %v4017_v55 }
 0x226   :  { %v4092_v37 = vadd.f32 %v5384_v3, %v4020_v6  ;;  %v5339_v38 = vpop.f32.mrb[152].mxu0 }
 0x227   :  { %v4160_v40 = vadd.f32 %v4159_v21, %v4089_v39  ;;  %v4176_v7 = vmul.f32 %v4089_v39, %v4089_v39  ;;  %v5385_v41 = vpop.f32.mrb[152].mxu1  ;;  %v5340_v42 = vpop.f32.mrb[153].mxu0 }
 0x228   :  { %v4651_v43 = vpack.c.bf16 %v4092_v37, %v4089_v39  ;;  %v4177_v44 = vmul.f32 %v4092_v37, %v4092_v37  ;;  %v5341_v23 = vadd.f32 %v5340_v42, %v5339_v38  ;;  %v5386_v19 = vpop.f32.mrb[153].mxu1  ;;  %v5342_v15 = vpop.f32.mrb[154].mxu0 }
 0x229   :  { %v4184_v51 = vadd.f32 %v4183_v48, %v4176_v7  ;;  %v4161_v61 = vadd.f32 %v4160_v40, %v4092_v37  ;;  %v5387_v46 = vadd.f32 %v5386_v19, %v5385_v41  ;;  %v5388_v24 = vpop.f32.mrb[154].mxu1  ;;  %v5343_v5 = vpop.f32.mrb[155].mxu0 }
 0x22a   :  { %4659 = vst [vmem:[%s7223_s2 + $0x10] sm:$0xff] %v4651_v43   ;;  %v4025_v4 = vadd.f32 %v5341_v23, %v7182_v25  ;;  %v5344_v20 = vadd.f32 %v5343_v5, %v5342_v15  ;;  %v5389_v32 = vpop.f32.mrb[155].mxu1 }
 0x22b   :  { %v4185_v49 = vadd.f32 %v4184_v51, %v4177_v44  ;;  %v5390_v57 = vadd.f32 %v5389_v32, %v5388_v24 }
 0x22c   :  { %v4097_v58 = vadd.f32 %v5387_v46, %v4025_v4  ;;  %v4028_v59 = vadd.f32 %v5344_v20, %v7185_v26 }
 0x22e   :  { %v4162_v60 = vadd.f32 %v4161_v61, %v4097_v58  ;;  %v4178_v2 = vmul.f32 %v4097_v58, %v4097_v58  ;;  %v4100_v62 = vadd.f32 %v5390_v57, %v4028_v59  ;;  %v5345_v35 = vpop.f32.mrb[156].mxu0 }
 0x22f   :  { %v5391_v47 = vpop.f32.mrb[156].mxu1  ;;  %v5346_v22 = vpop.f32.mrb[157].mxu0 }
 0x230   :  { %v4186_v0 = vadd.f32 %v4185_v49, %v4178_v2  ;;  %v4656_v33 = vpack.c.bf16 %v4100_v62, %v4097_v58  ;;  %v4163_v34 = vadd.f32 %v4162_v60, %v4100_v62  ;;  %v4179_v27 = vmul.f32 %v4100_v62, %v4100_v62  ;;  %v5392_v16 = vpop.f32.mrb[157].mxu1  ;;  %v5348_v8 = vpop.f32.mrb[158].mxu0 }
 0x231   :  { %v5347_v25 = vadd.f32 %v5346_v22, %v5345_v35  ;;  %v5393_v9 = vadd.f32 %v5392_v16, %v5391_v47  ;;  %v5394_v10 = vpop.f32.mrb[158].mxu1  ;;  %v5349_v11 = vpop.f32.mrb[159].mxu0 }
 0x232   :  { %4660 = vst [vmem:[%s7223_s2 + $0x18] sm:$0xff] %v4656_v33   ;;  %v4187_v26 = vadd.f32 %v4186_v0, %v4179_v27  ;;  %v5395_v12 = vpop.f32.mrb[159].mxu1 }
 0x233   :  { %v4033_v13 = vadd.f32 %v5347_v25, %v7188_v36 }
 0x235   :  { %v4105_v50 = vadd.f32 %v5393_v9, %v4033_v13 }
 0x237   :  { %v4637_v63 = vpack.c.bf16 %v4105_v50, %v4105_v50  ;;  %v4164_v45 = vadd.f32 %v4163_v34, %v4105_v50  ;;  %v4180_v17 = vmul.f32 %v4105_v50, %v4105_v50 }
 0x239   :  { %4155 = vst [vmem:[%s7223_s2 + $0x20] sm:$0xf] %v4637_v63  ;;  %v4165_v54 = vrot.slane %v4164_v45, 4  ;;  %v4188_v14 = vadd.f32 %v4187_v26, %v4180_v17 }
 0x23b   :  { %v4166_v21 = vadd.f32 %v4165_v54, %v4164_v45  ;;  %v4189_v53 = vrot.slane %v4188_v14, 4 }
 0x23d   :  { %v4167_v56 = vrot.slane %v4166_v21, 2  ;;  %v4190_v28 = vadd.f32 %v4189_v53, %v4188_v14 }
 0x23f   :  { %v4168_v18 = vadd.f32 %v4167_v56, %v4166_v21  ;;  %v4191_v52 = vrot.slane %v4190_v28, 2 }
 0x241   :  { %v4169_v29 = vrot.slane %v4168_v18, 1  ;;  %v4192_v30 = vadd.f32 %v4191_v52, %v4190_v28 }
 0x243   :  { %v4170_v48 = vadd.f32 %v4169_v29, %v4168_v18  ;;  %v4193_v36 = vrot.slane %v4192_v30, 1 }
 0x245   :  { %4171 = vst [vmem:[%s7222_s3] sm:$0x1] %v4170_v48  ;;  %v4194_v31 = vadd.f32 %v4193_v36, %v4192_v30 }
 0x247   :  { %4195 = vst [vmem:[%s7222_s3 + $0x1] sm:$0x1] %v4194_v31 }

// kernel: _lambda_.6
= control target key start
LH: loop header
LB: loop body
LE: loop exit
PB: predicated region body
PF: predicated region fallthrough
CT: control target
= control target key end

     0   :  { %v4349_v0 = vmov 0   ;;  %s5905_s1 = inlined_call_operand.vmem [shape: bf16[1152,128], index: 1, kind: input, shape index: {}]   ;;  %s5906_s0 = inlined_call_operand.vmem [shape: bf16[344,1152], index: 0, kind: input, shape index: {}]   ;;  %s5907_s3 = inlined_call_operand.vmem [shape: f32[8,128], index: 3, kind: output, shape index: {1}]   ;;  %s5908_s2 = inlined_call_operand.vmem [shape: bf16[344,128], index: 2, kind: output, shape index: {0}]  }
   0x1   :  { %1803 = vmatprep.subr.bf16.mxu1 %v4349_v0  ;;  %2011 = vmatprep.subr.bf16.mxu0 %v4349_v0  ;;  %v3994_v1 = vld [vmem:[%s5905_s1] sm:$0xff]   ;;  %v3996_v3 = vld [vmem:[%s5905_s1 + $0x8] sm:$0xff]   ;;  %v3998_v5 = vld [vmem:[%s5905_s1 + $0x10] sm:$0xff]  }
   0x2   :  { %v3995_v2 = vld [vmem:[%s5905_s1 + $0x80] sm:$0xff]   ;;  %1804 = vmatpush1.bf16.msra.mxu1 %v3994_v1  ;;  %v3997_v4 = vld [vmem:[%s5905_s1 + $0x88] sm:$0xff]   ;;  %v3999_v6 = vld [vmem:[%s5905_s1 + $0x90] sm:$0xff]  }
   0x3   :  { %2012 = vmatpush1.bf16.msra.mxu0 %v3995_v2  ;;  %1805 = vmatprep.subr.bf16.mxu1 %v4349_v0  ;;  %v4000_v7 = vld [vmem:[%s5905_s1 + $0x18] sm:$0xff]   ;;  %v4002_v9 = vld [vmem:[%s5905_s1 + $0x20] sm:$0xff]   ;;  %v4004_v11 = vld [vmem:[%s5905_s1 + $0x28] sm:$0xff]  }
   0x4   :  { %2013 = vmatprep.subr.bf16.mxu0 %v4349_v0  ;;  %v4001_v8 = vld [vmem:[%s5905_s1 + $0x98] sm:$0xff]   ;;  %v4003_v10 = vld [vmem:[%s5905_s1 + $0xa0] sm:$0xff]   ;;  %v4005_v12 = vld [vmem:[%s5905_s1 + $0xa8] sm:$0xff]  }
   0x5   :  { %v4006_v13 = vld [vmem:[%s5905_s1 + $0x30] sm:$0xff]   ;;  %v4008_v15 = vld [vmem:[%s5905_s1 + $0x38] sm:$0xff]   ;;  %v4010_v17 = vld [vmem:[%s5905_s1 + $0x40] sm:$0xff]  }
   0x6   :  { %1806 = vmatpush1.bf16.msra.mxu1 %v3996_v3  ;;  %v4007_v14 = vld [vmem:[%s5905_s1 + $0xb0] sm:$0xff]   ;;  %v4009_v16 = vld [vmem:[%s5905_s1 + $0xb8] sm:$0xff]   ;;  %v4011_v18 = vld [vmem:[%s5905_s1 + $0xc0] sm:$0xff]  }
   0x7   :  { %2014 = vmatpush1.bf16.msra.mxu0 %v3997_v4  ;;  %1807 = vmatprep.subr.bf16.mxu1 %v4349_v0  ;;  %v4028_v19 = vld [vmem:[%s5906_s0 + $0x4] ss:$36 sps:$4 sm:$0xff]   ;;  %v4031_v21 = vld [vmem:[%s5906_s0 + $0xc] ss:$36 sps:$4 sm:$0xff]   ;;  %v4016_v25 = vld [vmem:[%s5905_s1 + $0x58] sm:$0xff]  }
   0x8   :  { %2015 = vmatprep.subr.bf16.mxu0 %v4349_v0  ;;  %v4012_v20 = vld [vmem:[%s5905_s1 + $0x48] sm:$0xff]   ;;  %1835 = vmatprep.mubr.bf16.mxu1 %v4028_v19  ;;  %v4014_v23 = vld [vmem:[%s5905_s1 + $0x50] sm:$0xff]   ;;  %v4017_v26 = vld [vmem:[%s5905_s1 + $0xd8] sm:$0xff]  }
   0x9   :  { %v4013_v22 = vld [vmem:[%s5905_s1 + $0xc8] sm:$0xff]   ;;  %2043 = vmatprep.mubr.bf16.mxu0 %v4031_v21  ;;  %v4015_v24 = vld [vmem:[%s5905_s1 + $0xd0] sm:$0xff]   ;;  %v4018_v27 = vld [vmem:[%s5905_s1 + $0x60] sm:$0xff]  }
   0xa   :  { %1808 = vmatpush1.bf16.msra.mxu1 %v3998_v5  ;;  %v4019_v28 = vld [vmem:[%s5905_s1 + $0xe0] sm:$0xff]   ;;  %v4020_v29 = vld [vmem:[%s5905_s1 + $0x68] sm:$0xff]   ;;  %v4022_v31 = vld [vmem:[%s5905_s1 + $0x70] sm:$0xff]  }
   0xb   :  { %2016 = vmatpush1.bf16.msra.mxu0 %v3999_v6  ;;  %1809 = vmatprep.subr.bf16.mxu1 %v4349_v0  ;;  %v4021_v30 = vld [vmem:[%s5905_s1 + $0xe8] sm:$0xff]   ;;  %v4023_v32 = vld [vmem:[%s5905_s1 + $0xf0] sm:$0xff]   ;;  %v4024_v33 = vld [vmem:[%s5905_s1 + $0x78] sm:$0xff]  }
   0xc   :  { %2017 = vmatprep.subr.bf16.mxu0 %v4349_v0  ;;  %v4025_v34 = vld [vmem:[%s5905_s1 + $0xf8] sm:$0xff]   ;;  %v4026_v35 = vld [vmem:[%s5906_s0] ss:$36 sps:$4 sm:$0xff]   ;;  %v4029_v36 = vld [vmem:[%s5906_s0 + $0x8] ss:$36 sps:$4 sm:$0xff]  }
   0xd   :  { %v4032_v37 = vld [vmem:[%s5905_s1 + $0x100] sm:$0xff]   ;;  %v4033_v38 = vld [vmem:[%s5906_s0 + $0x4c] ss:$36 sps:$4 sm:$0xff]   ;;  %v4035_v39 = vld [vmem:[%s5906_s0 + $0x54] ss:$36 sps:$4 sm:$0xff]  }
   0xe   :  { %1810 = vmatpush1.bf16.msra.mxu1 %v4000_v7  ;;  %v4087_v40 = vld [vmem:[%s5905_s1 + $0x180] sm:$0xff]   ;;  %v4039_v41 = vld [vmem:[%s5905_s1 + $0x108] sm:$0xff]   ;;  %v4038_v43 = vld [vmem:[%s5906_s0 + $0x50] ss:$36 sps:$4 sm:$0xff]  }
   0xf   :  { %2018 = vmatpush1.bf16.msra.mxu0 %v4001_v8  ;;  %1811 = vmatprep.subr.bf16.mxu1 %v4349_v0  ;;  %v4037_v42 = vld [vmem:[%s5906_s0 + $0x48] ss:$36 sps:$4 sm:$0xff]   ;;  %v4040_v44 = vld [vmem:[%s5906_s0 + $0x94] ss:$36 sps:$4 sm:$0xff]   ;;  %v4042_v45 = vld [vmem:[%s5906_s0 + $0x9c] ss:$36 sps:$4 sm:$0xff]  }
  0x10   :  { %2019 = vmatprep.subr.bf16.mxu0 %v4349_v0  ;;  %v4050_v46 = vld [vmem:[%s5905_s1 + $0x110] sm:$0xff]   ;;  %v4549_v47 = vld [vmem:[%s5905_s1 + $0x188] sm:$0xff]   ;;  %v4059_v49 = vld [vmem:[%s5905_s1 + $0x118] sm:$0xff]  }
  0x11   :  { %v4044_v48 = vld [vmem:[%s5906_s0 + $0x90] ss:$36 sps:$4 sm:$0xff]   ;;  %v4045_v51 = vld [vmem:[%s5906_s0 + $0x98] ss:$36 sps:$4 sm:$0xff]   ;;  %v4048_v53 = vld [vmem:[%s5906_s0 + $0xe4] ss:$36 sps:$4 sm:$0xff]  }
  0x12   :  { %1812 = vmatpush1.bf16.msra.mxu1 %v4002_v9  ;;  %v4562_v50 = vld [vmem:[%s5905_s1 + $0x190] sm:$0xff]   ;;  %v4046_v52 = vld [vmem:[%s5906_s0 + $0xdc] ss:$36 sps:$4 sm:$0xff]   ;;  %v4079_v56 = vld [vmem:[%s5905_s1 + $0x128] sm:$0xff]  }
  0x13   :  { %2020 = vmatpush1.bf16.msra.mxu0 %v4003_v10  ;;  %1813 = vmatprep.subr.bf16.mxu1 %v4349_v0  ;;  %v4066_v54 = vld [vmem:[%s5905_s1 + $0x120] sm:$0xff]   ;;  %v4583_v55 = vld [vmem:[%s5905_s1 + $0x198] sm:$0xff]   ;;  %v4055_v60 = vld [vmem:[%s5906_s0 + $0x12c] ss:$36 sps:$4 sm:$0xff]  }
  0x14   :  { %2021 = vmatprep.subr.bf16.mxu0 %v4349_v0  ;;  %v4051_v57 = vld [vmem:[%s5906_s0 + $0xd8] ss:$36 sps:$4 sm:$0xff]   ;;  %v4052_v58 = vld [vmem:[%s5906_s0 + $0xe0] ss:$36 sps:$4 sm:$0xff]   ;;  %v4086_v61 = vld [vmem:[%s5905_s1 + $0x130] sm:$0xff]  }
  0x15   :  { %v4053_v59 = vld [vmem:[%s5906_s0 + $0x124] ss:$36 sps:$4 sm:$0xff]   ;;  %v4094_v1 = vld [vmem:[%s5905_s1 + $0x138] sm:$0xff]   ;;  %v4060_v4 = vld [vmem:[%s5906_s0 + $0x16c] ss:$36 sps:$4 sm:$0xff]  }
  0x16   :  { %1814 = vmatpush1.bf16.msra.mxu1 %v4004_v11  ;;  %v4610_v62 = vld [vmem:[%s5905_s1 + $0x1a0] sm:$0xff]   ;;  %v4623_v2 = vld [vmem:[%s5905_s1 + $0x1a8] sm:$0xff]   ;;  %v4062_v5 = vld [vmem:[%s5906_s0 + $0x174] ss:$36 sps:$4 sm:$0xff]  }
  0x17   :  { %2022 = vmatpush1.bf16.msra.mxu0 %v4005_v12  ;;  %1815 = vmatprep.subr.bf16.mxu1 %v4349_v0  ;;  %v4057_v63 = vld [vmem:[%s5906_s0 + $0x120] ss:$36 sps:$4 sm:$0xff]   ;;  %v4058_v3 = vld [vmem:[%s5906_s0 + $0x128] ss:$36 sps:$4 sm:$0xff]   ;;  %v4647_v8 = vld [vmem:[%s5905_s1 + $0x1b0] sm:$0xff]  }
  0x18   :  { %2023 = vmatprep.subr.bf16.mxu0 %v4349_v0  ;;  %v4108_v6 = vld [vmem:[%s5905_s1 + $0x140] sm:$0xff]   ;;  %v4116_v7 = vld [vmem:[%s5905_s1 + $0x148] sm:$0xff]   ;;  %v4065_v10 = vld [vmem:[%s5906_s0 + $0x170] ss:$36 sps:$4 sm:$0xff]  }
  0x19   :  { %v4064_v9 = vld [vmem:[%s5906_s0 + $0x168] ss:$36 sps:$4 sm:$0xff]   ;;  %v4067_v11 = vld [vmem:[%s5906_s0 + $0x1b4] ss:$36 sps:$4 sm:$0xff]   ;;  %v4069_v12 = vld [vmem:[%s5906_s0 + $0x1bc] ss:$36 sps:$4 sm:$0xff]  }
  0x1a   :  { %1816 = vmatpush1.bf16.msra.mxu1 %v4006_v13  ;;  %v4128_v13 = vld [vmem:[%s5905_s1 + $0x150] sm:$0xff]   ;;  %v4073_v19 = vld [vmem:[%s5906_s0 + $0x1fc] ss:$36 sps:$4 sm:$0xff]  }
  0x1b   :  { %2024 = vmatpush1.bf16.msra.mxu0 %v4007_v14  ;;  %1817 = vmatprep.subr.bf16.mxu1 %v4349_v0  ;;  %v4671_v14 = vld [vmem:[%s5905_s1 + $0x1b8] sm:$0xff]   ;;  %v4146_v21 = vld [vmem:[%s5905_s1 + $0x160] sm:$0xff]  }
  0x1c   :  { %2025 = vmatprep.subr.bf16.mxu0 %v4349_v0 }
  0x1e   :  { %1818 = vmatpush1.bf16.msra.mxu1 %v4008_v15  ;;  %v4071_v15 = vld [vmem:[%s5906_s0 + $0x1b0] ss:$36 sps:$4 sm:$0xff]  }
  0x1f   :  { %2026 = vmatpush1.bf16.msra.mxu0 %v4009_v16  ;;  %1819 = vmatprep.subr.bf16.mxu1 %v4349_v0  ;;  %v4138_v16 = vld [vmem:[%s5905_s1 + $0x158] sm:$0xff]  }
  0x20   :  { %2027 = vmatprep.subr.bf16.mxu0 %v4349_v0 }
  0x22   :  { %1820 = vmatpush1.bf16.msra.mxu1 %v4010_v17  ;;  %v4072_v17 = vld [vmem:[%s5906_s0 + $0x1b8] ss:$36 sps:$4 sm:$0xff]  }
  0x23   :  { %2028 = vmatpush1.bf16.msra.mxu0 %v4011_v18  ;;  %1821 = vmatprep.subr.bf16.mxu1 %v4349_v0  ;;  %v4687_v18 = vld [vmem:[%s5905_s1 + $0x1c0] sm:$0xff]  }
  0x24   :  { %2029 = vmatprep.subr.bf16.mxu0 %v4349_v0 }
  0x26   :  { %1822 = vmatpush1.bf16.msra.mxu1 %v4012_v20  ;;  %v4075_v20 = vld [vmem:[%s5906_s0 + $0x204] ss:$36 sps:$4 sm:$0xff]  }
  0x27   :  { %2030 = vmatpush1.bf16.msra.mxu0 %v4013_v22  ;;  %1823 = vmatprep.subr.bf16.mxu1 %v4349_v0  ;;  %v4704_v22 = vld [vmem:[%s5905_s1 + $0x1c8] sm:$0xff]  }
  0x28   :  { %2031 = vmatprep.subr.bf16.mxu0 %v4349_v0 }
  0x2a   :  { %1824 = vmatpush1.bf16.msra.mxu1 %v4014_v23  ;;  %v4077_v23 = vld [vmem:[%s5906_s0 + $0x1f8] ss:$36 sps:$4 sm:$0xff]  }
  0x2b   :  { %2032 = vmatpush1.bf16.msra.mxu0 %v4015_v24  ;;  %1825 = vmatprep.subr.bf16.mxu1 %v4349_v0  ;;  %v4161_v24 = vld [vmem:[%s5905_s1 + $0x168] sm:$0xff]  }
  0x2c   :  { %2033 = vmatprep.subr.bf16.mxu0 %v4349_v0 }
  0x2e   :  { %1826 = vmatpush1.bf16.msra.mxu1 %v4016_v25  ;;  %v4718_v25 = vld [vmem:[%s5905_s1 + $0x1d0] sm:$0xff]  }
  0x2f   :  { %2034 = vmatpush1.bf16.msra.mxu0 %v4017_v26  ;;  %1827 = vmatprep.subr.bf16.mxu1 %v4349_v0  ;;  %v4078_v26 = vld [vmem:[%s5906_s0 + $0x200] ss:$36 sps:$4 sm:$0xff]  }
  0x30   :  { %2035 = vmatprep.subr.bf16.mxu0 %v4349_v0 }
  0x32   :  { %1828 = vmatpush1.bf16.msra.mxu1 %v4018_v27  ;;  %v4080_v27 = vld [vmem:[%s5906_s0 + $0x244] ss:$36 sps:$4 sm:$0xff]  }
  0x33   :  { %2036 = vmatpush1.bf16.msra.mxu0 %v4019_v28  ;;  %1829 = vmatprep.subr.bf16.mxu1 %v4349_v0  ;;  %v4082_v28 = vld [vmem:[%s5906_s0 + $0x24c] ss:$36 sps:$4 sm:$0xff]  }
  0x34   :  { %2037 = vmatprep.subr.bf16.mxu0 %v4349_v0 }
  0x36   :  { %1830 = vmatpush1.bf16.msra.mxu1 %v4020_v29  ;;  %v4171_v29 = vld [vmem:[%s5905_s1 + $0x170] sm:$0xff]  }
  0x37   :  { %2038 = vmatpush1.bf16.msra.mxu0 %v4021_v30  ;;  %1831 = vmatprep.subr.bf16.mxu1 %v4349_v0  ;;  %v4738_v30 = vld [vmem:[%s5905_s1 + $0x1d8] sm:$0xff]  }
  0x38   :  { %2039 = vmatprep.subr.bf16.mxu0 %v4349_v0 }
  0x3a   :  { %1832 = vmatpush1.bf16.msra.mxu1 %v4022_v31  ;;  %v4181_v31 = vld [vmem:[%s5905_s1 + $0x178] sm:$0xff]  }
  0x3b   :  { %2040 = vmatpush1.bf16.msra.mxu0 %v4023_v32  ;;  %1833 = vmatprep.subr.bf16.mxu1 %v4349_v0  ;;  %v4748_v32 = vld [vmem:[%s5905_s1 + $0x1e0] sm:$0xff]  }
  0x3c   :  { %2041 = vmatprep.subr.bf16.mxu0 %v4349_v0 }
  0x3e   :  { %1834 = vmatpush1.bf16.msra.mxu1 %v4024_v33  ;;  %v4084_v33 = vld [vmem:[%s5906_s0 + $0x240] ss:$36 sps:$4 sm:$0xff]  }
  0x3f   :  { %2042 = vmatpush1.bf16.msra.mxu0 %v4025_v34  ;;  %3780 = vmatprep.subr.bf16.mxu1 %v4349_v0  ;;  %v4085_v34 = vld [vmem:[%s5906_s0 + $0x248] ss:$36 sps:$4 sm:$0xff]  }
  0x40   :  { %2219 = vmatprep.subr.bf16.mxu0 %v4349_v0 }
  0x41   :  { %1836 = vmatmul.mubr.bf16.vlgmr.msra.gmra.mrb[0].mxu1 %v4026_v35  ;;  %v4088_v35 = vld [vmem:[%s5906_s0 + $0x28c] ss:$36 sps:$4 sm:$0xff]  }
  0x42   :  { %2044 = vmatmul.mubr.bf16.vlgmr.msra.gmra.mrb[0].mxu0 %v4029_v36  ;;  %1843 = vmatprep.mubr.bf16.mxu1 %v4033_v38  ;;  %v4090_v36 = vld [vmem:[%s5906_s0 + $0x294] ss:$36 sps:$4 sm:$0xff]   ;;  %v4092_v38 = vld [vmem:[%s5906_s0 + $0x288] ss:$36 sps:$4 sm:$0xff]  }
  0x43   :  { %2220 = vmatpush1.bf16.msra.mxu0 %v4032_v37  ;;  %2051 = vmatprep.mubr.bf16.mxu0 %v4035_v39  ;;  %v4768_v37 = vld [vmem:[%s5905_s1 + $0x1e8] sm:$0xff]   ;;  %v4778_v39 = vld [vmem:[%s5905_s1 + $0x1f0] sm:$0xff]  }
  0x44   :  { %2221 = vmatprep.subr.bf16.mxu0 %v4349_v0  ;;  %3796 = vmatpush1.bf16.msra.mxu1 %v4087_v40  ;;  %v4093_v40 = vld [vmem:[%s5906_s0 + $0x290] ss:$36 sps:$4 sm:$0xff]  }
  0x45   :  { %3781 = vmatprep.subr.bf16.mxu1 %v4349_v0 }
  0x47   :  { %2222 = vmatpush1.bf16.msra.mxu0 %v4039_v41  ;;  %v4095_v41 = vld [vmem:[%s5906_s0 + $0x2d4] ss:$36 sps:$4 sm:$0xff]  }
  0x48   :  { %2223 = vmatprep.subr.bf16.mxu0 %v4349_v0  ;;  %3797 = vmatpush1.bf16.msra.mxu1 %v4549_v47 }
  0x49   :  { %1844 = vmatmul.mubr.bf16.gmra.mrb[4].mxu1 %v4037_v42  ;;  %3782 = vmatprep.subr.bf16.mxu1 %v4349_v0  ;;  %v4097_v42 = vld [vmem:[%s5906_s0 + $0x2dc] ss:$36 sps:$4 sm:$0xff]  }
  0x4a   :  { %2052 = vmatmul.mubr.bf16.gmra.mrb[4].mxu0 %v4038_v43  ;;  %1851 = vmatprep.mubr.bf16.mxu1 %v4040_v44  ;;  %v4795_v43 = vld [vmem:[%s5905_s1 + $0x1f8] sm:$0xff]   ;;  %v4099_v44 = vld [vmem:[%s5906_s0 + $0x2d0] ss:$36 sps:$4 sm:$0xff]  }
  0x4b   :  { %2059 = vmatprep.mubr.bf16.mxu0 %v4042_v45  ;;  %2224 = vmatpush1.bf16.msra.mxu0 %v4050_v46  ;;  %v4100_v45 = vld [vmem:[%s5906_s0 + $0x2d8] ss:$36 sps:$4 sm:$0xff]  }
  0x4c   :  { %2225 = vmatprep.subr.bf16.mxu0 %v4349_v0  ;;  %3798 = vmatpush1.bf16.msra.mxu1 %v4562_v50  ;;  %v4102_v46 = vld [vmem:[%s5906_s0 + $0x31c] ss:$36 sps:$4 sm:$0xff]  }
  0x4d   :  { %3783 = vmatprep.subr.bf16.mxu1 %v4349_v0 }
  0x4f   :  { %2226 = vmatpush1.bf16.msra.mxu0 %v4059_v49  ;;  %v4106_v49 = vld [vmem:[%s5906_s0 + $0x318] ss:$36 sps:$4 sm:$0xff]  }
  0x50   :  { %2227 = vmatprep.subr.bf16.mxu0 %v4349_v0  ;;  %3799 = vmatpush1.bf16.msra.mxu1 %v4583_v55 }
  0x51   :  { %1852 = vmatmul.mubr.bf16.gmra.mrb[8].mxu1 %v4044_v48  ;;  %3784 = vmatprep.subr.bf16.mxu1 %v4349_v0  ;;  %v4104_v48 = vld [vmem:[%s5906_s0 + $0x324] ss:$36 sps:$4 sm:$0xff]  }
  0x52   :  { %2060 = vmatmul.mubr.bf16.gmra.mrb[8].mxu0 %v4045_v51  ;;  %1859 = vmatprep.mubr.bf16.mxu1 %v4046_v52  ;;  %v4107_v51 = vld [vmem:[%s5906_s0 + $0x320] ss:$36 sps:$4 sm:$0xff]  }
  0x53   :  { %2067 = vmatprep.mubr.bf16.mxu0 %v4048_v53  ;;  %2228 = vmatpush1.bf16.msra.mxu0 %v4066_v54  ;;  %v4110_v52 = vld [vmem:[%s5906_s0 + $0x364] ss:$36 sps:$4 sm:$0xff]   ;;  %v4112_v53 = vld [vmem:[%s5906_s0 + $0x36c] ss:$36 sps:$4 sm:$0xff]  }
  0x54   :  { %2229 = vmatprep.subr.bf16.mxu0 %v4349_v0  ;;  %3800 = vmatpush1.bf16.msra.mxu1 %v4610_v62  ;;  %v4114_v54 = vld [vmem:[%s5906_s0 + $0x360] ss:$36 sps:$4 sm:$0xff]  }
  0x55   :  { %3785 = vmatprep.subr.bf16.mxu1 %v4349_v0 }
  0x57   :  { %2230 = vmatpush1.bf16.msra.mxu0 %v4079_v56  ;;  %v4115_v56 = vld [vmem:[%s5906_s0 + $0x368] ss:$36 sps:$4 sm:$0xff]  }
  0x58   :  { %2231 = vmatprep.subr.bf16.mxu0 %v4349_v0  ;;  %3801 = vmatpush1.bf16.msra.mxu1 %v4623_v2 }
  0x59   :  { %1860 = vmatmul.mubr.bf16.gmra.mrb[12].mxu1 %v4051_v57  ;;  %3786 = vmatprep.subr.bf16.mxu1 %v4349_v0  ;;  %v4117_v57 = vld [vmem:[%s5906_s0 + $0x3ac] ss:$36 sps:$4 sm:$0xff]  }
  0x5a   :  { %2068 = vmatmul.mubr.bf16.gmra.mrb[12].mxu0 %v4052_v58  ;;  %1867 = vmatprep.mubr.bf16.mxu1 %v4053_v59  ;;  %v4119_v58 = vld [vmem:[%s5906_s0 + $0x3b4] ss:$36 sps:$4 sm:$0xff]   ;;  %v4122_v59 = vld [vmem:[%s5906_s0 + $0x3a8] ss:$36 sps:$4 sm:$0xff]  }
  0x5b   :  { %2075 = vmatprep.mubr.bf16.mxu0 %v4055_v60  ;;  %2232 = vmatpush1.bf16.msra.mxu0 %v4086_v61  ;;  %v4123_v60 = vld [vmem:[%s5906_s0 + $0x3b0] ss:$36 sps:$4 sm:$0xff]  }
  0x5c   :  { %2233 = vmatprep.subr.bf16.mxu0 %v4349_v0  ;;  %3802 = vmatpush1.bf16.msra.mxu1 %v4647_v8  ;;  %v4124_v61 = vld [vmem:[%s5906_s0 + $0x3f4] ss:$36 sps:$4 sm:$0xff]  }
  0x5d   :  { %3787 = vmatprep.subr.bf16.mxu1 %v4349_v0 }
  0x5f   :  { %2234 = vmatpush1.bf16.msra.mxu0 %v4094_v1  ;;  %v4129_v1 = vld [vmem:[%s5906_s0 + $0x3f0] ss:$36 sps:$4 sm:$0xff]  }
  0x60   :  { %2235 = vmatprep.subr.bf16.mxu0 %v4349_v0  ;;  %3803 = vmatpush1.bf16.msra.mxu1 %v4671_v14 }
  0x61   :  { %1868 = vmatmul.mubr.bf16.gmra.mrb[16].mxu1 %v4057_v63  ;;  %3788 = vmatprep.subr.bf16.mxu1 %v4349_v0  ;;  %v4126_v63 = vld [vmem:[%s5906_s0 + $0x3fc] ss:$36 sps:$4 sm:$0xff]  }
  0x62   :  { %2076 = vmatmul.mubr.bf16.gmra.mrb[16].mxu0 %v4058_v3  ;;  %1875 = vmatprep.mubr.bf16.mxu1 %v4060_v4  ;;  %v4130_v3 = vld [vmem:[%s5906_s0 + $0x3f8] ss:$36 sps:$4 sm:$0xff]  }
  0x63   :  { %2083 = vmatprep.mubr.bf16.mxu0 %v4062_v5  ;;  %2236 = vmatpush1.bf16.msra.mxu0 %v4108_v6  ;;  %v4132_v4 = vld [vmem:[%s5906_s0 + $0x43c] ss:$36 sps:$4 sm:$0xff]   ;;  %v4134_v5 = vld [vmem:[%s5906_s0 + $0x444] ss:$36 sps:$4 sm:$0xff]  }
  0x64   :  { %2237 = vmatprep.subr.bf16.mxu0 %v4349_v0  ;;  %3804 = vmatpush1.bf16.msra.mxu1 %v4687_v18  ;;  %v4862_v6 = vld [vmem:[%s5905_s1 + $0x200] sm:$0xff]  }
  0x65   :  { %3789 = vmatprep.subr.bf16.mxu1 %v4349_v0 }
  0x67   :  { %2238 = vmatpush1.bf16.msra.mxu0 %v4116_v7  ;;  %v4136_v7 = vld [vmem:[%s5906_s0 + $0x438] ss:$36 sps:$4 sm:$0xff]  }
  0x68   :  { %2239 = vmatprep.subr.bf16.mxu0 %v4349_v0  ;;  %3805 = vmatpush1.bf16.msra.mxu1 %v4704_v22 }
  0x69   :  { %1876 = vmatmul.mubr.bf16.gmra.mrb[20].mxu1 %v4064_v9  ;;  %3790 = vmatprep.subr.bf16.mxu1 %v4349_v0  ;;  %v4137_v9 = vld [vmem:[%s5906_s0 + $0x440] ss:$36 sps:$4 sm:$0xff]  }
  0x6a   :  { %2084 = vmatmul.mubr.bf16.gmra.mrb[20].mxu0 %v4065_v10  ;;  %1883 = vmatprep.mubr.bf16.mxu1 %v4067_v11  ;;  %v4140_v10 = vld [vmem:[%s5906_s0 + $0x484] ss:$36 sps:$4 sm:$0xff]   ;;  %v4142_v11 = vld [vmem:[%s5906_s0 + $0x48c] ss:$36 sps:$4 sm:$0xff]  }
  0x6b   :  { %2091 = vmatprep.mubr.bf16.mxu0 %v4069_v12  ;;  %2240 = vmatpush1.bf16.msra.mxu0 %v4128_v13  ;;  %v4144_v12 = vld [vmem:[%s5906_s0 + $0x480] ss:$36 sps:$4 sm:$0xff]   ;;  %v4145_v13 = vld [vmem:[%s5906_s0 + $0x488] ss:$36 sps:$4 sm:$0xff]  }
  0x6c   :  { %2241 = vmatprep.subr.bf16.mxu0 %v4349_v0  ;;  %3806 = vmatpush1.bf16.msra.mxu1 %v4718_v25 }
  0x6d   :  { %3791 = vmatprep.subr.bf16.mxu1 %v4349_v0 }
  0x6f   :  { %2242 = vmatpush1.bf16.msra.mxu0 %v4138_v16  ;;  %v4149_v16 = vld [vmem:[%s5906_s0 + $0x4d4] ss:$36 sps:$4 sm:$0xff]  }
  0x70   :  { %2243 = vmatprep.subr.bf16.mxu0 %v4349_v0  ;;  %3807 = vmatpush1.bf16.msra.mxu1 %v4738_v30 }
  0x71   :  { %1884 = vmatmul.mubr.bf16.gmra.mrb[24].mxu1 %v4071_v15  ;;  %3792 = vmatprep.subr.bf16.mxu1 %v4349_v0  ;;  %v4147_v15 = vld [vmem:[%s5906_s0 + $0x4cc] ss:$36 sps:$4 sm:$0xff]  }
  0x72   :  { %2092 = vmatmul.mubr.bf16.gmra.mrb[24].mxu0 %v4072_v17  ;;  %1891 = vmatprep.mubr.bf16.mxu1 %v4073_v19  ;;  %v4151_v17 = vld [vmem:[%s5906_s0 + $0x4c8] ss:$36 sps:$4 sm:$0xff]   ;;  %v4152_v19 = vld [vmem:[%s5906_s0 + $0x4d0] ss:$36 sps:$4 sm:$0xff]  }
  0x73   :  { %2099 = vmatprep.mubr.bf16.mxu0 %v4075_v20  ;;  %2244 = vmatpush1.bf16.msra.mxu0 %v4146_v21  ;;  %v4155_v20 = vld [vmem:[%s5906_s0 + $0x514] ss:$36 sps:$4 sm:$0xff]   ;;  %v4157_v21 = vld [vmem:[%s5906_s0 + $0x51c] ss:$36 sps:$4 sm:$0xff]  }
  0x74   :  { %2245 = vmatprep.subr.bf16.mxu0 %v4349_v0  ;;  %3808 = vmatpush1.bf16.msra.mxu1 %v4748_v32 }
  0x75   :  { %3793 = vmatprep.subr.bf16.mxu1 %v4349_v0 }
  0x77   :  { %2246 = vmatpush1.bf16.msra.mxu0 %v4161_v24  ;;  %v4160_v24 = vld [vmem:[%s5906_s0 + $0x518] ss:$36 sps:$4 sm:$0xff]  }
  0x78   :  { %2247 = vmatprep.subr.bf16.mxu0 %v4349_v0  ;;  %3809 = vmatpush1.bf16.msra.mxu1 %v4768_v37 }
  0x79   :  { %1892 = vmatmul.mubr.bf16.gmra.mrb[28].mxu1 %v4077_v23  ;;  %3794 = vmatprep.subr.bf16.mxu1 %v4349_v0  ;;  %v4159_v23 = vld [vmem:[%s5906_s0 + $0x510] ss:$36 sps:$4 sm:$0xff]  }
  0x7a   :  { %2100 = vmatmul.mubr.bf16.gmra.mrb[28].mxu0 %v4078_v26  ;;  %1899 = vmatprep.mubr.bf16.mxu1 %v4080_v27  ;;  %v4164_v26 = vld [vmem:[%s5906_s0 + $0x55c] ss:$36 sps:$4 sm:$0xff]   ;;  %v4166_v27 = vld [vmem:[%s5906_s0 + $0x564] ss:$36 sps:$4 sm:$0xff]  }
  0x7b   :  { %2107 = vmatprep.mubr.bf16.mxu0 %v4082_v28  ;;  %2248 = vmatpush1.bf16.msra.mxu0 %v4171_v29  ;;  %v4168_v28 = vld [vmem:[%s5906_s0 + $0x558] ss:$36 sps:$4 sm:$0xff]   ;;  %v4169_v29 = vld [vmem:[%s5906_s0 + $0x560] ss:$36 sps:$4 sm:$0xff]  }
  0x7c   :  { %2249 = vmatprep.subr.bf16.mxu0 %v4349_v0  ;;  %3810 = vmatpush1.bf16.msra.mxu1 %v4778_v39 }
  0x7d   :  { %3795 = vmatprep.subr.bf16.mxu1 %v4349_v0 }
  0x7f   :  { %2250 = vmatpush1.bf16.msra.mxu0 %v4181_v31  ;;  %v4173_v31 = vld [vmem:[%s5906_s0 + $0x5a4] ss:$36 sps:$4 sm:$0xff]  }
  0x80   :  { %2427 = vmatprep.subr.bf16.mxu0 %v4349_v0  ;;  %3811 = vmatpush1.bf16.msra.mxu1 %v4795_v43 }
  0x81   :  { %1900 = vmatmul.mubr.bf16.gmra.mrb[32].mxu1 %v4084_v33  ;;  %3720 = vmatprep.subr.bf16.mxu1 %v4862_v6  ;;  %v4175_v33 = vld [vmem:[%s5906_s0 + $0x5ac] ss:$36 sps:$4 sm:$0xff]  }
  0x82   :  { %2108 = vmatmul.mubr.bf16.gmra.mrb[32].mxu0 %v4085_v34  ;;  %1907 = vmatprep.mubr.bf16.mxu1 %v4088_v35  ;;  %v224_v34 = vld [vmem:[%s5906_s0 + $0x5e8] sm:$0xff]  ;;  %v225_v35 = vld [vmem:[%s5906_s0 + $0x5f0] sm:$0xff] }
  0x83   :  { %2115 = vmatprep.mubr.bf16.mxu0 %v4090_v36  ;;  %v4177_v36 = vld [vmem:[%s5906_s0 + $0x5a0] ss:$36 sps:$4 sm:$0xff]  }
  0x89   :  { %1908 = vmatmul.mubr.bf16.gmra.mrb[36].mxu1 %v4092_v38  ;;  %v4178_v38 = vld [vmem:[%s5906_s0 + $0x5a8] ss:$36 sps:$4 sm:$0xff]  }
  0x8a   :  { %2116 = vmatmul.mubr.bf16.gmra.mrb[36].mxu0 %v4093_v40  ;;  %1915 = vmatprep.mubr.bf16.mxu1 %v4095_v41  ;;  %v3399_v40 = vcombine.high %v224_v34, %v224_v34  ;;  %v3401_v41 = vcombine.high %v225_v35, %v225_v35 }
  0x8b   :  { %2123 = vmatprep.mubr.bf16.mxu0 %v4097_v42  ;;  %v3398_v42 = vcombine.low %v224_v34, %v224_v34 }
  0x91   :  { %1916 = vmatmul.mubr.bf16.gmra.mrb[40].mxu1 %v4099_v44  ;;  %v3400_v44 = vcombine.low %v225_v35, %v225_v35 }
  0x92   :  { %2124 = vmatmul.mubr.bf16.gmra.mrb[40].mxu0 %v4100_v45  ;;  %1923 = vmatprep.mubr.bf16.mxu1 %v4102_v46  ;;  %v4193_v45 = vld [vmem:[%s5906_s0 + $0x1cc] ss:$36 sps:$4 sm:$0xff]   ;;  %v4190_v46 = vld [vmem:[%s5906_s0 + $0x14] ss:$36 sps:$4 sm:$0xff]  }
  0x93   :  { %2131 = vmatprep.mubr.bf16.mxu0 %v4104_v48  ;;  %v4191_v48 = vld [vmem:[%s5906_s0 + $0x1c8] ss:$36 sps:$4 sm:$0xff]  }
  0x99   :  { %1924 = vmatmul.mubr.bf16.gmra.mrb[44].mxu1 %v4106_v49  ;;  %v4188_v49 = vld [vmem:[%s5906_s0 + $0x10] ss:$36 sps:$4 sm:$0xff]  }
  0x9a   :  { %2132 = vmatmul.mubr.bf16.gmra.mrb[44].mxu0 %v4107_v51  ;;  %1931 = vmatprep.mubr.bf16.mxu1 %v4110_v52  ;;  %v4196_v51 = vld [vmem:[%s5906_s0 + $0x214] ss:$36 sps:$4 sm:$0xff]   ;;  %v4194_v52 = vld [vmem:[%s5906_s0 + $0x5c] ss:$36 sps:$4 sm:$0xff]  }
  0x9b   :  { %2139 = vmatprep.mubr.bf16.mxu0 %v4112_v53  ;;  %v4255_v53 = vld [vmem:[%s5905_s1 + $0x208] sm:$0xff]  }
  0xa1   :  { %1932 = vmatmul.mubr.bf16.gmra.mrb[48].mxu1 %v4114_v54  ;;  %v4348_v54 = vld [vmem:[%s5905_s1 + $0x180] sm:$0xff]  }
  0xa2   :  { %2140 = vmatmul.mubr.bf16.gmra.mrb[48].mxu0 %v4115_v56  ;;  %1939 = vmatprep.mubr.bf16.mxu1 %v4117_v57  ;;  %v4199_v56 = vld [vmem:[%s5906_s0 + $0x210] ss:$36 sps:$4 sm:$0xff]  }
  0xa3   :  { %2147 = vmatprep.mubr.bf16.mxu0 %v4119_v58  ;;  %v4268_v57 = vld [vmem:[%s5905_s1 + $0x210] sm:$0xff]   ;;  %v4198_v58 = vld [vmem:[%s5906_s0 + $0x58] ss:$36 sps:$4 sm:$0xff]  }
  0xa9   :  { %1940 = vmatmul.mubr.bf16.gmra.mrb[52].mxu1 %v4122_v59  ;;  %v4202_v59 = vld [vmem:[%s5906_s0 + $0x25c] ss:$36 sps:$4 sm:$0xff]  }
  0xaa   :  { %2148 = vmatmul.mubr.bf16.gmra.mrb[52].mxu0 %v4123_v60  ;;  %1947 = vmatprep.mubr.bf16.mxu1 %v4124_v61  ;;  %v4200_v60 = vld [vmem:[%s5906_s0 + $0xa4] ss:$36 sps:$4 sm:$0xff]   ;;  %v4275_v61 = vld [vmem:[%s5905_s1 + $0x218] sm:$0xff]  }
  0xab   :  { %2155 = vmatprep.mubr.bf16.mxu0 %v4126_v63  ;;  %v4282_v63 = vld [vmem:[%s5905_s1 + $0x220] sm:$0xff]  }
  0xb1   :  { %1948 = vmatmul.mubr.bf16.gmra.mrb[56].mxu1 %v4129_v1  ;;  %v4204_v1 = vld [vmem:[%s5906_s0 + $0xa0] ss:$36 sps:$4 sm:$0xff]  }
  0xb2   :  { %2156 = vmatmul.mubr.bf16.gmra.mrb[56].mxu0 %v4130_v3  ;;  %1955 = vmatprep.mubr.bf16.mxu1 %v4132_v4  ;;  %v4206_v3 = vld [vmem:[%s5906_s0 + $0xec] ss:$36 sps:$4 sm:$0xff]  }
  0xb3   :  { %2163 = vmatprep.mubr.bf16.mxu0 %v4134_v5  ;;  %v4283_v4 = vld [vmem:[%s5905_s1 + $0x228] sm:$0xff]   ;;  %v4289_v5 = vld [vmem:[%s5905_s1 + $0x230] sm:$0xff]  }
  0xb9   :  { %1956 = vmatmul.mubr.bf16.gmra.mrb[60].mxu1 %v4136_v7  ;;  %v4212_v7 = vld [vmem:[%s5906_s0 + $0x134] ss:$36 sps:$4 sm:$0xff]  }
  0xba   :  { %2164 = vmatmul.mubr.bf16.gmra.mrb[60].mxu0 %v4137_v9  ;;  %1963 = vmatprep.mubr.bf16.mxu1 %v4140_v10  ;;  %v4290_v9 = vld [vmem:[%s5905_s1 + $0x238] sm:$0xff]   ;;  %v4216_v10 = vld [vmem:[%s5906_s0 + $0x130] ss:$36 sps:$4 sm:$0xff]  }
  0xbb   :  { %2171 = vmatprep.mubr.bf16.mxu0 %v4142_v11  ;;  %v4220_v11 = vld [vmem:[%s5906_s0 + $0x334] ss:$36 sps:$4 sm:$0xff]  }
  0xc1   :  { %1964 = vmatmul.mubr.bf16.gmra.mrb[64].mxu1 %v4144_v12 }
  0xc2   :  { %2172 = vmatmul.mubr.bf16.gmra.mrb[64].mxu0 %v4145_v13  ;;  %1971 = vmatprep.mubr.bf16.mxu1 %v4147_v15  ;;  %v4223_v13 = vld [vmem:[%s5906_s0 + $0x330] ss:$36 sps:$4 sm:$0xff]  }
  0xc3   :  { %2179 = vmatprep.mubr.bf16.mxu0 %v4149_v16  ;;  %v4226_v16 = vld [vmem:[%s5906_s0 + $0x37c] ss:$36 sps:$4 sm:$0xff]  }
  0xc9   :  { %1972 = vmatmul.mubr.bf16.gmra.mrb[68].mxu1 %v4151_v17 }
  0xca   :  { %2180 = vmatmul.mubr.bf16.gmra.mrb[68].mxu0 %v4152_v19  ;;  %1979 = vmatprep.mubr.bf16.mxu1 %v4155_v20 }
  0xcb   :  { %2187 = vmatprep.mubr.bf16.mxu0 %v4157_v21  ;;  %v4229_v21 = vld [vmem:[%s5906_s0 + $0x378] ss:$36 sps:$4 sm:$0xff]  }
  0xd1   :  { %1980 = vmatmul.mubr.bf16.gmra.mrb[72].mxu1 %v4159_v23 }
  0xd2   :  { %2188 = vmatmul.mubr.bf16.gmra.mrb[72].mxu0 %v4160_v24  ;;  %1987 = vmatprep.mubr.bf16.mxu1 %v4164_v26  ;;  %v4232_v24 = vld [vmem:[%s5906_s0 + $0x3c4] ss:$36 sps:$4 sm:$0xff]  }
  0xd3   :  { %2195 = vmatprep.mubr.bf16.mxu0 %v4166_v27 }
  0xd9   :  { %1988 = vmatmul.mubr.bf16.gmra.mrb[76].mxu1 %v4168_v28 }
  0xda   :  { %2196 = vmatmul.mubr.bf16.gmra.mrb[76].mxu0 %v4169_v29  ;;  %1995 = vmatprep.mubr.bf16.mxu1 %v4173_v31  ;;  %v4235_v29 = vld [vmem:[%s5906_s0 + $0x3c0] ss:$36 sps:$4 sm:$0xff]  }
  0xdb   :  { %2203 = vmatprep.mubr.bf16.mxu0 %v4175_v33  ;;  %v4238_v33 = vld [vmem:[%s5906_s0 + $0x40c] ss:$36 sps:$4 sm:$0xff]  }
  0xe1   :  { %1996 = vmatmul.mubr.bf16.gmra.mrb[80].mxu1 %v4177_v36 }
  0xe2   :  { %2204 = vmatmul.mubr.bf16.gmra.mrb[80].mxu0 %v4178_v38  ;;  %2003 = vmatprep.mubr.bf16.mxu1 %v3399_v40  ;;  %v4241_v38 = vld [vmem:[%s5906_s0 + $0x408] ss:$36 sps:$4 sm:$0xff]  }
  0xe3   :  { %2211 = vmatprep.mubr.bf16.mxu0 %v3401_v41  ;;  %v4245_v41 = vld [vmem:[%s5906_s0 + $0x454] ss:$36 sps:$4 sm:$0xff]  }
  0xe9   :  { %2004 = vmatmul.mubr.bf16.gmra.mrb[84].mxu1 %v3398_v42 }
  0xea   :  { %2212 = vmatmul.mubr.bf16.gmra.mrb[84].mxu0 %v3400_v44  ;;  %2507 = vmatprep.mubr.bf16.mxu1 %v4193_v45  ;;  %v4248_v45 = vld [vmem:[%s5906_s0 + $0x450] ss:$36 sps:$4 sm:$0xff]  }
  0xeb   :  { %2251 = vmatprep.mubr.bf16.mxu0 %v4190_v46 }
  0xf1   :  { %2508 = vmatmul.mubr.bf16.vlgmr.msra.gmra.mrb[88].mxu1 %v4191_v48  ;;  %v4247_v48 = vld [vmem:[%s5906_s0 + $0x298] ss:$36 sps:$4 sm:$0xff]  }
  0xf2   :  { %2252 = vmatmul.mubr.bf16.vlgmr.msra.gmra.mrb[0].mxu0 %v4188_v49  ;;  %2515 = vmatprep.mubr.bf16.mxu1 %v4196_v51  ;;  %v4251_v49 = vld [vmem:[%s5906_s0 + $0x49c] ss:$36 sps:$4 sm:$0xff]   ;;  %v4249_v51 = vld [vmem:[%s5906_s0 + $0x2e4] ss:$36 sps:$4 sm:$0xff]  }
  0xf3   :  { %2428 = vmatpush1.bf16.msra.mxu0 %v4348_v54  ;;  %2259 = vmatprep.mubr.bf16.mxu0 %v4194_v52  ;;  %v4254_v54 = vld [vmem:[%s5906_s0 + $0x498] ss:$36 sps:$4 sm:$0xff]  }
  0xf4   :  { %2429 = vmatprep.subr.bf16.mxu0 %v4349_v0  ;;  %3721 = vmatpush3.bf16.msra.mxu1 %v4862_v6  ;;  %v4210_v6 = vld [vmem:[%s5906_s0 + $0xe8] ss:$36 sps:$4 sm:$0xff]  }
  0xf5   :  { %3722 = vmatprep.subr.bf16.mxu1 %v4255_v53 }
  0xf7   :  { %2430 = vmatpush1.bf16.msra.mxu0 %v4549_v47  ;;  %v4205_v47 = vld [vmem:[%s5906_s0 + $0x258] ss:$36 sps:$4 sm:$0xff]  }
  0xf8   :  { %2431 = vmatprep.subr.bf16.mxu0 %v4349_v0  ;;  %3723 = vmatpush3.bf16.msra.mxu1 %v4255_v53 }
  0xf9   :  { %2516 = vmatmul.mubr.bf16.gmra.mrb[92].mxu1 %v4199_v56  ;;  %3724 = vmatprep.subr.bf16.mxu1 %v4268_v57 }
  0xfa   :  { %2260 = vmatmul.mubr.bf16.gmra.mrb[4].mxu0 %v4198_v58  ;;  %2523 = vmatprep.mubr.bf16.mxu1 %v4202_v59  ;;  %v4258_v58 = vld [vmem:[%s5906_s0 + $0x4e4] ss:$36 sps:$4 sm:$0xff]  }
  0xfb   :  { %2267 = vmatprep.mubr.bf16.mxu0 %v4200_v60  ;;  %2432 = vmatpush1.bf16.msra.mxu0 %v4562_v50  ;;  %v4208_v50 = vld [vmem:[%s5906_s0 + $0x2a4] ss:$36 sps:$4 sm:$0xff]   ;;  %v4256_v60 = vld [vmem:[%s5906_s0 + $0x32c] ss:$36 sps:$4 sm:$0xff]  }
  0xfc   :  { %2433 = vmatprep.subr.bf16.mxu0 %v4349_v0  ;;  %3725 = vmatpush3.bf16.msra.mxu1 %v4268_v57  ;;  %v4253_v57 = vld [vmem:[%s5906_s0 + $0x2e0] ss:$36 sps:$4 sm:$0xff]  }
  0xfd   :  { %3726 = vmatprep.subr.bf16.mxu1 %v4275_v61 }
  0xff   :  { %2434 = vmatpush1.bf16.msra.mxu0 %v4583_v55  ;;  %v4211_v55 = vld [vmem:[%s5906_s0 + $0x2a0] ss:$36 sps:$4 sm:$0xff]  }
 0x100   :  { %2435 = vmatprep.subr.bf16.mxu0 %v4349_v0  ;;  %3727 = vmatpush3.bf16.msra.mxu1 %v4275_v61 }
 0x101   :  { %2524 = vmatmul.mubr.bf16.gmra.mrb[96].mxu1 %v4205_v47  ;;  %3728 = vmatprep.subr.bf16.mxu1 %v4282_v63 }
 0x102   :  { %2268 = vmatmul.mubr.bf16.gmra.mrb[8].mxu0 %v4204_v1  ;;  %2531 = vmatprep.mubr.bf16.mxu1 %v4208_v50  ;;  %v4260_v50 = vld [vmem:[%s5906_s0 + $0x328] ss:$36 sps:$4 sm:$0xff]  }
 0x103   :  { %2275 = vmatprep.mubr.bf16.mxu0 %v4206_v3  ;;  %2436 = vmatpush1.bf16.msra.mxu0 %v4610_v62  ;;  %v4214_v62 = vld [vmem:[%s5906_s0 + $0x2ec] ss:$36 sps:$4 sm:$0xff]  }
 0x104   :  { %2437 = vmatprep.subr.bf16.mxu0 %v4349_v0  ;;  %3729 = vmatpush3.bf16.msra.mxu1 %v4282_v63  ;;  %v4261_v63 = vld [vmem:[%s5906_s0 + $0x4e0] ss:$36 sps:$4 sm:$0xff]   ;;  %v4264_v3 = vld [vmem:[%s5906_s0 + $0x52c] ss:$36 sps:$4 sm:$0xff]  }
 0x105   :  { %3730 = vmatprep.subr.bf16.mxu1 %v4283_v4 }
 0x107   :  { %2438 = vmatpush1.bf16.msra.mxu0 %v4623_v2  ;;  %v4217_v2 = vld [vmem:[%s5906_s0 + $0x2e8] ss:$36 sps:$4 sm:$0xff]  }
 0x108   :  { %2439 = vmatprep.subr.bf16.mxu0 %v4349_v0  ;;  %3731 = vmatpush3.bf16.msra.mxu1 %v4283_v4 }
 0x109   :  { %2532 = vmatmul.mubr.bf16.gmra.mrb[100].mxu1 %v4211_v55  ;;  %3732 = vmatprep.subr.bf16.mxu1 %v4289_v5  ;;  %v4262_v55 = vld [vmem:[%s5906_s0 + $0x374] ss:$36 sps:$4 sm:$0xff]  }
 0x10a   :  { %2276 = vmatmul.mubr.bf16.gmra.mrb[12].mxu0 %v4210_v6  ;;  %2539 = vmatprep.mubr.bf16.mxu1 %v4214_v62  ;;  %v4267_v62 = vld [vmem:[%s5906_s0 + $0x528] ss:$36 sps:$4 sm:$0xff]  }
 0x10b   :  { %2283 = vmatprep.mubr.bf16.mxu0 %v4212_v7  ;;  %2440 = vmatpush1.bf16.msra.mxu0 %v4647_v8  ;;  %v4218_v8 = vld [vmem:[%s5906_s0 + $0x17c] ss:$36 sps:$4 sm:$0xff]  }
 0x10c   :  { %2441 = vmatprep.subr.bf16.mxu0 %v4349_v0  ;;  %3733 = vmatpush3.bf16.msra.mxu1 %v4289_v5 }
 0x10d   :  { %3734 = vmatprep.subr.bf16.mxu1 %v4290_v9 }
 0x10f   :  { %2442 = vmatpush1.bf16.msra.mxu0 %v4671_v14  ;;  %v4222_v14 = vld [vmem:[%s5906_s0 + $0x178] ss:$36 sps:$4 sm:$0xff]  }
 0x110   :  { %2443 = vmatprep.subr.bf16.mxu0 %v4349_v0  ;;  %3735 = vmatpush3.bf16.msra.mxu1 %v4290_v9  ;;  %v4266_v9 = vld [vmem:[%s5906_s0 + $0x370] ss:$36 sps:$4 sm:$0xff]  }
 0x111   :  { %2540 = vmatmul.mubr.bf16.gmra.mrb[104].mxu1 %v4217_v2  ;;  %v4271_v2 = vld [vmem:[%s5906_s0 + $0x574] ss:$36 sps:$4 sm:$0xff]  }
 0x112   :  { %2284 = vmatmul.mubr.bf16.gmra.mrb[16].mxu0 %v4216_v10  ;;  %2547 = vmatprep.mubr.bf16.mxu1 %v4220_v11  ;;  %v4269_v11 = vld [vmem:[%s5906_s0 + $0x3bc] ss:$36 sps:$4 sm:$0xff]  }
 0x113   :  { %2291 = vmatprep.mubr.bf16.mxu0 %v4218_v8  ;;  %2444 = vmatpush1.bf16.msra.mxu0 %v4687_v18  ;;  %v4224_v18 = vld [vmem:[%s5906_s0 + $0x1c4] ss:$36 sps:$4 sm:$0xff]  }
 0x114   :  { %2445 = vmatprep.subr.bf16.mxu0 %v4349_v0  ;;  %v5045_v12 = vpop.f32.mrb[0].mxu1 }
 0x115   :  { %v1839_v15 = vpop.f32.mrb[1].mxu1 }
 0x116   :  { %v5056_v17 = vpop.f32.mrb[2].mxu1  ;;  %v4274_v15 = vld [vmem:[%s5906_s0 + $0x570] ss:$36 sps:$4 sm:$0xff]  }
 0x117   :  { %2446 = vmatpush1.bf16.msra.mxu0 %v4704_v22  ;;  %v1842_v19 = vpop.f32.mrb[3].mxu1  ;;  %v4228_v22 = vld [vmem:[%s5906_s0 + $0x1c0] ss:$36 sps:$4 sm:$0xff]  }
 0x118   :  { %2447 = vmatprep.subr.bf16.mxu0 %v4349_v0 }
 0x119   :  { %2548 = vmatmul.mubr.bf16.gmra.mrb[108].mxu1 %v4223_v13 }
 0x11a   :  { %2292 = vmatmul.mubr.bf16.gmra.mrb[20].mxu0 %v4222_v14  ;;  %2555 = vmatprep.mubr.bf16.mxu1 %v4226_v16  ;;  %v4273_v16 = vld [vmem:[%s5906_s0 + $0x3b8] ss:$36 sps:$4 sm:$0xff]  }
 0x11b   :  { %2299 = vmatprep.mubr.bf16.mxu0 %v4224_v18  ;;  %2448 = vmatpush1.bf16.msra.mxu0 %v4718_v25  ;;  %v4230_v25 = vld [vmem:[%s5906_s0 + $0x20c] ss:$36 sps:$4 sm:$0xff]   ;;  %v4278_v18 = vld [vmem:[%s5906_s0 + $0x5bc] ss:$36 sps:$4 sm:$0xff]  }
 0x11c   :  { %v5064_v20 = vpop.f32.mrb[4].mxu1  ;;  %2449 = vmatprep.subr.bf16.mxu0 %v4349_v0 }
 0x11d   :  { %v1847_v23 = vpop.f32.mrb[5].mxu1 }
 0x11e   :  { %v5076_v26 = vpop.f32.mrb[6].mxu1 }
 0x11f   :  { %v1850_v27 = vpop.f32.mrb[7].mxu1  ;;  %2450 = vmatpush1.bf16.msra.mxu0 %v4738_v30  ;;  %v4234_v30 = vld [vmem:[%s5906_s0 + $0x208] ss:$36 sps:$4 sm:$0xff]  }
 0x120   :  { %2451 = vmatprep.subr.bf16.mxu0 %v4349_v0 }
 0x121   :  { %2556 = vmatmul.mubr.bf16.gmra.mrb[112].mxu1 %v4229_v21  ;;  %v4276_v21 = vld [vmem:[%s5906_s0 + $0x404] ss:$36 sps:$4 sm:$0xff]  }
 0x122   :  { %2300 = vmatmul.mubr.bf16.gmra.mrb[24].mxu0 %v4228_v22  ;;  %2563 = vmatprep.mubr.bf16.mxu1 %v4232_v24  ;;  %v227_v22 = vld [vmem:[%s5906_s0 + $0x600] sm:$0xff] }
 0x123   :  { %2307 = vmatprep.mubr.bf16.mxu0 %v4230_v25  ;;  %2452 = vmatpush1.bf16.msra.mxu0 %v4748_v32  ;;  %v4236_v32 = vld [vmem:[%s5906_s0 + $0x254] ss:$36 sps:$4 sm:$0xff]  }
 0x124   :  { %v5084_v28 = vpop.f32.mrb[8].mxu1  ;;  %2453 = vmatprep.subr.bf16.mxu0 %v4349_v0  ;;  %v4281_v25 = vld [vmem:[%s5906_s0 + $0x5b8] ss:$36 sps:$4 sm:$0xff]  }
 0x125   :  { %5909 = vst [vmem:[#allocation2_spill] sm:$0xff] %v5084_v28  ;;  %v1855_v31 = vpop.f32.mrb[9].mxu1 }
 0x126   :  { %v5096_v34 = vpop.f32.mrb[10].mxu1  ;;  %v3405_v31 = vcombine.high %v227_v22, %v227_v22 }
 0x127   :  { %5910 = vst [vmem:[#allocation3_spill] sm:$0xff] %v5096_v34  ;;  %v1858_v35 = vpop.f32.mrb[11].mxu1  ;;  %2454 = vmatpush1.bf16.msra.mxu0 %v4768_v37  ;;  %v4240_v37 = vld [vmem:[%s5906_s0 + $0x250] ss:$36 sps:$4 sm:$0xff]  }
 0x128   :  { %2455 = vmatprep.subr.bf16.mxu0 %v4349_v0 }
 0x129   :  { %2564 = vmatmul.mubr.bf16.gmra.mrb[116].mxu1 %v4235_v29  ;;  %v4280_v29 = vld [vmem:[%s5906_s0 + $0x400] ss:$36 sps:$4 sm:$0xff]  }
 0x12a   :  { %2308 = vmatmul.mubr.bf16.gmra.mrb[28].mxu0 %v4234_v30  ;;  %2571 = vmatprep.mubr.bf16.mxu1 %v4238_v33  ;;  %v4284_v33 = vld [vmem:[%s5906_s0 + $0x44c] ss:$36 sps:$4 sm:$0xff]  }
 0x12b   :  { %2315 = vmatprep.mubr.bf16.mxu0 %v4236_v32  ;;  %2456 = vmatpush1.bf16.msra.mxu0 %v4778_v39  ;;  %v4243_v39 = vld [vmem:[%s5906_s0 + $0x29c] ss:$36 sps:$4 sm:$0xff]  }
 0x12c   :  { %v5104_v36 = vpop.f32.mrb[12].mxu1  ;;  %2457 = vmatprep.subr.bf16.mxu0 %v4349_v0 }
 0x12d   :  { %5911 = vst [vmem:[#allocation4_spill] sm:$0xff] %v5104_v36  ;;  %v1863_v40 = vpop.f32.mrb[13].mxu1 }
 0x12e   :  { %v5116_v42 = vpop.f32.mrb[14].mxu1 }
 0x12f   :  { %5912 = vst [vmem:[#allocation5_spill] sm:$0xff] %v5116_v42  ;;  %v1866_v0 = vpop.f32.mrb[15].mxu1  ;;  %2458 = vmatpush1.bf16.msra.mxu0 %v4795_v43 }
 0x130   :  { %v4291_v0 = vld [vmem:[%s5906_s0 + $0x494] ss:$36 sps:$4 sm:$0xff]  }
 0x131   :  { %2572 = vmatmul.mubr.bf16.gmra.mrb[120].mxu1 %v4241_v38  ;;  %v3404_v38 = vcombine.low %v227_v22, %v227_v22 }
 0x132   :  { %2316 = vmatmul.mubr.bf16.gmra.mrb[32].mxu0 %v4240_v37  ;;  %2579 = vmatprep.mubr.bf16.mxu1 %v4245_v41  ;;  %v4287_v37 = vld [vmem:[%s5906_s0 + $0x448] ss:$36 sps:$4 sm:$0xff]   ;;  %v4293_v41 = vld [vmem:[%s5906_s0 + $0x20] ss:$36 sps:$4 sm:$0xff]  }
 0x133   :  { %2323 = vmatprep.mubr.bf16.mxu0 %v4243_v39 }
 0x134   :  { %v5122_v44 = vpop.f32.mrb[16].mxu1 }
 0x135   :  { %5913 = vst [vmem:[#allocation6_spill] sm:$0xff] %v5122_v44  ;;  %v1871_v46 = vpop.f32.mrb[17].mxu1 }
 0x136   :  { %v5133_v43 = vpop.f32.mrb[18].mxu1 }
 0x137   :  { %5914 = vst [vmem:[#allocation7_spill] sm:$0xff] %v5133_v43  ;;  %v1874_v52 = vpop.f32.mrb[19].mxu1 }
 0x138   :  { %v4298_v52 = vld [vmem:[%s5906_s0 + $0xb0] ss:$36 sps:$4 sm:$0xff]  }
 0x139   :  { %2580 = vmatmul.mubr.bf16.gmra.mrb[124].mxu1 %v4248_v45 }
 0x13a   :  { %2324 = vmatmul.mubr.bf16.gmra.mrb[36].mxu0 %v4247_v48  ;;  %2587 = vmatprep.mubr.bf16.mxu1 %v4251_v49  ;;  %v4295_v48 = vld [vmem:[%s5906_s0 + $0x68] ss:$36 sps:$4 sm:$0xff]  }
 0x13b   :  { %2331 = vmatprep.mubr.bf16.mxu0 %v4249_v51  ;;  %v4294_v51 = vld [vmem:[%s5906_s0 + $0x490] ss:$36 sps:$4 sm:$0xff]  }
 0x13c   :  { %v5138_v53 = vpop.f32.mrb[20].mxu1 }
 0x13d   :  { %5915 = vst [vmem:[#allocation8_spill] sm:$0xff] %v5138_v53  ;;  %v1879_v56 = vpop.f32.mrb[21].mxu1 }
 0x13e   :  { %v5149_v59 = vpop.f32.mrb[22].mxu1  ;;  %v4296_v56 = vld [vmem:[%s5906_s0 + $0x4dc] ss:$36 sps:$4 sm:$0xff]  }
 0x13f   :  { %5916 = vst [vmem:[#allocation9_spill] sm:$0xff] %v5149_v59  ;;  %v1882_v61 = vpop.f32.mrb[23].mxu1 }
 0x141   :  { %2588 = vmatmul.mubr.bf16.gmra.mrb[128].mxu1 %v4254_v54 }
 0x142   :  { %2332 = vmatmul.mubr.bf16.gmra.mrb[40].mxu0 %v4253_v57  ;;  %2595 = vmatprep.mubr.bf16.mxu1 %v4258_v58 }
 0x143   :  { %2339 = vmatprep.mubr.bf16.mxu0 %v4256_v60  ;;  %v4300_v60 = vld [vmem:[%s5906_s0 + $0xf8] ss:$36 sps:$4 sm:$0xff]  }
 0x144   :  { %v5154_v47 = vpop.f32.mrb[24].mxu1 }
 0x145   :  { %v1887_v1 = vpop.f32.mrb[25].mxu1 }
 0x146   :  { %v5165_v4 = vpop.f32.mrb[26].mxu1  ;;  %v4303_v1 = vld [vmem:[%s5906_s0 + $0x140] ss:$36 sps:$4 sm:$0xff]  }
 0x147   :  { %v1890_v5 = vpop.f32.mrb[27].mxu1 }
 0x149   :  { %2596 = vmatmul.mubr.bf16.gmra.mrb[132].mxu1 %v4261_v63  ;;  %v4299_v63 = vld [vmem:[%s5906_s0 + $0x4d8] ss:$36 sps:$4 sm:$0xff]  }
 0x14a   :  { %2340 = vmatmul.mubr.bf16.gmra.mrb[44].mxu0 %v4260_v50  ;;  %2603 = vmatprep.mubr.bf16.mxu1 %v4264_v3  ;;  %v4301_v3 = vld [vmem:[%s5906_s0 + $0x524] ss:$36 sps:$4 sm:$0xff]  }
 0x14b   :  { %2347 = vmatprep.mubr.bf16.mxu0 %v4262_v55 }
 0x14c   :  { %v5170_v6 = vpop.f32.mrb[28].mxu1 }
 0x14d   :  { %v1895_v7 = vpop.f32.mrb[29].mxu1 }
 0x14e   :  { %v5181_v10 = vpop.f32.mrb[30].mxu1 }
 0x14f   :  { %v1898_v8 = vpop.f32.mrb[31].mxu1 }
 0x150   :  { %v4306_v8 = vld [vmem:[%s5906_s0 + $0x56c] ss:$36 sps:$4 sm:$0xff]  }
 0x151   :  { %2604 = vmatmul.mubr.bf16.gmra.mrb[136].mxu1 %v4267_v62  ;;  %v4305_v62 = vld [vmem:[%s5906_s0 + $0x188] ss:$36 sps:$4 sm:$0xff]  }
 0x152   :  { %2348 = vmatmul.mubr.bf16.gmra.mrb[48].mxu0 %v4266_v9  ;;  %2611 = vmatprep.mubr.bf16.mxu1 %v4271_v2  ;;  %v4304_v9 = vld [vmem:[%s5906_s0 + $0x520] ss:$36 sps:$4 sm:$0xff]   ;;  %v4308_v2 = vld [vmem:[%s5906_s0 + $0x1d0] ss:$36 sps:$4 sm:$0xff]  }
 0x153   :  { %2355 = vmatprep.mubr.bf16.mxu0 %v4269_v11 }
 0x154   :  { %v5186_v13 = vpop.f32.mrb[32].mxu1 }
 0x155   :  { %v1903_v14 = vpop.f32.mrb[33].mxu1 }
 0x156   :  { %v5197_v19 = vpop.f32.mrb[34].mxu1 }
 0x157   :  { %v1906_v23 = vpop.f32.mrb[35].mxu1 }
 0x158   :  { %v4313_v23 = vld [vmem:[%s5906_s0 + $0x260] ss:$36 sps:$4 sm:$0xff]  }
 0x159   :  { %2612 = vmatmul.mubr.bf16.gmra.mrb[140].mxu1 %v4274_v15 }
 0x15a   :  { %2356 = vmatmul.mubr.bf16.gmra.mrb[52].mxu0 %v4273_v16  ;;  %2619 = vmatprep.mubr.bf16.mxu1 %v4278_v18  ;;  %v4310_v16 = vld [vmem:[%s5906_s0 + $0x218] ss:$36 sps:$4 sm:$0xff]  }
 0x15b   :  { %2363 = vmatprep.mubr.bf16.mxu0 %v4276_v21  ;;  %v4309_v21 = vld [vmem:[%s5906_s0 + $0x568] ss:$36 sps:$4 sm:$0xff]  }
 0x15c   :  { %v5205_v24 = vpop.f32.mrb[36].mxu1 }
 0x15d   :  { %v1911_v27 = vpop.f32.mrb[37].mxu1 }
 0x15e   :  { %v5213_v30 = vpop.f32.mrb[38].mxu1 }
 0x15f   :  { %v1914_v32 = vpop.f32.mrb[39].mxu1 }
 0x161   :  { %2620 = vmatmul.mubr.bf16.gmra.mrb[144].mxu1 %v4281_v25  ;;  %v4311_v25 = vld [vmem:[%s5906_s0 + $0x5b4] ss:$36 sps:$4 sm:$0xff]  }
 0x162   :  { %2364 = vmatmul.mubr.bf16.gmra.mrb[56].mxu0 %v4280_v29  ;;  %2627 = vmatprep.mubr.bf16.mxu1 %v3405_v31  ;;  %v226_v29 = vld [vmem:[%s5906_s0 + $0x5f8] sm:$0xff] }
 0x163   :  { %2371 = vmatprep.mubr.bf16.mxu0 %v4284_v33  ;;  %v4315_v33 = vld [vmem:[%s5906_s0 + $0x2a8] ss:$36 sps:$4 sm:$0xff]  }
 0x164   :  { %v5218_v35 = vpop.f32.mrb[40].mxu1 }
 0x165   :  { %v1919_v40 = vpop.f32.mrb[41].mxu1 }
 0x166   :  { %v5226_v39 = vpop.f32.mrb[42].mxu1  ;;  %v4317_v40 = vld [vmem:[%s5906_s0 + $0x2f0] ss:$36 sps:$4 sm:$0xff]  }
 0x167   :  { %v1922_v45 = vpop.f32.mrb[43].mxu1 }
 0x169   :  { %2628 = vmatmul.mubr.bf16.gmra.mrb[148].mxu1 %v3404_v38  ;;  %v4314_v38 = vld [vmem:[%s5906_s0 + $0x5b0] ss:$36 sps:$4 sm:$0xff]  }
 0x16a   :  { %2372 = vmatmul.mubr.bf16.gmra.mrb[60].mxu0 %v4287_v37  ;;  %3736 = vmatprep.mubr.bf16.mxu1 %v4293_v41  ;;  %v3403_v41 = vcombine.high %v226_v29, %v226_v29 }
 0x16b   :  { %2379 = vmatprep.mubr.bf16.mxu0 %v4291_v0 }
 0x16c   :  { %v5231_v46 = vpop.f32.mrb[44].mxu1 }
 0x16d   :  { %v1927_v49 = vpop.f32.mrb[45].mxu1 }
 0x16e   :  { %v5242_v54 = vpop.f32.mrb[46].mxu1 }
 0x16f   :  { %v1930_v57 = vpop.f32.mrb[47].mxu1 }
 0x170   :  { %v4322_v57 = vld [vmem:[%s5906_s0 + $0x1c] ss:$36 sps:$4 sm:$0xff]  }
 0x171   :  { %3737 = vmatmul.mubr.bf16.vlgmr.msra.gmra.mrb[152].mxu1 %v4295_v48  ;;  %v4319_v48 = vld [vmem:[%s5906_s0 + $0x338] ss:$36 sps:$4 sm:$0xff]  }
 0x172   :  { %2380 = vmatmul.mubr.bf16.gmra.mrb[64].mxu0 %v4294_v51  ;;  %3740 = vmatprep.mubr.bf16.mxu1 %v4298_v52  ;;  %v3402_v51 = vcombine.low %v226_v29, %v226_v29  ;;  %v4323_v52 = vld [vmem:[%s5906_s0 + $0x380] ss:$36 sps:$4 sm:$0xff]   ;;  %v4334_v29 = vld [vmem:[%s5906_s0 + $0x4e8] ss:$36 sps:$4 sm:$0xff]  }
 0x173   :  { %2387 = vmatprep.mubr.bf16.mxu0 %v4296_v56 }
 0x174   :  { %v5247_v58 = vpop.f32.mrb[48].mxu1 }
 0x175   :  { %v1935_v61 = vpop.f32.mrb[49].mxu1 }
 0x176   :  { %v5258_v50 = vpop.f32.mrb[50].mxu1 }
 0x177   :  { %v1938_v55 = vpop.f32.mrb[51].mxu1 }
 0x178   :  { %v4327_v55 = vld [vmem:[%s5906_s0 + $0x410] ss:$36 sps:$4 sm:$0xff]  }
 0x179   :  { %3741 = vmatmul.mubr.bf16.gmra.mrb[156].mxu1 %v4300_v60 }
 0x17a   :  { %2388 = vmatmul.mubr.bf16.gmra.mrb[68].mxu0 %v4299_v63  ;;  %3744 = vmatprep.mubr.bf16.mxu1 %v4303_v1  ;;  %v4324_v63 = vld [vmem:[%s5906_s0 + $0x3c8] ss:$36 sps:$4 sm:$0xff]  }
 0x17b   :  { %2395 = vmatprep.mubr.bf16.mxu0 %v4301_v3  ;;  %v4320_v3 = vld [vmem:[%s5906_s0 + $0x18] ss:$36 sps:$4 sm:$0xff]  }
 0x17c   :  { %v5263_v5 = vpop.f32.mrb[52].mxu1 }
 0x17d   :  { %v1943_v7 = vpop.f32.mrb[53].mxu1 }
 0x17e   :  { %v5274_v11 = vpop.f32.mrb[54].mxu1  ;;  %v4325_v7 = vld [vmem:[%s5906_s0 + $0x64] ss:$36 sps:$4 sm:$0xff]  }
 0x17f   :  { %v1946_v15 = vpop.f32.mrb[55].mxu1 }
 0x181   :  { %3745 = vmatmul.mubr.bf16.gmra.mrb[160].mxu1 %v4305_v62 }
 0x182   :  { %2396 = vmatmul.mubr.bf16.gmra.mrb[72].mxu0 %v4304_v9  ;;  %3748 = vmatprep.mubr.bf16.mxu1 %v4308_v2 }
 0x183   :  { %2403 = vmatprep.mubr.bf16.mxu0 %v4306_v8  ;;  %v4329_v8 = vld [vmem:[%s5906_s0 + $0x458] ss:$36 sps:$4 sm:$0xff]  }
 0x184   :  { %v5279_v14 = vpop.f32.mrb[56].mxu1 }
 0x185   :  { %v1951_v18 = vpop.f32.mrb[57].mxu1 }
 0x186   :  { %v5290_v22 = vpop.f32.mrb[58].mxu1  ;;  %v4332_v18 = vld [vmem:[%s5906_s0 + $0x4a0] ss:$36 sps:$4 sm:$0xff]  }
 0x187   :  { %v1954_v27 = vpop.f32.mrb[59].mxu1 }
 0x189   :  { %3749 = vmatmul.mubr.bf16.gmra.mrb[164].mxu1 %v4310_v16  ;;  %v4328_v16 = vld [vmem:[%s5906_s0 + $0x60] ss:$36 sps:$4 sm:$0xff]  }
 0x18a   :  { %2404 = vmatmul.mubr.bf16.gmra.mrb[76].mxu0 %v4309_v21  ;;  %3752 = vmatprep.mubr.bf16.mxu1 %v4313_v23  ;;  %v4330_v23 = vld [vmem:[%s5906_s0 + $0xac] ss:$36 sps:$4 sm:$0xff]  }
 0x18b   :  { %2411 = vmatprep.mubr.bf16.mxu0 %v4311_v25 }
 0x18c   :  { %v5298_v31 = vpop.f32.mrb[60].mxu1 }
 0x18d   :  { %v1959_v32 = vpop.f32.mrb[61].mxu1 }
 0x18e   :  { %v5309_v37 = vpop.f32.mrb[62].mxu1  ;;  %v4333_v32 = vld [vmem:[%s5906_s0 + $0xa8] ss:$36 sps:$4 sm:$0xff]  }
 0x18f   :  { %v1962_v0 = vpop.f32.mrb[63].mxu1 }
 0x190   :  { %v4335_v0 = vld [vmem:[%s5906_s0 + $0xf4] ss:$36 sps:$4 sm:$0xff]  }
 0x191   :  { %3753 = vmatmul.mubr.bf16.gmra.mrb[168].mxu1 %v4315_v33 }
 0x192   :  { %2412 = vmatmul.mubr.bf16.gmra.mrb[80].mxu0 %v4314_v38  ;;  %3756 = vmatprep.mubr.bf16.mxu1 %v4317_v40  ;;  %v4337_v40 = vld [vmem:[%s5906_s0 + $0x530] ss:$36 sps:$4 sm:$0xff]  }
 0x193   :  { %2419 = vmatprep.mubr.bf16.mxu0 %v3403_v41 }
 0x194   :  { %v5311_v45 = vpop.f32.mrb[64].mxu1 }
 0x195   :  { %v1967_v49 = vpop.f32.mrb[65].mxu1 }
 0x196   :  { %v5319_v56 = vpop.f32.mrb[66].mxu1  ;;  %v4339_v49 = vld [vmem:[%s5906_s0 + $0x578] ss:$36 sps:$4 sm:$0xff]  }
 0x197   :  { %v1970_v60 = vpop.f32.mrb[67].mxu1 }
 0x198   :  { %v4342_v60 = vld [vmem:[%s5906_s0 + $0x5c0] ss:$36 sps:$4 sm:$0xff]  }
 0x199   :  { %3757 = vmatmul.mubr.bf16.gmra.mrb[172].mxu1 %v4319_v48 }
 0x19a   :  { %2420 = vmatmul.mubr.bf16.gmra.mrb[88].mxu0 %v3402_v51  ;;  %3760 = vmatprep.mubr.bf16.mxu1 %v4323_v52  ;;  %v4338_v52 = vld [vmem:[%s5906_s0 + $0xf0] ss:$36 sps:$4 sm:$0xff]  }
 0x19b   :  { %2459 = vmatprep.mubr.bf16.mxu0 %v4322_v57 }
 0x19c   :  { %v5324_v61 = vpop.f32.mrb[68].mxu1 }
 0x19d   :  { %v1975_v1 = vpop.f32.mrb[69].mxu1 }
 0x19e   :  { %v5335_v62 = vpop.f32.mrb[70].mxu1  ;;  %v4340_v1 = vld [vmem:[%s5906_s0 + $0x13c] ss:$36 sps:$4 sm:$0xff]  }
 0x19f   :  { %v1978_v9 = vpop.f32.mrb[71].mxu1 }
 0x1a1   :  { %3761 = vmatmul.mubr.bf16.gmra.mrb[176].mxu1 %v4324_v63 }
 0x1a2   :  { %2460 = vmatmul.mubr.bf16.vlgmr.msra.gmra.mrb[0].mxu0 %v4320_v3  ;;  %3764 = vmatprep.mubr.bf16.mxu1 %v4327_v55 }
 0x1a3   :  { %2467 = vmatprep.mubr.bf16.mxu0 %v4325_v7  ;;  %v4344_v7 = vld [vmem:[%s5906_s0 + $0x608] ss:$0 sps:$4 sm:$0xff]  }
 0x1a4   :  { %v5340_v2 = vpop.f32.mrb[72].mxu1 }
 0x1a5   :  { %v1983_v15 = vpop.f32.mrb[73].mxu1 }
 0x1a6   :  { %v5351_v21 = vpop.f32.mrb[74].mxu1 }
 0x1a7   :  { %v1986_v25 = vpop.f32.mrb[75].mxu1 }
 0x1a8   :  { %v4345_v25 = vld [vmem:[%s5906_s0 + $0x184] ss:$36 sps:$4 sm:$0xff]  }
 0x1a9   :  { %3765 = vmatmul.mubr.bf16.gmra.mrb[180].mxu1 %v4329_v8 }
 0x1aa   :  { %2468 = vmatmul.mubr.bf16.gmra.mrb[4].mxu0 %v4328_v16  ;;  %3768 = vmatprep.mubr.bf16.mxu1 %v4332_v18  ;;  %v4343_v16 = vld [vmem:[%s5906_s0 + $0x138] ss:$36 sps:$4 sm:$0xff]  }
 0x1ab   :  { %2475 = vmatprep.mubr.bf16.mxu0 %v4330_v23 }
 0x1ac   :  { %v5356_v27 = vpop.f32.mrb[76].mxu1 }
 0x1ad   :  { %v1991_v33 = vpop.f32.mrb[77].mxu1 }
 0x1ae   :  { %v5364_v38 = vpop.f32.mrb[78].mxu1 }
 0x1af   :  { %v1994_v41 = vpop.f32.mrb[79].mxu1 }
 0x1b0   :  { %v4347_v41 = vld [vmem:[%s5906_s0 + $0x180] ss:$36 sps:$4 sm:$0xff]  }
 0x1b1   :  { %3769 = vmatmul.mubr.bf16.gmra.mrb[184].mxu1 %v4334_v29 }
 0x1b2   :  { %2476 = vmatmul.mubr.bf16.gmra.mrb[8].mxu0 %v4333_v32  ;;  %3772 = vmatprep.mubr.bf16.mxu1 %v4337_v40 }
 0x1b3   :  { %2483 = vmatprep.mubr.bf16.mxu0 %v4335_v0 }
 0x1b4   :  { %v5372_v48 = vpop.f32.mrb[80].mxu1 }
 0x1b5   :  { %v1999_v51 = vpop.f32.mrb[81].mxu1 }
 0x1b6   :  { %v5380_v57 = vpop.f32.mrb[82].mxu1 }
 0x1b7   :  { %v2002_v63 = vpop.f32.mrb[83].mxu1 }
 0x1b9   :  { %3773 = vmatmul.mubr.bf16.gmra.mrb[188].mxu1 %v4339_v49 }
 0x1ba   :  { %2484 = vmatmul.mubr.bf16.gmra.mrb[12].mxu0 %v4338_v52  ;;  %3776 = vmatprep.mubr.bf16.mxu1 %v4342_v60 }
 0x1bb   :  { %2491 = vmatprep.mubr.bf16.mxu0 %v4340_v1 }
 0x1bc   :  { %v2005_v3 = vpop.f32.mrb[84].mxu1 }
 0x1bd   :  { %v2213_v55 = vpop.f32.mrb[84].mxu0  ;;  %v2007_v9 = vpop.f32.mrb[85].mxu1 }
 0x1be   :  { %v5391_v8 = vadd.f32 %v2213_v55, %v2005_v3  ;;  %v2215_v15 = vpop.f32.mrb[85].mxu0  ;;  %v2008_v18 = vpop.f32.mrb[86].mxu1 }
 0x1bf   :  { %v2216_v23 = vpop.f32.mrb[86].mxu0  ;;  %v2009_v29 = vpop.f32.mrb[87].mxu1 }
 0x1c0   :  { %v2217_v33 = vpop.f32.mrb[87].mxu0 }
 0x1c1   :  { %3777 = vmatmul.mubr.bf16.gmra.mrb[192].mxu1 %v4344_v7 }
 0x1c2   :  { %2492 = vmatmul.mubr.bf16.gmra.mrb[16].mxu0 %v4343_v16 }
 0x1c3   :  { %2499 = vmatprep.mubr.bf16.mxu0 %v4345_v25 }
 0x1c4   :  { %v2509_v32 = vpop.f32.mrb[88].mxu1 }
 0x1c5   :  { %v2511_v40 = vpop.f32.mrb[89].mxu1 }
 0x1c6   :  { %v2512_v0 = vpop.f32.mrb[90].mxu1 }
 0x1c7   :  { %v2514_v49 = vpop.f32.mrb[91].mxu1 }
 0x1ca   :  { %2500 = vmatmul.mubr.bf16.gmra.mrb[20].mxu0 %v4347_v41 }
 0x1cc   :  { %v2517_v51 = vpop.f32.mrb[92].mxu1 }
 0x1cd   :  { %v2519_v52 = vpop.f32.mrb[93].mxu1 }
 0x1ce   :  { %v2520_v60 = vpop.f32.mrb[94].mxu1 }
 0x1cf   :  { %v2522_v63 = vpop.f32.mrb[95].mxu1 }
 0x1d4   :  { %v2525_v1 = vpop.f32.mrb[96].mxu1 }
 0x1d5   :  { %v2527_v3 = vpop.f32.mrb[97].mxu1 }
 0x1d6   :  { %v2528_v55 = vpop.f32.mrb[98].mxu1 }
 0x1d7   :  { %v2530_v9 = vpop.f32.mrb[99].mxu1 }
 0x1dc   :  { %v2533_v7 = vpop.f32.mrb[100].mxu1 }
 0x1dd   :  { %v2535_v15 = vpop.f32.mrb[101].mxu1 }
 0x1de   :  { %v2536_v16 = vpop.f32.mrb[102].mxu1 }
 0x1df   :  { %v2538_v18 = vpop.f32.mrb[103].mxu1 }
 0x1e4   :  { %v5402_v23 = vpop.f32.mrb[104].mxu1 }
 0x1e5   :  { %v2543_v25 = vpop.f32.mrb[105].mxu1 }
 0x1e6   :  { %v5404_v29 = vpop.f32.mrb[106].mxu1 }
 0x1e7   :  { %v2546_v33 = vpop.f32.mrb[107].mxu1 }
 0x1ec   :  { %v5406_v40 = vpop.f32.mrb[108].mxu1 }
 0x1ed   :  { %v2551_v41 = vpop.f32.mrb[109].mxu1 }
 0x1ee   :  { %v5408_v49 = vpop.f32.mrb[110].mxu1 }
 0x1ef   :  { %v2554_v52 = vpop.f32.mrb[111].mxu1 }
 0x1f4   :  { %v5410_v63 = vpop.f32.mrb[112].mxu1 }
 0x1f5   :  { %v2301_v3 = vpop.f32.mrb[24].mxu0  ;;  %v2559_v9 = vpop.f32.mrb[113].mxu1 }
 0x1f6   :  { %v3824_v15 = vadd.f32 %v2301_v3, %v5154_v47  ;;  %v2303_v59 = vpop.f32.mrb[25].mxu0  ;;  %v5413_v18 = vpop.f32.mrb[114].mxu1 }
 0x1f7   :  { %v2304_v53 = vpop.f32.mrb[26].mxu0  ;;  %v2562_v25 = vpop.f32.mrb[115].mxu1 }
 0x1f8   :  { %v3826_v43 = vadd.f32 %v2304_v53, %v5165_v4  ;;  %v5416_v33 = vadd.f32 %v3824_v15, %v2509_v32  ;;  %v2306_v44 = vpop.f32.mrb[27].mxu0 }
 0x1fa   :  { %v5418_v41 = vadd.f32 %v3826_v43, %v2512_v0 }
 0x1fc   :  { %v5420_v42 = vpop.f32.mrb[116].mxu1 }
 0x1fd   :  { %v2309_v52 = vpop.f32.mrb[28].mxu0  ;;  %v2567_v36 = vpop.f32.mrb[117].mxu1 }
 0x1fe   :  { %v3828_v9 = vadd.f32 %v2309_v52, %v5170_v6  ;;  %v2311_v34 = vpop.f32.mrb[29].mxu0  ;;  %v5423_v47 = vpop.f32.mrb[118].mxu1 }
 0x1ff   :  { %v2312_v59 = vpop.f32.mrb[30].mxu0  ;;  %v2570_v3 = vpop.f32.mrb[119].mxu1 }
 0x200   :  { %v3830_v25 = vadd.f32 %v2312_v59, %v5181_v10  ;;  %v5426_v28 = vadd.f32 %v3828_v9, %v2517_v51  ;;  %v2314_v53 = vpop.f32.mrb[31].mxu0 }
 0x202   :  { %v5428_v4 = vadd.f32 %v3830_v25, %v2520_v60 }
 0x204   :  { %v5430_v44 = vpop.f32.mrb[120].mxu1 }
 0x205   :  { %v2317_v43 = vpop.f32.mrb[32].mxu0  ;;  %v2575_v32 = vpop.f32.mrb[121].mxu1 }
 0x206   :  { %v3832_v36 = vadd.f32 %v2317_v43, %v5186_v13  ;;  %v2319_v0 = vpop.f32.mrb[33].mxu0  ;;  %v5433_v6 = vpop.f32.mrb[122].mxu1 }
 0x207   :  { %v2320_v34 = vpop.f32.mrb[34].mxu0  ;;  %v2578_v15 = vpop.f32.mrb[123].mxu1 }
 0x208   :  { %v3834_v52 = vadd.f32 %v2320_v34, %v5197_v19  ;;  %v5436_v3 = vadd.f32 %v3832_v36, %v2525_v1  ;;  %v2322_v10 = vpop.f32.mrb[35].mxu0 }
 0x20a   :  { %v5438_v51 = vadd.f32 %v3834_v52, %v2528_v55 }
 0x20c   :  { %v5440_v60 = vpop.f32.mrb[124].mxu1 }
 0x20d   :  { %v2325_v9 = vpop.f32.mrb[36].mxu0  ;;  %v2583_v59 = vpop.f32.mrb[125].mxu1 }
 0x20e   :  { %v3836_v25 = vadd.f32 %v2325_v9, %v5205_v24  ;;  %v2327_v53 = vpop.f32.mrb[37].mxu0  ;;  %v5443_v13 = vpop.f32.mrb[126].mxu1 }
 0x20f   :  { %v2328_v43 = vpop.f32.mrb[38].mxu0  ;;  %v2586_v32 = vpop.f32.mrb[127].mxu1 }
 0x210   :  { %v3838_v0 = vadd.f32 %v2328_v43, %v5213_v30  ;;  %v5446_v15 = vadd.f32 %v3836_v25, %v2533_v7  ;;  %v2330_v19 = vpop.f32.mrb[39].mxu0 }
 0x212   :  { %v5448_v1 = vadd.f32 %v3838_v0, %v2536_v16 }
 0x214   :  { %v5450_v55 = vpop.f32.mrb[128].mxu1 }
 0x215   :  { %v2333_v36 = vpop.f32.mrb[40].mxu0  ;;  %v2591_v34 = vpop.f32.mrb[129].mxu1 }
 0x216   :  { %v3840_v52 = vadd.f32 %v2333_v36, %v5218_v35  ;;  %v2335_v10 = vpop.f32.mrb[41].mxu0  ;;  %v5453_v24 = vpop.f32.mrb[130].mxu1 }
 0x217   :  { %v2336_v9 = vpop.f32.mrb[42].mxu0  ;;  %v2594_v59 = vpop.f32.mrb[131].mxu1 }
 0x218   :  { %v3842_v53 = vadd.f32 %v2336_v9, %v5226_v39  ;;  %v5457_v30 = vadd.f32 %v3840_v52, %v5402_v23  ;;  %v2338_v7 = vpop.f32.mrb[43].mxu0 }
 0x21a   :  { %v5460_v16 = vadd.f32 %v3842_v53, %v5404_v29 }
 0x21c   :  { %v5462_v25 = vpop.f32.mrb[132].mxu1 }
 0x21d   :  { %v2341_v43 = vpop.f32.mrb[44].mxu0  ;;  %v2599_v32 = vpop.f32.mrb[133].mxu1 }
 0x21e   :  { %v3844_v35 = vadd.f32 %v2341_v43, %v5231_v46  ;;  %v2343_v0 = vpop.f32.mrb[45].mxu0  ;;  %v5465_v19 = vpop.f32.mrb[134].mxu1 }
 0x21f   :  { %v2344_v36 = vpop.f32.mrb[46].mxu0  ;;  %v2602_v34 = vpop.f32.mrb[135].mxu1  ;;  %v4350_v0 = vmov 0.0  }
 0x220   :  { %v3846_v39 = vadd.f32 %v2344_v36, %v5242_v54  ;;  %v5469_v23 = vadd.f32 %v3844_v35, %v5406_v40  ;;  %v2346_v52 = vpop.f32.mrb[47].mxu0  ;;  %3059 = vst [vmem:[%s5907_s3] sm:$0xff] %v4350_v0 }
 0x222   :  { %v5472_v29 = vadd.f32 %v3846_v39, %v5408_v49 }
 0x224   :  { %v5474_v10 = vpop.f32.mrb[136].mxu1 }
 0x225   :  { %v2349_v9 = vpop.f32.mrb[48].mxu0  ;;  %v2607_v59 = vpop.f32.mrb[137].mxu1 }
 0x226   :  { %v3848_v46 = vadd.f32 %v2349_v9, %v5247_v58  ;;  %v2351_v53 = vpop.f32.mrb[49].mxu0  ;;  %v5477_v7 = vpop.f32.mrb[138].mxu1 }
 0x227   :  { %v2352_v43 = vpop.f32.mrb[50].mxu0  ;;  %v2610_v32 = vpop.f32.mrb[139].mxu1 }
 0x228   :  { %v3850_v54 = vadd.f32 %v2352_v43, %v5258_v50  ;;  %v5484_v40 = vadd.f32 %v3848_v46, %v5410_v63  ;;  %v2354_v49 = vpop.f32.mrb[51].mxu0 }
 0x22a   :  { %v5487_v35 = vadd.f32 %v3850_v54, %v5413_v18 }
 0x22c   :  { %v5489_v58 = vpop.f32.mrb[140].mxu1 }
 0x22d   :  { %v2357_v36 = vpop.f32.mrb[52].mxu0  ;;  %v2615_v34 = vpop.f32.mrb[141].mxu1 }
 0x22e   :  { %v3852_v39 = vadd.f32 %v2357_v36, %v5263_v5  ;;  %v2359_v52 = vpop.f32.mrb[53].mxu0  ;;  %v5492_v9 = vpop.f32.mrb[142].mxu1 }
 0x22f   :  { %v2360_v59 = vpop.f32.mrb[54].mxu0  ;;  %v2618_v53 = vpop.f32.mrb[143].mxu1 }
 0x230   :  { %v5495_v50 = vadd.f32 %v3852_v39, %v5420_v42  ;;  %v3854_v63 = vadd.f32 %v2360_v59, %v5274_v11  ;;  %v2362_v46 = vpop.f32.mrb[55].mxu0 }
 0x232   :  { %v5499_v18 = vadd.f32 %v3854_v63, %v5423_v47 }
 0x234   :  { %v5501_v43 = vpop.f32.mrb[144].mxu1 }
 0x235   :  { %v2365_v32 = vpop.f32.mrb[56].mxu0  ;;  %v2623_v0 = vpop.f32.mrb[145].mxu1 }
 0x236   :  { %v3856_v5 = vadd.f32 %v2365_v32, %v5279_v14  ;;  %v2367_v54 = vpop.f32.mrb[57].mxu0  ;;  %v5504_v49 = vpop.f32.mrb[146].mxu1 }
 0x237   :  { %v2368_v36 = vpop.f32.mrb[58].mxu0  ;;  %v2626_v34 = vpop.f32.mrb[147].mxu1 }
 0x238   :  { %v3858_v42 = vadd.f32 %v2368_v36, %v5290_v22  ;;  %v2370_v39 = vpop.f32.mrb[59].mxu0  ;;  %v5508_v11 = vadd.f32 %v3856_v5, %v5430_v44 }
 0x23a   :  { %v5511_v47 = vadd.f32 %v3858_v42, %v5433_v6 }
 0x23c   :  { %v5513_v52 = vpop.f32.mrb[148].mxu1 }
 0x23d   :  { %v2373_v59 = vpop.f32.mrb[60].mxu0  ;;  %v2631_v53 = vpop.f32.mrb[149].mxu1 }
 0x23e   :  { %v3860_v14 = vadd.f32 %v2373_v59, %v5298_v31  ;;  %v2375_v63 = vpop.f32.mrb[61].mxu0  ;;  %v2632_v46 = vpop.f32.mrb[150].mxu1 }
 0x23f   :  { %v2376_v32 = vpop.f32.mrb[62].mxu0  ;;  %v2633_v0 = vpop.f32.mrb[151].mxu1 }
 0x240   :  { %v3862_v54 = vadd.f32 %v2376_v32, %v5309_v37  ;;  %v2378_v22 = vpop.f32.mrb[63].mxu0  ;;  %v5518_v36 = vadd.f32 %v3860_v14, %v5440_v60 }
 0x242   :  { %v5521_v44 = vadd.f32 %v3862_v54, %v5443_v13 }
 0x244   :  { %v5523_v6 = vpop.f32.mrb[152].mxu1 }
 0x245   :  { %v2381_v5 = vpop.f32.mrb[64].mxu0  ;;  %v5525_v34 = vpop.f32.mrb[153].mxu1 }
 0x246   :  { %v3864_v31 = vadd.f32 %v2381_v5, %v5311_v45  ;;  %v2383_v42 = vpop.f32.mrb[65].mxu0  ;;  %v5528_v39 = vpop.f32.mrb[154].mxu1 }
 0x247   :  { %v2384_v59 = vpop.f32.mrb[66].mxu0  ;;  %v5530_v53 = vpop.f32.mrb[155].mxu1 }
 0x248   :  { %v3866_v37 = vadd.f32 %v2384_v59, %v5319_v56  ;;  %v2386_v60 = vpop.f32.mrb[67].mxu0  ;;  %v5534_v14 = vadd.f32 %v3864_v31, %v5450_v55 }
 0x24a   :  { %v5537_v13 = vadd.f32 %v3866_v37, %v5453_v24 }
 0x24c   :  { %v5539_v63 = vpop.f32.mrb[156].mxu1 }
 0x24d   :  { %v2389_v46 = vpop.f32.mrb[68].mxu0  ;;  %v5541_v32 = vpop.f32.mrb[157].mxu1 }
 0x24e   :  { %v3868_v45 = vadd.f32 %v2389_v46, %v5324_v61  ;;  %v2391_v0 = vpop.f32.mrb[69].mxu0  ;;  %v5544_v54 = vpop.f32.mrb[158].mxu1 }
 0x24f   :  { %5917 = vst [vmem:[#allocation10_spill] sm:$0xff] %v5544_v54  ;;  %v2392_v22 = vpop.f32.mrb[70].mxu0  ;;  %v5546_v5 = vpop.f32.mrb[159].mxu1 }
 0x250   :  { %v3870_v56 = vadd.f32 %v2392_v22, %v5335_v62  ;;  %v2394_v55 = vpop.f32.mrb[71].mxu0  ;;  %v5550_v31 = vadd.f32 %v3868_v45, %v5462_v25 }
 0x252   :  { %v5553_v24 = vadd.f32 %v3870_v56, %v5465_v19 }
 0x254   :  { %v5555_v42 = vpop.f32.mrb[160].mxu1 }
 0x255   :  { %v2397_v59 = vpop.f32.mrb[72].mxu0  ;;  %v5557_v37 = vpop.f32.mrb[161].mxu1 }
 0x256   :  { %v3872_v61 = vadd.f32 %v2397_v59, %v5340_v2  ;;  %v2399_v60 = vpop.f32.mrb[73].mxu0  ;;  %v5560_v46 = vpop.f32.mrb[162].mxu1 }
 0x257   :  { %5918 = vst [vmem:[#allocation11_spill] sm:$0xff] %v5560_v46  ;;  %v2400_v0 = vpop.f32.mrb[74].mxu0  ;;  %v5562_v54 = vpop.f32.mrb[163].mxu1 }
 0x258   :  { %v3874_v62 = vadd.f32 %v2400_v0, %v5351_v21  ;;  %v2402_v25 = vpop.f32.mrb[75].mxu0  ;;  %v5566_v45 = vadd.f32 %v3872_v61, %v5474_v10 }
 0x25a   :  { %v5569_v19 = vadd.f32 %v3874_v62, %v5477_v7 }
 0x25c   :  { %v3750_v22 = vpop.f32.mrb[164].mxu1 }
 0x25d   :  { %v2405_v56 = vpop.f32.mrb[76].mxu0  ;;  %v5572_v55 = vadd.f32 %v5426_v28, %v3750_v22  ;;  %v2717_v2 = vpop.f32.mrb[165].mxu1 }
 0x25e   :  { %v3876_v59 = vadd.f32 %v2405_v56, %v5356_v27  ;;  %v2407_v60 = vpop.f32.mrb[77].mxu0  ;;  %v5576_v46 = vadd.f32 %v5416_v33, %v2717_v2  ;;  %v3751_v21 = vpop.f32.mrb[166].mxu1 }
 0x25f   :  { %v2408_v0 = vpop.f32.mrb[78].mxu0  ;;  %v5579_v10 = vadd.f32 %v5428_v4, %v3751_v21  ;;  %v2720_v61 = vpop.f32.mrb[167].mxu1 }
 0x260   :  { %v3878_v7 = vadd.f32 %v2408_v0, %v5364_v38  ;;  %v2410_v62 = vpop.f32.mrb[79].mxu0  ;;  %v5583_v25 = vadd.f32 %v5418_v41, %v2720_v61  ;;  %v5586_v28 = vadd.f32 %v3876_v59, %v5489_v58 }
 0x261   :  { %v3603_v27 = vpack.c.bf16 %v5579_v10, %v5572_v55 }
 0x262   :  { %v3598_v33 = vpack.c.bf16 %v5583_v25, %v5576_v46  ;;  %v5593_v22 = vadd.f32 %v3878_v7, %v5492_v9 }
 0x263   :  { %3676 = vst [vmem:[%s5908_s2 + $0x38] sm:$0xff] %v3603_v27  }
 0x264   :  { %3675 = vst [vmem:[%s5908_s2 + $0x30] sm:$0xff] %v3598_v33   ;;  %v3754_v38 = vpop.f32.mrb[168].mxu1 }
 0x265   :  { %v2413_v41 = vpop.f32.mrb[80].mxu0  ;;  %v5602_v4 = vadd.f32 %v5446_v15, %v3754_v38  ;;  %v2733_v58 = vpop.f32.mrb[169].mxu1 }
 0x266   :  { %v3880_v56 = vadd.f32 %v2413_v41, %v5372_v48  ;;  %v2415_v2 = vpop.f32.mrb[81].mxu0  ;;  %v5606_v9 = vadd.f32 %v5436_v3, %v2733_v58  ;;  %v3755_v59 = vpop.f32.mrb[170].mxu1 }
 0x267   :  { %v2416_v60 = vpop.f32.mrb[82].mxu0  ;;  %v5609_v21 = vadd.f32 %v5448_v1, %v3755_v59  ;;  %v2736_v0 = vpop.f32.mrb[171].mxu1 }
 0x268   :  { %v3882_v61 = vadd.f32 %v2416_v60, %v5380_v57  ;;  %v2418_v7 = vpop.f32.mrb[83].mxu0  ;;  %v5613_v62 = vadd.f32 %v5438_v51, %v2736_v0  ;;  %v5616_v15 = vadd.f32 %v3880_v56, %v5501_v43 }
 0x269   :  { %v3613_v48 = vpack.c.bf16 %v5609_v21, %v5602_v4 }
 0x26a   :  { %v3608_v3 = vpack.c.bf16 %v5613_v62, %v5606_v9  ;;  %v5623_v27 = vadd.f32 %v3882_v61, %v5504_v49 }
 0x26b   :  { %3678 = vst [vmem:[%s5908_s2 + $0x48] sm:$0xff] %v3613_v48  }
 0x26c   :  { %3677 = vst [vmem:[%s5908_s2 + $0x40] sm:$0xff] %v3608_v3   ;;  %v3758_v57 = vpop.f32.mrb[172].mxu1 }
 0x26d   :  { %v2421_v51 = vpop.f32.mrb[88].mxu0  ;;  %v5632_v1 = vadd.f32 %v5469_v23, %v3758_v57  ;;  %v2749_v43 = vpop.f32.mrb[173].mxu1 }
 0x26e   :  { %v2422_v33 = vadd.f32 %v2421_v51, %v5391_v8  ;;  %v2423_v38 = vpop.f32.mrb[89].mxu0  ;;  %v5636_v49 = vadd.f32 %v5457_v30, %v2749_v43  ;;  %v3759_v41 = vpop.f32.mrb[174].mxu1 }
 0x26f   :  { %v2424_v58 = vpop.f32.mrb[90].mxu0  ;;  %v5639_v56 = vadd.f32 %v5472_v29, %v3759_v41  ;;  %v2752_v2 = vpop.f32.mrb[175].mxu1 }
 0x270   :  { %v2425_v59 = vpop.f32.mrb[91].mxu0  ;;  %v5642_v60 = vadd.f32 %v5460_v16, %v2752_v2  ;;  %v5645_v23 = vadd.f32 %v5513_v52, %v2422_v33 }
 0x271   :  { %v3623_v8 = vpack.c.bf16 %v5639_v56, %v5632_v1 }
 0x272   :  { %v3618_v30 = vpack.c.bf16 %v5642_v60, %v5636_v49 }
 0x273   :  { %3680 = vst [vmem:[%s5908_s2 + $0x58] sm:$0xff] %v3623_v8  }
 0x274   :  { %3679 = vst [vmem:[%s5908_s2 + $0x50] sm:$0xff] %v3618_v30   ;;  %v3762_v29 = vpop.f32.mrb[176].mxu1 }
 0x275   :  { %v2461_v16 = vpop.f32.mrb[0].mxu0  ;;  %v5658_v0 = vadd.f32 %v5495_v50, %v3762_v29  ;;  %v2765_v52 = vpop.f32.mrb[177].mxu1 }
 0x276   :  { %v3812_v61 = vadd.f32 %v2461_v16, %v5045_v12  ;;  %v2463_v7 = vpop.f32.mrb[1].mxu0  ;;  %v5662_v48 = vadd.f32 %v5484_v40, %v2765_v52  ;;  %v3763_v3 = vpop.f32.mrb[178].mxu1 }
 0x277   :  { %v2464_v57 = vpop.f32.mrb[2].mxu0  ;;  %v5665_v51 = vadd.f32 %v5499_v18, %v3763_v3  ;;  %v2768_v43 = vpop.f32.mrb[179].mxu1 }
 0x278   :  { %v2670_v33 = vadd.f32 %v3812_v61, %v5525_v34  ;;  %v3813_v38 = vadd.f32 %v2464_v57, %v5056_v17  ;;  %v2466_v41 = vpop.f32.mrb[3].mxu0  ;;  %v5670_v50 = vadd.f32 %v5487_v35, %v2768_v43 }
 0x279   :  { %v3633_v12 = vpack.c.bf16 %v5665_v51, %v5658_v0 }
 0x27a   :  { %v2673_v40 = vadd.f32 %v3813_v38, %v5530_v53  ;;  %v3628_v58 = vpack.c.bf16 %v5670_v50, %v5662_v48  ;;  %v3109_v18 = vmul.f32 %v2670_v33, %v2670_v33 }
 0x27b   :  { %3682 = vst [vmem:[%s5908_s2 + $0x68] sm:$0xff] %v3633_v12  }
 0x27c   :  { %v3568_v34 = vpack.c.bf16 %v2673_v40, %v2670_v33  ;;  %v3060_v2 = vadd.f32 %v2673_v40, %v2670_v33  ;;  %v3110_v17 = vmul.f32 %v2673_v40, %v2673_v40  ;;  %3681 = vst [vmem:[%s5908_s2 + $0x60] sm:$0xff] %v3628_v58   ;;  %v3766_v35 = vpop.f32.mrb[180].mxu1 }
 0x27d   :  { %v2469_v59 = vpop.f32.mrb[4].mxu0  ;;  %v5684_v8 = vadd.f32 %v5518_v36, %v3766_v35  ;;  %v2781_v53 = vpop.f32.mrb[181].mxu1 }
 0x27e   :  { %3569 = vst [vmem:[%s5908_s2] sm:$0xff] %v3568_v34   ;;  %v3152_v30 = vadd.f32 %v3110_v17, %v3109_v18  ;;  %v3814_v29 = vadd.f32 %v2469_v59, %v5064_v20  ;;  %v2471_v16 = vpop.f32.mrb[5].mxu0  ;;  %v5691_v52 = vadd.f32 %v5508_v11, %v2781_v53  ;;  %v3767_v61 = vpop.f32.mrb[182].mxu1  ;;  %v5919_v17 = vld [vmem:[#allocation2_spill] sm:$0xff] }
 0x27f   :  { %v2472_v7 = vpop.f32.mrb[6].mxu0  ;;  %v5694_v3 = vadd.f32 %v5521_v44, %v3767_v61  ;;  %v2784_v57 = vpop.f32.mrb[183].mxu1 }
 0x280   :  { %v2678_v36 = vadd.f32 %v3814_v29, %v5523_v6  ;;  %v3815_v43 = vadd.f32 %v2472_v7, %v5076_v26  ;;  %v2474_v33 = vpop.f32.mrb[7].mxu0  ;;  %v5699_v38 = vadd.f32 %v5511_v47, %v2784_v57  ;;  %v5920_v7 = vld [vmem:[#allocation3_spill] sm:$0xff] }
 0x281   :  { %v3643_v20 = vpack.c.bf16 %v5694_v3, %v5684_v8 }
 0x282   :  { %v3061_v41 = vadd.f32 %v3060_v2, %v2678_v36  ;;  %v3111_v11 = vmul.f32 %v2678_v36, %v2678_v36  ;;  %v2681_v12 = vadd.f32 %v3815_v43, %v5528_v39  ;;  %v3638_v44 = vpack.c.bf16 %v5699_v38, %v5691_v52 }
 0x283   :  { %3684 = vst [vmem:[%s5908_s2 + $0x78] sm:$0xff] %v3643_v20  }
 0x284   :  { %v3153_v6 = vadd.f32 %v3152_v30, %v3111_v11  ;;  %v3573_v26 = vpack.c.bf16 %v2681_v12, %v2678_v36  ;;  %v3062_v40 = vadd.f32 %v3061_v41, %v2681_v12  ;;  %v3112_v58 = vmul.f32 %v2681_v12, %v2681_v12  ;;  %3683 = vst [vmem:[%s5908_s2 + $0x70] sm:$0xff] %v3638_v44   ;;  %v3770_v47 = vpop.f32.mrb[184].mxu1 }
 0x285   :  { %v2477_v18 = vpop.f32.mrb[8].mxu0  ;;  %v5713_v34 = vadd.f32 %v5550_v31, %v3770_v47  ;;  %v2797_v39 = vpop.f32.mrb[185].mxu1 }
 0x286   :  { %3670 = vst [vmem:[%s5908_s2 + $0x8] sm:$0xff] %v3573_v26   ;;  %v3154_v2 = vadd.f32 %v3153_v6, %v3112_v58  ;;  %v3816_v35 = vadd.f32 %v2477_v18, %v5919_v17  ;;  %v2479_v59 = vpop.f32.mrb[9].mxu0  ;;  %v5720_v53 = vadd.f32 %v5534_v14, %v2797_v39  ;;  %v3771_v30 = vpop.f32.mrb[186].mxu1  ;;  %v5921_v58 = vld [vmem:[#allocation4_spill] sm:$0xff] }
 0x287   :  { %v2480_v29 = vpop.f32.mrb[10].mxu0  ;;  %v5723_v16 = vadd.f32 %v5553_v24, %v3771_v30  ;;  %v2800_v61 = vpop.f32.mrb[187].mxu1  ;;  %v5922_v30 = vld [vmem:[#allocation5_spill] sm:$0xff] }
 0x288   :  { %v2686_v31 = vadd.f32 %v3816_v35, %v5541_v32  ;;  %v3817_v57 = vadd.f32 %v2480_v29, %v5920_v7  ;;  %v2482_v36 = vpop.f32.mrb[11].mxu0  ;;  %v5728_v43 = vadd.f32 %v5537_v13, %v2800_v61 }
 0x289   :  { %v3653_v33 = vpack.c.bf16 %v5723_v16, %v5713_v34  ;;  %v5923_v36 = vld [vmem:[#allocation10_spill] sm:$0xff] }
 0x28a   :  { %v3063_v20 = vadd.f32 %v3062_v40, %v2686_v31  ;;  %v3113_v14 = vmul.f32 %v2686_v31, %v2686_v31  ;;  %v2689_v41 = vadd.f32 %v3817_v57, %v5546_v5  ;;  %v3648_v24 = vpack.c.bf16 %v5728_v43, %v5720_v53 }
 0x28b   :  { %3686 = vst [vmem:[%s5908_s2 + $0x88] sm:$0xff] %v3653_v33  }
 0x28c   :  { %v3155_v32 = vadd.f32 %v3154_v2, %v3113_v14  ;;  %v3578_v11 = vpack.c.bf16 %v2689_v41, %v2686_v31  ;;  %v3064_v12 = vadd.f32 %v3063_v20, %v2689_v41  ;;  %v3114_v44 = vmul.f32 %v2689_v41, %v2689_v41  ;;  %3685 = vst [vmem:[%s5908_s2 + $0x80] sm:$0xff] %v3648_v24   ;;  %v3774_v13 = vpop.f32.mrb[188].mxu1 }
 0x28d   :  { %v2485_v6 = vpop.f32.mrb[12].mxu0  ;;  %v5742_v26 = vadd.f32 %v5586_v28, %v3774_v13  ;;  %v2813_v5 = vpop.f32.mrb[189].mxu1 }
 0x28e   :  { %3671 = vst [vmem:[%s5908_s2 + $0x10] sm:$0xff] %v3578_v11   ;;  %v3156_v40 = vadd.f32 %v3155_v32, %v3114_v44  ;;  %v3818_v47 = vadd.f32 %v2485_v6, %v5921_v58  ;;  %v2487_v18 = vpop.f32.mrb[13].mxu0  ;;  %v5749_v39 = vadd.f32 %v5566_v45, %v2813_v5  ;;  %v3775_v2 = vpop.f32.mrb[190].mxu1  ;;  %v5924_v44 = vld [vmem:[#allocation6_spill] sm:$0xff] }
 0x28f   :  { %v2488_v17 = vpop.f32.mrb[14].mxu0  ;;  %v5752_v35 = vadd.f32 %v5593_v22, %v3775_v2  ;;  %v2816_v59 = vpop.f32.mrb[191].mxu1  ;;  %v5925_v2 = vld [vmem:[#allocation7_spill] sm:$0xff] }
 0x290   :  { %v2694_v28 = vadd.f32 %v3818_v47, %v5539_v63  ;;  %v3819_v29 = vadd.f32 %v2488_v17, %v5922_v30  ;;  %v2490_v61 = vpop.f32.mrb[15].mxu0  ;;  %v5757_v31 = vadd.f32 %v5569_v19, %v2816_v59 }
 0x291   :  { %v3663_v7 = vpack.c.bf16 %v5752_v35, %v5742_v26 }
 0x292   :  { %v3065_v57 = vadd.f32 %v3064_v12, %v2694_v28  ;;  %v3115_v45 = vmul.f32 %v2694_v28, %v2694_v28  ;;  %v2697_v33 = vadd.f32 %v3819_v29, %v5923_v36  ;;  %v3658_v22 = vpack.c.bf16 %v5757_v31, %v5749_v39 }
 0x293   :  { %3688 = vst [vmem:[%s5908_s2 + $0x98] sm:$0xff] %v3663_v7  }
 0x294   :  { %v3157_v63 = vadd.f32 %v3156_v40, %v3115_v45  ;;  %v3583_v20 = vpack.c.bf16 %v2697_v33, %v2694_v28  ;;  %v3066_v14 = vadd.f32 %v3065_v57, %v2697_v33  ;;  %v3116_v41 = vmul.f32 %v2697_v33, %v2697_v33  ;;  %3687 = vst [vmem:[%s5908_s2 + $0x90] sm:$0xff] %v3658_v22   ;;  %v3778_v19 = vpop.f32.mrb[192].mxu1  ;;  %v5926_v33 = vld [vmem:[#allocation8_spill] sm:$0xff] }
 0x295   :  { %v2493_v24 = vpop.f32.mrb[16].mxu0  ;;  %v5771_v32 = vadd.f32 %v3778_v19, %v5645_v23  ;;  %v2829_v11 = vpop.f32.mrb[193].mxu1 }
 0x296   :  { %3672 = vst [vmem:[%s5908_s2 + $0x18] sm:$0xff] %v3583_v20   ;;  %v3158_v12 = vadd.f32 %v3157_v63, %v3116_v41  ;;  %v3820_v13 = vadd.f32 %v2493_v24, %v5924_v44  ;;  %v2495_v6 = vpop.f32.mrb[17].mxu0  ;;  %v5778_v5 = vadd.f32 %v5616_v15, %v2829_v11  ;;  %v3779_v40 = vpop.f32.mrb[194].mxu1 }
 0x297   :  { %v3564_v58 = vpack.c.bf16 %v5771_v32, %v5771_v32  ;;  %v2496_v47 = vpop.f32.mrb[18].mxu0  ;;  %v2832_v18 = vpop.f32.mrb[195].mxu1 }
 0x298   :  { %v2702_v23 = vadd.f32 %v3820_v13, %v5557_v37  ;;  %v3821_v17 = vadd.f32 %v2496_v47, %v5925_v2  ;;  %v2498_v59 = vpop.f32.mrb[19].mxu0  ;;  %v5785_v28 = vadd.f32 %v5623_v27, %v2832_v18  ;;  %v3121_v47 = vmul.f32 %v5576_v46, %v5576_v46 }
 0x299   :  { %3058 = vst [vmem:[%s5908_s2 + $0xa8] sm:$0xf] %v3564_v58  ;;  %v3123_v59 = vmul.f32 %v5572_v55, %v5572_v55 }
 0x29a   :  { %v3067_v15 = vadd.f32 %v3066_v14, %v2702_v23  ;;  %v3117_v30 = vmul.f32 %v2702_v23, %v2702_v23  ;;  %v2705_v29 = vadd.f32 %v3821_v17, %v5562_v54  ;;  %v3668_v61 = vpack.c.bf16 %v5785_v28, %v5778_v5  ;;  %v5927_v14 = vld [vmem:[#allocation9_spill] sm:$0xff] }
 0x29c   :  { %v3159_v7 = vadd.f32 %v3158_v12, %v3117_v30  ;;  %v3588_v57 = vpack.c.bf16 %v2705_v29, %v2702_v23  ;;  %v3068_v37 = vadd.f32 %v3067_v15, %v2705_v29  ;;  %v3118_v45 = vmul.f32 %v2705_v29, %v2705_v29  ;;  %3689 = vst [vmem:[%s5908_s2 + $0xa0] sm:$0xff] %v3668_v61   ;;  %v5928_v12 = vld [vmem:[#allocation11_spill] sm:$0xff] }
 0x29d   :  { %v2501_v27 = vpop.f32.mrb[20].mxu0  ;;  %v3122_v23 = vmul.f32 %v5583_v25, %v5583_v25  ;;  %v3124_v29 = vmul.f32 %v5579_v10, %v5579_v10 }
 0x29e   :  { %3673 = vst [vmem:[%s5908_s2 + $0x20] sm:$0xff] %v3588_v57   ;;  %v3160_v36 = vadd.f32 %v3159_v7, %v3118_v45  ;;  %v3822_v22 = vadd.f32 %v2501_v27, %v5926_v33  ;;  %v2503_v54 = vpop.f32.mrb[21].mxu0 }
 0x29f   :  { %v2504_v63 = vpop.f32.mrb[22].mxu0 }
 0x2a0   :  { %v2710_v20 = vadd.f32 %v3822_v22, %v5555_v42  ;;  %v3823_v41 = vadd.f32 %v2504_v63, %v5927_v14  ;;  %v2506_v19 = vpop.f32.mrb[23].mxu0 }
 0x2a2   :  { %v3069_v24 = vadd.f32 %v3068_v37, %v2710_v20  ;;  %v3119_v11 = vmul.f32 %v2710_v20, %v2710_v20  ;;  %v2713_v44 = vadd.f32 %v3823_v41, %v5928_v12 }
 0x2a4   :  { %v3161_v13 = vadd.f32 %v3160_v36, %v3119_v11  ;;  %v3593_v6 = vpack.c.bf16 %v2713_v44, %v2710_v20  ;;  %v3070_v40 = vadd.f32 %v3069_v24, %v2713_v44  ;;  %v3120_v58 = vmul.f32 %v2713_v44, %v2713_v44 }
 0x2a6   :  { %3674 = vst [vmem:[%s5908_s2 + $0x28] sm:$0xff] %v3593_v6   ;;  %v3071_v42 = vadd.f32 %v3070_v40, %v5576_v46  ;;  %v3162_v18 = vadd.f32 %v3161_v13, %v3120_v58  ;;  %v3125_v46 = vmul.f32 %v5606_v9, %v5606_v9 }
 0x2a8   :  { %v3072_v2 = vadd.f32 %v3071_v42, %v5583_v25  ;;  %v3163_v17 = vadd.f32 %v3162_v18, %v3121_v47  ;;  %v3126_v25 = vmul.f32 %v5613_v62, %v5613_v62 }
 0x2aa   :  { %v3073_v15 = vadd.f32 %v3072_v2, %v5572_v55  ;;  %v3164_v30 = vadd.f32 %v3163_v17, %v3122_v23  ;;  %v3127_v55 = vmul.f32 %v5602_v4, %v5602_v4 }
 0x2ac   :  { %v3074_v61 = vadd.f32 %v3073_v15, %v5579_v10  ;;  %v3165_v7 = vadd.f32 %v3164_v30, %v3123_v59  ;;  %v3128_v10 = vmul.f32 %v5609_v21, %v5609_v21 }
 0x2ae   :  { %v3075_v57 = vadd.f32 %v3074_v61, %v5606_v9  ;;  %v3166_v37 = vadd.f32 %v3165_v7, %v3124_v29  ;;  %v3129_v9 = vmul.f32 %v5636_v49, %v5636_v49 }
 0x2b0   :  { %v3076_v45 = vadd.f32 %v3075_v57, %v5613_v62  ;;  %v3167_v27 = vadd.f32 %v3166_v37, %v3125_v46  ;;  %v3130_v62 = vmul.f32 %v5642_v60, %v5642_v60 }
 0x2b2   :  { %v3077_v36 = vadd.f32 %v3076_v45, %v5602_v4  ;;  %v3168_v33 = vadd.f32 %v3167_v27, %v3126_v25  ;;  %v3131_v4 = vmul.f32 %v5632_v1, %v5632_v1 }
 0x2b4   :  { %v3078_v22 = vadd.f32 %v3077_v36, %v5609_v21  ;;  %v3169_v54 = vadd.f32 %v3168_v33, %v3127_v55  ;;  %v3132_v21 = vmul.f32 %v5639_v56, %v5639_v56 }
 0x2b6   :  { %v3079_v63 = vadd.f32 %v3078_v22, %v5636_v49  ;;  %v3170_v20 = vadd.f32 %v3169_v54, %v3128_v10  ;;  %v3133_v49 = vmul.f32 %v5662_v48, %v5662_v48 }
 0x2b8   :  { %v3080_v14 = vadd.f32 %v3079_v63, %v5642_v60  ;;  %v3171_v41 = vadd.f32 %v3170_v20, %v3129_v9  ;;  %v3134_v60 = vmul.f32 %v5670_v50, %v5670_v50 }
 0x2ba   :  { %v3081_v19 = vadd.f32 %v3080_v14, %v5632_v1  ;;  %v3172_v24 = vadd.f32 %v3171_v41, %v3130_v62  ;;  %v3135_v1 = vmul.f32 %v5658_v0, %v5658_v0 }
 0x2bc   :  { %v3082_v11 = vadd.f32 %v3081_v19, %v5639_v56  ;;  %v3173_v12 = vadd.f32 %v3172_v24, %v3131_v4  ;;  %v3136_v56 = vmul.f32 %v5665_v51, %v5665_v51 }
 0x2be   :  { %v3083_v44 = vadd.f32 %v3082_v11, %v5662_v48  ;;  %v3174_v13 = vadd.f32 %v3173_v12, %v3132_v21  ;;  %v3137_v48 = vmul.f32 %v5691_v52, %v5691_v52 }
 0x2c0   :  { %v3084_v6 = vadd.f32 %v3083_v44, %v5670_v50  ;;  %v3175_v40 = vadd.f32 %v3174_v13, %v3133_v49  ;;  %v3138_v50 = vmul.f32 %v5699_v38, %v5699_v38 }
 0x2c2   :  { %v3085_v58 = vadd.f32 %v3084_v6, %v5658_v0  ;;  %v3176_v47 = vadd.f32 %v3175_v40, %v3134_v60  ;;  %v3139_v0 = vmul.f32 %v5684_v8, %v5684_v8 }
 0x2c4   :  { %v3086_v42 = vadd.f32 %v3085_v58, %v5665_v51  ;;  %v3177_v18 = vadd.f32 %v3176_v47, %v3135_v1  ;;  %v3140_v51 = vmul.f32 %v5694_v3, %v5694_v3 }
 0x2c6   :  { %v3087_v23 = vadd.f32 %v3086_v42, %v5691_v52  ;;  %v3178_v2 = vadd.f32 %v3177_v18, %v3136_v56  ;;  %v3141_v52 = vmul.f32 %v5720_v53, %v5720_v53 }
 0x2c8   :  { %v3088_v17 = vadd.f32 %v3087_v23, %v5699_v38  ;;  %v3179_v59 = vadd.f32 %v3178_v2, %v3137_v48  ;;  %v3142_v38 = vmul.f32 %v5728_v43, %v5728_v43 }
 0x2ca   :  { %v3089_v15 = vadd.f32 %v3088_v17, %v5684_v8  ;;  %v3180_v30 = vadd.f32 %v3179_v59, %v3138_v50  ;;  %v3143_v8 = vmul.f32 %v5713_v34, %v5713_v34 }
 0x2cc   :  { %v3090_v29 = vadd.f32 %v3089_v15, %v5694_v3  ;;  %v3181_v61 = vadd.f32 %v3180_v30, %v3139_v0  ;;  %v3144_v3 = vmul.f32 %v5723_v16, %v5723_v16 }
 0x2ce   :  { %v3091_v7 = vadd.f32 %v3090_v29, %v5720_v53  ;;  %v3182_v46 = vadd.f32 %v3181_v61, %v3140_v51  ;;  %v3145_v53 = vmul.f32 %v5749_v39, %v5749_v39 }
 0x2d0   :  { %v3092_v57 = vadd.f32 %v3091_v7, %v5728_v43  ;;  %v3183_v37 = vadd.f32 %v3182_v46, %v3141_v52  ;;  %v3146_v43 = vmul.f32 %v5757_v31, %v5757_v31 }
 0x2d2   :  { %v3093_v25 = vadd.f32 %v3092_v57, %v5713_v34  ;;  %v3184_v45 = vadd.f32 %v3183_v37, %v3142_v38  ;;  %v3147_v34 = vmul.f32 %v5742_v26, %v5742_v26 }
 0x2d4   :  { %v3094_v27 = vadd.f32 %v3093_v25, %v5723_v16  ;;  %v3185_v55 = vadd.f32 %v3184_v45, %v3143_v8  ;;  %v3148_v16 = vmul.f32 %v5752_v35, %v5752_v35 }
 0x2d6   :  { %v3095_v36 = vadd.f32 %v3094_v27, %v5749_v39  ;;  %v3186_v33 = vadd.f32 %v3185_v55, %v3144_v3  ;;  %v3149_v39 = vmul.f32 %v5778_v5, %v5778_v5 }
 0x2d8   :  { %v3096_v10 = vadd.f32 %v3095_v36, %v5757_v31  ;;  %v3187_v22 = vadd.f32 %v3186_v33, %v3145_v53  ;;  %v3150_v31 = vmul.f32 %v5785_v28, %v5785_v28 }
 0x2da   :  { %v3097_v54 = vadd.f32 %v3096_v10, %v5742_v26  ;;  %v3188_v9 = vadd.f32 %v3187_v22, %v3146_v43  ;;  %v3151_v26 = vmul.f32 %v5771_v32, %v5771_v32 }
 0x2dc   :  { %v3098_v63 = vadd.f32 %v3097_v54, %v5752_v35  ;;  %v3189_v20 = vadd.f32 %v3188_v9, %v3147_v34 }
 0x2de   :  { %v3099_v62 = vadd.f32 %v3098_v63, %v5778_v5  ;;  %v3190_v14 = vadd.f32 %v3189_v20, %v3148_v16 }
 0x2e0   :  { %v3100_v41 = vadd.f32 %v3099_v62, %v5785_v28  ;;  %v3191_v4 = vadd.f32 %v3190_v14, %v3149_v39 }
 0x2e2   :  { %v3101_v19 = vadd.f32 %v3100_v41, %v5771_v32  ;;  %v3192_v24 = vadd.f32 %v3191_v4, %v3150_v31 }
 0x2e4   :  { %v3102_v35 = vrot.slane %v3101_v19, 4  ;;  %v3193_v21 = vadd.f32 %v3192_v24, %v3151_v26 }
 0x2e6   :  { %v3103_v11 = vadd.f32 %v3102_v35, %v3101_v19  ;;  %v3194_v12 = vrot.slane %v3193_v21, 4 }
 0x2e8   :  { %v3104_v49 = vrot.slane %v3103_v11, 2  ;;  %v3195_v44 = vadd.f32 %v3194_v12, %v3193_v21 }
 0x2ea   :  { %v3105_v5 = vadd.f32 %v3104_v49, %v3103_v11  ;;  %v3196_v13 = vrot.slane %v3195_v44, 2 }
 0x2ec   :  { %v3106_v60 = vrot.slane %v3105_v5, 1  ;;  %v3197_v6 = vadd.f32 %v3196_v13, %v3195_v44 }
 0x2ee   :  { %v3107_v40 = vadd.f32 %v3106_v60, %v3105_v5  ;;  %v3198_v1 = vrot.slane %v3197_v6, 1 }
 0x2f0   :  { %3108 = vst [vmem:[%s5907_s3] sm:$0x1] %v3107_v40  ;;  %v3199_v28 = vadd.f32 %v3198_v1, %v3197_v6 }
 0x2f2   :  { %3200 = vst [vmem:[%s5907_s3 + $0x1] sm:$0x1] %v3199_v28 }

// kernel: squeeze.0
= control target key start
LH: loop header
LB: loop body
LE: loop exit
PB: predicated region body
PF: predicated region fallthrough
CT: control target
= control target key end

     0   :  { %s236_s6 = smov 3  ;;  %s239_s7 = smov 3  ;;  %vm241_vm0 = vcmask 850944   ;;  %vm280_vm1 = vcmask 916480   ;;  %vm261_vm2 = vcmask 883712   ;;  %vm298_vm3 = vcmask 949248   ;;  %s1052_s0 = inlined_call_operand.vmem [shape: f32[1568], index: 0, kind: input, shape index: {}]   ;;  %s1053_s1 = inlined_call_operand.hbm [shape: f32[2,1,28,28], index: 1, kind: output, shape index: {}]  }
   0x1   :  { %v769_v0 = vld [vmem:[%s1052_s0 + $0x4] ss:$7 sm:%s236_s6]   ;;  %v770_v1 = vld [vmem:[%s1052_s0 + $0x5] ss:$7 sm:%s239_s7]   ;;  %s275_s12 = smov 3  ;;  %s278_s15 = smov 3 }
   0x2   :  { %v242_v2 = vsel %vm241_vm0, %v770_v1, %v769_v0  ;;  %v276_v3 = vld [vmem:[%s1052_s0] ss:$7 sm:%s275_s12]   ;;  %v774_v4 = vld [vmem:[%s1052_s0 + $0x5] sm:$0x1]   ;;  %s836_s18 = smov 24   ;;  %s256_s21 = smov 3 }
   0x3   :  { %243 = vrot.lane.b32.xlu0 %v242_v2, %s836_s18  ;;  %v773_v5 = vld [vmem:[%s1052_s0 + $0x1] ss:$7 sm:%s278_s15]   ;;  %s259_s22 = smov 3  ;;  %v775_v6 = vld [vmem:[%s1052_s0 + $0x6] sm:$0x1]   ;;  %s837_s29 = smov 16  }
   0x4   :  { %v281_v7 = vsel %vm280_vm1, %v773_v5, %v276_v3  ;;  %v771_v8 = vld [vmem:[%s1052_s0 + $0x2] ss:$7 sm:%s256_s21]   ;;  %v772_v9 = vld [vmem:[%s1052_s0 + $0x3] ss:$7 sm:%s259_s22]   ;;  %s309_s30 = smov 3  ;;  %s312_s2 = smov 3  ;;  %v299_v11 = vsel %vm298_vm3, %v775_v6, %v774_v4 }
   0x5   :  { %282 = vrot.lane.b32.xlu1 %v281_v7, %s837_s29  ;;  %v262_v10 = vsel %vm261_vm2, %v772_v9, %v771_v8  ;;  %vm314_vm4 = vcmask 982016   ;;  %v776_v12 = vld [vmem:[%s1052_s0 + $0x3] ss:$7 sm:%s309_s30]   ;;  %s329_s7 = smov 3  ;;  %s838_s8 = smov 20   ;;  %vm334_vm5 = vcmask 1014784  }
   0x6   :  { %v777_v13 = vld [vmem:[%s1052_s0 + $0x4] ss:$7 sm:%s312_s2]   ;;  %s332_s11 = smov 3  ;;  %s839_s14 = smov 12   ;;  %v750_v21 = vld [vmem:[%s1052_s0 + $0x6] sm:$0x1]  }
   0x7   :  { %263 = vrot.lane.b32.xlu0 %v262_v10, %s838_s8  ;;  %v778_v14 = vld [vmem:[%s1052_s0 + $0x1] ss:$7 sm:%s329_s7]   ;;  %v315_v15 = vsel %vm314_vm4, %v777_v13, %v776_v12  ;;  %s10_s15 = smov 3  ;;  %s840_s16 = smov 8  }
   0x8   :  { %v779_v16 = vld [vmem:[%s1052_s0 + $0x2] ss:$7 sm:%s332_s11]   ;;  %s20_s17 = smov 3  ;;  %s841_s20 = smov 4  }
   0x9   :  { %300 = vrot.lane.b32.xlu1 %v299_v11, %s839_s14  ;;  %v335_v17 = vsel %vm334_vm5, %v779_v16, %v778_v14  ;;  %v747_v18 = vld [vmem:[%s1052_s0 + $0x5] ss:$7 sm:%s10_s15]   ;;  %s30_s21 = smov 3  ;;  %s842_s24 = smov 124  }
   0xa   :  { %v748_v19 = vld [vmem:[%s1052_s0 + $0x3] ss:$7 sm:%s20_s17]   ;;  %v749_v20 = vld [vmem:[%s1052_s0 + $0x1] ss:$7 sm:%s30_s21]   ;;  %s843_s27 = smov 120   ;;  %s47_s28 = smov 3 }
   0xb   :  { %316 = vrot.lane.b32.xlu0 %v315_v15, %s840_s16  ;;  %s844_s2 = smov 116   ;;  %s57_s3 = smov 3 }
   0xd   :  { %336 = vrot.lane.b32.xlu1 %v335_v17, %s841_s20 }
   0xf   :  { %12 = vrot.lane.b32.xlu0 %v747_v18, %s842_s24 }
  0x11   :  { %22 = vrot.lane.b32.xlu1 %v748_v19, %s843_s27 }
  0x13   :  { %32 = vrot.lane.b32.xlu0 %v749_v20, %s844_s2 }
  0x14   :  { %2 = vsyncpa [#allocation1], 0  ;;  %v751_v22 = vld [vmem:[%s1052_s0 + $0x4] ss:$7 sm:%s47_s28]   ;;  %s845_s6 = smov 112   ;;  %s66_s7 = smov 3 }
  0x15   :  { %41 = vrot.lane.b32.xlu1 %v750_v21, %s845_s6  ;;  %v752_v23 = vld [vmem:[%s1052_s0 + $0x2] ss:$7 sm:%s57_s3]   ;;  %s846_s10 = smov 108   ;;  %s847_s13 = smov 104   ;;  %v756_v28 = vld [vmem:[%s1052_s0 + $0x6] sm:$0x1]  }
  0x16   :  { %v67_v24 = vld [vmem:[%s1052_s0] ss:$7 sm:%s66_s7]   ;;  %s83_s14 = smov 3  ;;  %v753_v25 = vld [vmem:[%s1052_s0 + $0x5] sm:$0x1]   ;;  %s848_s17 = smov 100  }
  0x17   :  { %49 = vrot.lane.b32.xlu0 %v751_v22, %s846_s10  ;;  %s93_s18 = smov 3  ;;  %v754_v26 = vld [vmem:[%s1052_s0 + $0x3] ss:$7 sm:%s83_s14]   ;;  %s849_s21 = smov 96   ;;  %v759_v32 = vld [vmem:[%s1052_s0 + $0x5] sm:$0x1]  }
  0x18   :  { %v755_v27 = vld [vmem:[%s1052_s0 + $0x1] ss:$7 sm:%s93_s18]   ;;  %s850_s24 = smov 92   ;;  %s110_s25 = smov 3  ;;  %v762_v35 = vld [vmem:[%s1052_s0 + $0x6] sm:$0x1]  }
  0x19   :  { %59 = vrot.lane.b32.xlu1 %v752_v23, %s847_s13  ;;  %s851_s28 = smov 88   ;;  %s120_s29 = smov 3  ;;  %v757_v29 = vld [vmem:[%s1052_s0 + $0x4] ss:$7 sm:%s110_s25]   ;;  %vm5_vm6 = vcmask 228352   ;;  %vm245_vm7 = vcmask 195584  }
  0x1a   :  { %s852_s3 = smov 84   ;;  %s129_s4 = smov 3  ;;  %v758_v30 = vld [vmem:[%s1052_s0 + $0x2] ss:$7 sm:%s120_s29]   ;;  %v768_v45 = vld [vmem:[%s1052_s0 + $0x6] sm:$0x1]  }
  0x1b   :  { %68 = vrot.lane.b32.xlu0 %v67_v24, %s848_s17  ;;  %s853_s7 = smov 80   ;;  %v130_v31 = vld [vmem:[%s1052_s0] ss:$7 sm:%s129_s4]   ;;  %s854_s10 = smov 76   ;;  %v765_v40 = vld [vmem:[%s1052_s0 + $0x5] sm:$0x1]  }
  0x1c   :  { %s146_s11 = smov 3  ;;  %s855_s14 = smov 72   ;;  %vm250_vm8 = vcmask 228544   ;;  %vm284_vm9 = vcmask 130048   ;;  %vm289_vm10 = vcmask 228480   ;;  %vm265_vm11 = vcmask 162816  }
  0x1d   :  { %77 = vrot.lane.b32.xlu1 %v753_v25, %s849_s21  ;;  %s156_s15 = smov 3  ;;  %v760_v33 = vld [vmem:[%s1052_s0 + $0x3] ss:$7 sm:%s146_s11]   ;;  %s856_s18 = smov 68   ;;  %vm270_vm12 = vcmask 228512   ;;  %vm302_vm13 = vcmask 97280  }
  0x1e   :  { %v761_v34 = vld [vmem:[%s1052_s0 + $0x1] ss:$7 sm:%s156_s15]   ;;  %s857_s21 = smov 64   ;;  %s173_s22 = smov 3  ;;  %vm305_vm14 = vcmask 228448   ;;  %vm318_vm15 = vcmask 64512  }
  0x1f   :  { %85 = vrot.lane.b32.xlu0 %v754_v26, %s850_s24  ;;  %s858_s25 = smov 60   ;;  %s183_s26 = smov 3  ;;  %v763_v36 = vld [vmem:[%s1052_s0 + $0x4] ss:$7 sm:%s173_s22]   ;;  %vm323_vm0 = vcmask 228416   ;;  %vm338_vm1 = vcmask 31744  }
  0x20   :  { %s3_s29 = smov 3  ;;  %s859_s30 = smov 56   ;;  %v764_v38 = vld [vmem:[%s1052_s0 + $0x2] ss:$7 sm:%s183_s26]   ;;  %vm343_vm2 = vcmask 228384  }
  0x21   :  { %95 = vrot.lane.b32.xlu1 %v755_v27, %s851_s28  ;;  %s192_s2 = smov 3  ;;  %v4_v37 = vld [vmem:[%s1052_s0] ss:$7 sm:%s3_s29]   ;;  %s209_s11 = smov 3 }
  0x22   :  { %6 = vst.msk [vmem:[#allocation2] sm:$0x1] %vm5_vm6, %v4_v37   ;;  %8 = vst.msk [vmem:[#allocation2 + $0xff] sm:$0x2] %vm5_vm6, %v4_v37   ;;  %v193_v39 = vld [vmem:[%s1052_s0] ss:$7 sm:%s192_s2]  }
  0x23   :  { %104 = vrot.lane.b32.xlu0 %v756_v28, %s852_s3  ;;  %s219_s15 = smov 3  ;;  %v766_v41 = vld [vmem:[%s1052_s0 + $0x3] ss:$7 sm:%s209_s11]   ;;  %s866_s24 = smov 28  }
  0x24   :  { %v767_v44 = vld [vmem:[%s1052_s0 + $0x1] ss:$7 sm:%s219_s15]   ;;  %s865_s0 = smov 32  }
  0x25   :  { %112 = vrot.lane.b32.xlu1 %v757_v29, %s853_s7  ;;  %s860_s7 = smov 52  }
  0x27   :  { %122 = vrot.lane.b32.xlu0 %v758_v30, %s854_s10  ;;  %s861_s10 = smov 48  }
  0x29   :  { %131 = vrot.lane.b32.xlu1 %v130_v31, %s855_s14  ;;  %s862_s14 = smov 44   ;;  %v351_v42 = vld [vmem:[#allocation2] sm:$0x1] }
  0x2a   :  { %v540_v43 = vld [vmem:[#allocation2 + $0x100] sm:$0x1]  ;;  %353 = vst [vmem:[#allocation0] sm:$0x1] %v351_v42 }
  0x2b   :  { %140 = vrot.lane.b32.xlu0 %v759_v32, %s856_s18  ;;  %s863_s18 = smov 40   ;;  %544 = vst [vmem:[#allocation0 + $0x20] sm:$0x1] %v540_v43 }
  0x2d   :  { %148 = vrot.lane.b32.xlu1 %v760_v33, %s857_s21  ;;  %s864_s21 = smov 36  }
  0x2f   :  { %158 = vrot.lane.b32.xlu0 %v761_v34, %s858_s25  ;;  %s867_s25 = smov [#allocation0]  }
  0x30   :  { %s687_s26 = sshll.u32 %s867_s25, 4  ;;  %s688_s26 = int_to_ptr.vmem [resolvable:$true] %s687_s26 }
  0x31   :  { %167 = vrot.lane.b32.xlu1 %v762_v35, %s859_s30  ;;  %s812_s27 = scalar_lea.vmem %s688_s26, 896  ;;  %p817_p1 = scmp.lt.s32.totalorder %s688_s26, %s688_s26 }
  0x32   :  { %p813_p0 = scmp.ne.s32.totalorder %s688_s26, %s812_s27  ;;  %p818_p2 = scmp.lt.s32.totalorder %s812_s27, %s812_s27 }
  0x33   :  { %175 = vrot.lane.b32.xlu0 %v763_v36, %s860_s7 }
  0x34   :  { %p819_p3 = por %p818_p2, %p817_p1 }
  0x35   :  { %185 = vrot.lane.b32.xlu1 %v764_v38, %s861_s10 }
  0x36   :  { %p820_p4 = pnand %p819_p3, %p813_p0 }
  0x37   :  { %194 = vrot.lane.b32.xlu0 %v193_v39, %s862_s14 }
  0x39   :  { %203 = vrot.lane.b32.xlu1 %v765_v40, %s863_s18 }
  0x3b   :  { %211 = vrot.lane.b32.xlu0 %v766_v41, %s864_s21 }
  0x3d   :  { %221 = vrot.lane.b32.xlu1 %v767_v44, %s865_s0 }
  0x3f   :  { %230 = vrot.lane.b32.xlu0 %v768_v45, %s866_s24 }
  0x75   :  { %v244_v46 = vpop.permute.xlu0 %243  }
  0x76   :  { %247 = vst.msk [vmem:[#allocation2 + $0xb0] sm:$0x1] %vm245_vm7, %v244_v46   ;;  %249 = vst.msk [vmem:[#allocation2 + $0x1af] sm:$0x2] %vm245_vm7, %v244_v46  }
  0x77   :  { %252 = vst.msk [vmem:[#allocation2 + $0xb0] sm:$0x1] %vm250_vm8, %v244_v46   ;;  %254 = vst.msk [vmem:[#allocation2 + $0x1af] sm:$0x2] %vm250_vm8, %v244_v46   ;;  %v283_v47 = vpop.permute.xlu1 %282  }
  0x78   :  { %286 = vst.msk [vmem:[#allocation2 + $0x20] sm:$0x1] %vm284_vm9, %v283_v47   ;;  %288 = vst.msk [vmem:[#allocation2 + $0x11f] sm:$0x2] %vm284_vm9, %v283_v47  }
  0x79   :  { %291 = vst.msk [vmem:[#allocation2 + $0x20] sm:$0x1] %vm289_vm10, %v283_v47   ;;  %293 = vst.msk [vmem:[#allocation2 + $0x11f] sm:$0x2] %vm289_vm10, %v283_v47   ;;  %v264_v48 = vpop.permute.xlu0 %263  }
  0x7a   :  { %267 = vst.msk [vmem:[#allocation2 + $0x68] sm:$0x1] %vm265_vm11, %v264_v48   ;;  %269 = vst.msk [vmem:[#allocation2 + $0x167] sm:$0x2] %vm265_vm11, %v264_v48  }
  0x7b   :  { %272 = vst.msk [vmem:[#allocation2 + $0x68] sm:$0x1] %vm270_vm12, %v264_v48   ;;  %274 = vst.msk [vmem:[#allocation2 + $0x167] sm:$0x2] %vm270_vm12, %v264_v48   ;;  %v301_v49 = vpop.permute.xlu1 %300  }
  0x7c   :  { %304 = vst.msk [vmem:[#allocation2 + $0xd8] sm:$0x1] %vm302_vm13, %v301_v49  }
  0x7d   :  { %307 = vst.msk [vmem:[#allocation2 + $0xd8] sm:$0x1] %vm305_vm14, %v301_v49   ;;  %v317_v50 = vpop.permute.xlu0 %316  }
  0x7e   :  { %v480_v51 = vld [vmem:[#allocation2 + $0xb0] sm:$0x1]  ;;  %320 = vst.msk [vmem:[#allocation2 + $0x90] sm:$0x1] %vm318_vm15, %v317_v50   ;;  %322 = vst.msk [vmem:[#allocation2 + $0x18f] sm:$0x2] %vm318_vm15, %v317_v50  }
  0x7f   :  { %v672_v52 = vld [vmem:[#allocation2 + $0x1b0] sm:$0x1]  ;;  %484 = vst [vmem:[#allocation0 + $0x16] sm:$0x1] %v480_v51  ;;  %325 = vst.msk [vmem:[#allocation2 + $0x90] sm:$0x1] %vm323_vm0, %v317_v50   ;;  %v337_v53 = vpop.permute.xlu1 %336  }
  0x80   :  { %676 = vst [vmem:[#allocation0 + $0x36] sm:$0x1] %v672_v52  ;;  %327 = vst.msk [vmem:[#allocation2 + $0x18f] sm:$0x2] %vm323_vm0, %v317_v50   ;;  %v372_v54 = vld [vmem:[#allocation2 + $0x20] sm:$0x1] }
  0x81   :  { %v564_v55 = vld [vmem:[#allocation2 + $0x120] sm:$0x1]  ;;  %340 = vst.msk [vmem:[#allocation2 + $0x48] sm:$0x1] %vm338_vm1, %v337_v53   ;;  %342 = vst.msk [vmem:[#allocation2 + $0x147] sm:$0x2] %vm338_vm1, %v337_v53   ;;  %v13_v56 = vpop.permute.xlu0 %12  }
  0x82   :  { %376 = vst [vmem:[#allocation0 + $0x4] sm:$0x1] %v372_v54  ;;  %568 = vst [vmem:[#allocation0 + $0x24] sm:$0x1] %v564_v55  ;;  %v426_v57 = vld [vmem:[#allocation2 + $0x68] sm:$0x1] }
  0x83   :  { %345 = vst.msk [vmem:[#allocation2 + $0x48] sm:$0x1] %vm343_vm2, %v337_v53   ;;  %347 = vst.msk [vmem:[#allocation2 + $0x147] sm:$0x2] %vm343_vm2, %v337_v53   ;;  %v618_v58 = vld [vmem:[#allocation2 + $0x168] sm:$0x1]  ;;  %v23_v59 = vpop.permute.xlu1 %22  }
  0x84   :  { %16 = vst.msk [vmem:[#allocation2 + $0xb8] sm:$0x1] %vm5_vm6, %v13_v56   ;;  %18 = vst.msk [vmem:[#allocation2 + $0x1b7] sm:$0x2] %vm5_vm6, %v13_v56   ;;  %v510_v60 = vld [vmem:[#allocation2 + $0xd8] sm:$0x1] }
  0x85   :  { %430 = vst [vmem:[#allocation0 + $0xd] sm:$0x1] %v426_v57  ;;  %622 = vst [vmem:[#allocation0 + $0x2d] sm:$0x1] %v618_v58  ;;  %v33_v61 = vpop.permute.xlu0 %32  }
  0x86   :  { %26 = vst.msk [vmem:[#allocation2 + $0x70] sm:$0x1] %vm5_vm6, %v23_v59   ;;  %28 = vst.msk [vmem:[#allocation2 + $0x16f] sm:$0x2] %vm5_vm6, %v23_v59   ;;  %v456_v62 = vld [vmem:[#allocation2 + $0x90] sm:$0x1] }
  0x87   :  { %514 = vst [vmem:[#allocation0 + $0x1b] sm:$0x1] %v510_v60  ;;  %v648_v63 = vld [vmem:[#allocation2 + $0x190] sm:$0x1]  ;;  %36 = vst.msk [vmem:[#allocation2 + $0x28] sm:$0x1] %vm5_vm6, %v33_v61   ;;  %v42_v0 = vpop.permute.xlu1 %41  }
  0x88   :  { %38 = vst.msk [vmem:[#allocation2 + $0x127] sm:$0x2] %vm5_vm6, %v33_v61   ;;  %460 = vst [vmem:[#allocation0 + $0x12] sm:$0x1] %v456_v62 }
  0x89   :  { %652 = vst [vmem:[#allocation0 + $0x32] sm:$0x1] %v648_v63  ;;  %45 = vst.msk [vmem:[#allocation2 + $0xe0] sm:$0x1] %vm5_vm6, %v42_v0   ;;  %v50_v5 = vpop.permute.xlu0 %49  }
  0x8a   :  { %v402_v1 = vld [vmem:[#allocation2 + $0x48] sm:$0x1]  ;;  %53 = vst.msk [vmem:[#allocation2 + $0x98] sm:$0x1] %vm5_vm6, %v50_v5   ;;  %55 = vst.msk [vmem:[#allocation2 + $0x197] sm:$0x2] %vm5_vm6, %v50_v5  }
  0x8b   :  { %v594_v2 = vld [vmem:[#allocation2 + $0x148] sm:$0x1]  ;;  %406 = vst [vmem:[#allocation0 + $0x9] sm:$0x1] %v402_v1  ;;  %v486_v3 = vld [vmem:[#allocation2 + $0xb8] sm:$0x1]  ;;  %v60_v8 = vpop.permute.xlu1 %59  }
  0x8c   :  { %598 = vst [vmem:[#allocation0 + $0x29] sm:$0x1] %v594_v2  ;;  %v678_v4 = vld [vmem:[#allocation2 + $0x1b8] sm:$0x1]  ;;  %490 = vst [vmem:[#allocation0 + $0x17] sm:$0x1] %v486_v3 }
  0x8d   :  { %682 = vst [vmem:[#allocation0 + $0x37] sm:$0x1] %v678_v4  ;;  %v432_v6 = vld [vmem:[#allocation2 + $0x70] sm:$0x1]  ;;  %63 = vst.msk [vmem:[#allocation2 + $0x50] sm:$0x1] %vm5_vm6, %v60_v8   ;;  %v69_v11 = vpop.permute.xlu0 %68  }
  0x8e   :  { %v624_v7 = vld [vmem:[#allocation2 + $0x170] sm:$0x1]  ;;  %436 = vst [vmem:[#allocation0 + $0xe] sm:$0x1] %v432_v6  ;;  %65 = vst.msk [vmem:[#allocation2 + $0x14f] sm:$0x2] %vm5_vm6, %v60_v8  }
  0x8f   :  { %628 = vst [vmem:[#allocation0 + $0x2e] sm:$0x1] %v624_v7  ;;  %v378_v9 = vld [vmem:[#allocation2 + $0x28] sm:$0x1]  ;;  %72 = vst.msk [vmem:[#allocation2 + $0x8] sm:$0x1] %vm5_vm6, %v69_v11   ;;  %v78_v13 = vpop.permute.xlu1 %77  }
  0x90   :  { %v570_v10 = vld [vmem:[#allocation2 + $0x128] sm:$0x1]  ;;  %382 = vst [vmem:[#allocation0 + $0x5] sm:$0x1] %v378_v9  ;;  %74 = vst.msk [vmem:[#allocation2 + $0x107] sm:$0x2] %vm5_vm6, %v69_v11  }
  0x91   :  { %574 = vst [vmem:[#allocation0 + $0x25] sm:$0x1] %v570_v10  ;;  %v516_v12 = vld [vmem:[#allocation2 + $0xe0] sm:$0x1]  ;;  %81 = vst.msk [vmem:[#allocation2 + $0xc0] sm:$0x1] %vm5_vm6, %v78_v13   ;;  %v86_v16 = vpop.permute.xlu0 %85  }
  0x92   :  { %520 = vst [vmem:[#allocation0 + $0x1c] sm:$0x1] %v516_v12  ;;  %v462_v14 = vld [vmem:[#allocation2 + $0x98] sm:$0x1]  ;;  %89 = vst.msk [vmem:[#allocation2 + $0x78] sm:$0x1] %vm5_vm6, %v86_v16  }
  0x93   :  { %v654_v15 = vld [vmem:[#allocation2 + $0x198] sm:$0x1]  ;;  %466 = vst [vmem:[#allocation0 + $0x13] sm:$0x1] %v462_v14  ;;  %91 = vst.msk [vmem:[#allocation2 + $0x177] sm:$0x2] %vm5_vm6, %v86_v16   ;;  %v96_v19 = vpop.permute.xlu1 %95  }
  0x94   :  { %658 = vst [vmem:[#allocation0 + $0x33] sm:$0x1] %v654_v15  ;;  %v408_v17 = vld [vmem:[#allocation2 + $0x50] sm:$0x1]  ;;  %99 = vst.msk [vmem:[#allocation2 + $0x30] sm:$0x1] %vm5_vm6, %v96_v19  }
  0x95   :  { %v600_v18 = vld [vmem:[#allocation2 + $0x150] sm:$0x1]  ;;  %412 = vst [vmem:[#allocation0 + $0xa] sm:$0x1] %v408_v17  ;;  %101 = vst.msk [vmem:[#allocation2 + $0x12f] sm:$0x2] %vm5_vm6, %v96_v19   ;;  %v105_v22 = vpop.permute.xlu0 %104  }
  0x96   :  { %604 = vst [vmem:[#allocation0 + $0x2a] sm:$0x1] %v600_v18  ;;  %v355_v20 = vld [vmem:[#allocation2 + $0x8] sm:$0x1]  ;;  %108 = vst.msk [vmem:[#allocation2 + $0xe8] sm:$0x1] %vm5_vm6, %v105_v22  }
  0x97   :  { %v546_v21 = vld [vmem:[#allocation2 + $0x108] sm:$0x1]  ;;  %358 = vst [vmem:[#allocation0 + $0x1] sm:$0x1] %v355_v20  ;;  %v113_v24 = vpop.permute.xlu1 %112  }
  0x98   :  { %550 = vst [vmem:[#allocation0 + $0x21] sm:$0x1] %v546_v21  ;;  %v492_v23 = vld [vmem:[#allocation2 + $0xc0] sm:$0x1]  ;;  %116 = vst.msk [vmem:[#allocation2 + $0xa0] sm:$0x1] %vm5_vm6, %v113_v24  }
  0x99   :  { %496 = vst [vmem:[#allocation0 + $0x18] sm:$0x1] %v492_v23  ;;  %118 = vst.msk [vmem:[#allocation2 + $0x19f] sm:$0x2] %vm5_vm6, %v113_v24   ;;  %v438_v25 = vld [vmem:[#allocation2 + $0x78] sm:$0x1]  ;;  %v123_v27 = vpop.permute.xlu0 %122  }
  0x9a   :  { %v630_v26 = vld [vmem:[#allocation2 + $0x178] sm:$0x1]  ;;  %442 = vst [vmem:[#allocation0 + $0xf] sm:$0x1] %v438_v25  ;;  %126 = vst.msk [vmem:[#allocation2 + $0x58] sm:$0x1] %vm5_vm6, %v123_v27  }
  0x9b   :  { %634 = vst [vmem:[#allocation0 + $0x2f] sm:$0x1] %v630_v26  ;;  %128 = vst.msk [vmem:[#allocation2 + $0x157] sm:$0x2] %vm5_vm6, %v123_v27   ;;  %v384_v28 = vld [vmem:[#allocation2 + $0x30] sm:$0x1]  ;;  %v132_v30 = vpop.permute.xlu1 %131  }
  0x9c   :  { %v576_v29 = vld [vmem:[#allocation2 + $0x130] sm:$0x1]  ;;  %388 = vst [vmem:[#allocation0 + $0x6] sm:$0x1] %v384_v28  ;;  %135 = vst.msk [vmem:[#allocation2 + $0x10] sm:$0x1] %vm5_vm6, %v132_v30  }
  0x9d   :  { %580 = vst [vmem:[#allocation0 + $0x26] sm:$0x1] %v576_v29  ;;  %137 = vst.msk [vmem:[#allocation2 + $0x10f] sm:$0x2] %vm5_vm6, %v132_v30   ;;  %v522_v31 = vld [vmem:[#allocation2 + $0xe8] sm:$0x1]  ;;  %v141_v32 = vpop.permute.xlu0 %140  }
  0x9e   :  { %526 = vst [vmem:[#allocation0 + $0x1d] sm:$0x1] %v522_v31  ;;  %144 = vst.msk [vmem:[#allocation2 + $0xc8] sm:$0x1] %vm5_vm6, %v141_v32  }
  0x9f   :  { %v468_v33 = vld [vmem:[#allocation2 + $0xa0] sm:$0x1]  ;;  %v149_v35 = vpop.permute.xlu1 %148  }
  0xa0   :  { %v660_v34 = vld [vmem:[#allocation2 + $0x1a0] sm:$0x1]  ;;  %472 = vst [vmem:[#allocation0 + $0x14] sm:$0x1] %v468_v33  ;;  %152 = vst.msk [vmem:[#allocation2 + $0x80] sm:$0x1] %vm5_vm6, %v149_v35  }
  0xa1   :  { %664 = vst [vmem:[#allocation0 + $0x34] sm:$0x1] %v660_v34  ;;  %154 = vst.msk [vmem:[#allocation2 + $0x17f] sm:$0x2] %vm5_vm6, %v149_v35   ;;  %v414_v36 = vld [vmem:[#allocation2 + $0x58] sm:$0x1]  ;;  %v159_v38 = vpop.permute.xlu0 %158  }
  0xa2   :  { %v606_v37 = vld [vmem:[#allocation2 + $0x158] sm:$0x1]  ;;  %418 = vst [vmem:[#allocation0 + $0xb] sm:$0x1] %v414_v36  ;;  %162 = vst.msk [vmem:[#allocation2 + $0x38] sm:$0x1] %vm5_vm6, %v159_v38  }
  0xa3   :  { %610 = vst [vmem:[#allocation0 + $0x2b] sm:$0x1] %v606_v37  ;;  %164 = vst.msk [vmem:[#allocation2 + $0x137] sm:$0x2] %vm5_vm6, %v159_v38   ;;  %v360_v39 = vld [vmem:[#allocation2 + $0x10] sm:$0x1]  ;;  %v168_v41 = vpop.permute.xlu1 %167  }
  0xa4   :  { %v552_v40 = vld [vmem:[#allocation2 + $0x110] sm:$0x1]  ;;  %364 = vst [vmem:[#allocation0 + $0x2] sm:$0x1] %v360_v39  ;;  %171 = vst.msk [vmem:[#allocation2 + $0xf0] sm:$0x1] %vm5_vm6, %v168_v41  }
  0xa5   :  { %556 = vst [vmem:[#allocation0 + $0x22] sm:$0x1] %v552_v40  ;;  %v498_v42 = vld [vmem:[#allocation2 + $0xc8] sm:$0x1]  ;;  %v176_v43 = vpop.permute.xlu0 %175  }
  0xa6   :  { %502 = vst [vmem:[#allocation0 + $0x19] sm:$0x1] %v498_v42  ;;  %179 = vst.msk [vmem:[#allocation2 + $0xa8] sm:$0x1] %vm5_vm6, %v176_v43  }
  0xa7   :  { %181 = vst.msk [vmem:[#allocation2 + $0x1a7] sm:$0x2] %vm5_vm6, %v176_v43   ;;  %v444_v44 = vld [vmem:[#allocation2 + $0x80] sm:$0x1]  ;;  %v186_v46 = vpop.permute.xlu1 %185  }
  0xa8   :  { %v636_v45 = vld [vmem:[#allocation2 + $0x180] sm:$0x1]  ;;  %448 = vst [vmem:[#allocation0 + $0x10] sm:$0x1] %v444_v44  ;;  %189 = vst.msk [vmem:[#allocation2 + $0x60] sm:$0x1] %vm5_vm6, %v186_v46  }
  0xa9   :  { %640 = vst [vmem:[#allocation0 + $0x30] sm:$0x1] %v636_v45  ;;  %191 = vst.msk [vmem:[#allocation2 + $0x15f] sm:$0x2] %vm5_vm6, %v186_v46   ;;  %v390_v47 = vld [vmem:[#allocation2 + $0x38] sm:$0x1]  ;;  %v195_v49 = vpop.permute.xlu0 %194  }
  0xaa   :  { %v582_v48 = vld [vmem:[#allocation2 + $0x138] sm:$0x1]  ;;  %394 = vst [vmem:[#allocation0 + $0x7] sm:$0x1] %v390_v47  ;;  %198 = vst.msk [vmem:[#allocation2 + $0x18] sm:$0x1] %vm5_vm6, %v195_v49  }
  0xab   :  { %586 = vst [vmem:[#allocation0 + $0x27] sm:$0x1] %v582_v48  ;;  %200 = vst.msk [vmem:[#allocation2 + $0x117] sm:$0x2] %vm5_vm6, %v195_v49   ;;  %v528_v50 = vld [vmem:[#allocation2 + $0xf0] sm:$0x1]  ;;  %v204_v51 = vpop.permute.xlu1 %203  }
  0xac   :  { %532 = vst [vmem:[#allocation0 + $0x1e] sm:$0x1] %v528_v50  ;;  %207 = vst.msk [vmem:[#allocation2 + $0xd0] sm:$0x1] %vm5_vm6, %v204_v51  }
  0xad   :  { %v474_v52 = vld [vmem:[#allocation2 + $0xa8] sm:$0x1]  ;;  %v212_v54 = vpop.permute.xlu0 %211  }
  0xae   :  { %v666_v53 = vld [vmem:[#allocation2 + $0x1a8] sm:$0x1]  ;;  %478 = vst [vmem:[#allocation0 + $0x15] sm:$0x1] %v474_v52  ;;  %215 = vst.msk [vmem:[#allocation2 + $0x88] sm:$0x1] %vm5_vm6, %v212_v54  }
  0xaf   :  { %670 = vst [vmem:[#allocation0 + $0x35] sm:$0x1] %v666_v53  ;;  %217 = vst.msk [vmem:[#allocation2 + $0x187] sm:$0x2] %vm5_vm6, %v212_v54   ;;  %v420_v55 = vld [vmem:[#allocation2 + $0x60] sm:$0x1]  ;;  %v222_v57 = vpop.permute.xlu1 %221  }
  0xb0   :  { %v612_v56 = vld [vmem:[#allocation2 + $0x160] sm:$0x1]  ;;  %424 = vst [vmem:[#allocation0 + $0xc] sm:$0x1] %v420_v55  ;;  %225 = vst.msk [vmem:[#allocation2 + $0x40] sm:$0x1] %vm5_vm6, %v222_v57  }
  0xb1   :  { %616 = vst [vmem:[#allocation0 + $0x2c] sm:$0x1] %v612_v56  ;;  %227 = vst.msk [vmem:[#allocation2 + $0x13f] sm:$0x2] %vm5_vm6, %v222_v57   ;;  %v366_v58 = vld [vmem:[#allocation2 + $0x18] sm:$0x1]  ;;  %v231_v60 = vpop.permute.xlu0 %230  }
  0xb2   :  { %v558_v59 = vld [vmem:[#allocation2 + $0x118] sm:$0x1]  ;;  %370 = vst [vmem:[#allocation0 + $0x3] sm:$0x1] %v366_v58  ;;  %234 = vst.msk [vmem:[#allocation2 + $0xf8] sm:$0x1] %vm5_vm6, %v231_v60  }
  0xb3   :  { %562 = vst [vmem:[#allocation0 + $0x23] sm:$0x1] %v558_v59  ;;  %v504_v61 = vld [vmem:[#allocation2 + $0xd0] sm:$0x1] }
  0xb4   :  { %508 = vst [vmem:[#allocation0 + $0x1a] sm:$0x1] %v504_v61 }
  0xb5   :  { %v450_v62 = vld [vmem:[#allocation2 + $0x88] sm:$0x1] }
  0xb6   :  { %v642_v63 = vld [vmem:[#allocation2 + $0x188] sm:$0x1]  ;;  %454 = vst [vmem:[#allocation0 + $0x11] sm:$0x1] %v450_v62 }
  0xb7   :  { %646 = vst [vmem:[#allocation0 + $0x31] sm:$0x1] %v642_v63  ;;  %v396_v0 = vld [vmem:[#allocation2 + $0x40] sm:$0x1] }
  0xb8   :  { %v588_v1 = vld [vmem:[#allocation2 + $0x140] sm:$0x1]  ;;  %400 = vst [vmem:[#allocation0 + $0x8] sm:$0x1] %v396_v0 }
  0xb9   :  { %592 = vst [vmem:[#allocation0 + $0x28] sm:$0x1] %v588_v1  ;;  %v534_v2 = vld [vmem:[#allocation2 + $0xf8] sm:$0x1] }
  0xba   :  { %538 = vst [vmem:[#allocation0 + $0x1f] sm:$0x1] %v534_v2 }
  0xbb   :  { %823 = shalt.err (!%p820_p4)
}
  0xbc   :  { %s824_s30 = scalar_lea.hbm %s1053_s1, 896 }
  0xbd   :  { %p825_p5 = scmp.ne.s32.totalorder %s1053_s1, %s824_s30  ;;  %p828_p6 = scmp.lt.u32.totalorder %s824_s30, %s1053_s1 }
  0xbf   :  { %p830_p7 = pnand %p828_p6, %p825_p5 }
  0xc1   :  { %833 = shalt.err (!%p830_p7)
}
  0xc2   :  { %690 = dma.vmem_to_hbm [thread:$0]  %s688_s26, 896, %s1053_s1, [#allocation1]  }
  0xc3   :  { %834 = dma.done.wait [#allocation1], 896  }
  0xc4   :  { %835 = vsyncadd [#allocation1], 4294966400 }
  0xc5   :  { %692 = vsyncpa [#allocation1], 1 }

// kernel: _lambda_.7
= control target key start
LH: loop header
LB: loop body
LE: loop exit
PB: predicated region body
PF: predicated region fallthrough
CT: control target
= control target key end

     0   :  { %s11344_s0 = inlined_call_operand.vmem [shape: bf16[1024,1664], index: 0, kind: input, shape index: {}]   ;;  %s11345_s1 = inlined_call_operand.vmem [shape: bf16[8,1024], index: 1, kind: input, shape index: {}]   ;;  %s11346_s2 = inlined_call_operand.<no memory space> [shape: f32[1], index: 2, kind: input, shape index: {}]   ;;  %s11347_s3 = inlined_call_operand.vmem [shape: f32[1,1664], index: 3, kind: output, shape index: {}]  }
   0x1   :  { %v7382_v0 = vld [vmem:[%s11344_s0 + $0x4] ss:$52 sps:$4 sm:$0xff]   ;;  %v7386_v2 = vld [vmem:[%s11344_s0] ss:$52 sps:$4 sm:$0xff]   ;;  %v7392_v6 = vld [vmem:[%s11344_s0 + $0x68] ss:$52 sps:$4 sm:$0xff]  }
   0x2   :  { %v7384_v1 = vld [vmem:[%s11344_s0 + $0x684] ss:$52 sps:$4 sm:$0xff]   ;;  %5168 = vmatprep.subr.bf16.mxu0 %v7382_v0  ;;  %v7387_v3 = vld [vmem:[%s11344_s0 + $0x680] ss:$52 sps:$4 sm:$0xff]   ;;  %v7393_v7 = vld [vmem:[%s11344_s0 + $0x6e8] ss:$52 sps:$4 sm:$0xff]  }
   0x3   :  { %5209 = vmatprep.subr.bf16.mxu1 %v7384_v1  ;;  %v7388_v4 = vld [vmem:[%s11344_s0 + $0x6c] ss:$52 sps:$4 sm:$0xff]   ;;  %5169 = vmatpush1.bf16.msra.mxu0 %v7386_v2  ;;  %v7394_v8 = vld [vmem:[%s11344_s0 + $0xd4] ss:$52 sps:$4 sm:$0xff]   ;;  %v7398_v10 = vld [vmem:[%s11344_s0 + $0xd0] ss:$52 sps:$4 sm:$0xff]  }
   0x4   :  { %5210 = vmatpush1.bf16.msra.mxu1 %v7387_v3  ;;  %v7390_v5 = vld [vmem:[%s11344_s0 + $0x6ec] ss:$52 sps:$4 sm:$0xff]   ;;  %5170 = vmatprep.subr.bf16.mxu0 %v7388_v4  ;;  %v7396_v9 = vld [vmem:[%s11344_s0 + $0x754] ss:$52 sps:$4 sm:$0xff]   ;;  %v7399_v11 = vld [vmem:[%s11344_s0 + $0x750] ss:$52 sps:$4 sm:$0xff]  }
   0x5   :  { %5211 = vmatprep.subr.bf16.mxu1 %v7390_v5  ;;  %v7400_v12 = vld [vmem:[%s11344_s0 + $0x13c] ss:$52 sps:$4 sm:$0xff]   ;;  %v7404_v14 = vld [vmem:[%s11344_s0 + $0x138] ss:$52 sps:$4 sm:$0xff]   ;;  %v7410_v18 = vld [vmem:[%s11344_s0 + $0x1a0] ss:$52 sps:$4 sm:$0xff]  }
   0x6   :  { %v7402_v13 = vld [vmem:[%s11344_s0 + $0x7bc] ss:$52 sps:$4 sm:$0xff]   ;;  %v7405_v15 = vld [vmem:[%s11344_s0 + $0x7b8] ss:$52 sps:$4 sm:$0xff]   ;;  %v7411_v19 = vld [vmem:[%s11344_s0 + $0x820] ss:$52 sps:$4 sm:$0xff]  }
   0x7   :  { %5171 = vmatpush1.bf16.msra.mxu0 %v7392_v6  ;;  %v7406_v16 = vld [vmem:[%s11344_s0 + $0x1a4] ss:$52 sps:$4 sm:$0xff]   ;;  %v7412_v20 = vld [vmem:[%s11344_s0 + $0x20c] ss:$52 sps:$4 sm:$0xff]   ;;  %v7416_v22 = vld [vmem:[%s11344_s0 + $0x208] ss:$52 sps:$4 sm:$0xff]  }
   0x8   :  { %5212 = vmatpush1.bf16.msra.mxu1 %v7393_v7  ;;  %5172 = vmatprep.subr.bf16.mxu0 %v7394_v8  ;;  %v7408_v17 = vld [vmem:[%s11344_s0 + $0x824] ss:$52 sps:$4 sm:$0xff]   ;;  %v7414_v21 = vld [vmem:[%s11344_s0 + $0x88c] ss:$52 sps:$4 sm:$0xff]   ;;  %v7417_v23 = vld [vmem:[%s11344_s0 + $0x888] ss:$52 sps:$4 sm:$0xff]  }
   0x9   :  { %5213 = vmatprep.subr.bf16.mxu1 %v7396_v9  ;;  %v7418_v24 = vld [vmem:[%s11344_s0 + $0x274] ss:$52 sps:$4 sm:$0xff]   ;;  %v7422_v26 = vld [vmem:[%s11344_s0 + $0x270] ss:$52 sps:$4 sm:$0xff]   ;;  %v7428_v30 = vld [vmem:[%s11344_s0 + $0x2d8] ss:$52 sps:$4 sm:$0xff]  }
   0xa   :  { %v7420_v25 = vld [vmem:[%s11344_s0 + $0x8f4] ss:$52 sps:$4 sm:$0xff]   ;;  %v7423_v27 = vld [vmem:[%s11344_s0 + $0x8f0] ss:$52 sps:$4 sm:$0xff]   ;;  %v7429_v31 = vld [vmem:[%s11344_s0 + $0x958] ss:$52 sps:$4 sm:$0xff]  }
   0xb   :  { %5173 = vmatpush1.bf16.msra.mxu0 %v7398_v10  ;;  %v7424_v28 = vld [vmem:[%s11344_s0 + $0x2dc] ss:$52 sps:$4 sm:$0xff]   ;;  %v7430_v32 = vld [vmem:[%s11344_s0 + $0x344] ss:$52 sps:$4 sm:$0xff]   ;;  %v7434_v34 = vld [vmem:[%s11344_s0 + $0x340] ss:$52 sps:$4 sm:$0xff]  }
   0xc   :  { %5214 = vmatpush1.bf16.msra.mxu1 %v7399_v11  ;;  %5174 = vmatprep.subr.bf16.mxu0 %v7400_v12  ;;  %v7426_v29 = vld [vmem:[%s11344_s0 + $0x95c] ss:$52 sps:$4 sm:$0xff]   ;;  %v7432_v33 = vld [vmem:[%s11344_s0 + $0x9c4] ss:$52 sps:$4 sm:$0xff]   ;;  %v7435_v35 = vld [vmem:[%s11344_s0 + $0x9c0] ss:$52 sps:$4 sm:$0xff]  }
   0xd   :  { %5215 = vmatprep.subr.bf16.mxu1 %v7402_v13  ;;  %v7436_v36 = vld [vmem:[%s11344_s0 + $0x3ac] ss:$52 sps:$4 sm:$0xff]   ;;  %v7440_v38 = vld [vmem:[%s11344_s0 + $0x3a8] ss:$52 sps:$4 sm:$0xff]   ;;  %v7446_v42 = vld [vmem:[%s11344_s0 + $0x410] ss:$52 sps:$4 sm:$0xff]  }
   0xe   :  { %v7438_v37 = vld [vmem:[%s11344_s0 + $0xa2c] ss:$52 sps:$4 sm:$0xff]   ;;  %v7441_v39 = vld [vmem:[%s11344_s0 + $0xa28] ss:$52 sps:$4 sm:$0xff]   ;;  %v7447_v43 = vld [vmem:[%s11344_s0 + $0xa90] ss:$52 sps:$4 sm:$0xff]  }
   0xf   :  { %5175 = vmatpush1.bf16.msra.mxu0 %v7404_v14  ;;  %v7442_v40 = vld [vmem:[%s11344_s0 + $0x414] ss:$52 sps:$4 sm:$0xff]   ;;  %v7448_v44 = vld [vmem:[%s11344_s0 + $0x47c] ss:$52 sps:$4 sm:$0xff]   ;;  %v16_v46 = vld [vmem:[%s11345_s1] sm:$0xff] }
  0x10   :  { %5216 = vmatpush1.bf16.msra.mxu1 %v7405_v15  ;;  %5176 = vmatprep.subr.bf16.mxu0 %v7406_v16  ;;  %v7444_v41 = vld [vmem:[%s11344_s0 + $0xa94] ss:$52 sps:$4 sm:$0xff]   ;;  %v7450_v45 = vld [vmem:[%s11344_s0 + $0xafc] ss:$52 sps:$4 sm:$0xff]   ;;  %v8794_v47 = vcombine.high %v16_v46, %v16_v46  ;;  %v7452_v49 = vld [vmem:[%s11344_s0 + $0x478] ss:$52 sps:$4 sm:$0xff]   ;;  %v8863_v6 = vcombine.low %v16_v46, %v16_v46 }
  0x11   :  { %5217 = vmatprep.subr.bf16.mxu1 %v7408_v17  ;;  %v17_v48 = vld [vmem:[%s11345_s1 + $0x8] sm:$0xff]  ;;  %v7454_v52 = vld [vmem:[%s11344_s0 + $0x4e4] ss:$52 sps:$4 sm:$0xff]   ;;  %v7458_v54 = vld [vmem:[%s11344_s0 + $0x4e0] ss:$52 sps:$4 sm:$0xff]  }
  0x12   :  { %v7453_v50 = vld [vmem:[%s11344_s0 + $0xaf8] ss:$52 sps:$4 sm:$0xff]   ;;  %v8805_v51 = vcombine.high %v17_v48, %v17_v48  ;;  %5200 = vmatprep.mubr.bf16.mxu0 %v8794_v47  ;;  %v7459_v55 = vld [vmem:[%s11344_s0 + $0xb60] ss:$52 sps:$4 sm:$0xff]   ;;  %v7464_v58 = vld [vmem:[%s11344_s0 + $0x548] ss:$52 sps:$4 sm:$0xff]   ;;  %v8865_v7 = vcombine.low %v17_v48, %v17_v48 }
  0x13   :  { %5177 = vmatpush1.bf16.msra.mxu0 %v7410_v18  ;;  %v7456_v53 = vld [vmem:[%s11344_s0 + $0xb64] ss:$52 sps:$4 sm:$0xff]   ;;  %v7460_v56 = vld [vmem:[%s11344_s0 + $0x54c] ss:$52 sps:$4 sm:$0xff]   ;;  %v7465_v59 = vld [vmem:[%s11344_s0 + $0xbc8] ss:$52 sps:$4 sm:$0xff]  }
  0x14   :  { %5218 = vmatpush1.bf16.msra.mxu1 %v7411_v19  ;;  %5178 = vmatprep.subr.bf16.mxu0 %v7412_v20  ;;  %v7462_v57 = vld [vmem:[%s11344_s0 + $0xbcc] ss:$52 sps:$4 sm:$0xff]   ;;  %v7466_v60 = vld [vmem:[%s11344_s0 + $0x5b4] ss:$52 sps:$4 sm:$0xff]   ;;  %v7470_v62 = vld [vmem:[%s11344_s0 + $0x5b0] ss:$52 sps:$4 sm:$0xff]  }
  0x15   :  { %5219 = vmatprep.subr.bf16.mxu1 %v7414_v21  ;;  %5241 = vmatprep.mubr.bf16.mxu1 %v8805_v51  ;;  %v7468_v61 = vld [vmem:[%s11344_s0 + $0xc34] ss:$52 sps:$4 sm:$0xff]   ;;  %v7471_v63 = vld [vmem:[%s11344_s0 + $0xc30] ss:$52 sps:$4 sm:$0xff]   ;;  %v7476_v2 = vld [vmem:[%s11344_s0 + $0x618] ss:$52 sps:$4 sm:$0xff]  }
  0x16   :  { %v7472_v0 = vld [vmem:[%s11344_s0 + $0x61c] ss:$52 sps:$4 sm:$0xff]   ;;  %v7477_v3 = vld [vmem:[%s11344_s0 + $0xc98] ss:$52 sps:$4 sm:$0xff]   ;;  %v7482_v8 = vld [vmem:[%s11344_s0 + $0xd00] ss:$52 sps:$4 sm:$0xff]  }
  0x17   :  { %5179 = vmatpush1.bf16.msra.mxu0 %v7416_v22  ;;  %v7474_v1 = vld [vmem:[%s11344_s0 + $0xc9c] ss:$52 sps:$4 sm:$0xff]   ;;  %v7484_v4 = vld [vmem:[%s11344_s0 + $0xd04] ss:$52 sps:$4 sm:$0xff]   ;;  %v7485_v9 = vld [vmem:[%s11344_s0 + $0x1380] ss:$52 sps:$4 sm:$0xff]  }
  0x18   :  { %5220 = vmatpush1.bf16.msra.mxu1 %v7417_v23  ;;  %5180 = vmatprep.subr.bf16.mxu0 %v7418_v24  ;;  %v7487_v5 = vld [vmem:[%s11344_s0 + $0x1384] ss:$52 sps:$4 sm:$0xff]   ;;  %v7490_v10 = vld [vmem:[%s11344_s0 + $0xd6c] ss:$52 sps:$4 sm:$0xff]   ;;  %v7488_v12 = vld [vmem:[%s11344_s0 + $0xd68] ss:$52 sps:$4 sm:$0xff]  }
  0x19   :  { %5221 = vmatprep.subr.bf16.mxu1 %v7420_v25  ;;  %v7493_v11 = vld [vmem:[%s11344_s0 + $0x13ec] ss:$52 sps:$4 sm:$0xff]   ;;  %v7491_v13 = vld [vmem:[%s11344_s0 + $0x13e8] ss:$52 sps:$4 sm:$0xff]   ;;  %v7494_v16 = vld [vmem:[%s11344_s0 + $0xdd0] ss:$52 sps:$4 sm:$0xff]  }
  0x1a   :  { %v7496_v14 = vld [vmem:[%s11344_s0 + $0xdd4] ss:$52 sps:$4 sm:$0xff]   ;;  %v7497_v17 = vld [vmem:[%s11344_s0 + $0x1450] ss:$52 sps:$4 sm:$0xff]   ;;  %v7500_v20 = vld [vmem:[%s11344_s0 + $0xe38] ss:$52 sps:$4 sm:$0xff]  }
  0x1b   :  { %5181 = vmatpush1.bf16.msra.mxu0 %v7422_v26  ;;  %v7499_v15 = vld [vmem:[%s11344_s0 + $0x1454] ss:$52 sps:$4 sm:$0xff]   ;;  %v7502_v18 = vld [vmem:[%s11344_s0 + $0xe3c] ss:$52 sps:$4 sm:$0xff]   ;;  %v7503_v21 = vld [vmem:[%s11344_s0 + $0x14b8] ss:$52 sps:$4 sm:$0xff]  }
  0x1c   :  { %5222 = vmatpush1.bf16.msra.mxu1 %v7423_v27  ;;  %5182 = vmatprep.subr.bf16.mxu0 %v7424_v28  ;;  %v7505_v19 = vld [vmem:[%s11344_s0 + $0x14bc] ss:$52 sps:$4 sm:$0xff]   ;;  %v7508_v22 = vld [vmem:[%s11344_s0 + $0xea4] ss:$52 sps:$4 sm:$0xff]   ;;  %v7506_v24 = vld [vmem:[%s11344_s0 + $0xea0] ss:$52 sps:$4 sm:$0xff]  }
  0x1d   :  { %5223 = vmatprep.subr.bf16.mxu1 %v7426_v29  ;;  %v7511_v23 = vld [vmem:[%s11344_s0 + $0x1524] ss:$52 sps:$4 sm:$0xff]   ;;  %v7509_v25 = vld [vmem:[%s11344_s0 + $0x1520] ss:$52 sps:$4 sm:$0xff]   ;;  %v7512_v28 = vld [vmem:[%s11344_s0 + $0xf08] ss:$52 sps:$4 sm:$0xff]  }
  0x1e   :  { %v7514_v26 = vld [vmem:[%s11344_s0 + $0xf0c] ss:$52 sps:$4 sm:$0xff]   ;;  %v7515_v29 = vld [vmem:[%s11344_s0 + $0x1588] ss:$52 sps:$4 sm:$0xff]  }
  0x1f   :  { %5183 = vmatpush1.bf16.msra.mxu0 %v7428_v30  ;;  %v7517_v27 = vld [vmem:[%s11344_s0 + $0x158c] ss:$52 sps:$4 sm:$0xff]   ;;  %v7520_v30 = vld [vmem:[%s11344_s0 + $0xf74] ss:$52 sps:$4 sm:$0xff]  }
  0x20   :  { %5224 = vmatpush1.bf16.msra.mxu1 %v7429_v31  ;;  %5184 = vmatprep.subr.bf16.mxu0 %v7430_v32  ;;  %v7523_v31 = vld [vmem:[%s11344_s0 + $0x15f4] ss:$52 sps:$4 sm:$0xff]   ;;  %v7538_v46 = vld [vmem:[%s11344_s0 + $0x10ac] ss:$52 sps:$4 sm:$0xff]  }
  0x21   :  { %5225 = vmatprep.subr.bf16.mxu1 %v7432_v33  ;;  %v8944_v32 = vld [vmem:[%s11345_s1 + $0x10] sm:$0xff]  ;;  %v8949_v33 = vld [vmem:[%s11345_s1 + $0x18] sm:$0xff]  ;;  %v7541_v48 = vld [vmem:[%s11344_s0 + $0x172c] ss:$52 sps:$4 sm:$0xff]  }
  0x23   :  { %5185 = vmatpush1.bf16.msra.mxu0 %v7434_v34  ;;  %v7518_v34 = vld [vmem:[%s11344_s0 + $0xf70] ss:$52 sps:$4 sm:$0xff]  }
  0x24   :  { %5226 = vmatpush1.bf16.msra.mxu1 %v7435_v35  ;;  %5186 = vmatprep.subr.bf16.mxu0 %v7436_v36  ;;  %v7521_v35 = vld [vmem:[%s11344_s0 + $0x15f0] ss:$52 sps:$4 sm:$0xff]   ;;  %v8959_v36 = vcombine.high %v8944_v32, %v8944_v32 }
  0x25   :  { %5227 = vmatprep.subr.bf16.mxu1 %v7438_v37  ;;  %v8963_v37 = vcombine.high %v8949_v33, %v8949_v33 }
  0x27   :  { %5187 = vmatpush1.bf16.msra.mxu0 %v7440_v38  ;;  %v7526_v38 = vld [vmem:[%s11344_s0 + $0xfdc] ss:$52 sps:$4 sm:$0xff]  }
  0x28   :  { %5228 = vmatpush1.bf16.msra.mxu1 %v7441_v39  ;;  %5188 = vmatprep.subr.bf16.mxu0 %v7442_v40  ;;  %v7529_v39 = vld [vmem:[%s11344_s0 + $0x165c] ss:$52 sps:$4 sm:$0xff]   ;;  %v7524_v40 = vld [vmem:[%s11344_s0 + $0xfd8] ss:$52 sps:$4 sm:$0xff]  }
  0x29   :  { %5229 = vmatprep.subr.bf16.mxu1 %v7444_v41  ;;  %v7527_v41 = vld [vmem:[%s11344_s0 + $0x1658] ss:$52 sps:$4 sm:$0xff]  }
  0x2b   :  { %5189 = vmatpush1.bf16.msra.mxu0 %v7446_v42  ;;  %v7532_v42 = vld [vmem:[%s11344_s0 + $0x1044] ss:$52 sps:$4 sm:$0xff]  }
  0x2c   :  { %5230 = vmatpush1.bf16.msra.mxu1 %v7447_v43  ;;  %5190 = vmatprep.subr.bf16.mxu0 %v7448_v44  ;;  %v7535_v43 = vld [vmem:[%s11344_s0 + $0x16c4] ss:$52 sps:$4 sm:$0xff]   ;;  %v7530_v44 = vld [vmem:[%s11344_s0 + $0x1040] ss:$52 sps:$4 sm:$0xff]  }
  0x2d   :  { %5231 = vmatprep.subr.bf16.mxu1 %v7450_v45  ;;  %v7533_v45 = vld [vmem:[%s11344_s0 + $0x16c0] ss:$52 sps:$4 sm:$0xff]  }
  0x2f   :  { %5191 = vmatpush1.bf16.msra.mxu0 %v7452_v49  ;;  %v7536_v49 = vld [vmem:[%s11344_s0 + $0x10a8] ss:$52 sps:$4 sm:$0xff]  }
  0x30   :  { %5232 = vmatpush1.bf16.msra.mxu1 %v7453_v50  ;;  %5192 = vmatprep.subr.bf16.mxu0 %v7454_v52  ;;  %v7539_v50 = vld [vmem:[%s11344_s0 + $0x1728] ss:$52 sps:$4 sm:$0xff]  }
  0x31   :  { %5233 = vmatprep.subr.bf16.mxu1 %v7456_v53  ;;  %v7544_v52 = vld [vmem:[%s11344_s0 + $0x1114] ss:$52 sps:$4 sm:$0xff]  }
  0x32   :  { %v7547_v53 = vld [vmem:[%s11344_s0 + $0x1794] ss:$52 sps:$4 sm:$0xff]  }
  0x33   :  { %5193 = vmatpush1.bf16.msra.mxu0 %v7458_v54  ;;  %v7542_v54 = vld [vmem:[%s11344_s0 + $0x1110] ss:$52 sps:$4 sm:$0xff]  }
  0x34   :  { %5234 = vmatpush1.bf16.msra.mxu1 %v7459_v55  ;;  %5194 = vmatprep.subr.bf16.mxu0 %v7460_v56  ;;  %v7545_v55 = vld [vmem:[%s11344_s0 + $0x1790] ss:$52 sps:$4 sm:$0xff]  }
  0x35   :  { %5235 = vmatprep.subr.bf16.mxu1 %v7462_v57  ;;  %v7550_v56 = vld [vmem:[%s11344_s0 + $0x117c] ss:$52 sps:$4 sm:$0xff]  }
  0x36   :  { %v7553_v57 = vld [vmem:[%s11344_s0 + $0x17fc] ss:$52 sps:$4 sm:$0xff]  }
  0x37   :  { %5195 = vmatpush1.bf16.msra.mxu0 %v7464_v58  ;;  %v7548_v58 = vld [vmem:[%s11344_s0 + $0x1178] ss:$52 sps:$4 sm:$0xff]  }
  0x38   :  { %5236 = vmatpush1.bf16.msra.mxu1 %v7465_v59  ;;  %5196 = vmatprep.subr.bf16.mxu0 %v7466_v60  ;;  %v7551_v59 = vld [vmem:[%s11344_s0 + $0x17f8] ss:$52 sps:$4 sm:$0xff]  }
  0x39   :  { %5237 = vmatprep.subr.bf16.mxu1 %v7468_v61  ;;  %v7556_v60 = vld [vmem:[%s11344_s0 + $0x11e4] ss:$52 sps:$4 sm:$0xff]  }
  0x3a   :  { %v7559_v61 = vld [vmem:[%s11344_s0 + $0x1864] ss:$52 sps:$4 sm:$0xff]  }
  0x3b   :  { %5197 = vmatpush1.bf16.msra.mxu0 %v7470_v62  ;;  %v7554_v62 = vld [vmem:[%s11344_s0 + $0x11e0] ss:$52 sps:$4 sm:$0xff]  }
  0x3c   :  { %5238 = vmatpush1.bf16.msra.mxu1 %v7471_v63  ;;  %5198 = vmatprep.subr.bf16.mxu0 %v7472_v0  ;;  %v7557_v63 = vld [vmem:[%s11344_s0 + $0x1860] ss:$52 sps:$4 sm:$0xff]  }
  0x3d   :  { %5239 = vmatprep.subr.bf16.mxu1 %v7474_v1  ;;  %v7562_v0 = vld [vmem:[%s11344_s0 + $0x124c] ss:$52 sps:$4 sm:$0xff]  }
  0x3e   :  { %v7565_v1 = vld [vmem:[%s11344_s0 + $0x18cc] ss:$52 sps:$4 sm:$0xff]  }
  0x3f   :  { %5199 = vmatpush1.bf16.msra.mxu0 %v7476_v2  ;;  %v7560_v2 = vld [vmem:[%s11344_s0 + $0x1248] ss:$52 sps:$4 sm:$0xff]  }
  0x40   :  { %5240 = vmatpush1.bf16.msra.mxu1 %v7477_v3  ;;  %5250 = vmatprep.subr.bf16.mxu0 %v7484_v4  ;;  %v7563_v3 = vld [vmem:[%s11344_s0 + $0x18c8] ss:$52 sps:$4 sm:$0xff]  }
  0x41   :  { %5291 = vmatprep.subr.bf16.mxu1 %v7487_v5  ;;  %v7568_v4 = vld [vmem:[%s11344_s0 + $0x12b4] ss:$52 sps:$4 sm:$0xff]  }
  0x42   :  { %5201 = vmatmul.mubr.bf16.vlgmr.msra.gmra.mrb[0].mxu0 %v8863_v6  ;;  %v7571_v5 = vld [vmem:[%s11344_s0 + $0x1934] ss:$52 sps:$4 sm:$0xff]  }
  0x43   :  { %5242 = vmatmul.mubr.bf16.vlgmr.msra.gmra.mrb[0].mxu1 %v8865_v7  ;;  %5251 = vmatpush1.bf16.msra.mxu0 %v7482_v8  ;;  %v7566_v8 = vld [vmem:[%s11344_s0 + $0x12b0] ss:$52 sps:$4 sm:$0xff]  }
  0x44   :  { %5292 = vmatpush1.bf16.msra.mxu1 %v7485_v9  ;;  %5252 = vmatprep.subr.bf16.mxu0 %v7490_v10  ;;  %v7569_v9 = vld [vmem:[%s11344_s0 + $0x1930] ss:$52 sps:$4 sm:$0xff]  }
  0x45   :  { %5293 = vmatprep.subr.bf16.mxu1 %v7493_v11  ;;  %5282 = vmatprep.mubr.bf16.mxu0 %v8959_v36  ;;  %v7574_v10 = vld [vmem:[%s11344_s0 + $0x131c] ss:$52 sps:$4 sm:$0xff]  }
  0x46   :  { %5323 = vmatprep.mubr.bf16.mxu1 %v8963_v37  ;;  %v7577_v11 = vld [vmem:[%s11344_s0 + $0x199c] ss:$52 sps:$4 sm:$0xff]  }
  0x47   :  { %5253 = vmatpush1.bf16.msra.mxu0 %v7488_v12  ;;  %v7572_v12 = vld [vmem:[%s11344_s0 + $0x1318] ss:$52 sps:$4 sm:$0xff]  }
  0x48   :  { %5294 = vmatpush1.bf16.msra.mxu1 %v7491_v13  ;;  %5254 = vmatprep.subr.bf16.mxu0 %v7496_v14  ;;  %v7575_v13 = vld [vmem:[%s11344_s0 + $0x1998] ss:$52 sps:$4 sm:$0xff]  }
  0x49   :  { %5295 = vmatprep.subr.bf16.mxu1 %v7499_v15  ;;  %v7584_v14 = vld [vmem:[%s11344_s0 + $0xc] ss:$52 sps:$4 sm:$0xff]  }
  0x4a   :  { %v7587_v15 = vld [vmem:[%s11344_s0 + $0x68c] ss:$52 sps:$4 sm:$0xff]  }
  0x4b   :  { %5255 = vmatpush1.bf16.msra.mxu0 %v7494_v16  ;;  %v9083_v16 = vcombine.low %v8944_v32, %v8944_v32  ;;  %v7608_v32 = vld [vmem:[%s11344_s0 + $0x1ac] ss:$52 sps:$4 sm:$0xff]  }
  0x4c   :  { %5296 = vmatpush1.bf16.msra.mxu1 %v7497_v17  ;;  %5256 = vmatprep.subr.bf16.mxu0 %v7502_v18  ;;  %v9087_v17 = vcombine.low %v8949_v33, %v8949_v33  ;;  %v7582_v18 = vld [vmem:[%s11344_s0 + $0x8] ss:$52 sps:$4 sm:$0xff]   ;;  %v7611_v33 = vld [vmem:[%s11344_s0 + $0x82c] ss:$52 sps:$4 sm:$0xff]  }
  0x4d   :  { %5297 = vmatprep.subr.bf16.mxu1 %v7505_v19  ;;  %v7585_v19 = vld [vmem:[%s11344_s0 + $0x688] ss:$52 sps:$4 sm:$0xff]  }
  0x4f   :  { %5257 = vmatpush1.bf16.msra.mxu0 %v7500_v20  ;;  %v7590_v20 = vld [vmem:[%s11344_s0 + $0x74] ss:$52 sps:$4 sm:$0xff]  }
  0x50   :  { %5298 = vmatpush1.bf16.msra.mxu1 %v7503_v21  ;;  %5258 = vmatprep.subr.bf16.mxu0 %v7508_v22  ;;  %v7593_v21 = vld [vmem:[%s11344_s0 + $0x6f4] ss:$52 sps:$4 sm:$0xff]   ;;  %v7588_v22 = vld [vmem:[%s11344_s0 + $0x70] ss:$52 sps:$4 sm:$0xff]  }
  0x51   :  { %5299 = vmatprep.subr.bf16.mxu1 %v7511_v23  ;;  %v7591_v23 = vld [vmem:[%s11344_s0 + $0x6f0] ss:$52 sps:$4 sm:$0xff]  }
  0x53   :  { %5259 = vmatpush1.bf16.msra.mxu0 %v7506_v24  ;;  %v7596_v24 = vld [vmem:[%s11344_s0 + $0xdc] ss:$52 sps:$4 sm:$0xff]  }
  0x54   :  { %5300 = vmatpush1.bf16.msra.mxu1 %v7509_v25  ;;  %5260 = vmatprep.subr.bf16.mxu0 %v7514_v26  ;;  %v7599_v25 = vld [vmem:[%s11344_s0 + $0x75c] ss:$52 sps:$4 sm:$0xff]   ;;  %v7594_v26 = vld [vmem:[%s11344_s0 + $0xd8] ss:$52 sps:$4 sm:$0xff]  }
  0x55   :  { %5301 = vmatprep.subr.bf16.mxu1 %v7517_v27  ;;  %v7597_v27 = vld [vmem:[%s11344_s0 + $0x758] ss:$52 sps:$4 sm:$0xff]  }
  0x57   :  { %5261 = vmatpush1.bf16.msra.mxu0 %v7512_v28  ;;  %v7602_v28 = vld [vmem:[%s11344_s0 + $0x144] ss:$52 sps:$4 sm:$0xff]  }
  0x58   :  { %5302 = vmatpush1.bf16.msra.mxu1 %v7515_v29  ;;  %5262 = vmatprep.subr.bf16.mxu0 %v7520_v30  ;;  %v7605_v29 = vld [vmem:[%s11344_s0 + $0x7c4] ss:$52 sps:$4 sm:$0xff]   ;;  %v7600_v30 = vld [vmem:[%s11344_s0 + $0x140] ss:$52 sps:$4 sm:$0xff]  }
  0x59   :  { %5303 = vmatprep.subr.bf16.mxu1 %v7523_v31  ;;  %v7603_v31 = vld [vmem:[%s11344_s0 + $0x7c0] ss:$52 sps:$4 sm:$0xff]  }
  0x5b   :  { %5263 = vmatpush1.bf16.msra.mxu0 %v7518_v34  ;;  %v7606_v34 = vld [vmem:[%s11344_s0 + $0x1a8] ss:$52 sps:$4 sm:$0xff]  }
  0x5c   :  { %5304 = vmatpush1.bf16.msra.mxu1 %v7521_v35  ;;  %5264 = vmatprep.subr.bf16.mxu0 %v7526_v38  ;;  %v7609_v35 = vld [vmem:[%s11344_s0 + $0x828] ss:$52 sps:$4 sm:$0xff]  }
  0x5d   :  { %5305 = vmatprep.subr.bf16.mxu1 %v7529_v39  ;;  %v7614_v38 = vld [vmem:[%s11344_s0 + $0x214] ss:$52 sps:$4 sm:$0xff]  }
  0x5e   :  { %v7617_v39 = vld [vmem:[%s11344_s0 + $0x894] ss:$52 sps:$4 sm:$0xff]  }
  0x5f   :  { %5265 = vmatpush1.bf16.msra.mxu0 %v7524_v40  ;;  %v7612_v40 = vld [vmem:[%s11344_s0 + $0x210] ss:$52 sps:$4 sm:$0xff]  }
  0x60   :  { %5306 = vmatpush1.bf16.msra.mxu1 %v7527_v41  ;;  %5266 = vmatprep.subr.bf16.mxu0 %v7532_v42  ;;  %v7615_v41 = vld [vmem:[%s11344_s0 + $0x890] ss:$52 sps:$4 sm:$0xff]  }
  0x61   :  { %5307 = vmatprep.subr.bf16.mxu1 %v7535_v43  ;;  %v7620_v42 = vld [vmem:[%s11344_s0 + $0x27c] ss:$52 sps:$4 sm:$0xff]  }
  0x62   :  { %v7623_v43 = vld [vmem:[%s11344_s0 + $0x8fc] ss:$52 sps:$4 sm:$0xff]  }
  0x63   :  { %5267 = vmatpush1.bf16.msra.mxu0 %v7530_v44  ;;  %v7618_v44 = vld [vmem:[%s11344_s0 + $0x278] ss:$52 sps:$4 sm:$0xff]  }
  0x64   :  { %5308 = vmatpush1.bf16.msra.mxu1 %v7533_v45  ;;  %5268 = vmatprep.subr.bf16.mxu0 %v7538_v46  ;;  %v7621_v45 = vld [vmem:[%s11344_s0 + $0x8f8] ss:$52 sps:$4 sm:$0xff]  }
  0x65   :  { %5309 = vmatprep.subr.bf16.mxu1 %v7541_v48  ;;  %v7626_v46 = vld [vmem:[%s11344_s0 + $0x2e4] ss:$52 sps:$4 sm:$0xff]  }
  0x66   :  { %v7629_v48 = vld [vmem:[%s11344_s0 + $0x964] ss:$52 sps:$4 sm:$0xff]  }
  0x67   :  { %5269 = vmatpush1.bf16.msra.mxu0 %v7536_v49  ;;  %v7624_v49 = vld [vmem:[%s11344_s0 + $0x2e0] ss:$52 sps:$4 sm:$0xff]  }
  0x68   :  { %5310 = vmatpush1.bf16.msra.mxu1 %v7539_v50  ;;  %5270 = vmatprep.subr.bf16.mxu0 %v7544_v52  ;;  %v7627_v50 = vld [vmem:[%s11344_s0 + $0x960] ss:$52 sps:$4 sm:$0xff]  }
  0x69   :  { %5311 = vmatprep.subr.bf16.mxu1 %v7547_v53  ;;  %v7632_v52 = vld [vmem:[%s11344_s0 + $0x34c] ss:$52 sps:$4 sm:$0xff]  }
  0x6a   :  { %v7635_v53 = vld [vmem:[%s11344_s0 + $0x9cc] ss:$52 sps:$4 sm:$0xff]  }
  0x6b   :  { %5271 = vmatpush1.bf16.msra.mxu0 %v7542_v54  ;;  %v7630_v54 = vld [vmem:[%s11344_s0 + $0x348] ss:$52 sps:$4 sm:$0xff]  }
  0x6c   :  { %5312 = vmatpush1.bf16.msra.mxu1 %v7545_v55  ;;  %5272 = vmatprep.subr.bf16.mxu0 %v7550_v56  ;;  %v7633_v55 = vld [vmem:[%s11344_s0 + $0x9c8] ss:$52 sps:$4 sm:$0xff]  }
  0x6d   :  { %5313 = vmatprep.subr.bf16.mxu1 %v7553_v57  ;;  %v7638_v56 = vld [vmem:[%s11344_s0 + $0x3b4] ss:$52 sps:$4 sm:$0xff]  }
  0x6e   :  { %v7641_v57 = vld [vmem:[%s11344_s0 + $0xa34] ss:$52 sps:$4 sm:$0xff]  }
  0x6f   :  { %5273 = vmatpush1.bf16.msra.mxu0 %v7548_v58  ;;  %v7636_v58 = vld [vmem:[%s11344_s0 + $0x3b0] ss:$52 sps:$4 sm:$0xff]  }
  0x70   :  { %5314 = vmatpush1.bf16.msra.mxu1 %v7551_v59  ;;  %5274 = vmatprep.subr.bf16.mxu0 %v7556_v60  ;;  %v7639_v59 = vld [vmem:[%s11344_s0 + $0xa30] ss:$52 sps:$4 sm:$0xff]  }
  0x71   :  { %5315 = vmatprep.subr.bf16.mxu1 %v7559_v61  ;;  %v7644_v60 = vld [vmem:[%s11344_s0 + $0x41c] ss:$52 sps:$4 sm:$0xff]  }
  0x72   :  { %v7647_v61 = vld [vmem:[%s11344_s0 + $0xa9c] ss:$52 sps:$4 sm:$0xff]  }
  0x73   :  { %5275 = vmatpush1.bf16.msra.mxu0 %v7554_v62  ;;  %v7642_v62 = vld [vmem:[%s11344_s0 + $0x418] ss:$52 sps:$4 sm:$0xff]  }
  0x74   :  { %5316 = vmatpush1.bf16.msra.mxu1 %v7557_v63  ;;  %5276 = vmatprep.subr.bf16.mxu0 %v7562_v0  ;;  %v7645_v63 = vld [vmem:[%s11344_s0 + $0xa98] ss:$52 sps:$4 sm:$0xff]  }
  0x75   :  { %5317 = vmatprep.subr.bf16.mxu1 %v7565_v1  ;;  %v7650_v0 = vld [vmem:[%s11344_s0 + $0x484] ss:$52 sps:$4 sm:$0xff]  }
  0x76   :  { %v7653_v1 = vld [vmem:[%s11344_s0 + $0xb04] ss:$52 sps:$4 sm:$0xff]  }
  0x77   :  { %5277 = vmatpush1.bf16.msra.mxu0 %v7560_v2  ;;  %v7648_v2 = vld [vmem:[%s11344_s0 + $0x480] ss:$52 sps:$4 sm:$0xff]  }
  0x78   :  { %5318 = vmatpush1.bf16.msra.mxu1 %v7563_v3  ;;  %5278 = vmatprep.subr.bf16.mxu0 %v7568_v4  ;;  %v7651_v3 = vld [vmem:[%s11344_s0 + $0xb00] ss:$52 sps:$4 sm:$0xff]  }
  0x79   :  { %5319 = vmatprep.subr.bf16.mxu1 %v7571_v5  ;;  %v7656_v4 = vld [vmem:[%s11344_s0 + $0x4ec] ss:$52 sps:$4 sm:$0xff]  }
  0x7a   :  { %v7659_v5 = vld [vmem:[%s11344_s0 + $0xb6c] ss:$52 sps:$4 sm:$0xff]  }
  0x7b   :  { %5279 = vmatpush1.bf16.msra.mxu0 %v7566_v8  ;;  %v7654_v8 = vld [vmem:[%s11344_s0 + $0x4e8] ss:$52 sps:$4 sm:$0xff]  }
  0x7c   :  { %5320 = vmatpush1.bf16.msra.mxu1 %v7569_v9  ;;  %5280 = vmatprep.subr.bf16.mxu0 %v7574_v10  ;;  %v7657_v9 = vld [vmem:[%s11344_s0 + $0xb68] ss:$52 sps:$4 sm:$0xff]  }
  0x7d   :  { %5321 = vmatprep.subr.bf16.mxu1 %v7577_v11  ;;  %v7662_v10 = vld [vmem:[%s11344_s0 + $0x554] ss:$52 sps:$4 sm:$0xff]  }
  0x7e   :  { %v7665_v11 = vld [vmem:[%s11344_s0 + $0xbd4] ss:$52 sps:$4 sm:$0xff]  }
  0x7f   :  { %5281 = vmatpush1.bf16.msra.mxu0 %v7572_v12  ;;  %v7660_v12 = vld [vmem:[%s11344_s0 + $0x550] ss:$52 sps:$4 sm:$0xff]  }
  0x80   :  { %5322 = vmatpush1.bf16.msra.mxu1 %v7575_v13  ;;  %5332 = vmatprep.subr.bf16.mxu0 %v7584_v14  ;;  %v7663_v13 = vld [vmem:[%s11344_s0 + $0xbd0] ss:$52 sps:$4 sm:$0xff]  }
  0x81   :  { %5373 = vmatprep.subr.bf16.mxu1 %v7587_v15  ;;  %v7668_v14 = vld [vmem:[%s11344_s0 + $0x5bc] ss:$52 sps:$4 sm:$0xff]  }
  0x82   :  { %5283 = vmatmul.mubr.bf16.vlgmr.msra.gmra.mrb[4].mxu0 %v9083_v16  ;;  %v7671_v15 = vld [vmem:[%s11344_s0 + $0xc3c] ss:$52 sps:$4 sm:$0xff]  }
  0x83   :  { %5324 = vmatmul.mubr.bf16.vlgmr.msra.gmra.mrb[4].mxu1 %v9087_v17  ;;  %5333 = vmatpush1.bf16.msra.mxu0 %v7582_v18  ;;  %v7666_v18 = vld [vmem:[%s11344_s0 + $0x5b8] ss:$52 sps:$4 sm:$0xff]  }
  0x84   :  { %5374 = vmatpush1.bf16.msra.mxu1 %v7585_v19  ;;  %5334 = vmatprep.subr.bf16.mxu0 %v7590_v20  ;;  %v7669_v19 = vld [vmem:[%s11344_s0 + $0xc38] ss:$52 sps:$4 sm:$0xff]  }
  0x85   :  { %5375 = vmatprep.subr.bf16.mxu1 %v7593_v21  ;;  %5364 = vmatprep.mubr.bf16.mxu0 %v8794_v47  ;;  %v7674_v20 = vld [vmem:[%s11344_s0 + $0x624] ss:$52 sps:$4 sm:$0xff]  }
  0x86   :  { %5405 = vmatprep.mubr.bf16.mxu1 %v8805_v51  ;;  %v7677_v21 = vld [vmem:[%s11344_s0 + $0xca4] ss:$52 sps:$4 sm:$0xff]  }
  0x87   :  { %5335 = vmatpush1.bf16.msra.mxu0 %v7588_v22  ;;  %v7672_v22 = vld [vmem:[%s11344_s0 + $0x620] ss:$52 sps:$4 sm:$0xff]  }
  0x88   :  { %5376 = vmatpush1.bf16.msra.mxu1 %v7591_v23  ;;  %5336 = vmatprep.subr.bf16.mxu0 %v7596_v24  ;;  %v7675_v23 = vld [vmem:[%s11344_s0 + $0xca0] ss:$52 sps:$4 sm:$0xff]  }
  0x89   :  { %5377 = vmatprep.subr.bf16.mxu1 %v7599_v25  ;;  %v7680_v24 = vld [vmem:[%s11344_s0 + $0xd0c] ss:$52 sps:$4 sm:$0xff]  }
  0x8a   :  { %v7683_v25 = vld [vmem:[%s11344_s0 + $0x138c] ss:$52 sps:$4 sm:$0xff]  }
  0x8b   :  { %5337 = vmatpush1.bf16.msra.mxu0 %v7594_v26  ;;  %v7678_v26 = vld [vmem:[%s11344_s0 + $0xd08] ss:$52 sps:$4 sm:$0xff]  }
  0x8c   :  { %5378 = vmatpush1.bf16.msra.mxu1 %v7597_v27  ;;  %5338 = vmatprep.subr.bf16.mxu0 %v7602_v28  ;;  %v7681_v27 = vld [vmem:[%s11344_s0 + $0x1388] ss:$52 sps:$4 sm:$0xff]  }
  0x8d   :  { %5379 = vmatprep.subr.bf16.mxu1 %v7605_v29  ;;  %v7686_v28 = vld [vmem:[%s11344_s0 + $0xd74] ss:$52 sps:$4 sm:$0xff]  }
  0x8e   :  { %v7689_v29 = vld [vmem:[%s11344_s0 + $0x13f4] ss:$52 sps:$4 sm:$0xff]  }
  0x8f   :  { %5339 = vmatpush1.bf16.msra.mxu0 %v7600_v30  ;;  %v7684_v30 = vld [vmem:[%s11344_s0 + $0xd70] ss:$52 sps:$4 sm:$0xff]  }
  0x90   :  { %5380 = vmatpush1.bf16.msra.mxu1 %v7603_v31  ;;  %5340 = vmatprep.subr.bf16.mxu0 %v7608_v32  ;;  %v7687_v31 = vld [vmem:[%s11344_s0 + $0x13f0] ss:$52 sps:$4 sm:$0xff]  }
  0x91   :  { %5381 = vmatprep.subr.bf16.mxu1 %v7611_v33  ;;  %v7692_v32 = vld [vmem:[%s11344_s0 + $0xddc] ss:$52 sps:$4 sm:$0xff]  }
  0x92   :  { %v7695_v33 = vld [vmem:[%s11344_s0 + $0x145c] ss:$52 sps:$4 sm:$0xff]  }
  0x93   :  { %5341 = vmatpush1.bf16.msra.mxu0 %v7606_v34  ;;  %v7690_v34 = vld [vmem:[%s11344_s0 + $0xdd8] ss:$52 sps:$4 sm:$0xff]  }
  0x94   :  { %5382 = vmatpush1.bf16.msra.mxu1 %v7609_v35  ;;  %5342 = vmatprep.subr.bf16.mxu0 %v7614_v38  ;;  %v7693_v35 = vld [vmem:[%s11344_s0 + $0x1458] ss:$52 sps:$4 sm:$0xff]  }
  0x95   :  { %5383 = vmatprep.subr.bf16.mxu1 %v7617_v39  ;;  %v7698_v38 = vld [vmem:[%s11344_s0 + $0xe44] ss:$52 sps:$4 sm:$0xff]  }
  0x96   :  { %v7701_v39 = vld [vmem:[%s11344_s0 + $0x14c4] ss:$52 sps:$4 sm:$0xff]  }
  0x97   :  { %5343 = vmatpush1.bf16.msra.mxu0 %v7612_v40  ;;  %v7696_v40 = vld [vmem:[%s11344_s0 + $0xe40] ss:$52 sps:$4 sm:$0xff]  }
  0x98   :  { %5384 = vmatpush1.bf16.msra.mxu1 %v7615_v41  ;;  %5344 = vmatprep.subr.bf16.mxu0 %v7620_v42  ;;  %v7699_v41 = vld [vmem:[%s11344_s0 + $0x14c0] ss:$52 sps:$4 sm:$0xff]  }
  0x99   :  { %5385 = vmatprep.subr.bf16.mxu1 %v7623_v43  ;;  %v7704_v42 = vld [vmem:[%s11344_s0 + $0xeac] ss:$52 sps:$4 sm:$0xff]  }
  0x9a   :  { %v7707_v43 = vld [vmem:[%s11344_s0 + $0x152c] ss:$52 sps:$4 sm:$0xff]  }
  0x9b   :  { %5345 = vmatpush1.bf16.msra.mxu0 %v7618_v44  ;;  %v7702_v44 = vld [vmem:[%s11344_s0 + $0xea8] ss:$52 sps:$4 sm:$0xff]  }
  0x9c   :  { %5386 = vmatpush1.bf16.msra.mxu1 %v7621_v45  ;;  %5346 = vmatprep.subr.bf16.mxu0 %v7626_v46  ;;  %v7705_v45 = vld [vmem:[%s11344_s0 + $0x1528] ss:$52 sps:$4 sm:$0xff]  }
  0x9d   :  { %5387 = vmatprep.subr.bf16.mxu1 %v7629_v48  ;;  %v7710_v46 = vld [vmem:[%s11344_s0 + $0xf14] ss:$52 sps:$4 sm:$0xff]  }
  0x9e   :  { %v7713_v48 = vld [vmem:[%s11344_s0 + $0x1594] ss:$52 sps:$4 sm:$0xff]  }
  0x9f   :  { %5347 = vmatpush1.bf16.msra.mxu0 %v7624_v49  ;;  %v7708_v49 = vld [vmem:[%s11344_s0 + $0xf10] ss:$52 sps:$4 sm:$0xff]  }
  0xa0   :  { %5388 = vmatpush1.bf16.msra.mxu1 %v7627_v50  ;;  %5348 = vmatprep.subr.bf16.mxu0 %v7632_v52  ;;  %v7711_v50 = vld [vmem:[%s11344_s0 + $0x1590] ss:$52 sps:$4 sm:$0xff]  }
  0xa1   :  { %5389 = vmatprep.subr.bf16.mxu1 %v7635_v53  ;;  %v7716_v52 = vld [vmem:[%s11344_s0 + $0xf7c] ss:$52 sps:$4 sm:$0xff]  }
  0xa2   :  { %v7719_v53 = vld [vmem:[%s11344_s0 + $0x15fc] ss:$52 sps:$4 sm:$0xff]  }
  0xa3   :  { %5349 = vmatpush1.bf16.msra.mxu0 %v7630_v54  ;;  %v7714_v54 = vld [vmem:[%s11344_s0 + $0xf78] ss:$52 sps:$4 sm:$0xff]  }
  0xa4   :  { %5390 = vmatpush1.bf16.msra.mxu1 %v7633_v55  ;;  %5350 = vmatprep.subr.bf16.mxu0 %v7638_v56  ;;  %v7717_v55 = vld [vmem:[%s11344_s0 + $0x15f8] ss:$52 sps:$4 sm:$0xff]  }
  0xa5   :  { %5391 = vmatprep.subr.bf16.mxu1 %v7641_v57  ;;  %v7722_v56 = vld [vmem:[%s11344_s0 + $0xfe4] ss:$52 sps:$4 sm:$0xff]  }
  0xa6   :  { %v7725_v57 = vld [vmem:[%s11344_s0 + $0x1664] ss:$52 sps:$4 sm:$0xff]  }
  0xa7   :  { %5351 = vmatpush1.bf16.msra.mxu0 %v7636_v58  ;;  %v7720_v58 = vld [vmem:[%s11344_s0 + $0xfe0] ss:$52 sps:$4 sm:$0xff]  }
  0xa8   :  { %5392 = vmatpush1.bf16.msra.mxu1 %v7639_v59  ;;  %5352 = vmatprep.subr.bf16.mxu0 %v7644_v60  ;;  %v7723_v59 = vld [vmem:[%s11344_s0 + $0x1660] ss:$52 sps:$4 sm:$0xff]  }
  0xa9   :  { %5393 = vmatprep.subr.bf16.mxu1 %v7647_v61  ;;  %v7728_v60 = vld [vmem:[%s11344_s0 + $0x104c] ss:$52 sps:$4 sm:$0xff]  }
  0xaa   :  { %v7731_v61 = vld [vmem:[%s11344_s0 + $0x16cc] ss:$52 sps:$4 sm:$0xff]  }
  0xab   :  { %5353 = vmatpush1.bf16.msra.mxu0 %v7642_v62  ;;  %v7726_v62 = vld [vmem:[%s11344_s0 + $0x1048] ss:$52 sps:$4 sm:$0xff]  }
  0xac   :  { %5394 = vmatpush1.bf16.msra.mxu1 %v7645_v63  ;;  %5354 = vmatprep.subr.bf16.mxu0 %v7650_v0  ;;  %v7729_v63 = vld [vmem:[%s11344_s0 + $0x16c8] ss:$52 sps:$4 sm:$0xff]  }
  0xad   :  { %5395 = vmatprep.subr.bf16.mxu1 %v7653_v1  ;;  %v7734_v0 = vld [vmem:[%s11344_s0 + $0x10b4] ss:$52 sps:$4 sm:$0xff]  }
  0xae   :  { %v7737_v1 = vld [vmem:[%s11344_s0 + $0x1734] ss:$52 sps:$4 sm:$0xff]  }
  0xaf   :  { %5355 = vmatpush1.bf16.msra.mxu0 %v7648_v2  ;;  %v7732_v2 = vld [vmem:[%s11344_s0 + $0x10b0] ss:$52 sps:$4 sm:$0xff]  }
  0xb0   :  { %5396 = vmatpush1.bf16.msra.mxu1 %v7651_v3  ;;  %5356 = vmatprep.subr.bf16.mxu0 %v7656_v4  ;;  %v7735_v3 = vld [vmem:[%s11344_s0 + $0x1730] ss:$52 sps:$4 sm:$0xff]  }
  0xb1   :  { %5397 = vmatprep.subr.bf16.mxu1 %v7659_v5  ;;  %v7740_v4 = vld [vmem:[%s11344_s0 + $0x111c] ss:$52 sps:$4 sm:$0xff]  }
  0xb2   :  { %v7743_v5 = vld [vmem:[%s11344_s0 + $0x179c] ss:$52 sps:$4 sm:$0xff]  }
  0xb3   :  { %5357 = vmatpush1.bf16.msra.mxu0 %v7654_v8  ;;  %v7738_v8 = vld [vmem:[%s11344_s0 + $0x1118] ss:$52 sps:$4 sm:$0xff]  }
  0xb4   :  { %5398 = vmatpush1.bf16.msra.mxu1 %v7657_v9  ;;  %5358 = vmatprep.subr.bf16.mxu0 %v7662_v10  ;;  %v7741_v9 = vld [vmem:[%s11344_s0 + $0x1798] ss:$52 sps:$4 sm:$0xff]  }
  0xb5   :  { %5399 = vmatprep.subr.bf16.mxu1 %v7665_v11  ;;  %v7746_v10 = vld [vmem:[%s11344_s0 + $0x1184] ss:$52 sps:$4 sm:$0xff]  }
  0xb6   :  { %v7749_v11 = vld [vmem:[%s11344_s0 + $0x1804] ss:$52 sps:$4 sm:$0xff]  }
  0xb7   :  { %5359 = vmatpush1.bf16.msra.mxu0 %v7660_v12  ;;  %v7744_v12 = vld [vmem:[%s11344_s0 + $0x1180] ss:$52 sps:$4 sm:$0xff]  }
  0xb8   :  { %5400 = vmatpush1.bf16.msra.mxu1 %v7663_v13  ;;  %5360 = vmatprep.subr.bf16.mxu0 %v7668_v14  ;;  %v7747_v13 = vld [vmem:[%s11344_s0 + $0x1800] ss:$52 sps:$4 sm:$0xff]  }
  0xb9   :  { %5401 = vmatprep.subr.bf16.mxu1 %v7671_v15  ;;  %v7752_v14 = vld [vmem:[%s11344_s0 + $0x11ec] ss:$52 sps:$4 sm:$0xff]  }
  0xba   :  { %v7755_v15 = vld [vmem:[%s11344_s0 + $0x186c] ss:$52 sps:$4 sm:$0xff]  }
  0xbb   :  { %5361 = vmatpush1.bf16.msra.mxu0 %v7666_v18  ;;  %v7750_v18 = vld [vmem:[%s11344_s0 + $0x11e8] ss:$52 sps:$4 sm:$0xff]  }
  0xbc   :  { %5402 = vmatpush1.bf16.msra.mxu1 %v7669_v19  ;;  %5362 = vmatprep.subr.bf16.mxu0 %v7674_v20  ;;  %v7753_v19 = vld [vmem:[%s11344_s0 + $0x1868] ss:$52 sps:$4 sm:$0xff]  }
  0xbd   :  { %5403 = vmatprep.subr.bf16.mxu1 %v7677_v21  ;;  %v7758_v20 = vld [vmem:[%s11344_s0 + $0x1254] ss:$52 sps:$4 sm:$0xff]  }
  0xbe   :  { %v7761_v21 = vld [vmem:[%s11344_s0 + $0x18d4] ss:$52 sps:$4 sm:$0xff]  }
  0xbf   :  { %5363 = vmatpush1.bf16.msra.mxu0 %v7672_v22  ;;  %v7756_v22 = vld [vmem:[%s11344_s0 + $0x1250] ss:$52 sps:$4 sm:$0xff]  }
  0xc0   :  { %5404 = vmatpush1.bf16.msra.mxu1 %v7675_v23  ;;  %5414 = vmatprep.subr.bf16.mxu0 %v7680_v24  ;;  %v7759_v23 = vld [vmem:[%s11344_s0 + $0x18d0] ss:$52 sps:$4 sm:$0xff]  }
  0xc1   :  { %5455 = vmatprep.subr.bf16.mxu1 %v7683_v25  ;;  %v7764_v24 = vld [vmem:[%s11344_s0 + $0x12bc] ss:$52 sps:$4 sm:$0xff]  }
  0xc2   :  { %5365 = vmatmul.mubr.bf16.vlgmr.msra.gmra.mrb[8].mxu0 %v8863_v6  ;;  %v7767_v25 = vld [vmem:[%s11344_s0 + $0x193c] ss:$52 sps:$4 sm:$0xff]  }
  0xc3   :  { %5406 = vmatmul.mubr.bf16.vlgmr.msra.gmra.mrb[8].mxu1 %v8865_v7  ;;  %5415 = vmatpush1.bf16.msra.mxu0 %v7678_v26  ;;  %v7762_v26 = vld [vmem:[%s11344_s0 + $0x12b8] ss:$52 sps:$4 sm:$0xff]  }
  0xc4   :  { %5456 = vmatpush1.bf16.msra.mxu1 %v7681_v27  ;;  %5416 = vmatprep.subr.bf16.mxu0 %v7686_v28  ;;  %v7765_v27 = vld [vmem:[%s11344_s0 + $0x1938] ss:$52 sps:$4 sm:$0xff]  }
  0xc5   :  { %5457 = vmatprep.subr.bf16.mxu1 %v7689_v29  ;;  %5446 = vmatprep.mubr.bf16.mxu0 %v8959_v36  ;;  %v7770_v28 = vld [vmem:[%s11344_s0 + $0x1324] ss:$52 sps:$4 sm:$0xff]  }
  0xc6   :  { %5487 = vmatprep.mubr.bf16.mxu1 %v8963_v37  ;;  %v7773_v29 = vld [vmem:[%s11344_s0 + $0x19a4] ss:$52 sps:$4 sm:$0xff]  }
  0xc7   :  { %5417 = vmatpush1.bf16.msra.mxu0 %v7684_v30  ;;  %v7768_v30 = vld [vmem:[%s11344_s0 + $0x1320] ss:$52 sps:$4 sm:$0xff]  }
  0xc8   :  { %5458 = vmatpush1.bf16.msra.mxu1 %v7687_v31  ;;  %5418 = vmatprep.subr.bf16.mxu0 %v7692_v32  ;;  %v7771_v31 = vld [vmem:[%s11344_s0 + $0x19a0] ss:$52 sps:$4 sm:$0xff]  }
  0xc9   :  { %5459 = vmatprep.subr.bf16.mxu1 %v7695_v33  ;;  %v7776_v32 = vld [vmem:[%s11344_s0 + $0x14] ss:$52 sps:$4 sm:$0xff]  }
  0xca   :  { %v7779_v33 = vld [vmem:[%s11344_s0 + $0x694] ss:$52 sps:$4 sm:$0xff]  }
  0xcb   :  { %5419 = vmatpush1.bf16.msra.mxu0 %v7690_v34  ;;  %v7774_v34 = vld [vmem:[%s11344_s0 + $0x10] ss:$52 sps:$4 sm:$0xff]  }
  0xcc   :  { %5460 = vmatpush1.bf16.msra.mxu1 %v7693_v35  ;;  %5420 = vmatprep.subr.bf16.mxu0 %v7698_v38  ;;  %v7777_v35 = vld [vmem:[%s11344_s0 + $0x690] ss:$52 sps:$4 sm:$0xff]  }
  0xcd   :  { %5461 = vmatprep.subr.bf16.mxu1 %v7701_v39  ;;  %v7782_v38 = vld [vmem:[%s11344_s0 + $0x7c] ss:$52 sps:$4 sm:$0xff]  }
  0xce   :  { %v7785_v39 = vld [vmem:[%s11344_s0 + $0x6fc] ss:$52 sps:$4 sm:$0xff]  }
  0xcf   :  { %5421 = vmatpush1.bf16.msra.mxu0 %v7696_v40  ;;  %v7780_v40 = vld [vmem:[%s11344_s0 + $0x78] ss:$52 sps:$4 sm:$0xff]  }
  0xd0   :  { %5462 = vmatpush1.bf16.msra.mxu1 %v7699_v41  ;;  %5422 = vmatprep.subr.bf16.mxu0 %v7704_v42  ;;  %v7783_v41 = vld [vmem:[%s11344_s0 + $0x6f8] ss:$52 sps:$4 sm:$0xff]  }
  0xd1   :  { %5463 = vmatprep.subr.bf16.mxu1 %v7707_v43  ;;  %v7788_v42 = vld [vmem:[%s11344_s0 + $0xe4] ss:$52 sps:$4 sm:$0xff]  }
  0xd2   :  { %v7791_v43 = vld [vmem:[%s11344_s0 + $0x764] ss:$52 sps:$4 sm:$0xff]  }
  0xd3   :  { %5423 = vmatpush1.bf16.msra.mxu0 %v7702_v44  ;;  %v7786_v44 = vld [vmem:[%s11344_s0 + $0xe0] ss:$52 sps:$4 sm:$0xff]  }
  0xd4   :  { %5464 = vmatpush1.bf16.msra.mxu1 %v7705_v45  ;;  %5424 = vmatprep.subr.bf16.mxu0 %v7710_v46  ;;  %v7789_v45 = vld [vmem:[%s11344_s0 + $0x760] ss:$52 sps:$4 sm:$0xff]  }
  0xd5   :  { %5465 = vmatprep.subr.bf16.mxu1 %v7713_v48  ;;  %v7794_v46 = vld [vmem:[%s11344_s0 + $0x14c] ss:$52 sps:$4 sm:$0xff]  }
  0xd6   :  { %v7797_v48 = vld [vmem:[%s11344_s0 + $0x7cc] ss:$52 sps:$4 sm:$0xff]  }
  0xd7   :  { %5425 = vmatpush1.bf16.msra.mxu0 %v7708_v49  ;;  %v7792_v49 = vld [vmem:[%s11344_s0 + $0x148] ss:$52 sps:$4 sm:$0xff]  }
  0xd8   :  { %5466 = vmatpush1.bf16.msra.mxu1 %v7711_v50  ;;  %5426 = vmatprep.subr.bf16.mxu0 %v7716_v52  ;;  %v7795_v50 = vld [vmem:[%s11344_s0 + $0x7c8] ss:$52 sps:$4 sm:$0xff]  }
  0xd9   :  { %5467 = vmatprep.subr.bf16.mxu1 %v7719_v53  ;;  %v7800_v52 = vld [vmem:[%s11344_s0 + $0x1b4] ss:$52 sps:$4 sm:$0xff]  }
  0xda   :  { %v7803_v53 = vld [vmem:[%s11344_s0 + $0x834] ss:$52 sps:$4 sm:$0xff]  }
  0xdb   :  { %5427 = vmatpush1.bf16.msra.mxu0 %v7714_v54  ;;  %v7798_v54 = vld [vmem:[%s11344_s0 + $0x1b0] ss:$52 sps:$4 sm:$0xff]  }
  0xdc   :  { %5468 = vmatpush1.bf16.msra.mxu1 %v7717_v55  ;;  %5428 = vmatprep.subr.bf16.mxu0 %v7722_v56  ;;  %v7801_v55 = vld [vmem:[%s11344_s0 + $0x830] ss:$52 sps:$4 sm:$0xff]  }
  0xdd   :  { %5469 = vmatprep.subr.bf16.mxu1 %v7725_v57  ;;  %v7806_v56 = vld [vmem:[%s11344_s0 + $0x21c] ss:$52 sps:$4 sm:$0xff]  }
  0xde   :  { %v7809_v57 = vld [vmem:[%s11344_s0 + $0x89c] ss:$52 sps:$4 sm:$0xff]  }
  0xdf   :  { %5429 = vmatpush1.bf16.msra.mxu0 %v7720_v58  ;;  %v7804_v58 = vld [vmem:[%s11344_s0 + $0x218] ss:$52 sps:$4 sm:$0xff]  }
  0xe0   :  { %5470 = vmatpush1.bf16.msra.mxu1 %v7723_v59  ;;  %5430 = vmatprep.subr.bf16.mxu0 %v7728_v60  ;;  %v7807_v59 = vld [vmem:[%s11344_s0 + $0x898] ss:$52 sps:$4 sm:$0xff]  }
  0xe1   :  { %5471 = vmatprep.subr.bf16.mxu1 %v7731_v61  ;;  %v7812_v60 = vld [vmem:[%s11344_s0 + $0x284] ss:$52 sps:$4 sm:$0xff]  }
  0xe2   :  { %v7815_v61 = vld [vmem:[%s11344_s0 + $0x904] ss:$52 sps:$4 sm:$0xff]  }
  0xe3   :  { %5431 = vmatpush1.bf16.msra.mxu0 %v7726_v62 }
  0xe4   :  { %5472 = vmatpush1.bf16.msra.mxu1 %v7729_v63  ;;  %5432 = vmatprep.subr.bf16.mxu0 %v7734_v0  ;;  %v7810_v0 = vld [vmem:[%s11344_s0 + $0x280] ss:$52 sps:$4 sm:$0xff]  }
  0xe5   :  { %5473 = vmatprep.subr.bf16.mxu1 %v7737_v1  ;;  %v7813_v1 = vld [vmem:[%s11344_s0 + $0x900] ss:$52 sps:$4 sm:$0xff]  }
  0xe7   :  { %5433 = vmatpush1.bf16.msra.mxu0 %v7732_v2 }
  0xe8   :  { %5474 = vmatpush1.bf16.msra.mxu1 %v7735_v3  ;;  %5434 = vmatprep.subr.bf16.mxu0 %v7740_v4 }
  0xe9   :  { %5475 = vmatprep.subr.bf16.mxu1 %v7743_v5 }
  0xeb   :  { %5435 = vmatpush1.bf16.msra.mxu0 %v7738_v8 }
  0xec   :  { %5476 = vmatpush1.bf16.msra.mxu1 %v7741_v9  ;;  %5436 = vmatprep.subr.bf16.mxu0 %v7746_v10 }
  0xed   :  { %5477 = vmatprep.subr.bf16.mxu1 %v7749_v11 }
  0xef   :  { %5437 = vmatpush1.bf16.msra.mxu0 %v7744_v12  ;;  %v7818_v12 = vld [vmem:[%s11344_s0 + $0x2ec] ss:$52 sps:$4 sm:$0xff]  }
  0xf0   :  { %5478 = vmatpush1.bf16.msra.mxu1 %v7747_v13  ;;  %5438 = vmatprep.subr.bf16.mxu0 %v7752_v14  ;;  %v7821_v13 = vld [vmem:[%s11344_s0 + $0x96c] ss:$52 sps:$4 sm:$0xff]   ;;  %v7816_v14 = vld [vmem:[%s11344_s0 + $0x2e8] ss:$52 sps:$4 sm:$0xff]  }
  0xf1   :  { %5479 = vmatprep.subr.bf16.mxu1 %v7755_v15  ;;  %v7819_v15 = vld [vmem:[%s11344_s0 + $0x968] ss:$52 sps:$4 sm:$0xff]  }
  0xf3   :  { %5439 = vmatpush1.bf16.msra.mxu0 %v7750_v18  ;;  %v7824_v18 = vld [vmem:[%s11344_s0 + $0x354] ss:$52 sps:$4 sm:$0xff]  }
  0xf4   :  { %5480 = vmatpush1.bf16.msra.mxu1 %v7753_v19  ;;  %5440 = vmatprep.subr.bf16.mxu0 %v7758_v20  ;;  %v7827_v19 = vld [vmem:[%s11344_s0 + $0x9d4] ss:$52 sps:$4 sm:$0xff]   ;;  %v7822_v20 = vld [vmem:[%s11344_s0 + $0x350] ss:$52 sps:$4 sm:$0xff]  }
  0xf5   :  { %5481 = vmatprep.subr.bf16.mxu1 %v7761_v21  ;;  %v7825_v21 = vld [vmem:[%s11344_s0 + $0x9d0] ss:$52 sps:$4 sm:$0xff]  }
  0xf7   :  { %5441 = vmatpush1.bf16.msra.mxu0 %v7756_v22  ;;  %v7830_v22 = vld [vmem:[%s11344_s0 + $0x3bc] ss:$52 sps:$4 sm:$0xff]  }
  0xf8   :  { %5482 = vmatpush1.bf16.msra.mxu1 %v7759_v23  ;;  %5442 = vmatprep.subr.bf16.mxu0 %v7764_v24  ;;  %v7833_v23 = vld [vmem:[%s11344_s0 + $0xa3c] ss:$52 sps:$4 sm:$0xff]   ;;  %v7828_v24 = vld [vmem:[%s11344_s0 + $0x3b8] ss:$52 sps:$4 sm:$0xff]  }
  0xf9   :  { %5483 = vmatprep.subr.bf16.mxu1 %v7767_v25  ;;  %v7831_v25 = vld [vmem:[%s11344_s0 + $0xa38] ss:$52 sps:$4 sm:$0xff]  }
  0xfb   :  { %5443 = vmatpush1.bf16.msra.mxu0 %v7762_v26  ;;  %v7836_v26 = vld [vmem:[%s11344_s0 + $0x424] ss:$52 sps:$4 sm:$0xff]  }
  0xfc   :  { %5484 = vmatpush1.bf16.msra.mxu1 %v7765_v27  ;;  %5444 = vmatprep.subr.bf16.mxu0 %v7770_v28  ;;  %v7839_v27 = vld [vmem:[%s11344_s0 + $0xaa4] ss:$52 sps:$4 sm:$0xff]   ;;  %v7834_v28 = vld [vmem:[%s11344_s0 + $0x420] ss:$52 sps:$4 sm:$0xff]  }
  0xfd   :  { %5485 = vmatprep.subr.bf16.mxu1 %v7773_v29  ;;  %v7837_v29 = vld [vmem:[%s11344_s0 + $0xaa0] ss:$52 sps:$4 sm:$0xff]  }
  0xff   :  { %5445 = vmatpush1.bf16.msra.mxu0 %v7768_v30  ;;  %v7842_v30 = vld [vmem:[%s11344_s0 + $0x48c] ss:$52 sps:$4 sm:$0xff]  }
 0x100   :  { %5486 = vmatpush1.bf16.msra.mxu1 %v7771_v31  ;;  %5496 = vmatprep.subr.bf16.mxu0 %v7776_v32  ;;  %v7845_v31 = vld [vmem:[%s11344_s0 + $0xb0c] ss:$52 sps:$4 sm:$0xff]   ;;  %v7840_v32 = vld [vmem:[%s11344_s0 + $0x488] ss:$52 sps:$4 sm:$0xff]  }
 0x101   :  { %5537 = vmatprep.subr.bf16.mxu1 %v7779_v33  ;;  %v7843_v33 = vld [vmem:[%s11344_s0 + $0xb08] ss:$52 sps:$4 sm:$0xff]  }
 0x102   :  { %5447 = vmatmul.mubr.bf16.vlgmr.msra.gmra.mrb[12].mxu0 %v9083_v16 }
 0x103   :  { %5488 = vmatmul.mubr.bf16.vlgmr.msra.gmra.mrb[12].mxu1 %v9087_v17  ;;  %5497 = vmatpush1.bf16.msra.mxu0 %v7774_v34  ;;  %v7848_v34 = vld [vmem:[%s11344_s0 + $0x4f4] ss:$52 sps:$4 sm:$0xff]  }
 0x104   :  { %5538 = vmatpush1.bf16.msra.mxu1 %v7777_v35  ;;  %5498 = vmatprep.subr.bf16.mxu0 %v7782_v38  ;;  %v7851_v35 = vld [vmem:[%s11344_s0 + $0xb74] ss:$52 sps:$4 sm:$0xff]   ;;  %v7846_v38 = vld [vmem:[%s11344_s0 + $0x4f0] ss:$52 sps:$4 sm:$0xff]  }
 0x105   :  { %5539 = vmatprep.subr.bf16.mxu1 %v7785_v39  ;;  %5528 = vmatprep.mubr.bf16.mxu0 %v8794_v47  ;;  %v7849_v39 = vld [vmem:[%s11344_s0 + $0xb70] ss:$52 sps:$4 sm:$0xff]  }
 0x106   :  { %5569 = vmatprep.mubr.bf16.mxu1 %v8805_v51 }
 0x107   :  { %5499 = vmatpush1.bf16.msra.mxu0 %v7780_v40  ;;  %v7854_v40 = vld [vmem:[%s11344_s0 + $0x55c] ss:$52 sps:$4 sm:$0xff]  }
 0x108   :  { %5540 = vmatpush1.bf16.msra.mxu1 %v7783_v41  ;;  %5500 = vmatprep.subr.bf16.mxu0 %v7788_v42  ;;  %v7857_v41 = vld [vmem:[%s11344_s0 + $0xbdc] ss:$52 sps:$4 sm:$0xff]   ;;  %v7852_v42 = vld [vmem:[%s11344_s0 + $0x558] ss:$52 sps:$4 sm:$0xff]  }
 0x109   :  { %5541 = vmatprep.subr.bf16.mxu1 %v7791_v43  ;;  %v7855_v43 = vld [vmem:[%s11344_s0 + $0xbd8] ss:$52 sps:$4 sm:$0xff]  }
 0x10b   :  { %5501 = vmatpush1.bf16.msra.mxu0 %v7786_v44  ;;  %v7860_v44 = vld [vmem:[%s11344_s0 + $0x5c4] ss:$52 sps:$4 sm:$0xff]  }
 0x10c   :  { %5542 = vmatpush1.bf16.msra.mxu1 %v7789_v45  ;;  %5502 = vmatprep.subr.bf16.mxu0 %v7794_v46  ;;  %v7863_v45 = vld [vmem:[%s11344_s0 + $0xc44] ss:$52 sps:$4 sm:$0xff]   ;;  %v7858_v46 = vld [vmem:[%s11344_s0 + $0x5c0] ss:$52 sps:$4 sm:$0xff]  }
 0x10d   :  { %5543 = vmatprep.subr.bf16.mxu1 %v7797_v48  ;;  %v7861_v48 = vld [vmem:[%s11344_s0 + $0xc40] ss:$52 sps:$4 sm:$0xff]  }
 0x10f   :  { %5503 = vmatpush1.bf16.msra.mxu0 %v7792_v49  ;;  %v7866_v49 = vld [vmem:[%s11344_s0 + $0x62c] ss:$52 sps:$4 sm:$0xff]  }
 0x110   :  { %5544 = vmatpush1.bf16.msra.mxu1 %v7795_v50  ;;  %5504 = vmatprep.subr.bf16.mxu0 %v7800_v52  ;;  %v7869_v50 = vld [vmem:[%s11344_s0 + $0xcac] ss:$52 sps:$4 sm:$0xff]   ;;  %v7864_v52 = vld [vmem:[%s11344_s0 + $0x628] ss:$52 sps:$4 sm:$0xff]  }
 0x111   :  { %5545 = vmatprep.subr.bf16.mxu1 %v7803_v53  ;;  %v7867_v53 = vld [vmem:[%s11344_s0 + $0xca8] ss:$52 sps:$4 sm:$0xff]  }
 0x113   :  { %5505 = vmatpush1.bf16.msra.mxu0 %v7798_v54  ;;  %v7872_v54 = vld [vmem:[%s11344_s0 + $0xd14] ss:$52 sps:$4 sm:$0xff]  }
 0x114   :  { %5546 = vmatpush1.bf16.msra.mxu1 %v7801_v55  ;;  %5506 = vmatprep.subr.bf16.mxu0 %v7806_v56  ;;  %v7875_v55 = vld [vmem:[%s11344_s0 + $0x1394] ss:$52 sps:$4 sm:$0xff]   ;;  %v7870_v56 = vld [vmem:[%s11344_s0 + $0xd10] ss:$52 sps:$4 sm:$0xff]  }
 0x115   :  { %5547 = vmatprep.subr.bf16.mxu1 %v7809_v57  ;;  %v5202_v62 = vpop.f32.mrb[0].mxu0  ;;  %v7873_v57 = vld [vmem:[%s11344_s0 + $0x1390] ss:$52 sps:$4 sm:$0xff]  }
 0x116   :  { %v5243_v63 = vpop.f32.mrb[0].mxu1  ;;  %v5204_v3 = vpop.f32.mrb[1].mxu0 }
 0x117   :  { %v9563_v2 = vadd.f32 %v5243_v63, %v5202_v62  ;;  %v5245_v4 = vpop.f32.mrb[1].mxu1  ;;  %v5206_v8 = vpop.f32.mrb[2].mxu0  ;;  %5507 = vmatpush1.bf16.msra.mxu0 %v7804_v58  ;;  %v7878_v58 = vld [vmem:[%s11344_s0 + $0xd7c] ss:$52 sps:$4 sm:$0xff]   ;;  %v7884_v62 = vld [vmem:[%s11344_s0 + $0xde4] ss:$52 sps:$4 sm:$0xff]  }
 0x118   :  { %v9565_v5 = vadd.f32 %v5245_v4, %v5204_v3  ;;  %v5247_v9 = vpop.f32.mrb[2].mxu1  ;;  %5548 = vmatpush1.bf16.msra.mxu1 %v7807_v59  ;;  %v5207_v10 = vpop.f32.mrb[3].mxu0  ;;  %5508 = vmatprep.subr.bf16.mxu0 %v7812_v60  ;;  %v7881_v59 = vld [vmem:[%s11344_s0 + $0x13fc] ss:$52 sps:$4 sm:$0xff]   ;;  %v7876_v60 = vld [vmem:[%s11344_s0 + $0xd78] ss:$52 sps:$4 sm:$0xff]  }
 0x119   :  { %v5248_v11 = vpop.f32.mrb[3].mxu1  ;;  %5549 = vmatprep.subr.bf16.mxu1 %v7815_v61  ;;  %v7879_v61 = vld [vmem:[%s11344_s0 + $0x13f8] ss:$52 sps:$4 sm:$0xff]   ;;  %v7888_v8 = vld [vmem:[%s11344_s0 + $0xe48] ss:$52 sps:$4 sm:$0xff]  }
 0x11a   :  { %v7887_v63 = vld [vmem:[%s11344_s0 + $0x1464] ss:$52 sps:$4 sm:$0xff]   ;;  %v7890_v3 = vld [vmem:[%s11344_s0 + $0xe4c] ss:$52 sps:$4 sm:$0xff]   ;;  %v7891_v9 = vld [vmem:[%s11344_s0 + $0x14c8] ss:$52 sps:$4 sm:$0xff]  }
 0x11b   :  { %5509 = vmatpush1.bf16.msra.mxu0 %v7810_v0  ;;  %v7882_v0 = vld [vmem:[%s11344_s0 + $0xde0] ss:$52 sps:$4 sm:$0xff]  }
 0x11c   :  { %5550 = vmatpush1.bf16.msra.mxu1 %v7813_v1  ;;  %5510 = vmatprep.subr.bf16.mxu0 %v7818_v12  ;;  %v7885_v1 = vld [vmem:[%s11344_s0 + $0x1460] ss:$52 sps:$4 sm:$0xff]   ;;  %v7894_v12 = vld [vmem:[%s11344_s0 + $0xeb0] ss:$52 sps:$4 sm:$0xff]  }
 0x11d   :  { %5551 = vmatprep.subr.bf16.mxu1 %v7821_v13  ;;  %v7893_v4 = vld [vmem:[%s11344_s0 + $0x14cc] ss:$52 sps:$4 sm:$0xff]   ;;  %v7896_v10 = vld [vmem:[%s11344_s0 + $0xeb4] ss:$52 sps:$4 sm:$0xff]   ;;  %v7897_v13 = vld [vmem:[%s11344_s0 + $0x1530] ss:$52 sps:$4 sm:$0xff]  }
 0x11e   :  { %v7899_v11 = vld [vmem:[%s11344_s0 + $0x1534] ss:$52 sps:$4 sm:$0xff]  }
 0x11f   :  { %5511 = vmatpush1.bf16.msra.mxu0 %v7816_v14  ;;  %v7902_v14 = vld [vmem:[%s11344_s0 + $0xf1c] ss:$52 sps:$4 sm:$0xff]  }
 0x120   :  { %5552 = vmatpush1.bf16.msra.mxu1 %v7819_v15  ;;  %5512 = vmatprep.subr.bf16.mxu0 %v7824_v18  ;;  %v7905_v15 = vld [vmem:[%s11344_s0 + $0x159c] ss:$52 sps:$4 sm:$0xff]   ;;  %v7900_v18 = vld [vmem:[%s11344_s0 + $0xf18] ss:$52 sps:$4 sm:$0xff]  }
 0x121   :  { %5553 = vmatprep.subr.bf16.mxu1 %v7827_v19  ;;  %v7903_v19 = vld [vmem:[%s11344_s0 + $0x1598] ss:$52 sps:$4 sm:$0xff]  }
 0x123   :  { %5513 = vmatpush1.bf16.msra.mxu0 %v7822_v20  ;;  %v7908_v20 = vld [vmem:[%s11344_s0 + $0xf84] ss:$52 sps:$4 sm:$0xff]  }
 0x124   :  { %5554 = vmatpush1.bf16.msra.mxu1 %v7825_v21  ;;  %5514 = vmatprep.subr.bf16.mxu0 %v7830_v22  ;;  %v7911_v21 = vld [vmem:[%s11344_s0 + $0x1604] ss:$52 sps:$4 sm:$0xff]  }
 0x125   :  { %5555 = vmatprep.subr.bf16.mxu1 %v7833_v23 }
 0x127   :  { %5515 = vmatpush1.bf16.msra.mxu0 %v7828_v24  ;;  %v7906_v24 = vld [vmem:[%s11344_s0 + $0xf80] ss:$52 sps:$4 sm:$0xff]  }
 0x128   :  { %5556 = vmatpush1.bf16.msra.mxu1 %v7831_v25  ;;  %5516 = vmatprep.subr.bf16.mxu0 %v7836_v26  ;;  %v7909_v25 = vld [vmem:[%s11344_s0 + $0x1600] ss:$52 sps:$4 sm:$0xff]  }
 0x129   :  { %5557 = vmatprep.subr.bf16.mxu1 %v7839_v27 }
 0x12b   :  { %5517 = vmatpush1.bf16.msra.mxu0 %v7834_v28 }
 0x12c   :  { %5558 = vmatpush1.bf16.msra.mxu1 %v7837_v29  ;;  %5518 = vmatprep.subr.bf16.mxu0 %v7842_v30  ;;  %v9767_v29 = vstv %s11346_s2 }
 0x12d   :  { %5559 = vmatprep.subr.bf16.mxu1 %v7845_v31 }
 0x12f   :  { %5519 = vmatpush1.bf16.msra.mxu0 %v7840_v32 }
 0x130   :  { %5560 = vmatpush1.bf16.msra.mxu1 %v7843_v33  ;;  %5520 = vmatprep.subr.bf16.mxu0 %v7848_v34 }
 0x131   :  { %5561 = vmatprep.subr.bf16.mxu1 %v7851_v35 }
 0x133   :  { %5521 = vmatpush1.bf16.msra.mxu0 %v7846_v38  ;;  %v7917_v38 = vld [vmem:[%s11344_s0 + $0x166c] ss:$52 sps:$4 sm:$0xff]  }
 0x134   :  { %5562 = vmatpush1.bf16.msra.mxu1 %v7849_v39  ;;  %5522 = vmatprep.subr.bf16.mxu0 %v7854_v40  ;;  %v7915_v40 = vld [vmem:[%s11344_s0 + $0x1668] ss:$52 sps:$4 sm:$0xff]  }
 0x135   :  { %5563 = vmatprep.subr.bf16.mxu1 %v7857_v41 }
 0x137   :  { %5523 = vmatpush1.bf16.msra.mxu0 %v7852_v42 }
 0x138   :  { %5564 = vmatpush1.bf16.msra.mxu1 %v7855_v43  ;;  %5524 = vmatprep.subr.bf16.mxu0 %v7860_v44  ;;  %v7920_v43 = vld [vmem:[%s11344_s0 + $0x1054] ss:$52 sps:$4 sm:$0xff]  }
 0x139   :  { %5565 = vmatprep.subr.bf16.mxu1 %v7863_v45  ;;  %v7923_v44 = vld [vmem:[%s11344_s0 + $0x16d4] ss:$52 sps:$4 sm:$0xff]   ;;  %v7918_v45 = vld [vmem:[%s11344_s0 + $0x1050] ss:$52 sps:$4 sm:$0xff]  }
 0x13b   :  { %5525 = vmatpush1.bf16.msra.mxu0 %v7858_v46  ;;  %v7921_v46 = vld [vmem:[%s11344_s0 + $0x16d0] ss:$52 sps:$4 sm:$0xff]  }
 0x13c   :  { %5566 = vmatpush1.bf16.msra.mxu1 %v7861_v48  ;;  %5526 = vmatprep.subr.bf16.mxu0 %v7866_v49  ;;  %v7926_v48 = vld [vmem:[%s11344_s0 + $0x10bc] ss:$52 sps:$4 sm:$0xff]  }
 0x13d   :  { %5567 = vmatprep.subr.bf16.mxu1 %v7869_v50  ;;  %v7929_v49 = vld [vmem:[%s11344_s0 + $0x173c] ss:$52 sps:$4 sm:$0xff]   ;;  %v7924_v50 = vld [vmem:[%s11344_s0 + $0x10b8] ss:$52 sps:$4 sm:$0xff]  }
 0x13f   :  { %5527 = vmatpush1.bf16.msra.mxu0 %v7864_v52  ;;  %v7927_v52 = vld [vmem:[%s11344_s0 + $0x1738] ss:$52 sps:$4 sm:$0xff]  }
 0x140   :  { %5568 = vmatpush1.bf16.msra.mxu1 %v7867_v53  ;;  %5578 = vmatprep.subr.bf16.mxu0 %v7872_v54  ;;  %v7932_v53 = vld [vmem:[%s11344_s0 + $0x1124] ss:$52 sps:$4 sm:$0xff]  }
 0x141   :  { %5619 = vmatprep.subr.bf16.mxu1 %v7875_v55  ;;  %v7935_v54 = vld [vmem:[%s11344_s0 + $0x17a4] ss:$52 sps:$4 sm:$0xff]   ;;  %v7930_v55 = vld [vmem:[%s11344_s0 + $0x1120] ss:$52 sps:$4 sm:$0xff]  }
 0x142   :  { %5529 = vmatmul.mubr.bf16.vlgmr.msra.gmra.mrb[16].mxu0 %v8863_v6 }
 0x143   :  { %5570 = vmatmul.mubr.bf16.vlgmr.msra.gmra.mrb[16].mxu1 %v8865_v7  ;;  %5579 = vmatpush1.bf16.msra.mxu0 %v7870_v56  ;;  %v7933_v56 = vld [vmem:[%s11344_s0 + $0x17a0] ss:$52 sps:$4 sm:$0xff]  }
 0x144   :  { %5620 = vmatpush1.bf16.msra.mxu1 %v7873_v57  ;;  %5580 = vmatprep.subr.bf16.mxu0 %v7878_v58 }
 0x145   :  { %5621 = vmatprep.subr.bf16.mxu1 %v7881_v59  ;;  %5610 = vmatprep.mubr.bf16.mxu0 %v8959_v36 }
 0x146   :  { %5651 = vmatprep.mubr.bf16.mxu1 %v8963_v37 }
 0x147   :  { %5581 = vmatpush1.bf16.msra.mxu0 %v7876_v60  ;;  %v7938_v60 = vld [vmem:[%s11344_s0 + $0x118c] ss:$52 sps:$4 sm:$0xff]  }
 0x148   :  { %5622 = vmatpush1.bf16.msra.mxu1 %v7879_v61  ;;  %5582 = vmatprep.subr.bf16.mxu0 %v7884_v62  ;;  %v7941_v61 = vld [vmem:[%s11344_s0 + $0x180c] ss:$52 sps:$4 sm:$0xff]   ;;  %v7936_v62 = vld [vmem:[%s11344_s0 + $0x1188] ss:$52 sps:$4 sm:$0xff]  }
 0x149   :  { %5623 = vmatprep.subr.bf16.mxu1 %v7887_v63  ;;  %v7939_v63 = vld [vmem:[%s11344_s0 + $0x1808] ss:$52 sps:$4 sm:$0xff]  }
 0x14b   :  { %5583 = vmatpush1.bf16.msra.mxu0 %v7882_v0  ;;  %v7944_v0 = vld [vmem:[%s11344_s0 + $0x11f4] ss:$52 sps:$4 sm:$0xff]  }
 0x14c   :  { %5624 = vmatpush1.bf16.msra.mxu1 %v7885_v1  ;;  %5584 = vmatprep.subr.bf16.mxu0 %v7890_v3  ;;  %v7947_v1 = vld [vmem:[%s11344_s0 + $0x1874] ss:$52 sps:$4 sm:$0xff]   ;;  %v7942_v3 = vld [vmem:[%s11344_s0 + $0x11f0] ss:$52 sps:$4 sm:$0xff]  }
 0x14d   :  { %5625 = vmatprep.subr.bf16.mxu1 %v7893_v4  ;;  %v7945_v4 = vld [vmem:[%s11344_s0 + $0x1870] ss:$52 sps:$4 sm:$0xff]  }
 0x14f   :  { %5585 = vmatpush1.bf16.msra.mxu0 %v7888_v8  ;;  %v7950_v8 = vld [vmem:[%s11344_s0 + $0x125c] ss:$52 sps:$4 sm:$0xff]  }
 0x150   :  { %5626 = vmatpush1.bf16.msra.mxu1 %v7891_v9  ;;  %5586 = vmatprep.subr.bf16.mxu0 %v7896_v10  ;;  %v7953_v9 = vld [vmem:[%s11344_s0 + $0x18dc] ss:$52 sps:$4 sm:$0xff]   ;;  %v7948_v10 = vld [vmem:[%s11344_s0 + $0x1258] ss:$52 sps:$4 sm:$0xff]  }
 0x151   :  { %5627 = vmatprep.subr.bf16.mxu1 %v7899_v11  ;;  %v7951_v11 = vld [vmem:[%s11344_s0 + $0x18d8] ss:$52 sps:$4 sm:$0xff]  }
 0x153   :  { %5587 = vmatpush1.bf16.msra.mxu0 %v7894_v12  ;;  %v7956_v12 = vld [vmem:[%s11344_s0 + $0x12c4] ss:$52 sps:$4 sm:$0xff]  }
 0x154   :  { %5628 = vmatpush1.bf16.msra.mxu1 %v7897_v13  ;;  %5588 = vmatprep.subr.bf16.mxu0 %v7902_v14  ;;  %v7959_v13 = vld [vmem:[%s11344_s0 + $0x1944] ss:$52 sps:$4 sm:$0xff]   ;;  %v7954_v14 = vld [vmem:[%s11344_s0 + $0x12c0] ss:$52 sps:$4 sm:$0xff]  }
 0x155   :  { %5629 = vmatprep.subr.bf16.mxu1 %v7905_v15  ;;  %v5284_v22 = vpop.f32.mrb[4].mxu0  ;;  %v7957_v15 = vld [vmem:[%s11344_s0 + $0x1940] ss:$52 sps:$4 sm:$0xff]  }
 0x156   :  { %v5325_v23 = vpop.f32.mrb[4].mxu1  ;;  %v5285_v26 = vadd.f32 %v5284_v22, %v9563_v2  ;;  %v5286_v27 = vpop.f32.mrb[5].mxu0  ;;  %v7914_v2 = vld [vmem:[%s11344_s0 + $0xfec] ss:$52 sps:$4 sm:$0xff]   ;;  %v7968_v22 = vld [vmem:[%s11344_s0 + $0x1c] ss:$52 sps:$4 sm:$0xff]  }
 0x157   :  { %v5327_v28 = vpop.f32.mrb[5].mxu1  ;;  %v5287_v30 = vadd.f32 %v5286_v27, %v9565_v5  ;;  %v5288_v31 = vpop.f32.mrb[6].mxu0  ;;  %5589 = vmatpush1.bf16.msra.mxu0 %v7900_v18  ;;  %v7912_v5 = vld [vmem:[%s11344_s0 + $0xfe8] ss:$52 sps:$4 sm:$0xff]   ;;  %v7962_v18 = vld [vmem:[%s11344_s0 + $0x132c] ss:$52 sps:$4 sm:$0xff]  }
 0x158   :  { %v5329_v32 = vpop.f32.mrb[6].mxu1  ;;  %5630 = vmatpush1.bf16.msra.mxu1 %v7903_v19  ;;  %v5326_v33 = vadd.f32 %v5325_v23, %v5285_v26  ;;  %v5289_v34 = vpop.f32.mrb[7].mxu0  ;;  %5590 = vmatprep.subr.bf16.mxu0 %v7908_v20  ;;  %v7965_v19 = vld [vmem:[%s11344_s0 + $0x19ac] ss:$52 sps:$4 sm:$0xff]   ;;  %v7960_v20 = vld [vmem:[%s11344_s0 + $0x1328] ss:$52 sps:$4 sm:$0xff]  }
 0x159   :  { %v5330_v35 = vpop.f32.mrb[7].mxu1  ;;  %5631 = vmatprep.subr.bf16.mxu1 %v7911_v21  ;;  %v5328_v39 = vadd.f32 %v5327_v28, %v5287_v30  ;;  %v7963_v21 = vld [vmem:[%s11344_s0 + $0x19a8] ss:$52 sps:$4 sm:$0xff]   ;;  %v7974_v26 = vld [vmem:[%s11344_s0 + $0x84] ss:$52 sps:$4 sm:$0xff]  }
 0x15a   :  { %v6314_v41 = vadd.f32 %v9767_v29, %v5326_v33  ;;  %v7971_v23 = vld [vmem:[%s11344_s0 + $0x69c] ss:$52 sps:$4 sm:$0xff]   ;;  %v7977_v27 = vld [vmem:[%s11344_s0 + $0x704] ss:$52 sps:$4 sm:$0xff]   ;;  %v7972_v28 = vld [vmem:[%s11344_s0 + $0x80] ss:$52 sps:$4 sm:$0xff]  }
 0x15b   :  { %v6315_v42 = vadd.f32 %v9767_v29, %v5328_v39  ;;  %5591 = vmatpush1.bf16.msra.mxu0 %v7906_v24  ;;  %v7966_v24 = vld [vmem:[%s11344_s0 + $0x18] ss:$52 sps:$4 sm:$0xff]   ;;  %v7975_v30 = vld [vmem:[%s11344_s0 + $0x700] ss:$52 sps:$4 sm:$0xff]   ;;  %v7978_v33 = vld [vmem:[%s11344_s0 + $0xe8] ss:$52 sps:$4 sm:$0xff]  }
 0x15c   :  { %5632 = vmatpush1.bf16.msra.mxu1 %v7909_v25  ;;  %8606 = vtanh.f32 %v6314_v41  ;;  %5592 = vmatprep.subr.bf16.mxu0 %v7914_v2  ;;  %v7969_v25 = vld [vmem:[%s11344_s0 + $0x698] ss:$52 sps:$4 sm:$0xff]   ;;  %v7981_v34 = vld [vmem:[%s11344_s0 + $0x768] ss:$52 sps:$4 sm:$0xff]   ;;  %v7987_v39 = vld [vmem:[%s11344_s0 + $0x7d0] ss:$52 sps:$4 sm:$0xff]  }
 0x15d   :  { %5633 = vmatprep.subr.bf16.mxu1 %v7917_v38  ;;  %8608 = vtanh.f32 %v6315_v42  ;;  %v7980_v31 = vld [vmem:[%s11344_s0 + $0xec] ss:$52 sps:$4 sm:$0xff]   ;;  %v7986_v35 = vld [vmem:[%s11344_s0 + $0x154] ss:$52 sps:$4 sm:$0xff]   ;;  %v7984_v38 = vld [vmem:[%s11344_s0 + $0x150] ss:$52 sps:$4 sm:$0xff]  }
 0x15e   :  { %v7983_v32 = vld [vmem:[%s11344_s0 + $0x76c] ss:$52 sps:$4 sm:$0xff]   ;;  %v7989_v2 = vld [vmem:[%s11344_s0 + $0x7d4] ss:$52 sps:$4 sm:$0xff]  }
 0x15f   :  { %5593 = vmatpush1.bf16.msra.mxu0 %v7912_v5  ;;  %v7992_v5 = vld [vmem:[%s11344_s0 + $0x1bc] ss:$52 sps:$4 sm:$0xff]   ;;  %v7990_v41 = vld [vmem:[%s11344_s0 + $0x1b8] ss:$52 sps:$4 sm:$0xff]  }
 0x160   :  { %5634 = vmatpush1.bf16.msra.mxu1 %v7915_v40  ;;  %5594 = vmatprep.subr.bf16.mxu0 %v7920_v43  ;;  %v7995_v40 = vld [vmem:[%s11344_s0 + $0x83c] ss:$52 sps:$4 sm:$0xff]   ;;  %v7993_v42 = vld [vmem:[%s11344_s0 + $0x838] ss:$52 sps:$4 sm:$0xff]  }
 0x161   :  { %5635 = vmatprep.subr.bf16.mxu1 %v7923_v44  ;;  %v7998_v43 = vld [vmem:[%s11344_s0 + $0x224] ss:$52 sps:$4 sm:$0xff]  }
 0x162   :  { %v8001_v44 = vld [vmem:[%s11344_s0 + $0x8a4] ss:$52 sps:$4 sm:$0xff]  }
 0x163   :  { %5595 = vmatpush1.bf16.msra.mxu0 %v7918_v45  ;;  %v7996_v45 = vld [vmem:[%s11344_s0 + $0x220] ss:$52 sps:$4 sm:$0xff]  }
 0x164   :  { %5636 = vmatpush1.bf16.msra.mxu1 %v7921_v46  ;;  %5596 = vmatprep.subr.bf16.mxu0 %v7926_v48  ;;  %v7999_v46 = vld [vmem:[%s11344_s0 + $0x8a0] ss:$52 sps:$4 sm:$0xff]  }
 0x165   :  { %5637 = vmatprep.subr.bf16.mxu1 %v7929_v49  ;;  %v8004_v48 = vld [vmem:[%s11344_s0 + $0x28c] ss:$52 sps:$4 sm:$0xff]  }
 0x166   :  { %v9820_v57 = vpop.eup %8606  ;;  %v8007_v49 = vld [vmem:[%s11344_s0 + $0x90c] ss:$52 sps:$4 sm:$0xff]  }
 0x167   :  { %v9822_v58 = vpop.eup %8608  ;;  %5597 = vmatpush1.bf16.msra.mxu0 %v7924_v50 }
 0x168   :  { %5638 = vmatpush1.bf16.msra.mxu1 %v7927_v52  ;;  %v6353_v59 = vcombine.low %v9820_v57, %v9822_v58  ;;  %5598 = vmatprep.subr.bf16.mxu0 %v7932_v53  ;;  %v8002_v53 = vld [vmem:[%s11344_s0 + $0x288] ss:$52 sps:$4 sm:$0xff]  }
 0x169   :  { %5639 = vmatprep.subr.bf16.mxu1 %v7935_v54  ;;  %v8005_v54 = vld [vmem:[%s11344_s0 + $0x908] ss:$52 sps:$4 sm:$0xff]  }
 0x16a   :  { %v8136_v57 = vld [vmem:[%s11344_s0 + $0x11fc] ss:$52 sps:$4 sm:$0xff]  }
 0x16b   :  { %5599 = vmatpush1.bf16.msra.mxu0 %v7930_v55  ;;  %v8139_v58 = vld [vmem:[%s11344_s0 + $0x187c] ss:$52 sps:$4 sm:$0xff]  }
 0x16c   :  { %5640 = vmatpush1.bf16.msra.mxu1 %v7933_v56  ;;  %5600 = vmatprep.subr.bf16.mxu0 %v7938_v60 }
 0x16d   :  { %5641 = vmatprep.subr.bf16.mxu1 %v7941_v61 }
 0x16f   :  { %5601 = vmatpush1.bf16.msra.mxu0 %v7936_v62 }
 0x170   :  { %5642 = vmatpush1.bf16.msra.mxu1 %v7939_v63  ;;  %5602 = vmatprep.subr.bf16.mxu0 %v7944_v0 }
 0x171   :  { %5643 = vmatprep.subr.bf16.mxu1 %v7947_v1 }
 0x173   :  { %5603 = vmatpush1.bf16.msra.mxu0 %v7942_v3  ;;  %v8010_v3 = vld [vmem:[%s11344_s0 + $0x2f4] ss:$52 sps:$4 sm:$0xff]  }
 0x174   :  { %5644 = vmatpush1.bf16.msra.mxu1 %v7945_v4  ;;  %5604 = vmatprep.subr.bf16.mxu0 %v7950_v8  ;;  %v8013_v4 = vld [vmem:[%s11344_s0 + $0x974] ss:$52 sps:$4 sm:$0xff]   ;;  %v8008_v8 = vld [vmem:[%s11344_s0 + $0x2f0] ss:$52 sps:$4 sm:$0xff]  }
 0x175   :  { %5645 = vmatprep.subr.bf16.mxu1 %v7953_v9  ;;  %v8011_v9 = vld [vmem:[%s11344_s0 + $0x970] ss:$52 sps:$4 sm:$0xff]  }
 0x177   :  { %5605 = vmatpush1.bf16.msra.mxu0 %v7948_v10  ;;  %v8016_v10 = vld [vmem:[%s11344_s0 + $0x35c] ss:$52 sps:$4 sm:$0xff]  }
 0x178   :  { %5646 = vmatpush1.bf16.msra.mxu1 %v7951_v11  ;;  %5606 = vmatprep.subr.bf16.mxu0 %v7956_v12  ;;  %v8019_v11 = vld [vmem:[%s11344_s0 + $0x9dc] ss:$52 sps:$4 sm:$0xff]   ;;  %v8014_v12 = vld [vmem:[%s11344_s0 + $0x358] ss:$52 sps:$4 sm:$0xff]  }
 0x179   :  { %5647 = vmatprep.subr.bf16.mxu1 %v7959_v13  ;;  %v8017_v13 = vld [vmem:[%s11344_s0 + $0x9d8] ss:$52 sps:$4 sm:$0xff]  }
 0x17b   :  { %5607 = vmatpush1.bf16.msra.mxu0 %v7954_v14  ;;  %v8022_v14 = vld [vmem:[%s11344_s0 + $0x3c4] ss:$52 sps:$4 sm:$0xff]  }
 0x17c   :  { %5648 = vmatpush1.bf16.msra.mxu1 %v7957_v15  ;;  %5608 = vmatprep.subr.bf16.mxu0 %v7962_v18  ;;  %v8025_v15 = vld [vmem:[%s11344_s0 + $0xa44] ss:$52 sps:$4 sm:$0xff]   ;;  %v8020_v18 = vld [vmem:[%s11344_s0 + $0x3c0] ss:$52 sps:$4 sm:$0xff]  }
 0x17d   :  { %5649 = vmatprep.subr.bf16.mxu1 %v7965_v19  ;;  %v8023_v19 = vld [vmem:[%s11344_s0 + $0xa40] ss:$52 sps:$4 sm:$0xff]  }
 0x17f   :  { %5609 = vmatpush1.bf16.msra.mxu0 %v7960_v20  ;;  %v8028_v20 = vld [vmem:[%s11344_s0 + $0x42c] ss:$52 sps:$4 sm:$0xff]  }
 0x180   :  { %5650 = vmatpush1.bf16.msra.mxu1 %v7963_v21  ;;  %5660 = vmatprep.subr.bf16.mxu0 %v7968_v22  ;;  %v8031_v21 = vld [vmem:[%s11344_s0 + $0xaac] ss:$52 sps:$4 sm:$0xff]   ;;  %v8026_v22 = vld [vmem:[%s11344_s0 + $0x428] ss:$52 sps:$4 sm:$0xff]  }
 0x181   :  { %5701 = vmatprep.subr.bf16.mxu1 %v7971_v23  ;;  %v8029_v23 = vld [vmem:[%s11344_s0 + $0xaa8] ss:$52 sps:$4 sm:$0xff]  }
 0x182   :  { %5611 = vmatmul.mubr.bf16.vlgmr.msra.gmra.mrb[20].mxu0 %v9083_v16 }
 0x183   :  { %5652 = vmatmul.mubr.bf16.vlgmr.msra.gmra.mrb[20].mxu1 %v9087_v17  ;;  %5661 = vmatpush1.bf16.msra.mxu0 %v7966_v24  ;;  %v8034_v24 = vld [vmem:[%s11344_s0 + $0x494] ss:$52 sps:$4 sm:$0xff]  }
 0x184   :  { %5702 = vmatpush1.bf16.msra.mxu1 %v7969_v25  ;;  %5662 = vmatprep.subr.bf16.mxu0 %v7974_v26  ;;  %v8037_v25 = vld [vmem:[%s11344_s0 + $0xb14] ss:$52 sps:$4 sm:$0xff]   ;;  %v8032_v26 = vld [vmem:[%s11344_s0 + $0x490] ss:$52 sps:$4 sm:$0xff]  }
 0x185   :  { %5703 = vmatprep.subr.bf16.mxu1 %v7977_v27  ;;  %5692 = vmatprep.mubr.bf16.mxu0 %v8794_v47  ;;  %v8035_v27 = vld [vmem:[%s11344_s0 + $0xb10] ss:$52 sps:$4 sm:$0xff]  }
 0x186   :  { %5733 = vmatprep.mubr.bf16.mxu1 %v8805_v51 }
 0x187   :  { %5663 = vmatpush1.bf16.msra.mxu0 %v7972_v28  ;;  %v8040_v28 = vld [vmem:[%s11344_s0 + $0x4fc] ss:$52 sps:$4 sm:$0xff]  }
 0x188   :  { %5704 = vmatpush1.bf16.msra.mxu1 %v7975_v30  ;;  %5664 = vmatprep.subr.bf16.mxu0 %v7980_v31  ;;  %v8043_v30 = vld [vmem:[%s11344_s0 + $0xb7c] ss:$52 sps:$4 sm:$0xff]   ;;  %v8038_v31 = vld [vmem:[%s11344_s0 + $0x4f8] ss:$52 sps:$4 sm:$0xff]  }
 0x189   :  { %5705 = vmatprep.subr.bf16.mxu1 %v7983_v32  ;;  %v8041_v32 = vld [vmem:[%s11344_s0 + $0xb78] ss:$52 sps:$4 sm:$0xff]  }
 0x18b   :  { %5665 = vmatpush1.bf16.msra.mxu0 %v7978_v33  ;;  %v8046_v33 = vld [vmem:[%s11344_s0 + $0x564] ss:$52 sps:$4 sm:$0xff]  }
 0x18c   :  { %5706 = vmatpush1.bf16.msra.mxu1 %v7981_v34  ;;  %5666 = vmatprep.subr.bf16.mxu0 %v7986_v35  ;;  %v8049_v34 = vld [vmem:[%s11344_s0 + $0xbe4] ss:$52 sps:$4 sm:$0xff]   ;;  %v8044_v35 = vld [vmem:[%s11344_s0 + $0x560] ss:$52 sps:$4 sm:$0xff]  }
 0x18d   :  { %5707 = vmatprep.subr.bf16.mxu1 %v7989_v2  ;;  %v8047_v2 = vld [vmem:[%s11344_s0 + $0xbe0] ss:$52 sps:$4 sm:$0xff]  }
 0x18f   :  { %5667 = vmatpush1.bf16.msra.mxu0 %v7984_v38  ;;  %v8052_v38 = vld [vmem:[%s11344_s0 + $0x5cc] ss:$52 sps:$4 sm:$0xff]  }
 0x190   :  { %5708 = vmatpush1.bf16.msra.mxu1 %v7987_v39  ;;  %5668 = vmatprep.subr.bf16.mxu0 %v7992_v5  ;;  %v8055_v39 = vld [vmem:[%s11344_s0 + $0xc4c] ss:$52 sps:$4 sm:$0xff]   ;;  %v8050_v5 = vld [vmem:[%s11344_s0 + $0x5c8] ss:$52 sps:$4 sm:$0xff]  }
 0x191   :  { %5709 = vmatprep.subr.bf16.mxu1 %v7995_v40  ;;  %v8053_v40 = vld [vmem:[%s11344_s0 + $0xc48] ss:$52 sps:$4 sm:$0xff]  }
 0x193   :  { %5669 = vmatpush1.bf16.msra.mxu0 %v7990_v41  ;;  %v8058_v41 = vld [vmem:[%s11344_s0 + $0x634] ss:$52 sps:$4 sm:$0xff]  }
 0x194   :  { %5710 = vmatpush1.bf16.msra.mxu1 %v7993_v42  ;;  %5670 = vmatprep.subr.bf16.mxu0 %v7998_v43  ;;  %v8061_v42 = vld [vmem:[%s11344_s0 + $0xcb4] ss:$52 sps:$4 sm:$0xff]   ;;  %v8056_v43 = vld [vmem:[%s11344_s0 + $0x630] ss:$52 sps:$4 sm:$0xff]  }
 0x195   :  { %5711 = vmatprep.subr.bf16.mxu1 %v8001_v44  ;;  %v5366_v50 = vpop.f32.mrb[8].mxu0  ;;  %v8059_v44 = vld [vmem:[%s11344_s0 + $0xcb0] ss:$52 sps:$4 sm:$0xff]  }
 0x196   :  { %v5407_v52 = vpop.f32.mrb[8].mxu1  ;;  %v5368_v56 = vpop.f32.mrb[9].mxu0 }
 0x197   :  { %v9974_v55 = vadd.f32 %v5407_v52, %v5366_v50  ;;  %v5409_v60 = vpop.f32.mrb[9].mxu1  ;;  %v5370_v62 = vpop.f32.mrb[10].mxu0  ;;  %5671 = vmatpush1.bf16.msra.mxu0 %v7996_v45  ;;  %v8064_v45 = vld [vmem:[%s11344_s0 + $0xd1c] ss:$52 sps:$4 sm:$0xff]   ;;  %v6360_v50 = vlaneseq  ;;  %v8070_v52 = vld [vmem:[%s11344_s0 + $0xd84] ss:$52 sps:$4 sm:$0xff]  }
 0x198   :  { %v9976_v61 = vadd.f32 %v5409_v60, %v5368_v56  ;;  %v5411_v63 = vpop.f32.mrb[10].mxu1  ;;  %5712 = vmatpush1.bf16.msra.mxu1 %v7999_v46  ;;  %v5371_v0 = vpop.f32.mrb[11].mxu0  ;;  %5672 = vmatprep.subr.bf16.mxu0 %v8004_v48  ;;  %v8067_v46 = vld [vmem:[%s11344_s0 + $0x139c] ss:$52 sps:$4 sm:$0xff]   ;;  %v8062_v48 = vld [vmem:[%s11344_s0 + $0xd18] ss:$52 sps:$4 sm:$0xff]  }
 0x199   :  { %v5412_v1 = vpop.f32.mrb[11].mxu1  ;;  %5713 = vmatprep.subr.bf16.mxu1 %v8007_v49  ;;  %v8065_v49 = vld [vmem:[%s11344_s0 + $0x1398] ss:$52 sps:$4 sm:$0xff]   ;;  %v8071_v56 = vld [vmem:[%s11344_s0 + $0x1400] ss:$52 sps:$4 sm:$0xff]   ;;  %v10113_v60 = vshrl.u32 %v6360_v50, 7 }
 0x19a   :  { %v8076_v62 = vld [vmem:[%s11344_s0 + $0xdec] ss:$52 sps:$4 sm:$0xff]   ;;  %v8074_v0 = vld [vmem:[%s11344_s0 + $0xde8] ss:$52 sps:$4 sm:$0xff]   ;;  %vm6446_vm0 = vcmp.lt.s32.totalorder %v6360_v50, 640 }
 0x19b   :  { %5673 = vmatpush1.bf16.msra.mxu0 %v8002_v53  ;;  %v8073_v53 = vld [vmem:[%s11344_s0 + $0x1404] ss:$52 sps:$4 sm:$0xff]   ;;  %v8079_v63 = vld [vmem:[%s11344_s0 + $0x146c] ss:$52 sps:$4 sm:$0xff]   ;;  %v8077_v1 = vld [vmem:[%s11344_s0 + $0x1468] ss:$52 sps:$4 sm:$0xff]  }
 0x19c   :  { %5714 = vmatpush1.bf16.msra.mxu1 %v8005_v54  ;;  %5674 = vmatprep.subr.bf16.mxu0 %v8010_v3  ;;  %v8068_v54 = vld [vmem:[%s11344_s0 + $0xd80] ss:$52 sps:$4 sm:$0xff]  }
 0x19d   :  { %5715 = vmatprep.subr.bf16.mxu1 %v8013_v4  ;;  %v8082_v3 = vld [vmem:[%s11344_s0 + $0xe54] ss:$52 sps:$4 sm:$0xff]  }
 0x19e   :  { %v8085_v4 = vld [vmem:[%s11344_s0 + $0x14d4] ss:$52 sps:$4 sm:$0xff]  }
 0x19f   :  { %5675 = vmatpush1.bf16.msra.mxu0 %v8008_v8  ;;  %v8080_v8 = vld [vmem:[%s11344_s0 + $0xe50] ss:$52 sps:$4 sm:$0xff]  }
 0x1a0   :  { %5716 = vmatpush1.bf16.msra.mxu1 %v8011_v9  ;;  %5676 = vmatprep.subr.bf16.mxu0 %v8016_v10  ;;  %v8083_v9 = vld [vmem:[%s11344_s0 + $0x14d0] ss:$52 sps:$4 sm:$0xff]  }
 0x1a1   :  { %5717 = vmatprep.subr.bf16.mxu1 %v8019_v11  ;;  %v8088_v10 = vld [vmem:[%s11344_s0 + $0xebc] ss:$52 sps:$4 sm:$0xff]  }
 0x1a2   :  { %v8091_v11 = vld [vmem:[%s11344_s0 + $0x153c] ss:$52 sps:$4 sm:$0xff]  }
 0x1a3   :  { %5677 = vmatpush1.bf16.msra.mxu0 %v8014_v12  ;;  %v8086_v12 = vld [vmem:[%s11344_s0 + $0xeb8] ss:$52 sps:$4 sm:$0xff]  }
 0x1a4   :  { %5718 = vmatpush1.bf16.msra.mxu1 %v8017_v13  ;;  %5678 = vmatprep.subr.bf16.mxu0 %v8022_v14  ;;  %v8089_v13 = vld [vmem:[%s11344_s0 + $0x1538] ss:$52 sps:$4 sm:$0xff]  }
 0x1a5   :  { %5719 = vmatprep.subr.bf16.mxu1 %v8025_v15  ;;  %v8094_v14 = vld [vmem:[%s11344_s0 + $0xf24] ss:$52 sps:$4 sm:$0xff]  }
 0x1a6   :  { %v8097_v15 = vld [vmem:[%s11344_s0 + $0x15a4] ss:$52 sps:$4 sm:$0xff]  }
 0x1a7   :  { %5679 = vmatpush1.bf16.msra.mxu0 %v8020_v18  ;;  %v8092_v18 = vld [vmem:[%s11344_s0 + $0xf20] ss:$52 sps:$4 sm:$0xff]  }
 0x1a8   :  { %5720 = vmatpush1.bf16.msra.mxu1 %v8023_v19  ;;  %5680 = vmatprep.subr.bf16.mxu0 %v8028_v20  ;;  %v8095_v19 = vld [vmem:[%s11344_s0 + $0x15a0] ss:$52 sps:$4 sm:$0xff]  }
 0x1a9   :  { %5721 = vmatprep.subr.bf16.mxu1 %v8031_v21  ;;  %v8100_v20 = vld [vmem:[%s11344_s0 + $0xf8c] ss:$52 sps:$4 sm:$0xff]  }
 0x1aa   :  { %v8103_v21 = vld [vmem:[%s11344_s0 + $0x160c] ss:$52 sps:$4 sm:$0xff]  }
 0x1ab   :  { %5681 = vmatpush1.bf16.msra.mxu0 %v8026_v22 }
 0x1ac   :  { %5722 = vmatpush1.bf16.msra.mxu1 %v8029_v23  ;;  %5682 = vmatprep.subr.bf16.mxu0 %v8034_v24  ;;  %v8098_v24 = vld [vmem:[%s11344_s0 + $0xf88] ss:$52 sps:$4 sm:$0xff]  }
 0x1ad   :  { %5723 = vmatprep.subr.bf16.mxu1 %v8037_v25  ;;  %v8101_v25 = vld [vmem:[%s11344_s0 + $0x1608] ss:$52 sps:$4 sm:$0xff]  }
 0x1af   :  { %5683 = vmatpush1.bf16.msra.mxu0 %v8032_v26 }
 0x1b0   :  { %5724 = vmatpush1.bf16.msra.mxu1 %v8035_v27  ;;  %5684 = vmatprep.subr.bf16.mxu0 %v8040_v28 }
 0x1b1   :  { %5725 = vmatprep.subr.bf16.mxu1 %v8043_v30 }
 0x1b3   :  { %5685 = vmatpush1.bf16.msra.mxu0 %v8038_v31 }
 0x1b4   :  { %5726 = vmatpush1.bf16.msra.mxu1 %v8041_v32  ;;  %5686 = vmatprep.subr.bf16.mxu0 %v8046_v33 }
 0x1b5   :  { %5727 = vmatprep.subr.bf16.mxu1 %v8049_v34 }
 0x1b7   :  { %5687 = vmatpush1.bf16.msra.mxu0 %v8044_v35 }
 0x1b8   :  { %5728 = vmatpush1.bf16.msra.mxu1 %v8047_v2  ;;  %5688 = vmatprep.subr.bf16.mxu0 %v8052_v38  ;;  %v8106_v2 = vld [vmem:[%s11344_s0 + $0xff4] ss:$52 sps:$4 sm:$0xff]  }
 0x1b9   :  { %5729 = vmatprep.subr.bf16.mxu1 %v8055_v39  ;;  %v8107_v39 = vld [vmem:[%s11344_s0 + $0x1670] ss:$52 sps:$4 sm:$0xff]  }
 0x1bb   :  { %5689 = vmatpush1.bf16.msra.mxu0 %v8050_v5 }
 0x1bc   :  { %5730 = vmatpush1.bf16.msra.mxu1 %v8053_v40  ;;  %5690 = vmatprep.subr.bf16.mxu0 %v8058_v41  ;;  %v8112_v41 = vld [vmem:[%s11344_s0 + $0x105c] ss:$52 sps:$4 sm:$0xff]  }
 0x1bd   :  { %5731 = vmatprep.subr.bf16.mxu1 %v8061_v42  ;;  %v8115_v42 = vld [vmem:[%s11344_s0 + $0x16dc] ss:$52 sps:$4 sm:$0xff]  }
 0x1bf   :  { %5691 = vmatpush1.bf16.msra.mxu0 %v8056_v43  ;;  %v8110_v43 = vld [vmem:[%s11344_s0 + $0x1058] ss:$52 sps:$4 sm:$0xff]  }
 0x1c0   :  { %5732 = vmatpush1.bf16.msra.mxu1 %v8059_v44  ;;  %5742 = vmatprep.subr.bf16.mxu0 %v8064_v45  ;;  %v8113_v44 = vld [vmem:[%s11344_s0 + $0x16d8] ss:$52 sps:$4 sm:$0xff]   ;;  %v8632_v45 = vmov 1966171168  }
 0x1c1   :  { %5783 = vmatprep.subr.bf16.mxu1 %v8067_v46  ;;  %v6358_v46 = vunpack.c.l.s4 %v8632_v45  ;;  %v8184_v45 = vld [vmem:[%s11344_s0 + $0x1c4] ss:$52 sps:$4 sm:$0xff]  }
 0x1c2   :  { %5693 = vmatmul.mubr.bf16.vlgmr.msra.gmra.mrb[24].mxu0 %v8863_v6 }
 0x1c3   :  { %5734 = vmatmul.mubr.bf16.vlgmr.msra.gmra.mrb[24].mxu1 %v8865_v7  ;;  %5743 = vmatpush1.bf16.msra.mxu0 %v8062_v48  ;;  %v8118_v48 = vld [vmem:[%s11344_s0 + $0x10c4] ss:$52 sps:$4 sm:$0xff]  }
 0x1c4   :  { %5784 = vmatpush1.bf16.msra.mxu1 %v8065_v49  ;;  %5744 = vmatprep.subr.bf16.mxu0 %v8070_v52  ;;  %v8121_v49 = vld [vmem:[%s11344_s0 + $0x1744] ss:$52 sps:$4 sm:$0xff]   ;;  %v8116_v52 = vld [vmem:[%s11344_s0 + $0x10c0] ss:$52 sps:$4 sm:$0xff]  }
 0x1c5   :  { %5785 = vmatprep.subr.bf16.mxu1 %v8073_v53  ;;  %5774 = vmatprep.mubr.bf16.mxu0 %v8959_v36  ;;  %v8119_v53 = vld [vmem:[%s11344_s0 + $0x1740] ss:$52 sps:$4 sm:$0xff]  }
 0x1c6   :  { %5815 = vmatprep.mubr.bf16.mxu1 %v8963_v37 }
 0x1c7   :  { %5745 = vmatpush1.bf16.msra.mxu0 %v8068_v54  ;;  %v6359_v54 = vunpack.c.0.s8 %v6358_v46  ;;  %v8187_v46 = vld [vmem:[%s11344_s0 + $0x844] ss:$52 sps:$4 sm:$0xff]  }
 0x1c8   :  { %5786 = vmatpush1.bf16.msra.mxu1 %v8071_v56  ;;  %5746 = vmatprep.subr.bf16.mxu0 %v8076_v62  ;;  %v8124_v56 = vld [vmem:[%s11344_s0 + $0x112c] ss:$52 sps:$4 sm:$0xff]  }
 0x1c9   :  { %5787 = vmatprep.subr.bf16.mxu1 %v8079_v63  ;;  %v8127_v62 = vld [vmem:[%s11344_s0 + $0x17ac] ss:$52 sps:$4 sm:$0xff]   ;;  %v8122_v63 = vld [vmem:[%s11344_s0 + $0x1128] ss:$52 sps:$4 sm:$0xff]  }
 0x1cb   :  { %5747 = vmatpush1.bf16.msra.mxu0 %v8074_v0  ;;  %v8125_v0 = vld [vmem:[%s11344_s0 + $0x17a8] ss:$52 sps:$4 sm:$0xff]  }
 0x1cc   :  { %5788 = vmatpush1.bf16.msra.mxu1 %v8077_v1  ;;  %5748 = vmatprep.subr.bf16.mxu0 %v8082_v3  ;;  %v10230_v3 = vsub.s32 %v6359_v54, %v10113_v60  ;;  %v8188_v54 = vld [vmem:[%s11344_s0 + $0x228] ss:$52 sps:$4 sm:$0xff]  }
 0x1cd   :  { %5789 = vmatprep.subr.bf16.mxu1 %v8085_v4 }
 0x1ce   :  { %v10242_v60 = vrot.slane %v6353_v59, %v10230_v3  ;;  %v8134_v59 = vld [vmem:[%s11344_s0 + $0x11f8] ss:$52 sps:$4 sm:$0xff]  }
 0x1cf   :  { %5749 = vmatpush1.bf16.msra.mxu0 %v8080_v8 }
 0x1d0   :  { %5790 = vmatpush1.bf16.msra.mxu1 %v8083_v9  ;;  %5750 = vmatprep.subr.bf16.mxu0 %v8088_v10  ;;  %v8130_v9 = vld [vmem:[%s11344_s0 + $0x1194] ss:$52 sps:$4 sm:$0xff]  }
 0x1d1   :  { %5791 = vmatprep.subr.bf16.mxu1 %v8091_v11  ;;  %v8133_v10 = vld [vmem:[%s11344_s0 + $0x1814] ss:$52 sps:$4 sm:$0xff]  }
 0x1d3   :  { %5751 = vmatpush1.bf16.msra.mxu0 %v8086_v12  ;;  %v8128_v12 = vld [vmem:[%s11344_s0 + $0x1190] ss:$52 sps:$4 sm:$0xff]  }
 0x1d4   :  { %5792 = vmatpush1.bf16.msra.mxu1 %v8089_v13  ;;  %5752 = vmatprep.subr.bf16.mxu0 %v8094_v14  ;;  %v8131_v13 = vld [vmem:[%s11344_s0 + $0x1810] ss:$52 sps:$4 sm:$0xff]  }
 0x1d5   :  { %5793 = vmatprep.subr.bf16.mxu1 %v8097_v15  ;;  %v5448_v22 = vpop.f32.mrb[12].mxu0  ;;  %v8137_v15 = vld [vmem:[%s11344_s0 + $0x1878] ss:$52 sps:$4 sm:$0xff]  }
 0x1d6   :  { %v5489_v23 = vpop.f32.mrb[12].mxu1  ;;  %v5449_v26 = vadd.f32 %v5448_v22, %v9974_v55  ;;  %v5450_v27 = vpop.f32.mrb[13].mxu0  ;;  %v8109_v55 = vld [vmem:[%s11344_s0 + $0x1674] ss:$52 sps:$4 sm:$0xff]   ;;  %v8148_v22 = vld [vmem:[%s11344_s0 + $0x12cc] ss:$52 sps:$4 sm:$0xff]  }
 0x1d7   :  { %v5491_v28 = vpop.f32.mrb[13].mxu1  ;;  %v5451_v30 = vadd.f32 %v5450_v27, %v9976_v61  ;;  %v5452_v31 = vpop.f32.mrb[14].mxu0  ;;  %5753 = vmatpush1.bf16.msra.mxu0 %v8092_v18  ;;  %v8104_v61 = vld [vmem:[%s11344_s0 + $0xff0] ss:$52 sps:$4 sm:$0xff]   ;;  %v8157_v27 = vld [vmem:[%s11344_s0 + $0x19b4] ss:$52 sps:$4 sm:$0xff]  }
 0x1d8   :  { %v5493_v32 = vpop.f32.mrb[14].mxu1  ;;  %5794 = vmatpush1.bf16.msra.mxu1 %v8095_v19  ;;  %v5490_v33 = vadd.f32 %v5489_v23, %v5449_v26  ;;  %v5453_v34 = vpop.f32.mrb[15].mxu0  ;;  %5754 = vmatprep.subr.bf16.mxu0 %v8100_v20  ;;  %v8142_v18 = vld [vmem:[%s11344_s0 + $0x1264] ss:$52 sps:$4 sm:$0xff]   ;;  %v8140_v20 = vld [vmem:[%s11344_s0 + $0x1260] ss:$52 sps:$4 sm:$0xff]  }
 0x1d9   :  { %v5494_v35 = vpop.f32.mrb[15].mxu1  ;;  %5795 = vmatprep.subr.bf16.mxu1 %v8103_v21  ;;  %v5492_v38 = vadd.f32 %v5491_v28, %v5451_v30  ;;  %v8145_v19 = vld [vmem:[%s11344_s0 + $0x18e4] ss:$52 sps:$4 sm:$0xff]   ;;  %v8143_v21 = vld [vmem:[%s11344_s0 + $0x18e0] ss:$52 sps:$4 sm:$0xff]  }
 0x1da   :  { %v6316_v5 = vadd.f32 %v9767_v29, %v5490_v33  ;;  %v8151_v23 = vld [vmem:[%s11344_s0 + $0x194c] ss:$52 sps:$4 sm:$0xff]   ;;  %v8154_v26 = vld [vmem:[%s11344_s0 + $0x1334] ss:$52 sps:$4 sm:$0xff]   ;;  %v8152_v28 = vld [vmem:[%s11344_s0 + $0x1330] ss:$52 sps:$4 sm:$0xff]  }
 0x1db   :  { %v6317_v40 = vadd.f32 %v9767_v29, %v5492_v38  ;;  %5755 = vmatpush1.bf16.msra.mxu0 %v8098_v24  ;;  %v8146_v24 = vld [vmem:[%s11344_s0 + $0x12c8] ss:$52 sps:$4 sm:$0xff]   ;;  %v8155_v30 = vld [vmem:[%s11344_s0 + $0x19b0] ss:$52 sps:$4 sm:$0xff]   ;;  %v8158_v33 = vld [vmem:[%s11344_s0 + $0x20] ss:$52 sps:$4 sm:$0xff]  }
 0x1dc   :  { %5796 = vmatpush1.bf16.msra.mxu1 %v8101_v25  ;;  %8610 = vtanh.f32 %v6316_v5  ;;  %5756 = vmatprep.subr.bf16.mxu0 %v8106_v2  ;;  %v8149_v25 = vld [vmem:[%s11344_s0 + $0x1948] ss:$52 sps:$4 sm:$0xff]   ;;  %v8160_v31 = vld [vmem:[%s11344_s0 + $0x24] ss:$52 sps:$4 sm:$0xff]   ;;  %v8161_v34 = vld [vmem:[%s11344_s0 + $0x6a0] ss:$52 sps:$4 sm:$0xff]  }
 0x1dd   :  { %5797 = vmatprep.subr.bf16.mxu1 %v8109_v55  ;;  %8612 = vtanh.f32 %v6317_v40  ;;  %v8163_v32 = vld [vmem:[%s11344_s0 + $0x6a4] ss:$52 sps:$4 sm:$0xff]   ;;  %v8166_v35 = vld [vmem:[%s11344_s0 + $0x8c] ss:$52 sps:$4 sm:$0xff]   ;;  %v8164_v55 = vld [vmem:[%s11344_s0 + $0x88] ss:$52 sps:$4 sm:$0xff]  }
 0x1de   :  { %v8169_v2 = vld [vmem:[%s11344_s0 + $0x70c] ss:$52 sps:$4 sm:$0xff]   ;;  %v8167_v38 = vld [vmem:[%s11344_s0 + $0x708] ss:$52 sps:$4 sm:$0xff]   ;;  %v8170_v5 = vld [vmem:[%s11344_s0 + $0xf0] ss:$52 sps:$4 sm:$0xff]  }
 0x1df   :  { %5757 = vmatpush1.bf16.msra.mxu0 %v8104_v61  ;;  %v8172_v61 = vld [vmem:[%s11344_s0 + $0xf4] ss:$52 sps:$4 sm:$0xff]   ;;  %v8173_v40 = vld [vmem:[%s11344_s0 + $0x770] ss:$52 sps:$4 sm:$0xff]  }
 0x1e0   :  { %5798 = vmatpush1.bf16.msra.mxu1 %v8107_v39  ;;  %5758 = vmatprep.subr.bf16.mxu0 %v8112_v41  ;;  %v8175_v39 = vld [vmem:[%s11344_s0 + $0x774] ss:$52 sps:$4 sm:$0xff]   ;;  %v8178_v41 = vld [vmem:[%s11344_s0 + $0x15c] ss:$52 sps:$4 sm:$0xff]  }
 0x1e1   :  { %5799 = vmatprep.subr.bf16.mxu1 %v8115_v42  ;;  %v8181_v42 = vld [vmem:[%s11344_s0 + $0x7dc] ss:$52 sps:$4 sm:$0xff]  }
 0x1e3   :  { %5759 = vmatpush1.bf16.msra.mxu0 %v8110_v43  ;;  %v8176_v43 = vld [vmem:[%s11344_s0 + $0x158] ss:$52 sps:$4 sm:$0xff]  }
 0x1e4   :  { %5800 = vmatpush1.bf16.msra.mxu1 %v8113_v44  ;;  %5760 = vmatprep.subr.bf16.mxu0 %v8118_v48  ;;  %v8179_v44 = vld [vmem:[%s11344_s0 + $0x7d8] ss:$52 sps:$4 sm:$0xff]   ;;  %v8182_v48 = vld [vmem:[%s11344_s0 + $0x1c0] ss:$52 sps:$4 sm:$0xff]  }
 0x1e5   :  { %5801 = vmatprep.subr.bf16.mxu1 %v8121_v49  ;;  %v8185_v49 = vld [vmem:[%s11344_s0 + $0x840] ss:$52 sps:$4 sm:$0xff]  }
 0x1e6   :  { %v8611_v1 = vpop.eup %8610 }
 0x1e7   :  { %v8613_v4 = vpop.eup %8612  ;;  %5761 = vmatpush1.bf16.msra.mxu0 %v8116_v52  ;;  %v8190_v52 = vld [vmem:[%s11344_s0 + $0x22c] ss:$52 sps:$4 sm:$0xff]  }
 0x1e8   :  { %5802 = vmatpush1.bf16.msra.mxu1 %v8119_v53  ;;  %v6354_v8 = vcombine.low %v8611_v1, %v8613_v4  ;;  %5762 = vmatprep.subr.bf16.mxu0 %v8124_v56  ;;  %v8193_v53 = vld [vmem:[%s11344_s0 + $0x8ac] ss:$52 sps:$4 sm:$0xff]   ;;  %v8191_v56 = vld [vmem:[%s11344_s0 + $0x8a8] ss:$52 sps:$4 sm:$0xff]  }
 0x1e9   :  { %5803 = vmatprep.subr.bf16.mxu1 %v8127_v62  ;;  %v8196_v62 = vld [vmem:[%s11344_s0 + $0x294] ss:$52 sps:$4 sm:$0xff]  }
 0x1ea   :  { %v10245_v11 = vrot.slane %v6354_v8, %v10230_v3 }
 0x1eb   :  { %5763 = vmatpush1.bf16.msra.mxu0 %v8122_v63  ;;  %v8199_v63 = vld [vmem:[%s11344_s0 + $0x914] ss:$52 sps:$4 sm:$0xff]  }
 0x1ec   :  { %5804 = vmatpush1.bf16.msra.mxu1 %v8125_v0  ;;  %v6385_v14 = vcombine.low %v10242_v60, %v10245_v11  ;;  %5764 = vmatprep.subr.bf16.mxu0 %v8130_v9  ;;  %v8526_v60 = vld [vmem:[%s11344_s0 + $0x1274] ss:$52 sps:$4 sm:$0xff]  }
 0x1ed   :  { %5805 = vmatprep.subr.bf16.mxu1 %v8133_v10  ;;  %v8529_v11 = vld [vmem:[%s11344_s0 + $0x18f4] ss:$52 sps:$4 sm:$0xff]  }
 0x1ef   :  { %5765 = vmatpush1.bf16.msra.mxu0 %v8128_v12 }
 0x1f0   :  { %5806 = vmatpush1.bf16.msra.mxu1 %v8131_v13  ;;  %5766 = vmatprep.subr.bf16.mxu0 %v8136_v57  ;;  %v8194_v57 = vld [vmem:[%s11344_s0 + $0x290] ss:$52 sps:$4 sm:$0xff]  }
 0x1f1   :  { %5807 = vmatprep.subr.bf16.mxu1 %v8139_v58  ;;  %v8197_v58 = vld [vmem:[%s11344_s0 + $0x910] ss:$52 sps:$4 sm:$0xff]  }
 0x1f3   :  { %5767 = vmatpush1.bf16.msra.mxu0 %v8134_v59 }
 0x1f4   :  { %5808 = vmatpush1.bf16.msra.mxu1 %v8137_v15  ;;  %5768 = vmatprep.subr.bf16.mxu0 %v8142_v18  ;;  %v8202_v18 = vld [vmem:[%s11344_s0 + $0x2fc] ss:$52 sps:$4 sm:$0xff]  }
 0x1f5   :  { %5809 = vmatprep.subr.bf16.mxu1 %v8145_v19  ;;  %v8205_v19 = vld [vmem:[%s11344_s0 + $0x97c] ss:$52 sps:$4 sm:$0xff]  }
 0x1f7   :  { %5769 = vmatpush1.bf16.msra.mxu0 %v8140_v20  ;;  %v8200_v20 = vld [vmem:[%s11344_s0 + $0x2f8] ss:$52 sps:$4 sm:$0xff]  }
 0x1f8   :  { %5810 = vmatpush1.bf16.msra.mxu1 %v8143_v21  ;;  %5770 = vmatprep.subr.bf16.mxu0 %v8148_v22  ;;  %v8203_v21 = vld [vmem:[%s11344_s0 + $0x978] ss:$52 sps:$4 sm:$0xff]  }
 0x1f9   :  { %5811 = vmatprep.subr.bf16.mxu1 %v8151_v23  ;;  %v8208_v22 = vld [vmem:[%s11344_s0 + $0x364] ss:$52 sps:$4 sm:$0xff]  }
 0x1fa   :  { %v8211_v23 = vld [vmem:[%s11344_s0 + $0x9e4] ss:$52 sps:$4 sm:$0xff]  }
 0x1fb   :  { %5771 = vmatpush1.bf16.msra.mxu0 %v8146_v24  ;;  %v8206_v24 = vld [vmem:[%s11344_s0 + $0x360] ss:$52 sps:$4 sm:$0xff]  }
 0x1fc   :  { %5812 = vmatpush1.bf16.msra.mxu1 %v8149_v25  ;;  %5772 = vmatprep.subr.bf16.mxu0 %v8154_v26  ;;  %v8209_v25 = vld [vmem:[%s11344_s0 + $0x9e0] ss:$52 sps:$4 sm:$0xff]  }
 0x1fd   :  { %5813 = vmatprep.subr.bf16.mxu1 %v8157_v27  ;;  %v8214_v26 = vld [vmem:[%s11344_s0 + $0x3cc] ss:$52 sps:$4 sm:$0xff]  }
 0x1fe   :  { %v8217_v27 = vld [vmem:[%s11344_s0 + $0xa4c] ss:$52 sps:$4 sm:$0xff]  }
 0x1ff   :  { %5773 = vmatpush1.bf16.msra.mxu0 %v8152_v28  ;;  %v8212_v28 = vld [vmem:[%s11344_s0 + $0x3c8] ss:$52 sps:$4 sm:$0xff]  }
 0x200   :  { %5814 = vmatpush1.bf16.msra.mxu1 %v8155_v30  ;;  %5824 = vmatprep.subr.bf16.mxu0 %v8160_v31  ;;  %v8215_v30 = vld [vmem:[%s11344_s0 + $0xa48] ss:$52 sps:$4 sm:$0xff]  }
 0x201   :  { %5865 = vmatprep.subr.bf16.mxu1 %v8163_v32  ;;  %v8220_v31 = vld [vmem:[%s11344_s0 + $0x434] ss:$52 sps:$4 sm:$0xff]  }
 0x202   :  { %5775 = vmatmul.mubr.bf16.vlgmr.msra.gmra.mrb[28].mxu0 %v9083_v16  ;;  %v8223_v32 = vld [vmem:[%s11344_s0 + $0xab4] ss:$52 sps:$4 sm:$0xff]  }
 0x203   :  { %5816 = vmatmul.mubr.bf16.vlgmr.msra.gmra.mrb[28].mxu1 %v9087_v17  ;;  %5825 = vmatpush1.bf16.msra.mxu0 %v8158_v33  ;;  %v8218_v33 = vld [vmem:[%s11344_s0 + $0x430] ss:$52 sps:$4 sm:$0xff]  }
 0x204   :  { %5866 = vmatpush1.bf16.msra.mxu1 %v8161_v34  ;;  %5826 = vmatprep.subr.bf16.mxu0 %v8166_v35  ;;  %v8221_v34 = vld [vmem:[%s11344_s0 + $0xab0] ss:$52 sps:$4 sm:$0xff]  }
 0x205   :  { %5867 = vmatprep.subr.bf16.mxu1 %v8169_v2  ;;  %5856 = vmatprep.mubr.bf16.mxu0 %v8794_v47  ;;  %v8226_v35 = vld [vmem:[%s11344_s0 + $0x49c] ss:$52 sps:$4 sm:$0xff]  }
 0x206   :  { %5897 = vmatprep.mubr.bf16.mxu1 %v8805_v51  ;;  %v8229_v2 = vld [vmem:[%s11344_s0 + $0xb1c] ss:$52 sps:$4 sm:$0xff]  }
 0x207   :  { %5827 = vmatpush1.bf16.msra.mxu0 %v8164_v55  ;;  %v8224_v55 = vld [vmem:[%s11344_s0 + $0x498] ss:$52 sps:$4 sm:$0xff]  }
 0x208   :  { %5868 = vmatpush1.bf16.msra.mxu1 %v8167_v38  ;;  %5828 = vmatprep.subr.bf16.mxu0 %v8172_v61  ;;  %v8227_v38 = vld [vmem:[%s11344_s0 + $0xb18] ss:$52 sps:$4 sm:$0xff]  }
 0x209   :  { %5869 = vmatprep.subr.bf16.mxu1 %v8175_v39  ;;  %v8232_v61 = vld [vmem:[%s11344_s0 + $0x504] ss:$52 sps:$4 sm:$0xff]  }
 0x20a   :  { %v8235_v39 = vld [vmem:[%s11344_s0 + $0xb84] ss:$52 sps:$4 sm:$0xff]  }
 0x20b   :  { %5829 = vmatpush1.bf16.msra.mxu0 %v8170_v5  ;;  %v8230_v5 = vld [vmem:[%s11344_s0 + $0x500] ss:$52 sps:$4 sm:$0xff]  }
 0x20c   :  { %5870 = vmatpush1.bf16.msra.mxu1 %v8173_v40  ;;  %5830 = vmatprep.subr.bf16.mxu0 %v8178_v41  ;;  %v8233_v40 = vld [vmem:[%s11344_s0 + $0xb80] ss:$52 sps:$4 sm:$0xff]  }
 0x20d   :  { %5871 = vmatprep.subr.bf16.mxu1 %v8181_v42  ;;  %v8238_v41 = vld [vmem:[%s11344_s0 + $0x56c] ss:$52 sps:$4 sm:$0xff]  }
 0x20e   :  { %v8241_v42 = vld [vmem:[%s11344_s0 + $0xbec] ss:$52 sps:$4 sm:$0xff]  }
 0x20f   :  { %5831 = vmatpush1.bf16.msra.mxu0 %v8176_v43  ;;  %v8236_v43 = vld [vmem:[%s11344_s0 + $0x568] ss:$52 sps:$4 sm:$0xff]  }
 0x210   :  { %5872 = vmatpush1.bf16.msra.mxu1 %v8179_v44  ;;  %5832 = vmatprep.subr.bf16.mxu0 %v8184_v45  ;;  %v8239_v44 = vld [vmem:[%s11344_s0 + $0xbe8] ss:$52 sps:$4 sm:$0xff]  }
 0x211   :  { %5873 = vmatprep.subr.bf16.mxu1 %v8187_v46  ;;  %v8244_v45 = vld [vmem:[%s11344_s0 + $0x5d4] ss:$52 sps:$4 sm:$0xff]  }
 0x212   :  { %v8247_v46 = vld [vmem:[%s11344_s0 + $0xc54] ss:$52 sps:$4 sm:$0xff]  }
 0x213   :  { %5833 = vmatpush1.bf16.msra.mxu0 %v8182_v48  ;;  %v8242_v48 = vld [vmem:[%s11344_s0 + $0x5d0] ss:$52 sps:$4 sm:$0xff]  }
 0x214   :  { %5874 = vmatpush1.bf16.msra.mxu1 %v8185_v49  ;;  %5834 = vmatprep.subr.bf16.mxu0 %v8190_v52  ;;  %v8245_v49 = vld [vmem:[%s11344_s0 + $0xc50] ss:$52 sps:$4 sm:$0xff]  }
 0x215   :  { %5875 = vmatprep.subr.bf16.mxu1 %v8193_v53  ;;  %v5530_v0 = vpop.f32.mrb[16].mxu0  ;;  %v8250_v52 = vld [vmem:[%s11344_s0 + $0x63c] ss:$52 sps:$4 sm:$0xff]  }
 0x216   :  { %v5571_v1 = vpop.f32.mrb[16].mxu1  ;;  %v5532_v8 = vpop.f32.mrb[17].mxu0  ;;  %v8253_v53 = vld [vmem:[%s11344_s0 + $0xcbc] ss:$52 sps:$4 sm:$0xff]  }
 0x217   :  { %v10385_v4 = vadd.f32 %v5571_v1, %v5530_v0  ;;  %v5573_v9 = vpop.f32.mrb[17].mxu1  ;;  %v5534_v12 = vpop.f32.mrb[18].mxu0  ;;  %5835 = vmatpush1.bf16.msra.mxu0 %v8188_v54  ;;  %v8248_v54 = vld [vmem:[%s11344_s0 + $0x638] ss:$52 sps:$4 sm:$0xff]   ;;  %v8254_v0 = vld [vmem:[%s11344_s0 + $0xd20] ss:$52 sps:$4 sm:$0xff]  }
 0x218   :  { %v10387_v10 = vadd.f32 %v5573_v9, %v5532_v8  ;;  %v5575_v13 = vpop.f32.mrb[18].mxu1  ;;  %5876 = vmatpush1.bf16.msra.mxu1 %v8191_v56  ;;  %v5535_v59 = vpop.f32.mrb[19].mxu0  ;;  %5836 = vmatprep.subr.bf16.mxu0 %v8196_v62  ;;  %v8251_v56 = vld [vmem:[%s11344_s0 + $0xcb8] ss:$52 sps:$4 sm:$0xff]   ;;  %v8257_v1 = vld [vmem:[%s11344_s0 + $0x13a0] ss:$52 sps:$4 sm:$0xff]  }
 0x219   :  { %v5576_v15 = vpop.f32.mrb[19].mxu1  ;;  %5877 = vmatprep.subr.bf16.mxu1 %v8199_v63  ;;  %v8256_v62 = vld [vmem:[%s11344_s0 + $0xd24] ss:$52 sps:$4 sm:$0xff]   ;;  %v8262_v8 = vld [vmem:[%s11344_s0 + $0xd8c] ss:$52 sps:$4 sm:$0xff]  }
 0x21a   :  { %v8259_v63 = vld [vmem:[%s11344_s0 + $0x13a4] ss:$52 sps:$4 sm:$0xff]   ;;  %v8265_v9 = vld [vmem:[%s11344_s0 + $0x140c] ss:$52 sps:$4 sm:$0xff]   ;;  %v8260_v12 = vld [vmem:[%s11344_s0 + $0xd88] ss:$52 sps:$4 sm:$0xff]  }
 0x21b   :  { %5837 = vmatpush1.bf16.msra.mxu0 %v8194_v57  ;;  %v8263_v13 = vld [vmem:[%s11344_s0 + $0x1408] ss:$52 sps:$4 sm:$0xff]   ;;  %v8266_v59 = vld [vmem:[%s11344_s0 + $0xdf0] ss:$52 sps:$4 sm:$0xff]  }
 0x21c   :  { %5878 = vmatpush1.bf16.msra.mxu1 %v8197_v58  ;;  %5838 = vmatprep.subr.bf16.mxu0 %v8202_v18  ;;  %v8268_v57 = vld [vmem:[%s11344_s0 + $0xdf4] ss:$52 sps:$4 sm:$0xff]   ;;  %v8269_v15 = vld [vmem:[%s11344_s0 + $0x1470] ss:$52 sps:$4 sm:$0xff]  }
 0x21d   :  { %5879 = vmatprep.subr.bf16.mxu1 %v8205_v19  ;;  %v8271_v58 = vld [vmem:[%s11344_s0 + $0x1474] ss:$52 sps:$4 sm:$0xff]   ;;  %v8274_v18 = vld [vmem:[%s11344_s0 + $0xe5c] ss:$52 sps:$4 sm:$0xff]  }
 0x21e   :  { %v8277_v19 = vld [vmem:[%s11344_s0 + $0x14dc] ss:$52 sps:$4 sm:$0xff]  }
 0x21f   :  { %5839 = vmatpush1.bf16.msra.mxu0 %v8200_v20  ;;  %v8272_v20 = vld [vmem:[%s11344_s0 + $0xe58] ss:$52 sps:$4 sm:$0xff]  }
 0x220   :  { %5880 = vmatpush1.bf16.msra.mxu1 %v8203_v21  ;;  %5840 = vmatprep.subr.bf16.mxu0 %v8208_v22  ;;  %v8275_v21 = vld [vmem:[%s11344_s0 + $0x14d8] ss:$52 sps:$4 sm:$0xff]  }
 0x221   :  { %5881 = vmatprep.subr.bf16.mxu1 %v8211_v23  ;;  %v8280_v22 = vld [vmem:[%s11344_s0 + $0xec4] ss:$52 sps:$4 sm:$0xff]  }
 0x222   :  { %v8283_v23 = vld [vmem:[%s11344_s0 + $0x1544] ss:$52 sps:$4 sm:$0xff]  }
 0x223   :  { %5841 = vmatpush1.bf16.msra.mxu0 %v8206_v24  ;;  %v8278_v24 = vld [vmem:[%s11344_s0 + $0xec0] ss:$52 sps:$4 sm:$0xff]  }
 0x224   :  { %5882 = vmatpush1.bf16.msra.mxu1 %v8209_v25  ;;  %5842 = vmatprep.subr.bf16.mxu0 %v8214_v26  ;;  %v8281_v25 = vld [vmem:[%s11344_s0 + $0x1540] ss:$52 sps:$4 sm:$0xff]  }
 0x225   :  { %5883 = vmatprep.subr.bf16.mxu1 %v8217_v27  ;;  %v8286_v26 = vld [vmem:[%s11344_s0 + $0xf2c] ss:$52 sps:$4 sm:$0xff]  }
 0x226   :  { %v8289_v27 = vld [vmem:[%s11344_s0 + $0x15ac] ss:$52 sps:$4 sm:$0xff]  }
 0x227   :  { %5843 = vmatpush1.bf16.msra.mxu0 %v8212_v28  ;;  %v8284_v28 = vld [vmem:[%s11344_s0 + $0xf28] ss:$52 sps:$4 sm:$0xff]  }
 0x228   :  { %5884 = vmatpush1.bf16.msra.mxu1 %v8215_v30  ;;  %5844 = vmatprep.subr.bf16.mxu0 %v8220_v31  ;;  %v8287_v30 = vld [vmem:[%s11344_s0 + $0x15a8] ss:$52 sps:$4 sm:$0xff]  }
 0x229   :  { %5885 = vmatprep.subr.bf16.mxu1 %v8223_v32  ;;  %v8292_v31 = vld [vmem:[%s11344_s0 + $0xf94] ss:$52 sps:$4 sm:$0xff]  }
 0x22a   :  { %v8295_v32 = vld [vmem:[%s11344_s0 + $0x1614] ss:$52 sps:$4 sm:$0xff]  }
 0x22b   :  { %5845 = vmatpush1.bf16.msra.mxu0 %v8218_v33 }
 0x22c   :  { %5886 = vmatpush1.bf16.msra.mxu1 %v8221_v34  ;;  %5846 = vmatprep.subr.bf16.mxu0 %v8226_v35 }
 0x22d   :  { %5887 = vmatprep.subr.bf16.mxu1 %v8229_v2 }
 0x22f   :  { %5847 = vmatpush1.bf16.msra.mxu0 %v8224_v55 }
 0x230   :  { %5888 = vmatpush1.bf16.msra.mxu1 %v8227_v38  ;;  %5848 = vmatprep.subr.bf16.mxu0 %v8232_v61 }
 0x231   :  { %5889 = vmatprep.subr.bf16.mxu1 %v8235_v39 }
 0x233   :  { %5849 = vmatpush1.bf16.msra.mxu0 %v8230_v5  ;;  %v8290_v5 = vld [vmem:[%s11344_s0 + $0xf90] ss:$52 sps:$4 sm:$0xff]  }
 0x234   :  { %5890 = vmatpush1.bf16.msra.mxu1 %v8233_v40  ;;  %5850 = vmatprep.subr.bf16.mxu0 %v8238_v41  ;;  %v8293_v40 = vld [vmem:[%s11344_s0 + $0x1610] ss:$52 sps:$4 sm:$0xff]  }
 0x235   :  { %5891 = vmatprep.subr.bf16.mxu1 %v8241_v42 }
 0x237   :  { %5851 = vmatpush1.bf16.msra.mxu0 %v8236_v43 }
 0x238   :  { %5892 = vmatpush1.bf16.msra.mxu1 %v8239_v44  ;;  %5852 = vmatprep.subr.bf16.mxu0 %v8244_v45 }
 0x239   :  { %5893 = vmatprep.subr.bf16.mxu1 %v8247_v46 }
 0x23b   :  { %5853 = vmatpush1.bf16.msra.mxu0 %v8242_v48  ;;  %v8296_v48 = vld [vmem:[%s11344_s0 + $0xff8] ss:$52 sps:$4 sm:$0xff]  }
 0x23c   :  { %5894 = vmatpush1.bf16.msra.mxu1 %v8245_v49  ;;  %5854 = vmatprep.subr.bf16.mxu0 %v8250_v52  ;;  %v8299_v49 = vld [vmem:[%s11344_s0 + $0x1678] ss:$52 sps:$4 sm:$0xff]  }
 0x23d   :  { %5895 = vmatprep.subr.bf16.mxu1 %v8253_v53  ;;  %v8304_v52 = vld [vmem:[%s11344_s0 + $0x1064] ss:$52 sps:$4 sm:$0xff]  }
 0x23e   :  { %v8307_v53 = vld [vmem:[%s11344_s0 + $0x16e4] ss:$52 sps:$4 sm:$0xff]  }
 0x23f   :  { %5855 = vmatpush1.bf16.msra.mxu0 %v8248_v54  ;;  %v8302_v54 = vld [vmem:[%s11344_s0 + $0x1060] ss:$52 sps:$4 sm:$0xff]  }
 0x240   :  { %5896 = vmatpush1.bf16.msra.mxu1 %v8251_v56  ;;  %5906 = vmatprep.subr.bf16.mxu0 %v8256_v62  ;;  %v8305_v56 = vld [vmem:[%s11344_s0 + $0x16e0] ss:$52 sps:$4 sm:$0xff]  }
 0x241   :  { %5947 = vmatprep.subr.bf16.mxu1 %v8259_v63  ;;  %v8310_v62 = vld [vmem:[%s11344_s0 + $0x10cc] ss:$52 sps:$4 sm:$0xff]  }
 0x242   :  { %5857 = vmatmul.mubr.bf16.vlgmr.msra.gmra.mrb[32].mxu0 %v8863_v6  ;;  %v8313_v63 = vld [vmem:[%s11344_s0 + $0x174c] ss:$52 sps:$4 sm:$0xff]  }
 0x243   :  { %5898 = vmatmul.mubr.bf16.vlgmr.msra.gmra.mrb[32].mxu1 %v8865_v7  ;;  %5907 = vmatpush1.bf16.msra.mxu0 %v8254_v0  ;;  %v8308_v0 = vld [vmem:[%s11344_s0 + $0x10c8] ss:$52 sps:$4 sm:$0xff]  }
 0x244   :  { %5948 = vmatpush1.bf16.msra.mxu1 %v8257_v1  ;;  %5908 = vmatprep.subr.bf16.mxu0 %v8262_v8  ;;  %v8311_v1 = vld [vmem:[%s11344_s0 + $0x1748] ss:$52 sps:$4 sm:$0xff]  }
 0x245   :  { %5949 = vmatprep.subr.bf16.mxu1 %v8265_v9  ;;  %5938 = vmatprep.mubr.bf16.mxu0 %v8959_v36  ;;  %v8316_v8 = vld [vmem:[%s11344_s0 + $0x1134] ss:$52 sps:$4 sm:$0xff]  }
 0x246   :  { %5979 = vmatprep.mubr.bf16.mxu1 %v8963_v37  ;;  %v8319_v9 = vld [vmem:[%s11344_s0 + $0x17b4] ss:$52 sps:$4 sm:$0xff]  }
 0x247   :  { %5909 = vmatpush1.bf16.msra.mxu0 %v8260_v12 }
 0x248   :  { %5950 = vmatpush1.bf16.msra.mxu1 %v8263_v13  ;;  %5910 = vmatprep.subr.bf16.mxu0 %v8268_v57  ;;  %v8314_v57 = vld [vmem:[%s11344_s0 + $0x1130] ss:$52 sps:$4 sm:$0xff]  }
 0x249   :  { %5951 = vmatprep.subr.bf16.mxu1 %v8271_v58  ;;  %v8317_v58 = vld [vmem:[%s11344_s0 + $0x17b0] ss:$52 sps:$4 sm:$0xff]  }
 0x24b   :  { %5911 = vmatpush1.bf16.msra.mxu0 %v8266_v59 }
 0x24c   :  { %5952 = vmatpush1.bf16.msra.mxu1 %v8269_v15  ;;  %5912 = vmatprep.subr.bf16.mxu0 %v8274_v18  ;;  %v8322_v15 = vld [vmem:[%s11344_s0 + $0x119c] ss:$52 sps:$4 sm:$0xff]  }
 0x24d   :  { %5953 = vmatprep.subr.bf16.mxu1 %v8277_v19  ;;  %v8325_v18 = vld [vmem:[%s11344_s0 + $0x181c] ss:$52 sps:$4 sm:$0xff]   ;;  %v8320_v19 = vld [vmem:[%s11344_s0 + $0x1198] ss:$52 sps:$4 sm:$0xff]  }
 0x24f   :  { %5913 = vmatpush1.bf16.msra.mxu0 %v8272_v20  ;;  %v8323_v20 = vld [vmem:[%s11344_s0 + $0x1818] ss:$52 sps:$4 sm:$0xff]  }
 0x250   :  { %5954 = vmatpush1.bf16.msra.mxu1 %v8275_v21  ;;  %5914 = vmatprep.subr.bf16.mxu0 %v8280_v22  ;;  %v8328_v21 = vld [vmem:[%s11344_s0 + $0x1204] ss:$52 sps:$4 sm:$0xff]  }
 0x251   :  { %5955 = vmatprep.subr.bf16.mxu1 %v8283_v23  ;;  %v8331_v22 = vld [vmem:[%s11344_s0 + $0x1884] ss:$52 sps:$4 sm:$0xff]   ;;  %v8326_v23 = vld [vmem:[%s11344_s0 + $0x1200] ss:$52 sps:$4 sm:$0xff]  }
 0x253   :  { %5915 = vmatpush1.bf16.msra.mxu0 %v8278_v24  ;;  %v8329_v24 = vld [vmem:[%s11344_s0 + $0x1880] ss:$52 sps:$4 sm:$0xff]  }
 0x254   :  { %5956 = vmatpush1.bf16.msra.mxu1 %v8281_v25  ;;  %5916 = vmatprep.subr.bf16.mxu0 %v8286_v26  ;;  %v8334_v25 = vld [vmem:[%s11344_s0 + $0x126c] ss:$52 sps:$4 sm:$0xff]  }
 0x255   :  { %5957 = vmatprep.subr.bf16.mxu1 %v8289_v27  ;;  %v5612_v33 = vpop.f32.mrb[20].mxu0  ;;  %v8337_v26 = vld [vmem:[%s11344_s0 + $0x18ec] ss:$52 sps:$4 sm:$0xff]   ;;  %v8332_v27 = vld [vmem:[%s11344_s0 + $0x1268] ss:$52 sps:$4 sm:$0xff]  }
 0x256   :  { %v5653_v34 = vpop.f32.mrb[20].mxu1  ;;  %v5613_v35 = vadd.f32 %v5612_v33, %v10385_v4  ;;  %v5614_v2 = vpop.f32.mrb[21].mxu0  ;;  %v8298_v4 = vld [vmem:[%s11344_s0 + $0xffc] ss:$52 sps:$4 sm:$0xff]  }
 0x257   :  { %v5655_v55 = vpop.f32.mrb[21].mxu1  ;;  %v5615_v38 = vadd.f32 %v5614_v2, %v10387_v10  ;;  %v5616_v61 = vpop.f32.mrb[22].mxu0  ;;  %5917 = vmatpush1.bf16.msra.mxu0 %v8284_v28  ;;  %v8301_v10 = vld [vmem:[%s11344_s0 + $0x167c] ss:$52 sps:$4 sm:$0xff]   ;;  %v8344_v2 = vld [vmem:[%s11344_s0 + $0x1338] ss:$52 sps:$4 sm:$0xff]  }
 0x258   :  { %v5657_v39 = vpop.f32.mrb[22].mxu1  ;;  %5958 = vmatpush1.bf16.msra.mxu1 %v8287_v30  ;;  %v5654_v41 = vadd.f32 %v5653_v34, %v5613_v35  ;;  %v5617_v42 = vpop.f32.mrb[23].mxu0  ;;  %5918 = vmatprep.subr.bf16.mxu0 %v8292_v31  ;;  %v8335_v28 = vld [vmem:[%s11344_s0 + $0x18e8] ss:$52 sps:$4 sm:$0xff]   ;;  %v8341_v33 = vld [vmem:[%s11344_s0 + $0x1950] ss:$52 sps:$4 sm:$0xff]  }
 0x259   :  { %v5658_v43 = vpop.f32.mrb[23].mxu1  ;;  %5959 = vmatprep.subr.bf16.mxu1 %v8295_v32  ;;  %v5656_v44 = vadd.f32 %v5655_v55, %v5615_v38  ;;  %v8340_v30 = vld [vmem:[%s11344_s0 + $0x12d4] ss:$52 sps:$4 sm:$0xff]   ;;  %v8338_v32 = vld [vmem:[%s11344_s0 + $0x12d0] ss:$52 sps:$4 sm:$0xff]  }
 0x25a   :  { %v6318_v45 = vadd.f32 %v9767_v29, %v5654_v41  ;;  %v8343_v31 = vld [vmem:[%s11344_s0 + $0x1954] ss:$52 sps:$4 sm:$0xff]   ;;  %v8346_v34 = vld [vmem:[%s11344_s0 + $0x133c] ss:$52 sps:$4 sm:$0xff]   ;;  %v8347_v55 = vld [vmem:[%s11344_s0 + $0x19b8] ss:$52 sps:$4 sm:$0xff]  }
 0x25b   :  { %v6319_v46 = vadd.f32 %v9767_v29, %v5656_v44  ;;  %5919 = vmatpush1.bf16.msra.mxu0 %v8290_v5  ;;  %v8349_v35 = vld [vmem:[%s11344_s0 + $0x19bc] ss:$52 sps:$4 sm:$0xff]   ;;  %v8352_v38 = vld [vmem:[%s11344_s0 + $0x2c] ss:$52 sps:$4 sm:$0xff]   ;;  %v8361_v41 = vld [vmem:[%s11344_s0 + $0x714] ss:$52 sps:$4 sm:$0xff]  }
 0x25c   :  { %5960 = vmatpush1.bf16.msra.mxu1 %v8293_v40  ;;  %8614 = vtanh.f32 %v6318_v45  ;;  %5920 = vmatprep.subr.bf16.mxu0 %v8298_v4  ;;  %v8355_v61 = vld [vmem:[%s11344_s0 + $0x6ac] ss:$52 sps:$4 sm:$0xff]   ;;  %v8350_v39 = vld [vmem:[%s11344_s0 + $0x28] ss:$52 sps:$4 sm:$0xff]   ;;  %v8356_v42 = vld [vmem:[%s11344_s0 + $0x90] ss:$52 sps:$4 sm:$0xff]  }
 0x25d   :  { %5961 = vmatprep.subr.bf16.mxu1 %v8301_v10  ;;  %8616 = vtanh.f32 %v6319_v46  ;;  %v8353_v5 = vld [vmem:[%s11344_s0 + $0x6a8] ss:$52 sps:$4 sm:$0xff]   ;;  %v8359_v43 = vld [vmem:[%s11344_s0 + $0x710] ss:$52 sps:$4 sm:$0xff]   ;;  %v8362_v44 = vld [vmem:[%s11344_s0 + $0xf8] ss:$52 sps:$4 sm:$0xff]  }
 0x25e   :  { %v8358_v40 = vld [vmem:[%s11344_s0 + $0x94] ss:$52 sps:$4 sm:$0xff]   ;;  %v8364_v4 = vld [vmem:[%s11344_s0 + $0xfc] ss:$52 sps:$4 sm:$0xff]   ;;  %v8365_v45 = vld [vmem:[%s11344_s0 + $0x778] ss:$52 sps:$4 sm:$0xff]  }
 0x25f   :  { %5921 = vmatpush1.bf16.msra.mxu0 %v8296_v48  ;;  %v8367_v10 = vld [vmem:[%s11344_s0 + $0x77c] ss:$52 sps:$4 sm:$0xff]   ;;  %v8370_v46 = vld [vmem:[%s11344_s0 + $0x164] ss:$52 sps:$4 sm:$0xff]  }
 0x260   :  { %5962 = vmatpush1.bf16.msra.mxu1 %v8299_v49  ;;  %5922 = vmatprep.subr.bf16.mxu0 %v8304_v52  ;;  %v8373_v48 = vld [vmem:[%s11344_s0 + $0x7e4] ss:$52 sps:$4 sm:$0xff]   ;;  %v8368_v49 = vld [vmem:[%s11344_s0 + $0x160] ss:$52 sps:$4 sm:$0xff]  }
 0x261   :  { %5963 = vmatprep.subr.bf16.mxu1 %v8307_v53  ;;  %v8371_v52 = vld [vmem:[%s11344_s0 + $0x7e0] ss:$52 sps:$4 sm:$0xff]  }
 0x262   :  { %v8376_v53 = vld [vmem:[%s11344_s0 + $0x1cc] ss:$52 sps:$4 sm:$0xff]  }
 0x263   :  { %5923 = vmatpush1.bf16.msra.mxu0 %v8302_v54  ;;  %v8379_v54 = vld [vmem:[%s11344_s0 + $0x84c] ss:$52 sps:$4 sm:$0xff]  }
 0x264   :  { %5964 = vmatpush1.bf16.msra.mxu1 %v8305_v56  ;;  %5924 = vmatprep.subr.bf16.mxu0 %v8310_v62  ;;  %v8374_v56 = vld [vmem:[%s11344_s0 + $0x1c8] ss:$52 sps:$4 sm:$0xff]  }
 0x265   :  { %5965 = vmatprep.subr.bf16.mxu1 %v8313_v63  ;;  %v8377_v62 = vld [vmem:[%s11344_s0 + $0x848] ss:$52 sps:$4 sm:$0xff]  }
 0x266   :  { %v10637_v12 = vpop.eup %8614  ;;  %v8382_v63 = vld [vmem:[%s11344_s0 + $0x234] ss:$52 sps:$4 sm:$0xff]  }
 0x267   :  { %v10639_v13 = vpop.eup %8616  ;;  %5925 = vmatpush1.bf16.msra.mxu0 %v8308_v0  ;;  %v8385_v0 = vld [vmem:[%s11344_s0 + $0x8b4] ss:$52 sps:$4 sm:$0xff]  }
 0x268   :  { %5966 = vmatpush1.bf16.msra.mxu1 %v8311_v1  ;;  %v6355_v59 = vcombine.low %v10637_v12, %v10639_v13  ;;  %5926 = vmatprep.subr.bf16.mxu0 %v8316_v8  ;;  %v8380_v1 = vld [vmem:[%s11344_s0 + $0x230] ss:$52 sps:$4 sm:$0xff]   ;;  %v8520_v12 = vld [vmem:[%s11344_s0 + $0x120c] ss:$52 sps:$4 sm:$0xff]  }
 0x269   :  { %5967 = vmatprep.subr.bf16.mxu1 %v8319_v9  ;;  %v8383_v8 = vld [vmem:[%s11344_s0 + $0x8b0] ss:$52 sps:$4 sm:$0xff]   ;;  %v8523_v13 = vld [vmem:[%s11344_s0 + $0x188c] ss:$52 sps:$4 sm:$0xff]  }
 0x26a   :  { %v8388_v9 = vld [vmem:[%s11344_s0 + $0x29c] ss:$52 sps:$4 sm:$0xff]  }
 0x26b   :  { %5927 = vmatpush1.bf16.msra.mxu0 %v8314_v57  ;;  %v8391_v57 = vld [vmem:[%s11344_s0 + $0x91c] ss:$52 sps:$4 sm:$0xff]  }
 0x26c   :  { %5968 = vmatpush1.bf16.msra.mxu1 %v8317_v58  ;;  %5928 = vmatprep.subr.bf16.mxu0 %v8322_v15 }
 0x26d   :  { %5969 = vmatprep.subr.bf16.mxu1 %v8325_v18 }
 0x26f   :  { %5929 = vmatpush1.bf16.msra.mxu0 %v8320_v19 }
 0x270   :  { %5970 = vmatpush1.bf16.msra.mxu1 %v8323_v20  ;;  %5930 = vmatprep.subr.bf16.mxu0 %v8328_v21 }
 0x271   :  { %5971 = vmatprep.subr.bf16.mxu1 %v8331_v22 }
 0x273   :  { %5931 = vmatpush1.bf16.msra.mxu0 %v8326_v23 }
 0x274   :  { %5972 = vmatpush1.bf16.msra.mxu1 %v8329_v24  ;;  %5932 = vmatprep.subr.bf16.mxu0 %v8334_v25  ;;  %v8386_v24 = vld [vmem:[%s11344_s0 + $0x298] ss:$52 sps:$4 sm:$0xff]  }
 0x275   :  { %5973 = vmatprep.subr.bf16.mxu1 %v8337_v26  ;;  %v8389_v25 = vld [vmem:[%s11344_s0 + $0x918] ss:$52 sps:$4 sm:$0xff]  }
 0x277   :  { %5933 = vmatpush1.bf16.msra.mxu0 %v8332_v27 }
 0x278   :  { %5974 = vmatpush1.bf16.msra.mxu1 %v8335_v28  ;;  %5934 = vmatprep.subr.bf16.mxu0 %v8340_v30  ;;  %v8394_v28 = vld [vmem:[%s11344_s0 + $0x304] ss:$52 sps:$4 sm:$0xff]  }
 0x279   :  { %5975 = vmatprep.subr.bf16.mxu1 %v8343_v31  ;;  %v8397_v30 = vld [vmem:[%s11344_s0 + $0x984] ss:$52 sps:$4 sm:$0xff]   ;;  %v8392_v31 = vld [vmem:[%s11344_s0 + $0x300] ss:$52 sps:$4 sm:$0xff]  }
 0x27b   :  { %5935 = vmatpush1.bf16.msra.mxu0 %v8338_v32  ;;  %v8395_v32 = vld [vmem:[%s11344_s0 + $0x980] ss:$52 sps:$4 sm:$0xff]  }
 0x27c   :  { %5976 = vmatpush1.bf16.msra.mxu1 %v8341_v33  ;;  %5936 = vmatprep.subr.bf16.mxu0 %v8346_v34  ;;  %v8400_v33 = vld [vmem:[%s11344_s0 + $0x36c] ss:$52 sps:$4 sm:$0xff]  }
 0x27d   :  { %5977 = vmatprep.subr.bf16.mxu1 %v8349_v35  ;;  %v8403_v34 = vld [vmem:[%s11344_s0 + $0x9ec] ss:$52 sps:$4 sm:$0xff]   ;;  %v8398_v35 = vld [vmem:[%s11344_s0 + $0x368] ss:$52 sps:$4 sm:$0xff]  }
 0x27f   :  { %5937 = vmatpush1.bf16.msra.mxu0 %v8344_v2  ;;  %v8401_v2 = vld [vmem:[%s11344_s0 + $0x9e8] ss:$52 sps:$4 sm:$0xff]  }
 0x280   :  { %5978 = vmatpush1.bf16.msra.mxu1 %v8347_v55  ;;  %5988 = vmatprep.subr.bf16.mxu0 %v8352_v38  ;;  %v8406_v55 = vld [vmem:[%s11344_s0 + $0x3d4] ss:$52 sps:$4 sm:$0xff]  }
 0x281   :  { %6029 = vmatprep.subr.bf16.mxu1 %v8355_v61  ;;  %v8409_v38 = vld [vmem:[%s11344_s0 + $0xa54] ss:$52 sps:$4 sm:$0xff]   ;;  %v8404_v61 = vld [vmem:[%s11344_s0 + $0x3d0] ss:$52 sps:$4 sm:$0xff]  }
 0x282   :  { %5939 = vmatmul.mubr.bf16.vlgmr.msra.gmra.mrb[36].mxu0 %v9083_v16 }
 0x283   :  { %5980 = vmatmul.mubr.bf16.vlgmr.msra.gmra.mrb[36].mxu1 %v9087_v17  ;;  %5989 = vmatpush1.bf16.msra.mxu0 %v8350_v39  ;;  %v8407_v39 = vld [vmem:[%s11344_s0 + $0xa50] ss:$52 sps:$4 sm:$0xff]  }
 0x284   :  { %6030 = vmatpush1.bf16.msra.mxu1 %v8353_v5  ;;  %5990 = vmatprep.subr.bf16.mxu0 %v8358_v40  ;;  %v8412_v5 = vld [vmem:[%s11344_s0 + $0x43c] ss:$52 sps:$4 sm:$0xff]  }
 0x285   :  { %6031 = vmatprep.subr.bf16.mxu1 %v8361_v41  ;;  %6020 = vmatprep.mubr.bf16.mxu0 %v8794_v47  ;;  %v8415_v40 = vld [vmem:[%s11344_s0 + $0xabc] ss:$52 sps:$4 sm:$0xff]   ;;  %v8410_v41 = vld [vmem:[%s11344_s0 + $0x438] ss:$52 sps:$4 sm:$0xff]  }
 0x286   :  { %6061 = vmatprep.mubr.bf16.mxu1 %v8805_v51 }
 0x287   :  { %5991 = vmatpush1.bf16.msra.mxu0 %v8356_v42  ;;  %v8413_v42 = vld [vmem:[%s11344_s0 + $0xab8] ss:$52 sps:$4 sm:$0xff]  }
 0x288   :  { %6032 = vmatpush1.bf16.msra.mxu1 %v8359_v43  ;;  %5992 = vmatprep.subr.bf16.mxu0 %v8364_v4  ;;  %v8418_v43 = vld [vmem:[%s11344_s0 + $0x4a4] ss:$52 sps:$4 sm:$0xff]  }
 0x289   :  { %6033 = vmatprep.subr.bf16.mxu1 %v8367_v10  ;;  %v8421_v4 = vld [vmem:[%s11344_s0 + $0xb24] ss:$52 sps:$4 sm:$0xff]   ;;  %v8416_v10 = vld [vmem:[%s11344_s0 + $0x4a0] ss:$52 sps:$4 sm:$0xff]  }
 0x28b   :  { %5993 = vmatpush1.bf16.msra.mxu0 %v8362_v44  ;;  %v8419_v44 = vld [vmem:[%s11344_s0 + $0xb20] ss:$52 sps:$4 sm:$0xff]  }
 0x28c   :  { %6034 = vmatpush1.bf16.msra.mxu1 %v8365_v45  ;;  %5994 = vmatprep.subr.bf16.mxu0 %v8370_v46  ;;  %v8424_v45 = vld [vmem:[%s11344_s0 + $0x50c] ss:$52 sps:$4 sm:$0xff]  }
 0x28d   :  { %6035 = vmatprep.subr.bf16.mxu1 %v8373_v48  ;;  %v8427_v46 = vld [vmem:[%s11344_s0 + $0xb8c] ss:$52 sps:$4 sm:$0xff]   ;;  %v8422_v48 = vld [vmem:[%s11344_s0 + $0x508] ss:$52 sps:$4 sm:$0xff]  }
 0x28f   :  { %5995 = vmatpush1.bf16.msra.mxu0 %v8368_v49  ;;  %v8425_v49 = vld [vmem:[%s11344_s0 + $0xb88] ss:$52 sps:$4 sm:$0xff]  }
 0x290   :  { %6036 = vmatpush1.bf16.msra.mxu1 %v8371_v52  ;;  %5996 = vmatprep.subr.bf16.mxu0 %v8376_v53  ;;  %v8430_v52 = vld [vmem:[%s11344_s0 + $0x574] ss:$52 sps:$4 sm:$0xff]  }
 0x291   :  { %6037 = vmatprep.subr.bf16.mxu1 %v8379_v54  ;;  %v8433_v53 = vld [vmem:[%s11344_s0 + $0xbf4] ss:$52 sps:$4 sm:$0xff]   ;;  %v8428_v54 = vld [vmem:[%s11344_s0 + $0x570] ss:$52 sps:$4 sm:$0xff]  }
 0x293   :  { %5997 = vmatpush1.bf16.msra.mxu0 %v8374_v56  ;;  %v8431_v56 = vld [vmem:[%s11344_s0 + $0xbf0] ss:$52 sps:$4 sm:$0xff]  }
 0x294   :  { %6038 = vmatpush1.bf16.msra.mxu1 %v8377_v62  ;;  %5998 = vmatprep.subr.bf16.mxu0 %v8382_v63  ;;  %v8436_v62 = vld [vmem:[%s11344_s0 + $0x5dc] ss:$52 sps:$4 sm:$0xff]  }
 0x295   :  { %6039 = vmatprep.subr.bf16.mxu1 %v8385_v0  ;;  %v5694_v58 = vpop.f32.mrb[24].mxu0  ;;  %v8439_v63 = vld [vmem:[%s11344_s0 + $0xc5c] ss:$52 sps:$4 sm:$0xff]   ;;  %v8434_v0 = vld [vmem:[%s11344_s0 + $0x5d8] ss:$52 sps:$4 sm:$0xff]  }
 0x296   :  { %v5735_v15 = vpop.f32.mrb[24].mxu1  ;;  %v5696_v19 = vpop.f32.mrb[25].mxu0 }
 0x297   :  { %v10791_v18 = vadd.f32 %v5735_v15, %v5694_v58  ;;  %v5737_v20 = vpop.f32.mrb[25].mxu1  ;;  %v5698_v22 = vpop.f32.mrb[26].mxu0  ;;  %5999 = vmatpush1.bf16.msra.mxu0 %v8380_v1  ;;  %v8437_v1 = vld [vmem:[%s11344_s0 + $0xc58] ss:$52 sps:$4 sm:$0xff]   ;;  %v8443_v58 = vld [vmem:[%s11344_s0 + $0xcc0] ss:$52 sps:$4 sm:$0xff]  }
 0x298   :  { %v10793_v21 = vadd.f32 %v5737_v20, %v5696_v19  ;;  %v5739_v23 = vpop.f32.mrb[26].mxu1  ;;  %6040 = vmatpush1.bf16.msra.mxu1 %v8383_v8  ;;  %v5699_v26 = vpop.f32.mrb[27].mxu0  ;;  %6000 = vmatprep.subr.bf16.mxu0 %v8388_v9  ;;  %v8442_v8 = vld [vmem:[%s11344_s0 + $0x644] ss:$52 sps:$4 sm:$0xff]   ;;  %v8448_v15 = vld [vmem:[%s11344_s0 + $0xd2c] ss:$52 sps:$4 sm:$0xff]  }
 0x299   :  { %v5740_v27 = vpop.f32.mrb[27].mxu1  ;;  %6041 = vmatprep.subr.bf16.mxu1 %v8391_v57  ;;  %v8445_v9 = vld [vmem:[%s11344_s0 + $0xcc4] ss:$52 sps:$4 sm:$0xff]   ;;  %v8440_v57 = vld [vmem:[%s11344_s0 + $0x640] ss:$52 sps:$4 sm:$0xff]  }
 0x29a   :  { %v8451_v19 = vld [vmem:[%s11344_s0 + $0x13ac] ss:$52 sps:$4 sm:$0xff]   ;;  %v8446_v20 = vld [vmem:[%s11344_s0 + $0xd28] ss:$52 sps:$4 sm:$0xff]   ;;  %v8455_v26 = vld [vmem:[%s11344_s0 + $0x1410] ss:$52 sps:$4 sm:$0xff]  }
 0x29b   :  { %6001 = vmatpush1.bf16.msra.mxu0 %v8386_v24  ;;  %v8449_v22 = vld [vmem:[%s11344_s0 + $0x13a8] ss:$52 sps:$4 sm:$0xff]  }
 0x29c   :  { %6042 = vmatpush1.bf16.msra.mxu1 %v8389_v25  ;;  %6002 = vmatprep.subr.bf16.mxu0 %v8394_v28  ;;  %v8454_v23 = vld [vmem:[%s11344_s0 + $0xd94] ss:$52 sps:$4 sm:$0xff]   ;;  %v8452_v25 = vld [vmem:[%s11344_s0 + $0xd90] ss:$52 sps:$4 sm:$0xff]  }
 0x29d   :  { %6043 = vmatprep.subr.bf16.mxu1 %v8397_v30  ;;  %v8457_v24 = vld [vmem:[%s11344_s0 + $0x1414] ss:$52 sps:$4 sm:$0xff]   ;;  %v8460_v27 = vld [vmem:[%s11344_s0 + $0xdfc] ss:$52 sps:$4 sm:$0xff]   ;;  %v8458_v30 = vld [vmem:[%s11344_s0 + $0xdf8] ss:$52 sps:$4 sm:$0xff]  }
 0x29e   :  { %v8463_v28 = vld [vmem:[%s11344_s0 + $0x147c] ss:$52 sps:$4 sm:$0xff]  }
 0x29f   :  { %6003 = vmatpush1.bf16.msra.mxu0 %v8392_v31  ;;  %v8461_v31 = vld [vmem:[%s11344_s0 + $0x1478] ss:$52 sps:$4 sm:$0xff]  }
 0x2a0   :  { %6044 = vmatpush1.bf16.msra.mxu1 %v8395_v32  ;;  %6004 = vmatprep.subr.bf16.mxu0 %v8400_v33  ;;  %v8466_v32 = vld [vmem:[%s11344_s0 + $0xe64] ss:$52 sps:$4 sm:$0xff]  }
 0x2a1   :  { %6045 = vmatprep.subr.bf16.mxu1 %v8403_v34  ;;  %v8469_v33 = vld [vmem:[%s11344_s0 + $0x14e4] ss:$52 sps:$4 sm:$0xff]   ;;  %v8464_v34 = vld [vmem:[%s11344_s0 + $0xe60] ss:$52 sps:$4 sm:$0xff]  }
 0x2a3   :  { %6005 = vmatpush1.bf16.msra.mxu0 %v8398_v35  ;;  %v8467_v35 = vld [vmem:[%s11344_s0 + $0x14e0] ss:$52 sps:$4 sm:$0xff]  }
 0x2a4   :  { %6046 = vmatpush1.bf16.msra.mxu1 %v8401_v2  ;;  %6006 = vmatprep.subr.bf16.mxu0 %v8406_v55  ;;  %v8472_v2 = vld [vmem:[%s11344_s0 + $0xecc] ss:$52 sps:$4 sm:$0xff]  }
 0x2a5   :  { %6047 = vmatprep.subr.bf16.mxu1 %v8409_v38  ;;  %v8475_v55 = vld [vmem:[%s11344_s0 + $0x154c] ss:$52 sps:$4 sm:$0xff]   ;;  %v8470_v38 = vld [vmem:[%s11344_s0 + $0xec8] ss:$52 sps:$4 sm:$0xff]  }
 0x2a7   :  { %6007 = vmatpush1.bf16.msra.mxu0 %v8404_v61  ;;  %v8473_v61 = vld [vmem:[%s11344_s0 + $0x1548] ss:$52 sps:$4 sm:$0xff]  }
 0x2a8   :  { %6048 = vmatpush1.bf16.msra.mxu1 %v8407_v39  ;;  %6008 = vmatprep.subr.bf16.mxu0 %v8412_v5  ;;  %v8478_v39 = vld [vmem:[%s11344_s0 + $0xf34] ss:$52 sps:$4 sm:$0xff]  }
 0x2a9   :  { %6049 = vmatprep.subr.bf16.mxu1 %v8415_v40  ;;  %v8481_v5 = vld [vmem:[%s11344_s0 + $0x15b4] ss:$52 sps:$4 sm:$0xff]   ;;  %v8476_v40 = vld [vmem:[%s11344_s0 + $0xf30] ss:$52 sps:$4 sm:$0xff]  }
 0x2ab   :  { %6009 = vmatpush1.bf16.msra.mxu0 %v8410_v41  ;;  %v8479_v41 = vld [vmem:[%s11344_s0 + $0x15b0] ss:$52 sps:$4 sm:$0xff]  }
 0x2ac   :  { %6050 = vmatpush1.bf16.msra.mxu1 %v8413_v42  ;;  %6010 = vmatprep.subr.bf16.mxu0 %v8418_v43  ;;  %v8484_v42 = vld [vmem:[%s11344_s0 + $0xf9c] ss:$52 sps:$4 sm:$0xff]  }
 0x2ad   :  { %6051 = vmatprep.subr.bf16.mxu1 %v8421_v4  ;;  %v8487_v43 = vld [vmem:[%s11344_s0 + $0x161c] ss:$52 sps:$4 sm:$0xff]  }
 0x2af   :  { %6011 = vmatpush1.bf16.msra.mxu0 %v8416_v10 }
 0x2b0   :  { %6052 = vmatpush1.bf16.msra.mxu1 %v8419_v44  ;;  %6012 = vmatprep.subr.bf16.mxu0 %v8424_v45 }
 0x2b1   :  { %6053 = vmatprep.subr.bf16.mxu1 %v8427_v46 }
 0x2b3   :  { %6013 = vmatpush1.bf16.msra.mxu0 %v8422_v48 }
 0x2b4   :  { %6054 = vmatpush1.bf16.msra.mxu1 %v8425_v49  ;;  %6014 = vmatprep.subr.bf16.mxu0 %v8430_v52 }
 0x2b5   :  { %6055 = vmatprep.subr.bf16.mxu1 %v8433_v53  ;;  %v8482_v53 = vld [vmem:[%s11344_s0 + $0xf98] ss:$52 sps:$4 sm:$0xff]  }
 0x2b7   :  { %6015 = vmatpush1.bf16.msra.mxu0 %v8428_v54  ;;  %v8485_v54 = vld [vmem:[%s11344_s0 + $0x1618] ss:$52 sps:$4 sm:$0xff]  }
 0x2b8   :  { %6056 = vmatpush1.bf16.msra.mxu1 %v8431_v56  ;;  %6016 = vmatprep.subr.bf16.mxu0 %v8436_v62 }
 0x2b9   :  { %6057 = vmatprep.subr.bf16.mxu1 %v8439_v63 }
 0x2bb   :  { %6017 = vmatpush1.bf16.msra.mxu0 %v8434_v0 }
 0x2bc   :  { %6058 = vmatpush1.bf16.msra.mxu1 %v8437_v1  ;;  %6018 = vmatprep.subr.bf16.mxu0 %v8442_v8 }
 0x2bd   :  { %6059 = vmatprep.subr.bf16.mxu1 %v8445_v9  ;;  %v8488_v9 = vld [vmem:[%s11344_s0 + $0x1000] ss:$52 sps:$4 sm:$0xff]  }
 0x2bf   :  { %6019 = vmatpush1.bf16.msra.mxu0 %v8440_v57  ;;  %v8491_v57 = vld [vmem:[%s11344_s0 + $0x1680] ss:$52 sps:$4 sm:$0xff]  }
 0x2c0   :  { %6060 = vmatpush1.bf16.msra.mxu1 %v8443_v58  ;;  %6070 = vmatprep.subr.bf16.mxu0 %v8448_v15  ;;  %v8496_v58 = vld [vmem:[%s11344_s0 + $0x106c] ss:$52 sps:$4 sm:$0xff]  }
 0x2c1   :  { %6111 = vmatprep.subr.bf16.mxu1 %v8451_v19  ;;  %v8499_v15 = vld [vmem:[%s11344_s0 + $0x16ec] ss:$52 sps:$4 sm:$0xff]   ;;  %v8494_v19 = vld [vmem:[%s11344_s0 + $0x1068] ss:$52 sps:$4 sm:$0xff]  }
 0x2c2   :  { %6021 = vmatmul.mubr.bf16.vlgmr.msra.gmra.mrb[40].mxu0 %v8863_v6 }
 0x2c3   :  { %6062 = vmatmul.mubr.bf16.vlgmr.msra.gmra.mrb[40].mxu1 %v8865_v7  ;;  %6071 = vmatpush1.bf16.msra.mxu0 %v8446_v20  ;;  %v8497_v20 = vld [vmem:[%s11344_s0 + $0x16e8] ss:$52 sps:$4 sm:$0xff]  }
 0x2c4   :  { %6112 = vmatpush1.bf16.msra.mxu1 %v8449_v22  ;;  %6072 = vmatprep.subr.bf16.mxu0 %v8454_v23  ;;  %v8502_v22 = vld [vmem:[%s11344_s0 + $0x10d4] ss:$52 sps:$4 sm:$0xff]  }
 0x2c5   :  { %6113 = vmatprep.subr.bf16.mxu1 %v8457_v24  ;;  %6102 = vmatprep.mubr.bf16.mxu0 %v8959_v36  ;;  %v8505_v23 = vld [vmem:[%s11344_s0 + $0x1754] ss:$52 sps:$4 sm:$0xff]   ;;  %v8500_v24 = vld [vmem:[%s11344_s0 + $0x10d0] ss:$52 sps:$4 sm:$0xff]  }
 0x2c6   :  { %6143 = vmatprep.mubr.bf16.mxu1 %v8963_v37 }
 0x2c7   :  { %6073 = vmatpush1.bf16.msra.mxu0 %v8452_v25  ;;  %v8503_v25 = vld [vmem:[%s11344_s0 + $0x1750] ss:$52 sps:$4 sm:$0xff]  }
 0x2c8   :  { %6114 = vmatpush1.bf16.msra.mxu1 %v8455_v26  ;;  %6074 = vmatprep.subr.bf16.mxu0 %v8460_v27  ;;  %v8508_v26 = vld [vmem:[%s11344_s0 + $0x113c] ss:$52 sps:$4 sm:$0xff]  }
 0x2c9   :  { %6115 = vmatprep.subr.bf16.mxu1 %v8463_v28  ;;  %v8511_v27 = vld [vmem:[%s11344_s0 + $0x17bc] ss:$52 sps:$4 sm:$0xff]  }
 0x2cb   :  { %6075 = vmatpush1.bf16.msra.mxu0 %v8458_v30 }
 0x2cc   :  { %6116 = vmatpush1.bf16.msra.mxu1 %v8461_v31  ;;  %6076 = vmatprep.subr.bf16.mxu0 %v8466_v32  ;;  %v8506_v31 = vld [vmem:[%s11344_s0 + $0x1138] ss:$52 sps:$4 sm:$0xff]  }
 0x2cd   :  { %6117 = vmatprep.subr.bf16.mxu1 %v8469_v33  ;;  %v8509_v32 = vld [vmem:[%s11344_s0 + $0x17b8] ss:$52 sps:$4 sm:$0xff]  }
 0x2cf   :  { %6077 = vmatpush1.bf16.msra.mxu0 %v8464_v34  ;;  %v8514_v34 = vld [vmem:[%s11344_s0 + $0x11a4] ss:$52 sps:$4 sm:$0xff]  }
 0x2d0   :  { %6118 = vmatpush1.bf16.msra.mxu1 %v8467_v35  ;;  %6078 = vmatprep.subr.bf16.mxu0 %v8472_v2  ;;  %v8517_v35 = vld [vmem:[%s11344_s0 + $0x1824] ss:$52 sps:$4 sm:$0xff]   ;;  %v6377_v2 = vrot.slane %v6355_v59, %v10230_v3  ;;  %v6393_v59 = vrot.slane %v6385_v14, %v10230_v3 }
 0x2d1   :  { %6119 = vmatprep.subr.bf16.mxu1 %v8475_v55  ;;  %v8524_v14 = vld [vmem:[%s11344_s0 + $0x1270] ss:$52 sps:$4 sm:$0xff]  }
 0x2d3   :  { %6079 = vmatpush1.bf16.msra.mxu0 %v8470_v38  ;;  %v8512_v38 = vld [vmem:[%s11344_s0 + $0x11a0] ss:$52 sps:$4 sm:$0xff]  }
 0x2d4   :  { %6120 = vmatpush1.bf16.msra.mxu1 %v8473_v61  ;;  %6080 = vmatprep.subr.bf16.mxu0 %v8478_v39  ;;  %v8515_v61 = vld [vmem:[%s11344_s0 + $0x1820] ss:$52 sps:$4 sm:$0xff]  }
 0x2d5   :  { %6121 = vmatprep.subr.bf16.mxu1 %v8481_v5  ;;  %v5776_v4 = vpop.f32.mrb[28].mxu0 }
 0x2d6   :  { %v5817_v10 = vpop.f32.mrb[28].mxu1  ;;  %v5777_v44 = vadd.f32 %v5776_v4, %v10791_v18  ;;  %v5778_v45 = vpop.f32.mrb[29].mxu0  ;;  %v8490_v18 = vld [vmem:[%s11344_s0 + $0x1004] ss:$52 sps:$4 sm:$0xff]   ;;  %v8532_v4 = vld [vmem:[%s11344_s0 + $0x12dc] ss:$52 sps:$4 sm:$0xff]  }
 0x2d7   :  { %v5819_v46 = vpop.f32.mrb[29].mxu1  ;;  %v5779_v48 = vadd.f32 %v5778_v45, %v10793_v21  ;;  %v5780_v49 = vpop.f32.mrb[30].mxu0  ;;  %6081 = vmatpush1.bf16.msra.mxu0 %v8476_v40  ;;  %v8493_v21 = vld [vmem:[%s11344_s0 + $0x1684] ss:$52 sps:$4 sm:$0xff]   ;;  %v8518_v40 = vld [vmem:[%s11344_s0 + $0x1208] ss:$52 sps:$4 sm:$0xff]  }
 0x2d8   :  { %v5821_v52 = vpop.f32.mrb[30].mxu1  ;;  %6122 = vmatpush1.bf16.msra.mxu1 %v8479_v41  ;;  %v5818_v56 = vadd.f32 %v5817_v10, %v5777_v44  ;;  %v5781_v62 = vpop.f32.mrb[31].mxu0  ;;  %6082 = vmatprep.subr.bf16.mxu0 %v8484_v42  ;;  %v8521_v41 = vld [vmem:[%s11344_s0 + $0x1888] ss:$52 sps:$4 sm:$0xff]   ;;  %v8530_v44 = vld [vmem:[%s11344_s0 + $0x12d8] ss:$52 sps:$4 sm:$0xff]  }
 0x2d9   :  { %v5822_v63 = vpop.f32.mrb[31].mxu1  ;;  %6123 = vmatprep.subr.bf16.mxu1 %v8487_v43  ;;  %v5820_v0 = vadd.f32 %v5819_v46, %v5779_v48  ;;  %v8527_v43 = vld [vmem:[%s11344_s0 + $0x18f0] ss:$52 sps:$4 sm:$0xff]   ;;  %v8533_v45 = vld [vmem:[%s11344_s0 + $0x1958] ss:$52 sps:$4 sm:$0xff]  }
 0x2da   :  { %v6320_v1 = vadd.f32 %v9767_v29, %v5818_v56  ;;  %v8535_v10 = vld [vmem:[%s11344_s0 + $0x195c] ss:$52 sps:$4 sm:$0xff]   ;;  %v8538_v46 = vld [vmem:[%s11344_s0 + $0x1344] ss:$52 sps:$4 sm:$0xff]   ;;  %v8536_v49 = vld [vmem:[%s11344_s0 + $0x1340] ss:$52 sps:$4 sm:$0xff]  }
 0x2db   :  { %v6321_v8 = vadd.f32 %v9767_v29, %v5820_v0  ;;  %6083 = vmatpush1.bf16.msra.mxu0 %v8482_v53  ;;  %v8541_v48 = vld [vmem:[%s11344_s0 + $0x19c4] ss:$52 sps:$4 sm:$0xff]   ;;  %v8539_v52 = vld [vmem:[%s11344_s0 + $0x19c0] ss:$52 sps:$4 sm:$0xff]  }
 0x2dc   :  { %6124 = vmatpush1.bf16.msra.mxu1 %v8485_v54  ;;  %8618 = vtanh.f32 %v6320_v1  ;;  %6084 = vmatprep.subr.bf16.mxu0 %v8490_v18  ;;  %v8542_v53 = vld [vmem:[%s11344_s0 + $0x370] ss:$52 sps:$4 sm:$0xff]   ;;  %v8546_v63 = vld [vmem:[%s11344_s0 + $0x3d8] ss:$52 sps:$4 sm:$0xff]   ;;  %v8550_v1 = vld [vmem:[%s11344_s0 + $0x440] ss:$52 sps:$4 sm:$0xff]  }
 0x2dd   :  { %6125 = vmatprep.subr.bf16.mxu1 %v8493_v21  ;;  %8620 = vtanh.f32 %v6321_v8  ;;  %v8543_v54 = vld [vmem:[%s11344_s0 + $0x9f0] ss:$52 sps:$4 sm:$0xff]   ;;  %v8547_v18 = vld [vmem:[%s11344_s0 + $0xa58] ss:$52 sps:$4 sm:$0xff]   ;;  %v8551_v8 = vld [vmem:[%s11344_s0 + $0xac0] ss:$52 sps:$4 sm:$0xff]  }
 0x2de   :  { %v8544_v56 = vld [vmem:[%s11344_s0 + $0x30] ss:$52 sps:$4 sm:$0xff]   ;;  %v8548_v21 = vld [vmem:[%s11344_s0 + $0x98] ss:$52 sps:$4 sm:$0xff]  }
 0x2df   :  { %6085 = vmatpush1.bf16.msra.mxu0 %v8488_v9  ;;  %v8545_v62 = vld [vmem:[%s11344_s0 + $0x6b0] ss:$52 sps:$4 sm:$0xff]   ;;  %v8549_v0 = vld [vmem:[%s11344_s0 + $0x718] ss:$52 sps:$4 sm:$0xff]   ;;  %v8552_v9 = vld [vmem:[%s11344_s0 + $0x100] ss:$52 sps:$4 sm:$0xff]  }
 0x2e0   :  { %6126 = vmatpush1.bf16.msra.mxu1 %v8491_v57  ;;  %6086 = vmatprep.subr.bf16.mxu0 %v8496_v58  ;;  %v8553_v57 = vld [vmem:[%s11344_s0 + $0x780] ss:$52 sps:$4 sm:$0xff]   ;;  %v8554_v58 = vld [vmem:[%s11344_s0 + $0x4a8] ss:$52 sps:$4 sm:$0xff]  }
 0x2e1   :  { %6127 = vmatprep.subr.bf16.mxu1 %v8499_v15  ;;  %v8557_v15 = vld [vmem:[%s11344_s0 + $0x7e8] ss:$52 sps:$4 sm:$0xff]  }
 0x2e3   :  { %6087 = vmatpush1.bf16.msra.mxu0 %v8494_v19  ;;  %v8558_v19 = vld [vmem:[%s11344_s0 + $0x510] ss:$52 sps:$4 sm:$0xff]  }
 0x2e4   :  { %6128 = vmatpush1.bf16.msra.mxu1 %v8497_v20  ;;  %6088 = vmatprep.subr.bf16.mxu0 %v8502_v22  ;;  %v8559_v20 = vld [vmem:[%s11344_s0 + $0xb90] ss:$52 sps:$4 sm:$0xff]  }
 0x2e5   :  { %6129 = vmatprep.subr.bf16.mxu1 %v8505_v23  ;;  %v8560_v22 = vld [vmem:[%s11344_s0 + $0x1d0] ss:$52 sps:$4 sm:$0xff]  }
 0x2e6   :  { %v8619_v28 = vpop.eup %8618  ;;  %v8561_v23 = vld [vmem:[%s11344_s0 + $0x850] ss:$52 sps:$4 sm:$0xff]  }
 0x2e7   :  { %v8621_v30 = vpop.eup %8620  ;;  %6089 = vmatpush1.bf16.msra.mxu0 %v8500_v24  ;;  %v8562_v24 = vld [vmem:[%s11344_s0 + $0x578] ss:$52 sps:$4 sm:$0xff]  }
 0x2e8   :  { %6130 = vmatpush1.bf16.msra.mxu1 %v8503_v25  ;;  %v6356_v33 = vcombine.low %v8619_v28, %v8621_v30  ;;  %6090 = vmatprep.subr.bf16.mxu0 %v8508_v26  ;;  %v8563_v25 = vld [vmem:[%s11344_s0 + $0xbf8] ss:$52 sps:$4 sm:$0xff]   ;;  %v8566_v28 = vld [vmem:[%s11344_s0 + $0x5e0] ss:$52 sps:$4 sm:$0xff]  }
 0x2e9   :  { %6131 = vmatprep.subr.bf16.mxu1 %v8511_v27  ;;  %v8564_v26 = vld [vmem:[%s11344_s0 + $0x238] ss:$52 sps:$4 sm:$0xff]   ;;  %v8567_v30 = vld [vmem:[%s11344_s0 + $0xc60] ss:$52 sps:$4 sm:$0xff]  }
 0x2ea   :  { %v6384_v55 = vrot.slane %v6356_v33, %v10230_v3  ;;  %v8565_v27 = vld [vmem:[%s11344_s0 + $0x8b8] ss:$52 sps:$4 sm:$0xff]  }
 0x2eb   :  { %6091 = vmatpush1.bf16.msra.mxu0 %v8506_v31 }
 0x2ec   :  { %6132 = vmatpush1.bf16.msra.mxu1 %v8509_v32  ;;  %v6386_v39 = vcombine.low %v6377_v2, %v6384_v55  ;;  %6092 = vmatprep.subr.bf16.mxu0 %v8514_v34 }
 0x2ed   :  { %6133 = vmatprep.subr.bf16.mxu1 %v8517_v35 }
 0x2ee   :  { %v6400_v5 = vrot.slane %v6386_v39, %v10230_v3  ;;  %v8569_v39 = vld [vmem:[%s11344_s0 + $0x920] ss:$52 sps:$4 sm:$0xff]  }
 0x2ef   :  { %6093 = vmatpush1.bf16.msra.mxu0 %v8512_v38 }
 0x2f0   :  { %6134 = vmatpush1.bf16.msra.mxu1 %v8515_v61  ;;  %v6401_v42 = vcombine.low %v6393_v59, %v6400_v5  ;;  %6094 = vmatprep.subr.bf16.mxu0 %v8520_v12  ;;  %v8568_v61 = vld [vmem:[%s11344_s0 + $0x2a0] ss:$52 sps:$4 sm:$0xff]   ;;  %v8570_v59 = vld [vmem:[%s11344_s0 + $0x648] ss:$52 sps:$4 sm:$0xff]  }
 0x2f1   :  { %6135 = vmatprep.subr.bf16.mxu1 %v8523_v13  ;;  %v8571_v5 = vld [vmem:[%s11344_s0 + $0xcc8] ss:$52 sps:$4 sm:$0xff]  }
 0x2f2   :  { %6443 = vst [vmem:[%s11347_s3] sm:$0xff] %v6401_v42  ;;  %v8574_v42 = vld [vmem:[%s11344_s0 + $0x1070] ss:$52 sps:$4 sm:$0xff]  }
 0x2f3   :  { %6095 = vmatpush1.bf16.msra.mxu0 %v8518_v40  ;;  %v8572_v40 = vld [vmem:[%s11344_s0 + $0x308] ss:$52 sps:$4 sm:$0xff]  }
 0x2f4   :  { %6136 = vmatpush1.bf16.msra.mxu1 %v8521_v41  ;;  %6096 = vmatprep.subr.bf16.mxu0 %v8526_v60  ;;  %v8573_v41 = vld [vmem:[%s11344_s0 + $0x988] ss:$52 sps:$4 sm:$0xff]   ;;  %v8575_v60 = vld [vmem:[%s11344_s0 + $0x16f0] ss:$52 sps:$4 sm:$0xff]  }
 0x2f5   :  { %6137 = vmatprep.subr.bf16.mxu1 %v8529_v11  ;;  %v8576_v11 = vld [vmem:[%s11344_s0 + $0xd30] ss:$52 sps:$4 sm:$0xff]  }
 0x2f7   :  { %6097 = vmatpush1.bf16.msra.mxu0 %v8524_v14  ;;  %v8577_v14 = vld [vmem:[%s11344_s0 + $0x13b0] ss:$52 sps:$4 sm:$0xff]  }
 0x2f8   :  { %6138 = vmatpush1.bf16.msra.mxu1 %v8527_v43  ;;  %6098 = vmatprep.subr.bf16.mxu0 %v8532_v4  ;;  %v8578_v43 = vld [vmem:[%s11344_s0 + $0x10d8] ss:$52 sps:$4 sm:$0xff]  }
 0x2f9   :  { %6139 = vmatprep.subr.bf16.mxu1 %v8535_v10  ;;  %v8579_v4 = vld [vmem:[%s11344_s0 + $0x1758] ss:$52 sps:$4 sm:$0xff]  }
 0x2fa   :  { %v8580_v10 = vld [vmem:[%s11344_s0 + $0xd98] ss:$52 sps:$4 sm:$0xff]  }
 0x2fb   :  { %6099 = vmatpush1.bf16.msra.mxu0 %v8530_v44  ;;  %v8581_v44 = vld [vmem:[%s11344_s0 + $0x1418] ss:$52 sps:$4 sm:$0xff]  }
 0x2fc   :  { %6140 = vmatpush1.bf16.msra.mxu1 %v8533_v45  ;;  %6100 = vmatprep.subr.bf16.mxu0 %v8538_v46  ;;  %v8582_v45 = vld [vmem:[%s11344_s0 + $0x1140] ss:$52 sps:$4 sm:$0xff]  }
 0x2fd   :  { %6141 = vmatprep.subr.bf16.mxu1 %v8541_v48  ;;  %v8585_v46 = vld [vmem:[%s11344_s0 + $0x1480] ss:$52 sps:$4 sm:$0xff]   ;;  %v8586_v48 = vld [vmem:[%s11344_s0 + $0x11a8] ss:$52 sps:$4 sm:$0xff]  }
 0x2ff   :  { %6101 = vmatpush1.bf16.msra.mxu0 %v8536_v49  ;;  %v8589_v49 = vld [vmem:[%s11344_s0 + $0x14e8] ss:$52 sps:$4 sm:$0xff]  }
 0x300   :  { %6142 = vmatpush1.bf16.msra.mxu1 %v8539_v52  ;;  %7293 = vmatprep.subr.bf16.mxu0 %v8542_v53  ;;  %v8590_v52 = vld [vmem:[%s11344_s0 + $0x1210] ss:$52 sps:$4 sm:$0xff]  }
 0x301   :  { %7315 = vmatprep.subr.bf16.mxu1 %v8543_v54  ;;  %v8591_v53 = vld [vmem:[%s11344_s0 + $0x1890] ss:$52 sps:$4 sm:$0xff]  }
 0x302   :  { %6103 = vmatmul.mubr.bf16.vlgmr.msra.gmra.mrb[44].mxu0 %v9083_v16  ;;  %v8592_v54 = vld [vmem:[%s11344_s0 + $0xed0] ss:$52 sps:$4 sm:$0xff]  }
 0x303   :  { %6144 = vmatmul.mubr.bf16.vlgmr.msra.gmra.mrb[44].mxu1 %v9087_v17  ;;  %7294 = vmatpush3.bf16.msra.mxu0 %v8544_v56  ;;  %v8593_v56 = vld [vmem:[%s11344_s0 + $0x1550] ss:$52 sps:$4 sm:$0xff]  }
 0x304   :  { %7316 = vmatpush3.bf16.msra.mxu1 %v8545_v62  ;;  %7295 = vmatprep.subr.bf16.mxu0 %v8546_v63  ;;  %v8594_v62 = vld [vmem:[%s11344_s0 + $0x1278] ss:$52 sps:$4 sm:$0xff]  }
 0x305   :  { %7317 = vmatprep.subr.bf16.mxu1 %v8547_v18  ;;  %6184 = vmatprep.mubr.bf16.mxu0 %v8794_v47  ;;  %v8555_v47 = vld [vmem:[%s11344_s0 + $0xb28] ss:$52 sps:$4 sm:$0xff]   ;;  %v8595_v63 = vld [vmem:[%s11344_s0 + $0x18f8] ss:$52 sps:$4 sm:$0xff]  }
 0x306   :  { %6224 = vmatprep.mubr.bf16.mxu1 %v8805_v51  ;;  %v8556_v51 = vld [vmem:[%s11344_s0 + $0x168] ss:$52 sps:$4 sm:$0xff]   ;;  %v8596_v18 = vld [vmem:[%s11344_s0 + $0xf38] ss:$52 sps:$4 sm:$0xff]  }
 0x307   :  { %7296 = vmatpush3.bf16.msra.mxu0 %v8548_v21  ;;  %v8597_v21 = vld [vmem:[%s11344_s0 + $0x15b8] ss:$52 sps:$4 sm:$0xff]  }
 0x308   :  { %7318 = vmatpush3.bf16.msra.mxu1 %v8549_v0  ;;  %7297 = vmatprep.subr.bf16.mxu0 %v8550_v1  ;;  %v8598_v0 = vld [vmem:[%s11344_s0 + $0x12e0] ss:$52 sps:$4 sm:$0xff]  }
 0x309   :  { %7319 = vmatprep.subr.bf16.mxu1 %v8551_v8  ;;  %v8599_v1 = vld [vmem:[%s11344_s0 + $0x1960] ss:$52 sps:$4 sm:$0xff]  }
 0x30a   :  { %v8600_v8 = vld [vmem:[%s11344_s0 + $0xfa0] ss:$52 sps:$4 sm:$0xff]  }
 0x30b   :  { %7298 = vmatpush3.bf16.msra.mxu0 %v8552_v9  ;;  %v8601_v9 = vld [vmem:[%s11344_s0 + $0x1620] ss:$52 sps:$4 sm:$0xff]  }
 0x30c   :  { %7320 = vmatpush3.bf16.msra.mxu1 %v8553_v57  ;;  %7299 = vmatprep.subr.bf16.mxu0 %v8554_v58  ;;  %v8602_v57 = vld [vmem:[%s11344_s0 + $0x1348] ss:$52 sps:$4 sm:$0xff]  }
 0x30d   :  { %7321 = vmatprep.subr.bf16.mxu1 %v8555_v47  ;;  %v8603_v58 = vld [vmem:[%s11344_s0 + $0x19c8] ss:$52 sps:$4 sm:$0xff]  }
 0x30e   :  { %v8604_v47 = vld [vmem:[%s11344_s0 + $0x1008] ss:$52 sps:$4 sm:$0xff]  }
 0x30f   :  { %7300 = vmatpush3.bf16.msra.mxu0 %v8556_v51  ;;  %v8605_v51 = vld [vmem:[%s11344_s0 + $0x1688] ss:$52 sps:$4 sm:$0xff]  }
 0x310   :  { %7322 = vmatpush3.bf16.msra.mxu1 %v8557_v15  ;;  %7301 = vmatprep.subr.bf16.mxu0 %v8558_v19 }
 0x311   :  { %7323 = vmatprep.subr.bf16.mxu1 %v8559_v20 }
 0x313   :  { %7302 = vmatpush3.bf16.msra.mxu0 %v8560_v22 }
 0x314   :  { %7324 = vmatpush3.bf16.msra.mxu1 %v8561_v23  ;;  %7303 = vmatprep.subr.bf16.mxu0 %v8562_v24 }
 0x315   :  { %7325 = vmatprep.subr.bf16.mxu1 %v8563_v25  ;;  %v5858_v31 = vpop.f32.mrb[32].mxu0 }
 0x316   :  { %v5899_v32 = vpop.f32.mrb[32].mxu1  ;;  %v5860_v34 = vpop.f32.mrb[33].mxu0 }
 0x317   :  { %v11204_v33 = vadd.f32 %v5899_v32, %v5858_v31  ;;  %v5901_v35 = vpop.f32.mrb[33].mxu1  ;;  %v5862_v55 = vpop.f32.mrb[34].mxu0  ;;  %7304 = vmatpush3.bf16.msra.mxu0 %v8564_v26 }
 0x318   :  { %v11206_v2 = vadd.f32 %v5901_v35, %v5860_v34  ;;  %v5903_v38 = vpop.f32.mrb[34].mxu1  ;;  %7326 = vmatpush3.bf16.msra.mxu1 %v8565_v27  ;;  %v5863_v12 = vpop.f32.mrb[35].mxu0  ;;  %7305 = vmatprep.subr.bf16.mxu0 %v8566_v28 }
 0x319   :  { %v5904_v13 = vpop.f32.mrb[35].mxu1  ;;  %7327 = vmatprep.subr.bf16.mxu1 %v8567_v30 }
 0x31b   :  { %7306 = vmatpush3.bf16.msra.mxu0 %v8568_v61 }
 0x31c   :  { %7328 = vmatpush3.bf16.msra.mxu1 %v8569_v39  ;;  %7307 = vmatprep.subr.bf16.mxu0 %v8570_v59 }
 0x31d   :  { %7329 = vmatprep.subr.bf16.mxu1 %v8571_v5 }
 0x31f   :  { %7308 = vmatpush3.bf16.msra.mxu0 %v8572_v40 }
 0x320   :  { %7330 = vmatpush3.bf16.msra.mxu1 %v8573_v41  ;;  %7337 = vmatprep.subr.bf16.mxu0 %v8574_v42 }
 0x321   :  { %7359 = vmatprep.subr.bf16.mxu1 %v8575_v60 }
 0x322   :  { %6185 = vmatmul.mubr.bf16.vlgmr.msra.gmra.mrb[48].mxu0 %v8863_v6  ;;  %v8583_v6 = vld [vmem:[%s11344_s0 + $0x17c0] ss:$52 sps:$4 sm:$0xff]  }
 0x323   :  { %6225 = vmatmul.mubr.bf16.vlgmr.msra.gmra.mrb[48].mxu1 %v8865_v7  ;;  %7338 = vmatpush3.bf16.msra.mxu0 %v8576_v11  ;;  %v8584_v7 = vld [vmem:[%s11344_s0 + $0xe00] ss:$52 sps:$4 sm:$0xff]  }
 0x324   :  { %7360 = vmatpush3.bf16.msra.mxu1 %v8577_v14  ;;  %7339 = vmatprep.subr.bf16.mxu0 %v8578_v43 }
 0x325   :  { %7361 = vmatprep.subr.bf16.mxu1 %v8579_v4  ;;  %6264 = vmatprep.mubr.bf16.mxu0 %v8959_v36  ;;  %v8587_v36 = vld [vmem:[%s11344_s0 + $0x1828] ss:$52 sps:$4 sm:$0xff]  }
 0x326   :  { %6304 = vmatprep.mubr.bf16.mxu1 %v8963_v37  ;;  %v8588_v37 = vld [vmem:[%s11344_s0 + $0xe68] ss:$52 sps:$4 sm:$0xff]  }
 0x327   :  { %7340 = vmatpush3.bf16.msra.mxu0 %v8580_v10 }
 0x328   :  { %7362 = vmatpush3.bf16.msra.mxu1 %v8581_v44  ;;  %7341 = vmatprep.subr.bf16.mxu0 %v8582_v45 }
 0x329   :  { %7363 = vmatprep.subr.bf16.mxu1 %v8583_v6 }
 0x32b   :  { %7342 = vmatpush3.bf16.msra.mxu0 %v8584_v7 }
 0x32c   :  { %7364 = vmatpush3.bf16.msra.mxu1 %v8585_v46  ;;  %7343 = vmatprep.subr.bf16.mxu0 %v8586_v48 }
 0x32d   :  { %7365 = vmatprep.subr.bf16.mxu1 %v8587_v36 }
 0x32f   :  { %7344 = vmatpush3.bf16.msra.mxu0 %v8588_v37 }
 0x330   :  { %7366 = vmatpush3.bf16.msra.mxu1 %v8589_v49  ;;  %7345 = vmatprep.subr.bf16.mxu0 %v8590_v52 }
 0x331   :  { %7367 = vmatprep.subr.bf16.mxu1 %v8591_v53 }
 0x333   :  { %7346 = vmatpush3.bf16.msra.mxu0 %v8592_v54 }
 0x334   :  { %7368 = vmatpush3.bf16.msra.mxu1 %v8593_v56  ;;  %7347 = vmatprep.subr.bf16.mxu0 %v8594_v62 }
 0x335   :  { %7369 = vmatprep.subr.bf16.mxu1 %v8595_v63 }
 0x337   :  { %7348 = vmatpush3.bf16.msra.mxu0 %v8596_v18 }
 0x338   :  { %7370 = vmatpush3.bf16.msra.mxu1 %v8597_v21  ;;  %7349 = vmatprep.subr.bf16.mxu0 %v8598_v0 }
 0x339   :  { %7371 = vmatprep.subr.bf16.mxu1 %v8599_v1 }
 0x33b   :  { %7350 = vmatpush3.bf16.msra.mxu0 %v8600_v8 }
 0x33c   :  { %7372 = vmatpush3.bf16.msra.mxu1 %v8601_v9  ;;  %7351 = vmatprep.subr.bf16.mxu0 %v8602_v57 }
 0x33d   :  { %7373 = vmatprep.subr.bf16.mxu1 %v8603_v58 }
 0x33f   :  { %7352 = vmatpush3.bf16.msra.mxu0 %v8604_v47 }
 0x340   :  { %7374 = vmatpush3.bf16.msra.mxu1 %v8605_v51 }
 0x342   :  { %6265 = vmatmul.mubr.bf16.vlgmr.msra.gmra.mrb[52].mxu0 %v9083_v16 }
 0x343   :  { %6305 = vmatmul.mubr.bf16.vlgmr.msra.gmra.mrb[52].mxu1 %v9087_v17 }
 0x355   :  { %v5940_v15 = vpop.f32.mrb[36].mxu0 }
 0x356   :  { %v5981_v19 = vpop.f32.mrb[36].mxu1  ;;  %v5941_v20 = vadd.f32 %v5940_v15, %v11204_v33  ;;  %v5942_v22 = vpop.f32.mrb[37].mxu0 }
 0x357   :  { %v5983_v23 = vpop.f32.mrb[37].mxu1  ;;  %v5943_v24 = vadd.f32 %v5942_v22, %v11206_v2  ;;  %v5944_v25 = vpop.f32.mrb[38].mxu0 }
 0x358   :  { %v5985_v26 = vpop.f32.mrb[38].mxu1  ;;  %v5982_v27 = vadd.f32 %v5981_v19, %v5941_v20  ;;  %v5945_v28 = vpop.f32.mrb[39].mxu0 }
 0x359   :  { %v5986_v30 = vpop.f32.mrb[39].mxu1  ;;  %v5984_v31 = vadd.f32 %v5983_v23, %v5943_v24 }
 0x35a   :  { %v6322_v32 = vadd.f32 %v9767_v29, %v5982_v27 }
 0x35b   :  { %v6323_v16 = vadd.f32 %v9767_v29, %v5984_v31 }
 0x35c   :  { %8622 = vtanh.f32 %v6322_v32 }
 0x35d   :  { %8624 = vtanh.f32 %v6323_v16 }
 0x366   :  { %v8623_v17 = vpop.eup %8622 }
 0x367   :  { %v8625_v34 = vpop.eup %8624 }
 0x368   :  { %v6402_v35 = vcombine.low %v8623_v17, %v8625_v34 }
 0x36a   :  { %v6410_v49 = vrot.slane %v6402_v35, %v10230_v3 }
 0x395   :  { %v6022_v33 = vpop.f32.mrb[40].mxu0 }
 0x396   :  { %v6063_v55 = vpop.f32.mrb[40].mxu1  ;;  %v6024_v61 = vpop.f32.mrb[41].mxu0 }
 0x397   :  { %v6064_v38 = vadd.f32 %v6063_v55, %v6022_v33  ;;  %v6065_v2 = vpop.f32.mrb[41].mxu1  ;;  %v6026_v12 = vpop.f32.mrb[42].mxu0 }
 0x398   :  { %v6066_v39 = vadd.f32 %v6065_v2, %v6024_v61  ;;  %v6067_v13 = vpop.f32.mrb[42].mxu1  ;;  %v6027_v59 = vpop.f32.mrb[43].mxu0 }
 0x399   :  { %v6068_v5 = vpop.f32.mrb[43].mxu1 }
 0x3d5   :  { %v6104_v40 = vpop.f32.mrb[44].mxu0 }
 0x3d6   :  { %v6145_v41 = vpop.f32.mrb[44].mxu1  ;;  %v6105_v42 = vadd.f32 %v6104_v40, %v6064_v38  ;;  %v6106_v60 = vpop.f32.mrb[45].mxu0 }
 0x3d7   :  { %v6147_v11 = vpop.f32.mrb[45].mxu1  ;;  %v6107_v14 = vadd.f32 %v6106_v60, %v6066_v39  ;;  %v6108_v43 = vpop.f32.mrb[46].mxu0 }
 0x3d8   :  { %v6149_v4 = vpop.f32.mrb[46].mxu1  ;;  %v6146_v10 = vadd.f32 %v6145_v41, %v6105_v42  ;;  %v6109_v44 = vpop.f32.mrb[47].mxu0 }
 0x3d9   :  { %v6150_v45 = vpop.f32.mrb[47].mxu1  ;;  %v6148_v6 = vadd.f32 %v6147_v11, %v6107_v14 }
 0x3da   :  { %v6324_v7 = vadd.f32 %v9767_v29, %v6146_v10 }
 0x3db   :  { %v6325_v46 = vadd.f32 %v9767_v29, %v6148_v6 }
 0x3dc   :  { %8626 = vtanh.f32 %v6324_v7 }
 0x3dd   :  { %8628 = vtanh.f32 %v6325_v46 }
 0x3e6   :  { %v8627_v48 = vpop.eup %8626 }
 0x3e7   :  { %v8629_v36 = vpop.eup %8628 }
 0x3e8   :  { %v6403_v37 = vcombine.low %v8627_v48, %v8629_v36 }
 0x3ea   :  { %v6417_v52 = vrot.slane %v6403_v37, %v10230_v3 }
 0x3ec   :  { %v6425_v53 = vcombine.low %v6410_v49, %v6417_v52 }
 0x3ee   :  { %v6432_v32 = vrot.slane %v6425_v53, %v10230_v3 }
 0x3f5   :  { %v7309_v54 = vpop.f32.mrb[48].mxu0 }
 0x3f6   :  { %v7331_v56 = vpop.f32.mrb[48].mxu1  ;;  %v7310_v62 = vpop.f32.mrb[49].mxu0 }
 0x3f7   :  { %v7332_v63 = vpop.f32.mrb[49].mxu1  ;;  %v7311_v18 = vadd.f32 %v7310_v62, %v7309_v54  ;;  %v7312_v0 = vpop.f32.mrb[50].mxu0 }
 0x3f8   :  { %v7333_v21 = vadd.f32 %v7332_v63, %v7331_v56  ;;  %v7334_v1 = vpop.f32.mrb[50].mxu1  ;;  %v7313_v8 = vpop.f32.mrb[51].mxu0 }
 0x3f9   :  { %v7335_v9 = vpop.f32.mrb[51].mxu1 }
 0x3fa   :  { %v6227_v57 = vadd.f32 %v7333_v21, %v7311_v18 }
 0x415   :  { %v7353_v58 = vpop.f32.mrb[52].mxu0 }
 0x416   :  { %v7375_v47 = vpop.f32.mrb[52].mxu1  ;;  %v7354_v51 = vpop.f32.mrb[53].mxu0 }
 0x417   :  { %v7376_v15 = vpop.f32.mrb[53].mxu1  ;;  %v7355_v19 = vadd.f32 %v7354_v51, %v7353_v58  ;;  %v7356_v22 = vpop.f32.mrb[54].mxu0 }
 0x418   :  { %v7377_v20 = vadd.f32 %v7376_v15, %v7375_v47  ;;  %v7378_v23 = vpop.f32.mrb[54].mxu1  ;;  %v7357_v24 = vpop.f32.mrb[55].mxu0 }
 0x419   :  { %v7379_v25 = vpop.f32.mrb[55].mxu1  ;;  %v6267_v26 = vadd.f32 %v7355_v19, %v6227_v57 }
 0x41b   :  { %v6307_v27 = vadd.f32 %v7377_v20, %v6267_v26 }
 0x41d   :  { %v6326_v28 = vadd.f32 %v9767_v29, %v6307_v27 }
 0x41f   :  { %8630 = vtanh.f32 %v6326_v28 }
 0x429   :  { %v8631_v30 = vpop.eup %8630 }
 0x42a   :  { %v6424_v31 = vrot.slane %v8631_v30, %v10230_v3 }
 0x42c   :  { %v6439_v16 = vrot.slane %v6424_v31, %v10230_v3 }
 0x42e   :  { %v6440_v17 = vcombine.low %v6432_v32, %v6439_v16 }
 0x430   :  { %6448 = vst.msk [vmem:[%s11347_s3 + $0x8] sm:$0x1f] %vm6446_vm0, %v6440_v17 }

</bundles_post_ra>
